<compile_context>
chip_gen: v5e
topology: v5e:2x2
jax: 0.10.0
libtpu: 0.0.40
codegen_flags: <defaults>
</compile_context>

<pallas_src>
import math
from functools import partial

import jax
import jax.numpy as jnp
from jax.experimental import pallas as pl
from jax.experimental.pallas import tpu as pltpu

NEG_INF = -1e9  # additive mask value (finite; no fully-masked key rows here)


# ----------------------------- BlockSpec helpers -----------------------------

def _stacked_spec(shape):
    """Weight stacked along a leading layer axis; squeeze that axis in-kernel."""
    rest = len(shape) - 1
    return pl.BlockSpec((None,) + tuple(shape[1:]),
                        lambda l, _r=rest: (l,) + (0,) * _r)


def _const_spec(shape):
    """Whole-array block, constant across the layer grid (activations / fc_out)."""
    n = len(shape)
    return pl.BlockSpec(tuple(shape), lambda l, _n=n: (0,) * _n)


# --------------------------- in-kernel building blocks ------------------------

def _layernorm(x2, g, b, eps=1e-5):
    """x2: (M, D); g, b: (1, D). Post-LN with PyTorch eps."""
    mean = jnp.mean(x2, axis=-1, keepdims=True)
    c = x2 - mean
    var = jnp.mean(c * c, axis=-1, keepdims=True)
    return c * jax.lax.rsqrt(var + eps) * g + b


def _attention(q2, k2, v2, B, Sq, Sk, H, bias, out_w, out_b):
    """Multi-head attention + output projection (all heads, one invocation).

    q2: (B*Sq, D); k2, v2: (B*Sk, D); bias: (B, Sq, Sk) or (B, 1, Sk) additive;
    out_w: (D, D); out_b: (1, D).  Returns (B*Sq, D).
    Per-head outputs are concatenated once so the out-projection is a single
    K=D matmul (no four K=hd matmuls / no out_w slicing).
    """
    D = q2.shape[-1]
    hd = D // H
    scale = 1.0 / math.sqrt(hd)
    q3 = q2.reshape(B, Sq, D)
    k3 = k2.reshape(B, Sk, D)
    v3 = v2.reshape(B, Sk, D)
    o_heads = []
    for h in range(H):  # static unroll (H = 4)
        lo = h * hd
        s = jnp.einsum("bqd,bkd->bqk", q3[:, :, lo:lo + hd], k3[:, :, lo:lo + hd],
                       preferred_element_type=jnp.float32)
        s = s * scale + bias
        m = jnp.max(s, axis=-1, keepdims=True)
        p = jnp.exp(s - m)
        p = p / jnp.sum(p, axis=-1, keepdims=True)   # exact divide (PyTorch parity)
        o_heads.append(jnp.einsum("bqk,bkd->bqd", p, v3[:, :, lo:lo + hd],
                                  preferred_element_type=jnp.float32))
    o = jnp.concatenate(o_heads, axis=-1).reshape(B * Sq, D)
    return jnp.dot(o, out_w, preferred_element_type=jnp.float32) + out_b


def _ffn(x2, lin1_w_ref, lin1_b_ref, lin2_w_ref, lin2_b_ref, chunk=512):
    """ReLU FFN, chunked over the hidden axis to bound live vregs."""
    M, D = x2.shape
    F = lin1_w_ref.shape[-1]
    y = jnp.zeros((M, D), jnp.float32) + lin2_b_ref[...]
    for c0 in range(0, F, chunk):  # static unroll (F=2048 -> 4 chunks)
        w1 = lin1_w_ref[:, c0:c0 + chunk]
        b1 = lin1_b_ref[:, c0:c0 + chunk]
        w2 = lin2_w_ref[c0:c0 + chunk, :]
        h = jnp.maximum(jnp.dot(x2, w1, preferred_element_type=jnp.float32) + b1, 0.0)
        y = y + jnp.dot(h, w2, preferred_element_type=jnp.float32)
    return y


# ------------------------------ fused stack kernels ---------------------------

def _encoder_stack_kernel(x_ref, kpm_ref,
                          q_w_ref, q_b_ref, k_w_ref, k_b_ref, v_w_ref, v_b_ref,
                          out_w_ref, out_b_ref,
                          lin1_w_ref, lin1_b_ref, lin2_w_ref, lin2_b_ref,
                          ln1_g_ref, ln1_b_ref, ln2_g_ref, ln2_b_ref,
                          o_ref, carry_ref, *, nhead):
    l = pl.program_id(0)
    B, S, D = x_ref.shape

    @pl.when(l == 0)
    def _():
        carry_ref[...] = x_ref[...]

    x2 = carry_ref[...].reshape(B * S, D)

    # separate Q/K/V projections (lane-aligned outputs, no sub-128 slicing)
    q2 = jnp.dot(x2, q_w_ref[...], preferred_element_type=jnp.float32) + q_b_ref[...]
    k2 = jnp.dot(x2, k_w_ref[...], preferred_element_type=jnp.float32) + k_b_ref[...]
    v2 = jnp.dot(x2, v_w_ref[...], preferred_element_type=jnp.float32) + v_b_ref[...]

    attn = _attention(q2, k2, v2, B, S, S, nhead, kpm_ref[...],
                      out_w_ref[...], out_b_ref[...])
    x2 = _layernorm(x2 + attn, ln1_g_ref[...], ln1_b_ref[...])

    y = _ffn(x2, lin1_w_ref, lin1_b_ref, lin2_w_ref, lin2_b_ref)
    x2 = _layernorm(x2 + y, ln2_g_ref[...], ln2_b_ref[...])

    out3 = x2.reshape(B, S, D)
    carry_ref[...] = out3

    @pl.when(l == pl.num_programs(0) - 1)
    def _():
        o_ref[...] = out3


def _decoder_stack_kernel(y_ref, mem_ref, tgt_bias_ref, mem_kpm_ref,
                          sa_q_w_ref, sa_q_b_ref, sa_k_w_ref, sa_k_b_ref,
                          sa_v_w_ref, sa_v_b_ref, sa_out_w_ref, sa_out_b_ref,
                          ca_q_w_ref, ca_q_b_ref, ca_k_w_ref, ca_k_b_ref,
                          ca_v_w_ref, ca_v_b_ref, ca_out_w_ref, ca_out_b_ref,
                          lin1_w_ref, lin1_b_ref, lin2_w_ref, lin2_b_ref,
                          ln1_g_ref, ln1_b_ref, ln2_g_ref, ln2_b_ref,
                          ln3_g_ref, ln3_b_ref,
                          fc_w_ref, fc_b_ref,
                          logits_ref, carry_ref, *, nhead):
    l = pl.program_id(0)
    B, St, D = y_ref.shape
    Ss = mem_ref.shape[1]
    NL = fc_w_ref.shape[1]

    @pl.when(l == 0)
    def _():
        carry_ref[...] = y_ref[...]

    x2 = carry_ref[...].reshape(B * St, D)
    m2 = mem_ref[...].reshape(B * Ss, D)

    # --- masked self-attention (causal + tgt key padding, precomputed bias) ---
    q2 = jnp.dot(x2, sa_q_w_ref[...], preferred_element_type=jnp.float32) + sa_q_b_ref[...]
    k2 = jnp.dot(x2, sa_k_w_ref[...], preferred_element_type=jnp.float32) + sa_k_b_ref[...]
    v2 = jnp.dot(x2, sa_v_w_ref[...], preferred_element_type=jnp.float32) + sa_v_b_ref[...]
    sa = _attention(q2, k2, v2, B, St, St, nhead, tgt_bias_ref[...],
                    sa_out_w_ref[...], sa_out_b_ref[...])
    x2 = _layernorm(x2 + sa, ln1_g_ref[...], ln1_b_ref[...])

    # --- cross-attention over encoder memory ---
    q2 = jnp.dot(x2, ca_q_w_ref[...], preferred_element_type=jnp.float32) + ca_q_b_ref[...]
    k2 = jnp.dot(m2, ca_k_w_ref[...], preferred_element_type=jnp.float32) + ca_k_b_ref[...]
    v2 = jnp.dot(m2, ca_v_w_ref[...], preferred_element_type=jnp.float32) + ca_v_b_ref[...]
    ca = _attention(q2, k2, v2, B, St, Ss, nhead, mem_kpm_ref[...],
                    ca_out_w_ref[...], ca_out_b_ref[...])
    x2 = _layernorm(x2 + ca, ln2_g_ref[...], ln2_b_ref[...])

    # --- FFN (ReLU) ---
    y = _ffn(x2, lin1_w_ref, lin1_b_ref, lin2_w_ref, lin2_b_ref)
    x2 = _layernorm(x2 + y, ln3_g_ref[...], ln3_b_ref[...])

    carry_ref[...] = x2.reshape(B, St, D)

    # --- fc_out epilogue on the final layer step (lane-dense 128-wide out) ---
    @pl.when(l == pl.num_programs(0) - 1)
    def _():
        logits = jnp.dot(x2, fc_w_ref[...], preferred_element_type=jnp.float32) + fc_b_ref[...]
        logits_ref[...] = logits.reshape(B, St, NL)


# ------------------------------- stack wrappers -------------------------------

def encoder_stack(x, src_bias, w, nhead):
    B, S, D = x.shape
    L = w["q_w"].shape[0]
    operands = (x, src_bias,
                w["q_w"], w["q_b"], w["k_w"], w["k_b"], w["v_w"], w["v_b"],
                w["out_w"], w["out_b"],
                w["lin1_w"], w["lin1_b"], w["lin2_w"], w["lin2_b"],
                w["ln1_g"], w["ln1_b"], w["ln2_g"], w["ln2_b"])
    in_specs = [_const_spec(x.shape), _const_spec(src_bias.shape)]
    in_specs += [_stacked_spec(o.shape) for o in operands[2:]]
    return pl.pallas_call(
        partial(_encoder_stack_kernel, nhead=nhead),
        out_shape=jax.ShapeDtypeStruct((B, S, D), jnp.float32),
        grid=(L,),
        in_specs=in_specs,
        out_specs=_const_spec((B, S, D)),
        scratch_shapes=[pltpu.VMEM((B, S, D), jnp.float32)],
        compiler_params=pltpu.CompilerParams(dimension_semantics=("arbitrary",)),
    )(*operands)


def decoder_stack(y, memory, tgt_bias, mem_bias, w, fc_w, fc_b, nhead):
    B, St, D = y.shape
    L = w["sa_q_w"].shape[0]
    NL = fc_w.shape[1]
    operands = (y, memory, tgt_bias, mem_bias,
                w["sa_q_w"], w["sa_q_b"], w["sa_k_w"], w["sa_k_b"],
                w["sa_v_w"], w["sa_v_b"], w["sa_out_w"], w["sa_out_b"],
                w["ca_q_w"], w["ca_q_b"], w["ca_k_w"], w["ca_k_b"],
                w["ca_v_w"], w["ca_v_b"], w["ca_out_w"], w["ca_out_b"],
                w["lin1_w"], w["lin1_b"], w["lin2_w"], w["lin2_b"],
                w["ln1_g"], w["ln1_b"], w["ln2_g"], w["ln2_b"],
                w["ln3_g"], w["ln3_b"],
                fc_w, fc_b)
    in_specs = [_const_spec(y.shape), _const_spec(memory.shape),
                _const_spec(tgt_bias.shape), _const_spec(mem_bias.shape)]
    in_specs += [_stacked_spec(o.shape) for o in operands[4:30]]
    in_specs += [_const_spec(fc_w.shape), _const_spec(fc_b.shape)]
    return pl.pallas_call(
        partial(_decoder_stack_kernel, nhead=nhead),
        out_shape=jax.ShapeDtypeStruct((B, St, NL), jnp.float32),
        grid=(L,),
        in_specs=in_specs,
        out_specs=_const_spec((B, St, NL)),
        scratch_shapes=[pltpu.VMEM((B, St, D), jnp.float32)],
        compiler_params=pltpu.CompilerParams(dimension_semantics=("arbitrary",)),
    )(*operands)


# --------------------------------- model glue ---------------------------------

def sinusoidal_pe(max_len, d_model):
    position = jnp.arange(max_len, dtype=jnp.float32)[:, None]
    div_term = jnp.exp(jnp.arange(0, d_model, 2, dtype=jnp.float32)
                       * (-math.log(10000.0) / d_model))
    pe = jnp.zeros((max_len, d_model), jnp.float32)
    pe = pe.at[:, 0::2].set(jnp.sin(position * div_term))
    pe = pe.at[:, 1::2].set(jnp.cos(position * div_term))
    return pe


def _kpm_bias(kpm, B, Sk):
    """PyTorch convention: True = padded key (masked). Returns (B, 1, Sk) f32 bias."""
    if kpm is None:
        return jnp.zeros((B, 1, Sk), jnp.float32)
    return jnp.where(kpm, NEG_INF, 0.0).astype(jnp.float32).reshape(B, 1, Sk)


def _tgt_bias(tgt_kpm, B, St):
    """Causal (triu) + target key-padding additive bias, built once: (B, St, St)."""
    causal = jnp.where(jnp.arange(St)[None, :] > jnp.arange(St)[:, None],
                       NEG_INF, 0.0).astype(jnp.float32)
    return _kpm_bias(tgt_kpm, B, St) + causal[None, :, :]


def hangman_transformer(params, src, tgt, src_kpm=None, tgt_kpm=None, *, nhead=4):
    pe = params["pe"]
    B, Ss = src.shape
    St = tgt.shape[1]

    # masks -> tiny additive biases, built ONCE and reused by every layer
    src_bias = _kpm_bias(src_kpm, B, Ss)   # also the memory_key_padding bias
    tgt_bias = _tgt_bias(tgt_kpm, B, St)   # causal + tgt key padding

    # --- encoder (embedding gather + PE add stay in plain JAX) ---
    x = params["enc_embed"][src] + pe[None, :Ss, :]
    memory = encoder_stack(x, src_bias, params["enc"], nhead)

    # --- decoder + fc_out epilogue (single fused call) ---
    y = params["dec_embed"][tgt] + pe[None, :St, :]
    logits_pad = decoder_stack(y, memory, tgt_bias, src_bias, params["dec"],
                               params["fc_out_w"], params["fc_out_b"], nhead)
    return logits_pad[..., :26]


# ------------------------- deterministic init -----------------------------
# Per-layer weights are stacked along a leading layer axis, stored in
# (in_features, out_features) layout; biases / LN params as (L, 1, N).

def init_params(key, vocab_size, d_model, nhead, num_layers, max_len, dim_feedforward):
    keys = iter(jax.random.split(key, 256))
    nxt = lambda: next(keys)
    D, F, L = d_model, dim_feedforward, num_layers

    def rand(shape):
        return jax.random.normal(nxt(), shape, jnp.float32) * 0.02

    def ln_pair():
        return jnp.ones((L, 1, D), jnp.float32), jnp.zeros((L, 1, D), jnp.float32)

    def common():
        p = {"q_w": rand((L, D, D)), "q_b": rand((L, 1, D)),
             "k_w": rand((L, D, D)), "k_b": rand((L, 1, D)),
             "v_w": rand((L, D, D)), "v_b": rand((L, 1, D)),
             "out_w": rand((L, D, D)), "out_b": rand((L, 1, D)),
             "lin1_w": rand((L, D, F)), "lin1_b": rand((L, 1, F)),
             "lin2_w": rand((L, F, D)), "lin2_b": rand((L, 1, D))}
        p["ln1_g"], p["ln1_b"] = ln_pair()
        p["ln2_g"], p["ln2_b"] = ln_pair()
        return p

    enc = common()

    dc = common()
    dec = {"sa_q_w": dc["q_w"], "sa_q_b": dc["q_b"],
           "sa_k_w": dc["k_w"], "sa_k_b": dc["k_b"],
           "sa_v_w": dc["v_w"], "sa_v_b": dc["v_b"],
           "sa_out_w": dc["out_w"], "sa_out_b": dc["out_b"],
           "ca_q_w": rand((L, D, D)), "ca_q_b": rand((L, 1, D)),
           "ca_k_w": rand((L, D, D)), "ca_k_b": rand((L, 1, D)),
           "ca_v_w": rand((L, D, D)), "ca_v_b": rand((L, 1, D)),
           "ca_out_w": rand((L, D, D)), "ca_out_b": rand((L, 1, D)),
           "lin1_w": dc["lin1_w"], "lin1_b": dc["lin1_b"],
           "lin2_w": dc["lin2_w"], "lin2_b": dc["lin2_b"],
           "ln1_g": dc["ln1_g"], "ln1_b": dc["ln1_b"],
           "ln2_g": dc["ln2_g"], "ln2_b": dc["ln2_b"]}
    dec["ln3_g"], dec["ln3_b"] = ln_pair()

    # fc_out padded to 128 output lanes (extra columns zero; sliced off in JAX)
    fc_w = jnp.zeros((D, 128), jnp.float32).at[:, :26].set(rand((D, 26)))
    fc_b = jnp.zeros((1, 128), jnp.float32).at[:, :26].set(rand((1, 26)))

    return {
        "enc_embed": rand((vocab_size, D)),
        "dec_embed": rand((vocab_size, D)),
        "pe": sinusoidal_pe(max_len, D),
        "enc": enc, "dec": dec,
        "fc_out_w": fc_w, "fc_out_b": fc_b,
    }


# --------------------------------- main ------------------------------------

if __name__ == "__main__":
    # TODO(synk): dropout layers are identity here (eval-mode semantics).
    vocab_size = 29
    d_model = 32
    nhead = 4
    num_layers = 2
    max_len = 16
    dim_feedforward = 2048   # nn.TransformerEncoder/DecoderLayer default
    B, S_src, S_tgt = 2, 8, 8

    key = jax.random.PRNGKey(0)
    kp, ks, kt = jax.random.split(key, 3)
    params = init_params(kp, vocab_size, d_model, nhead, num_layers, max_len,
                         dim_feedforward)

    src = jax.random.randint(ks, (B, S_src), 0, vocab_size)
    tgt = jax.random.randint(kt, (B, S_tgt), 0, vocab_size)
    # PyTorch convention: True = padded position (ignored as attention key)
    src_kpm = jnp.zeros((B, S_src), dtype=bool).at[:, -2:].set(True)
    tgt_kpm = jnp.zeros((B, S_tgt), dtype=bool)

    fwd = jax.jit(partial(hangman_transformer, nhead=nhead))
    out = fwd(params, src, tgt, src_kpm, tgt_kpm)
    jax.block_until_ready(out)
    assert out.shape == (B, S_tgt, 26) and out.dtype == jnp.float32
    print("KERNEL_OK")
</pallas_src>

<mosaic_0001>
module attributes {stable_mosaic.version = 11 : i64} {
  func.func @_encoder_stack_kernel(%arg0: i32, %arg1: memref<2x8x32xf32, #tpu.memory_space<vmem>>, %arg2: memref<2x1x8xf32, #tpu.memory_space<vmem>>, %arg3: memref<1x32x32xf32, #tpu.memory_space<vmem>>, %arg4: memref<1x1x32xf32, #tpu.memory_space<vmem>>, %arg5: memref<1x32x32xf32, #tpu.memory_space<vmem>>, %arg6: memref<1x1x32xf32, #tpu.memory_space<vmem>>, %arg7: memref<1x32x32xf32, #tpu.memory_space<vmem>>, %arg8: memref<1x1x32xf32, #tpu.memory_space<vmem>>, %arg9: memref<1x32x32xf32, #tpu.memory_space<vmem>>, %arg10: memref<1x1x32xf32, #tpu.memory_space<vmem>>, %arg11: memref<1x32x2048xf32, #tpu.memory_space<vmem>>, %arg12: memref<1x1x2048xf32, #tpu.memory_space<vmem>>, %arg13: memref<1x2048x32xf32, #tpu.memory_space<vmem>>, %arg14: memref<1x1x32xf32, #tpu.memory_space<vmem>>, %arg15: memref<1x1x32xf32, #tpu.memory_space<vmem>>, %arg16: memref<1x1x32xf32, #tpu.memory_space<vmem>>, %arg17: memref<1x1x32xf32, #tpu.memory_space<vmem>>, %arg18: memref<1x1x32xf32, #tpu.memory_space<vmem>>, %arg19: memref<2x8x32xf32, #tpu.memory_space<vmem>>, %arg20: memref<2x8x32xf32, #tpu.memory_space<vmem>>) attributes {dimension_semantics = [#tpu.dimension_semantics<arbitrary>], iteration_bounds = array<i64: 2>, scalar_prefetch = 0 : i64, scratch_operands = 1 : i64, tpu.core_type = #tpu.core_type<tc>, window_params = [{pipeline_mode = #tpu.pipeline_mode<synchronous>, transform_indices = @transform_0, window_bounds = array<i64: 2, 8, 32>}, {pipeline_mode = #tpu.pipeline_mode<synchronous>, transform_indices = @transform_1, window_bounds = array<i64: 2, 1, 8>}, {transform_indices = @transform_2, window_bounds = array<i64: 1, 32, 32>}, {transform_indices = @transform_3, window_bounds = array<i64: 1, 1, 32>}, {transform_indices = @transform_4, window_bounds = array<i64: 1, 32, 32>}, {transform_indices = @transform_5, window_bounds = array<i64: 1, 1, 32>}, {transform_indices = @transform_6, window_bounds = array<i64: 1, 32, 32>}, {transform_indices = @transform_7, window_bounds = array<i64: 1, 1, 32>}, {transform_indices = @transform_8, window_bounds = array<i64: 1, 32, 32>}, {transform_indices = @transform_9, window_bounds = array<i64: 1, 1, 32>}, {transform_indices = @transform_10, window_bounds = array<i64: 1, 32, 2048>}, {transform_indices = @transform_11, window_bounds = array<i64: 1, 1, 2048>}, {transform_indices = @transform_12, window_bounds = array<i64: 1, 2048, 32>}, {transform_indices = @transform_13, window_bounds = array<i64: 1, 1, 32>}, {transform_indices = @transform_14, window_bounds = array<i64: 1, 1, 32>}, {transform_indices = @transform_15, window_bounds = array<i64: 1, 1, 32>}, {transform_indices = @transform_16, window_bounds = array<i64: 1, 1, 32>}, {transform_indices = @transform_17, window_bounds = array<i64: 1, 1, 32>}, {pipeline_mode = #tpu.pipeline_mode<synchronous>, transform_indices = @transform_18, window_bounds = array<i64: 2, 8, 32>}]} {
    %c0_i32 = arith.constant 0 : i32
    %0 = arith.cmpi eq, %arg0, %c0_i32 : i32
    %1 = arith.extui %0 : i1 to i32
    %c0_i32_0 = arith.constant 0 : i32
    %2 = arith.cmpi ne, %1, %c0_i32_0 : i32
    scf.if %2 {
      %c0_128 = arith.constant 0 : index
      %c0_129 = arith.constant 0 : index
      %c0_130 = arith.constant 0 : index
      %223 = vector.load %arg1[%c0_128, %c0_129, %c0_130] : memref<2x8x32xf32, #tpu.memory_space<vmem>>, vector<2x8x32xf32>
      %c0_131 = arith.constant 0 : index
      %c0_132 = arith.constant 0 : index
      %c0_133 = arith.constant 0 : index
      %224 = vector.load %arg20[%c0_131, %c0_132, %c0_133] : memref<2x8x32xf32, #tpu.memory_space<vmem>>, vector<2x8x32xf32>
      tpu.vector_store %arg20[%c0_131, %c0_132, %c0_133], %223 {strides = array<i32>} : memref<2x8x32xf32, #tpu.memory_space<vmem>>, vector<2x8x32xf32>,
    } else {
    }
    %c0 = arith.constant 0 : index
    %c0_1 = arith.constant 0 : index
    %c0_2 = arith.constant 0 : index
    %3 = vector.load %arg20[%c0, %c0_1, %c0_2] : memref<2x8x32xf32, #tpu.memory_space<vmem>>, vector<2x8x32xf32>
    %4 = vector.shape_cast %3 : vector<2x8x32xf32> to vector<16x32xf32>
    %c0_3 = arith.constant 0 : index
    %c0_4 = arith.constant 0 : index
    %c0_5 = arith.constant 0 : index
    %5 = vector.load %arg3[%c0_3, %c0_4, %c0_5] : memref<1x32x32xf32, #tpu.memory_space<vmem>>, vector<1x32x32xf32>
    %6 = vector.shape_cast %5 : vector<1x32x32xf32> to vector<32x32xf32>
    %cst = arith.constant dense<0.000000e+00> : vector<16x32xf32>
    %7 = tpu.matmul %4, %6, %cst {dimension_numbers = #tpu.dot_dimension_numbers<[1], [0], [0], [1], [0, 0, 1, 1], [], []>} : vector<16x32xf32>, vector<32x32xf32>, vector<16x32xf32> -> vector<16x32xf32>
    %c0_6 = arith.constant 0 : index
    %c0_7 = arith.constant 0 : index
    %c0_8 = arith.constant 0 : index
    %8 = vector.load %arg4[%c0_6, %c0_7, %c0_8] : memref<1x1x32xf32, #tpu.memory_space<vmem>>, vector<1x1x32xf32>
    %9 = vector.shape_cast %8 : vector<1x1x32xf32> to vector<1x32xf32>
    %10 = vector.broadcast %9 : vector<1x32xf32> to vector<16x32xf32>
    %11 = arith.addf %7, %10 : vector<16x32xf32>
    %c0_9 = arith.constant 0 : index
    %c0_10 = arith.constant 0 : index
    %c0_11 = arith.constant 0 : index
    %12 = vector.load %arg5[%c0_9, %c0_10, %c0_11] : memref<1x32x32xf32, #tpu.memory_space<vmem>>, vector<1x32x32xf32>
    %13 = vector.shape_cast %12 : vector<1x32x32xf32> to vector<32x32xf32>
    %cst_12 = arith.constant dense<0.000000e+00> : vector<16x32xf32>
    %14 = tpu.matmul %4, %13, %cst_12 {dimension_numbers = #tpu.dot_dimension_numbers<[1], [0], [0], [1], [0, 0, 1, 1], [], []>} : vector<16x32xf32>, vector<32x32xf32>, vector<16x32xf32> -> vector<16x32xf32>
    %c0_13 = arith.constant 0 : index
    %c0_14 = arith.constant 0 : index
    %c0_15 = arith.constant 0 : index
    %15 = vector.load %arg6[%c0_13, %c0_14, %c0_15] : memref<1x1x32xf32, #tpu.memory_space<vmem>>, vector<1x1x32xf32>
    %16 = vector.shape_cast %15 : vector<1x1x32xf32> to vector<1x32xf32>
    %17 = vector.broadcast %16 : vector<1x32xf32> to vector<16x32xf32>
    %18 = arith.addf %14, %17 : vector<16x32xf32>
    %c0_16 = arith.constant 0 : index
    %c0_17 = arith.constant 0 : index
    %c0_18 = arith.constant 0 : index
    %19 = vector.load %arg7[%c0_16, %c0_17, %c0_18] : memref<1x32x32xf32, #tpu.memory_space<vmem>>, vector<1x32x32xf32>
    %20 = vector.shape_cast %19 : vector<1x32x32xf32> to vector<32x32xf32>
    %cst_19 = arith.constant dense<0.000000e+00> : vector<16x32xf32>
    %21 = tpu.matmul %4, %20, %cst_19 {dimension_numbers = #tpu.dot_dimension_numbers<[1], [0], [0], [1], [0, 0, 1, 1], [], []>} : vector<16x32xf32>, vector<32x32xf32>, vector<16x32xf32> -> vector<16x32xf32>
    %c0_20 = arith.constant 0 : index
    %c0_21 = arith.constant 0 : index
    %c0_22 = arith.constant 0 : index
    %22 = vector.load %arg8[%c0_20, %c0_21, %c0_22] : memref<1x1x32xf32, #tpu.memory_space<vmem>>, vector<1x1x32xf32>
    %23 = vector.shape_cast %22 : vector<1x1x32xf32> to vector<1x32xf32>
    %24 = vector.broadcast %23 : vector<1x32xf32> to vector<16x32xf32>
    %25 = arith.addf %21, %24 : vector<16x32xf32>
    %c0_23 = arith.constant 0 : index
    %c0_24 = arith.constant 0 : index
    %c0_25 = arith.constant 0 : index
    %26 = vector.load %arg2[%c0_23, %c0_24, %c0_25] : memref<2x1x8xf32, #tpu.memory_space<vmem>>, vector<2x1x8xf32>
    %c0_26 = arith.constant 0 : index
    %c0_27 = arith.constant 0 : index
    %c0_28 = arith.constant 0 : index
    %27 = vector.load %arg9[%c0_26, %c0_27, %c0_28] : memref<1x32x32xf32, #tpu.memory_space<vmem>>, vector<1x32x32xf32>
    %28 = vector.shape_cast %27 : vector<1x32x32xf32> to vector<32x32xf32>
    %c0_29 = arith.constant 0 : index
    %c0_30 = arith.constant 0 : index
    %c0_31 = arith.constant 0 : index
    %29 = vector.load %arg10[%c0_29, %c0_30, %c0_31] : memref<1x1x32xf32, #tpu.memory_space<vmem>>, vector<1x1x32xf32>
    %30 = vector.shape_cast %29 : vector<1x1x32xf32> to vector<1x32xf32>
    %31 = vector.shape_cast %11 : vector<16x32xf32> to vector<2x8x32xf32>
    %32 = vector.shape_cast %18 : vector<16x32xf32> to vector<2x8x32xf32>
    %33 = vector.shape_cast %25 : vector<16x32xf32> to vector<2x8x32xf32>
    %34 = vector.extract_strided_slice %31 {offsets = [0, 0, 0], sizes = [2, 8, 8], strides = [1, 1, 1]} : vector<2x8x32xf32> to vector<2x8x8xf32>
    %35 = vector.extract_strided_slice %32 {offsets = [0, 0, 0], sizes = [2, 8, 8], strides = [1, 1, 1]} : vector<2x8x32xf32> to vector<2x8x8xf32>
    "tpu.trace_start"() <{level = 10 : i32, message = "bqd,bkd->bqk"}> : () -> ()
    %cst_32 = arith.constant dense<0.000000e+00> : vector<2x8x8xf32>
    %36 = tpu.matmul %34, %35, %cst_32 {dimension_numbers = #tpu.dot_dimension_numbers<[2], [2], [1], [1], [0, 0, 0, 1, 1, 1], [0], [0]>} : vector<2x8x8xf32>, vector<2x8x8xf32>, vector<2x8x8xf32> -> vector<2x8x8xf32>
    "tpu.trace_stop"() : () -> ()
    %cst_33 = arith.constant 0.353553385 : f32
    %37 = vector.broadcast %cst_33 : f32 to vector<2x8x8xf32>
    %38 = arith.mulf %36, %37 : vector<2x8x8xf32>
    %39 = vector.broadcast %26 : vector<2x1x8xf32> to vector<2x8x8xf32>
    %40 = arith.addf %38, %39 : vector<2x8x8xf32>
    %cst_34 = arith.constant dense<0xFF800000> : vector<2x8xf32>
    %41 = vector.multi_reduction <maximumf>, %40, %cst_34 [2] : vector<2x8x8xf32> to vector<2x8xf32>
    %42 = vector.shape_cast %41 : vector<2x8xf32> to vector<2x8x1xf32>
    %43 = vector.broadcast %42 : vector<2x8x1xf32> to vector<2x8x8xf32>
    %44 = arith.subf %40, %43 : vector<2x8x8xf32>
    %45 = math.exp %44 : vector<2x8x8xf32>
    %cst_35 = arith.constant dense<0.000000e+00> : vector<2x8xf32>
    %46 = vector.multi_reduction <add>, %45, %cst_35 [2] : vector<2x8x8xf32> to vector<2x8xf32>
    %47 = vector.shape_cast %46 : vector<2x8xf32> to vector<2x8x1xf32>
    %48 = vector.broadcast %47 : vector<2x8x1xf32> to vector<2x8x8xf32>
    %49 = arith.divf %45, %48 : vector<2x8x8xf32>
    %50 = vector.extract_strided_slice %33 {offsets = [0, 0, 0], sizes = [2, 8, 8], strides = [1, 1, 1]} : vector<2x8x32xf32> to vector<2x8x8xf32>
    "tpu.trace_start"() <{level = 10 : i32, message = "bqk,bkd->bqd"}> : () -> ()
    %cst_36 = arith.constant dense<0.000000e+00> : vector<2x8x8xf32>
    %51 = tpu.matmul %49, %50, %cst_36 {dimension_numbers = #tpu.dot_dimension_numbers<[2], [1], [1], [2], [0, 0, 0, 1, 1, 2], [0], [0]>} : vector<2x8x8xf32>, vector<2x8x8xf32>, vector<2x8x8xf32> -> vector<2x8x8xf32>
    "tpu.trace_stop"() : () -> ()
    %52 = vector.extract_strided_slice %31 {offsets = [0, 0, 8], sizes = [2, 8, 8], strides = [1, 1, 1]} : vector<2x8x32xf32> to vector<2x8x8xf32>
    %53 = vector.extract_strided_slice %32 {offsets = [0, 0, 8], sizes = [2, 8, 8], strides = [1, 1, 1]} : vector<2x8x32xf32> to vector<2x8x8xf32>
    "tpu.trace_start"() <{level = 10 : i32, message = "bqd,bkd->bqk"}> : () -> ()
    %cst_37 = arith.constant dense<0.000000e+00> : vector<2x8x8xf32>
    %54 = tpu.matmul %52, %53, %cst_37 {dimension_numbers = #tpu.dot_dimension_numbers<[2], [2], [1], [1], [0, 0, 0, 1, 1, 1], [0], [0]>} : vector<2x8x8xf32>, vector<2x8x8xf32>, vector<2x8x8xf32> -> vector<2x8x8xf32>
    "tpu.trace_stop"() : () -> ()
    %cst_38 = arith.constant 0.353553385 : f32
    %55 = vector.broadcast %cst_38 : f32 to vector<2x8x8xf32>
    %56 = arith.mulf %54, %55 : vector<2x8x8xf32>
    %57 = vector.broadcast %26 : vector<2x1x8xf32> to vector<2x8x8xf32>
    %58 = arith.addf %56, %57 : vector<2x8x8xf32>
    %cst_39 = arith.constant dense<0xFF800000> : vector<2x8xf32>
    %59 = vector.multi_reduction <maximumf>, %58, %cst_39 [2] : vector<2x8x8xf32> to vector<2x8xf32>
    %60 = vector.shape_cast %59 : vector<2x8xf32> to vector<2x8x1xf32>
    %61 = vector.broadcast %60 : vector<2x8x1xf32> to vector<2x8x8xf32>
    %62 = arith.subf %58, %61 : vector<2x8x8xf32>
    %63 = math.exp %62 : vector<2x8x8xf32>
    %cst_40 = arith.constant dense<0.000000e+00> : vector<2x8xf32>
    %64 = vector.multi_reduction <add>, %63, %cst_40 [2] : vector<2x8x8xf32> to vector<2x8xf32>
    %65 = vector.shape_cast %64 : vector<2x8xf32> to vector<2x8x1xf32>
    %66 = vector.broadcast %65 : vector<2x8x1xf32> to vector<2x8x8xf32>
    %67 = arith.divf %63, %66 : vector<2x8x8xf32>
    %68 = vector.extract_strided_slice %33 {offsets = [0, 0, 8], sizes = [2, 8, 8], strides = [1, 1, 1]} : vector<2x8x32xf32> to vector<2x8x8xf32>
    "tpu.trace_start"() <{level = 10 : i32, message = "bqk,bkd->bqd"}> : () -> ()
    %cst_41 = arith.constant dense<0.000000e+00> : vector<2x8x8xf32>
    %69 = tpu.matmul %67, %68, %cst_41 {dimension_numbers = #tpu.dot_dimension_numbers<[2], [1], [1], [2], [0, 0, 0, 1, 1, 2], [0], [0]>} : vector<2x8x8xf32>, vector<2x8x8xf32>, vector<2x8x8xf32> -> vector<2x8x8xf32>
    "tpu.trace_stop"() : () -> ()
    %70 = vector.extract_strided_slice %31 {offsets = [0, 0, 16], sizes = [2, 8, 8], strides = [1, 1, 1]} : vector<2x8x32xf32> to vector<2x8x8xf32>
    %71 = vector.extract_strided_slice %32 {offsets = [0, 0, 16], sizes = [2, 8, 8], strides = [1, 1, 1]} : vector<2x8x32xf32> to vector<2x8x8xf32>
    "tpu.trace_start"() <{level = 10 : i32, message = "bqd,bkd->bqk"}> : () -> ()
    %cst_42 = arith.constant dense<0.000000e+00> : vector<2x8x8xf32>
    %72 = tpu.matmul %70, %71, %cst_42 {dimension_numbers = #tpu.dot_dimension_numbers<[2], [2], [1], [1], [0, 0, 0, 1, 1, 1], [0], [0]>} : vector<2x8x8xf32>, vector<2x8x8xf32>, vector<2x8x8xf32> -> vector<2x8x8xf32>
    "tpu.trace_stop"() : () -> ()
    %cst_43 = arith.constant 0.353553385 : f32
    %73 = vector.broadcast %cst_43 : f32 to vector<2x8x8xf32>
    %74 = arith.mulf %72, %73 : vector<2x8x8xf32>
    %75 = vector.broadcast %26 : vector<2x1x8xf32> to vector<2x8x8xf32>
    %76 = arith.addf %74, %75 : vector<2x8x8xf32>
    %cst_44 = arith.constant dense<0xFF800000> : vector<2x8xf32>
    %77 = vector.multi_reduction <maximumf>, %76, %cst_44 [2] : vector<2x8x8xf32> to vector<2x8xf32>
    %78 = vector.shape_cast %77 : vector<2x8xf32> to vector<2x8x1xf32>
    %79 = vector.broadcast %78 : vector<2x8x1xf32> to vector<2x8x8xf32>
    %80 = arith.subf %76, %79 : vector<2x8x8xf32>
    %81 = math.exp %80 : vector<2x8x8xf32>
    %cst_45 = arith.constant dense<0.000000e+00> : vector<2x8xf32>
    %82 = vector.multi_reduction <add>, %81, %cst_45 [2] : vector<2x8x8xf32> to vector<2x8xf32>
    %83 = vector.shape_cast %82 : vector<2x8xf32> to vector<2x8x1xf32>
    %84 = vector.broadcast %83 : vector<2x8x1xf32> to vector<2x8x8xf32>
    %85 = arith.divf %81, %84 : vector<2x8x8xf32>
    %86 = vector.extract_strided_slice %33 {offsets = [0, 0, 16], sizes = [2, 8, 8], strides = [1, 1, 1]} : vector<2x8x32xf32> to vector<2x8x8xf32>
    "tpu.trace_start"() <{level = 10 : i32, message = "bqk,bkd->bqd"}> : () -> ()
    %cst_46 = arith.constant dense<0.000000e+00> : vector<2x8x8xf32>
    %87 = tpu.matmul %85, %86, %cst_46 {dimension_numbers = #tpu.dot_dimension_numbers<[2], [1], [1], [2], [0, 0, 0, 1, 1, 2], [0], [0]>} : vector<2x8x8xf32>, vector<2x8x8xf32>, vector<2x8x8xf32> -> vector<2x8x8xf32>
    "tpu.trace_stop"() : () -> ()
    %88 = vector.extract_strided_slice %31 {offsets = [0, 0, 24], sizes = [2, 8, 8], strides = [1, 1, 1]} : vector<2x8x32xf32> to vector<2x8x8xf32>
    %89 = vector.extract_strided_slice %32 {offsets = [0, 0, 24], sizes = [2, 8, 8], strides = [1, 1, 1]} : vector<2x8x32xf32> to vector<2x8x8xf32>
    "tpu.trace_start"() <{level = 10 : i32, message = "bqd,bkd->bqk"}> : () -> ()
    %cst_47 = arith.constant dense<0.000000e+00> : vector<2x8x8xf32>
    %90 = tpu.matmul %88, %89, %cst_47 {dimension_numbers = #tpu.dot_dimension_numbers<[2], [2], [1], [1], [0, 0, 0, 1, 1, 1], [0], [0]>} : vector<2x8x8xf32>, vector<2x8x8xf32>, vector<2x8x8xf32> -> vector<2x8x8xf32>
    "tpu.trace_stop"() : () -> ()
    %cst_48 = arith.constant 0.353553385 : f32
    %91 = vector.broadcast %cst_48 : f32 to vector<2x8x8xf32>
    %92 = arith.mulf %90, %91 : vector<2x8x8xf32>
    %93 = vector.broadcast %26 : vector<2x1x8xf32> to vector<2x8x8xf32>
    %94 = arith.addf %92, %93 : vector<2x8x8xf32>
    %cst_49 = arith.constant dense<0xFF800000> : vector<2x8xf32>
    %95 = vector.multi_reduction <maximumf>, %94, %cst_49 [2] : vector<2x8x8xf32> to vector<2x8xf32>
    %96 = vector.shape_cast %95 : vector<2x8xf32> to vector<2x8x1xf32>
    %97 = vector.broadcast %96 : vector<2x8x1xf32> to vector<2x8x8xf32>
    %98 = arith.subf %94, %97 : vector<2x8x8xf32>
    %99 = math.exp %98 : vector<2x8x8xf32>
    %cst_50 = arith.constant dense<0.000000e+00> : vector<2x8xf32>
    %100 = vector.multi_reduction <add>, %99, %cst_50 [2] : vector<2x8x8xf32> to vector<2x8xf32>
    %101 = vector.shape_cast %100 : vector<2x8xf32> to vector<2x8x1xf32>
    %102 = vector.broadcast %101 : vector<2x8x1xf32> to vector<2x8x8xf32>
    %103 = arith.divf %99, %102 : vector<2x8x8xf32>
    %104 = vector.extract_strided_slice %33 {offsets = [0, 0, 24], sizes = [2, 8, 8], strides = [1, 1, 1]} : vector<2x8x32xf32> to vector<2x8x8xf32>
    "tpu.trace_start"() <{level = 10 : i32, message = "bqk,bkd->bqd"}> : () -> ()
    %cst_51 = arith.constant dense<0.000000e+00> : vector<2x8x8xf32>
    %105 = tpu.matmul %103, %104, %cst_51 {dimension_numbers = #tpu.dot_dimension_numbers<[2], [1], [1], [2], [0, 0, 0, 1, 1, 2], [0], [0]>} : vector<2x8x8xf32>, vector<2x8x8xf32>, vector<2x8x8xf32> -> vector<2x8x8xf32>
    "tpu.trace_stop"() : () -> ()
    %106 = tpu.concatenate %51, %69, %87, %105 in 2 : vector<2x8x8xf32>, vector<2x8x8xf32>, vector<2x8x8xf32>, vector<2x8x8xf32> -> vector<2x8x32xf32>
    %107 = vector.shape_cast %106 : vector<2x8x32xf32> to vector<16x32xf32>
    %cst_52 = arith.constant dense<0.000000e+00> : vector<16x32xf32>
    %108 = tpu.matmul %107, %28, %cst_52 {dimension_numbers = #tpu.dot_dimension_numbers<[1], [0], [0], [1], [0, 0, 1, 1], [], []>} : vector<16x32xf32>, vector<32x32xf32>, vector<16x32xf32> -> vector<16x32xf32>
    %109 = vector.broadcast %30 : vector<1x32xf32> to vector<16x32xf32>
    %110 = arith.addf %108, %109 : vector<16x32xf32>
    %111 = arith.addf %4, %110 : vector<16x32xf32>
    %c0_53 = arith.constant 0 : index
    %c0_54 = arith.constant 0 : index
    %c0_55 = arith.constant 0 : index
    %112 = vector.load %arg15[%c0_53, %c0_54, %c0_55] : memref<1x1x32xf32, #tpu.memory_space<vmem>>, vector<1x1x32xf32>
    %113 = vector.shape_cast %112 : vector<1x1x32xf32> to vector<1x32xf32>
    %c0_56 = arith.constant 0 : index
    %c0_57 = arith.constant 0 : index
    %c0_58 = arith.constant 0 : index
    %114 = vector.load %arg16[%c0_56, %c0_57, %c0_58] : memref<1x1x32xf32, #tpu.memory_space<vmem>>, vector<1x1x32xf32>
    %115 = vector.shape_cast %114 : vector<1x1x32xf32> to vector<1x32xf32>
    %cst_59 = arith.constant dense<0.000000e+00> : vector<16xf32>
    %116 = vector.multi_reduction <add>, %111, %cst_59 [1] : vector<16x32xf32> to vector<16xf32>
    %117 = vector.shape_cast %116 : vector<16xf32> to vector<16x1xf32>
    %cst_60 = arith.constant 3.200000e+01 : f32
    %118 = vector.broadcast %cst_60 : f32 to vector<16x1xf32>
    %119 = arith.divf %117, %118 : vector<16x1xf32>
    %120 = vector.broadcast %119 : vector<16x1xf32> to vector<16x32xf32>
    %121 = arith.subf %111, %120 : vector<16x32xf32>
    %122 = arith.mulf %121, %121 : vector<16x32xf32>
    %cst_61 = arith.constant dense<0.000000e+00> : vector<16xf32>
    %123 = vector.multi_reduction <add>, %122, %cst_61 [1] : vector<16x32xf32> to vector<16xf32>
    %124 = vector.shape_cast %123 : vector<16xf32> to vector<16x1xf32>
    %cst_62 = arith.constant 3.200000e+01 : f32
    %125 = vector.broadcast %cst_62 : f32 to vector<16x1xf32>
    %126 = arith.divf %124, %125 : vector<16x1xf32>
    %cst_63 = arith.constant 9.99999974E-6 : f32
    %127 = vector.broadcast %cst_63 : f32 to vector<16x1xf32>
    %128 = arith.addf %126, %127 : vector<16x1xf32>
    %129 = math.rsqrt %128 : vector<16x1xf32>
    %130 = vector.broadcast %129 : vector<16x1xf32> to vector<16x32xf32>
    %131 = arith.mulf %121, %130 : vector<16x32xf32>
    %132 = vector.broadcast %113 : vector<1x32xf32> to vector<16x32xf32>
    %133 = arith.mulf %131, %132 : vector<16x32xf32>
    %134 = vector.broadcast %115 : vector<1x32xf32> to vector<16x32xf32>
    %135 = arith.addf %133, %134 : vector<16x32xf32>
    %cst_64 = arith.constant 0.000000e+00 : f32
    %136 = vector.broadcast %cst_64 : f32 to vector<16x32xf32>
    %c0_65 = arith.constant 0 : index
    %c0_66 = arith.constant 0 : index
    %c0_67 = arith.constant 0 : index
    %137 = vector.load %arg14[%c0_65, %c0_66, %c0_67] : memref<1x1x32xf32, #tpu.memory_space<vmem>>, vector<1x1x32xf32>
    %138 = vector.shape_cast %137 : vector<1x1x32xf32> to vector<1x32xf32>
    %139 = vector.broadcast %138 : vector<1x32xf32> to vector<16x32xf32>
    %140 = arith.addf %136, %139 : vector<16x32xf32>
    %c0_68 = arith.constant 0 : index
    %c0_69 = arith.constant 0 : index
    %c0_70 = arith.constant 0 : index
    %141 = vector.load %arg11[%c0_68, %c0_69, %c0_70] : memref<1x32x2048xf32, #tpu.memory_space<vmem>>, vector<1x32x512xf32>
    %142 = vector.shape_cast %141 : vector<1x32x512xf32> to vector<32x512xf32>
    %c0_71 = arith.constant 0 : index
    %c0_72 = arith.constant 0 : index
    %c0_73 = arith.constant 0 : index
    %143 = vector.load %arg12[%c0_71, %c0_72, %c0_73] : memref<1x1x2048xf32, #tpu.memory_space<vmem>>, vector<1x1x512xf32>
    %144 = vector.shape_cast %143 : vector<1x1x512xf32> to vector<1x512xf32>
    %c0_74 = arith.constant 0 : index
    %c0_75 = arith.constant 0 : index
    %c0_76 = arith.constant 0 : index
    %145 = vector.load %arg13[%c0_74, %c0_75, %c0_76] : memref<1x2048x32xf32, #tpu.memory_space<vmem>>, vector<1x512x32xf32>
    %146 = vector.shape_cast %145 : vector<1x512x32xf32> to vector<512x32xf32>
    %cst_77 = arith.constant dense<0.000000e+00> : vector<16x512xf32>
    %147 = tpu.matmul %135, %142, %cst_77 {dimension_numbers = #tpu.dot_dimension_numbers<[1], [0], [0], [1], [0, 0, 1, 1], [], []>} : vector<16x32xf32>, vector<32x512xf32>, vector<16x512xf32> -> vector<16x512xf32>
    %148 = vector.broadcast %144 : vector<1x512xf32> to vector<16x512xf32>
    %149 = arith.addf %147, %148 : vector<16x512xf32>
    %cst_78 = arith.constant 0.000000e+00 : f32
    %150 = vector.broadcast %cst_78 : f32 to vector<16x512xf32>
    %151 = arith.maximumf %149, %150 : vector<16x512xf32>
    %cst_79 = arith.constant dense<0.000000e+00> : vector<16x32xf32>
    %152 = tpu.matmul %151, %146, %cst_79 {dimension_numbers = #tpu.dot_dimension_numbers<[1], [0], [0], [1], [0, 0, 1, 1], [], []>} : vector<16x512xf32>, vector<512x32xf32>, vector<16x32xf32> -> vector<16x32xf32>
    %153 = arith.addf %140, %152 : vector<16x32xf32>
    %c0_80 = arith.constant 0 : index
    %c0_81 = arith.constant 0 : index
    %c512 = arith.constant 512 : index
    %154 = vector.load %arg11[%c0_80, %c0_81, %c512] : memref<1x32x2048xf32, #tpu.memory_space<vmem>>, vector<1x32x512xf32>
    %155 = vector.shape_cast %154 : vector<1x32x512xf32> to vector<32x512xf32>
    %c0_82 = arith.constant 0 : index
    %c0_83 = arith.constant 0 : index
    %c512_84 = arith.constant 512 : index
    %156 = vector.load %arg12[%c0_82, %c0_83, %c512_84] : memref<1x1x2048xf32, #tpu.memory_space<vmem>>, vector<1x1x512xf32>
    %157 = vector.shape_cast %156 : vector<1x1x512xf32> to vector<1x512xf32>
    %c0_85 = arith.constant 0 : index
    %c512_86 = arith.constant 512 : index
    %c0_87 = arith.constant 0 : index
    %158 = vector.load %arg13[%c0_85, %c512_86, %c0_87] : memref<1x2048x32xf32, #tpu.memory_space<vmem>>, vector<1x512x32xf32>
    %159 = vector.shape_cast %158 : vector<1x512x32xf32> to vector<512x32xf32>
    %cst_88 = arith.constant dense<0.000000e+00> : vector<16x512xf32>
    %160 = tpu.matmul %135, %155, %cst_88 {dimension_numbers = #tpu.dot_dimension_numbers<[1], [0], [0], [1], [0, 0, 1, 1], [], []>} : vector<16x32xf32>, vector<32x512xf32>, vector<16x512xf32> -> vector<16x512xf32>
    %161 = vector.broadcast %157 : vector<1x512xf32> to vector<16x512xf32>
    %162 = arith.addf %160, %161 : vector<16x512xf32>
    %cst_89 = arith.constant 0.000000e+00 : f32
    %163 = vector.broadcast %cst_89 : f32 to vector<16x512xf32>
    %164 = arith.maximumf %162, %163 : vector<16x512xf32>
    %cst_90 = arith.constant dense<0.000000e+00> : vector<16x32xf32>
    %165 = tpu.matmul %164, %159, %cst_90 {dimension_numbers = #tpu.dot_dimension_numbers<[1], [0], [0], [1], [0, 0, 1, 1], [], []>} : vector<16x512xf32>, vector<512x32xf32>, vector<16x32xf32> -> vector<16x32xf32>
    %166 = arith.addf %153, %165 : vector<16x32xf32>
    %c0_91 = arith.constant 0 : index
    %c0_92 = arith.constant 0 : index
    %c1024 = arith.constant 1024 : index
    %167 = vector.load %arg11[%c0_91, %c0_92, %c1024] : memref<1x32x2048xf32, #tpu.memory_space<vmem>>, vector<1x32x512xf32>
    %168 = vector.shape_cast %167 : vector<1x32x512xf32> to vector<32x512xf32>
    %c0_93 = arith.constant 0 : index
    %c0_94 = arith.constant 0 : index
    %c1024_95 = arith.constant 1024 : index
    %169 = vector.load %arg12[%c0_93, %c0_94, %c1024_95] : memref<1x1x2048xf32, #tpu.memory_space<vmem>>, vector<1x1x512xf32>
    %170 = vector.shape_cast %169 : vector<1x1x512xf32> to vector<1x512xf32>
    %c0_96 = arith.constant 0 : index
    %c1024_97 = arith.constant 1024 : index
    %c0_98 = arith.constant 0 : index
    %171 = vector.load %arg13[%c0_96, %c1024_97, %c0_98] : memref<1x2048x32xf32, #tpu.memory_space<vmem>>, vector<1x512x32xf32>
    %172 = vector.shape_cast %171 : vector<1x512x32xf32> to vector<512x32xf32>
    %cst_99 = arith.constant dense<0.000000e+00> : vector<16x512xf32>
    %173 = tpu.matmul %135, %168, %cst_99 {dimension_numbers = #tpu.dot_dimension_numbers<[1], [0], [0], [1], [0, 0, 1, 1], [], []>} : vector<16x32xf32>, vector<32x512xf32>, vector<16x512xf32> -> vector<16x512xf32>
    %174 = vector.broadcast %170 : vector<1x512xf32> to vector<16x512xf32>
    %175 = arith.addf %173, %174 : vector<16x512xf32>
    %cst_100 = arith.constant 0.000000e+00 : f32
    %176 = vector.broadcast %cst_100 : f32 to vector<16x512xf32>
    %177 = arith.maximumf %175, %176 : vector<16x512xf32>
    %cst_101 = arith.constant dense<0.000000e+00> : vector<16x32xf32>
    %178 = tpu.matmul %177, %172, %cst_101 {dimension_numbers = #tpu.dot_dimension_numbers<[1], [0], [0], [1], [0, 0, 1, 1], [], []>} : vector<16x512xf32>, vector<512x32xf32>, vector<16x32xf32> -> vector<16x32xf32>
    %179 = arith.addf %166, %178 : vector<16x32xf32>
    %c0_102 = arith.constant 0 : index
    %c0_103 = arith.constant 0 : index
    %c1536 = arith.constant 1536 : index
    %180 = vector.load %arg11[%c0_102, %c0_103, %c1536] : memref<1x32x2048xf32, #tpu.memory_space<vmem>>, vector<1x32x512xf32>
    %181 = vector.shape_cast %180 : vector<1x32x512xf32> to vector<32x512xf32>
    %c0_104 = arith.constant 0 : index
    %c0_105 = arith.constant 0 : index
    %c1536_106 = arith.constant 1536 : index
    %182 = vector.load %arg12[%c0_104, %c0_105, %c1536_106] : memref<1x1x2048xf32, #tpu.memory_space<vmem>>, vector<1x1x512xf32>
    %183 = vector.shape_cast %182 : vector<1x1x512xf32> to vector<1x512xf32>
    %c0_107 = arith.constant 0 : index
    %c1536_108 = arith.constant 1536 : index
    %c0_109 = arith.constant 0 : index
    %184 = vector.load %arg13[%c0_107, %c1536_108, %c0_109] : memref<1x2048x32xf32, #tpu.memory_space<vmem>>, vector<1x512x32xf32>
    %185 = vector.shape_cast %184 : vector<1x512x32xf32> to vector<512x32xf32>
    %cst_110 = arith.constant dense<0.000000e+00> : vector<16x512xf32>
    %186 = tpu.matmul %135, %181, %cst_110 {dimension_numbers = #tpu.dot_dimension_numbers<[1], [0], [0], [1], [0, 0, 1, 1], [], []>} : vector<16x32xf32>, vector<32x512xf32>, vector<16x512xf32> -> vector<16x512xf32>
    %187 = vector.broadcast %183 : vector<1x512xf32> to vector<16x512xf32>
    %188 = arith.addf %186, %187 : vector<16x512xf32>
    %cst_111 = arith.constant 0.000000e+00 : f32
    %189 = vector.broadcast %cst_111 : f32 to vector<16x512xf32>
    %190 = arith.maximumf %188, %189 : vector<16x512xf32>
    %cst_112 = arith.constant dense<0.000000e+00> : vector<16x32xf32>
    %191 = tpu.matmul %190, %185, %cst_112 {dimension_numbers = #tpu.dot_dimension_numbers<[1], [0], [0], [1], [0, 0, 1, 1], [], []>} : vector<16x512xf32>, vector<512x32xf32>, vector<16x32xf32> -> vector<16x32xf32>
    %192 = arith.addf %179, %191 : vector<16x32xf32>
    %193 = arith.addf %135, %192 : vector<16x32xf32>
    %c0_113 = arith.constant 0 : index
    %c0_114 = arith.constant 0 : index
    %c0_115 = arith.constant 0 : index
    %194 = vector.load %arg17[%c0_113, %c0_114, %c0_115] : memref<1x1x32xf32, #tpu.memory_space<vmem>>, vector<1x1x32xf32>
    %195 = vector.shape_cast %194 : vector<1x1x32xf32> to vector<1x32xf32>
    %c0_116 = arith.constant 0 : index
    %c0_117 = arith.constant 0 : index
    %c0_118 = arith.constant 0 : index
    %196 = vector.load %arg18[%c0_116, %c0_117, %c0_118] : memref<1x1x32xf32, #tpu.memory_space<vmem>>, vector<1x1x32xf32>
    %197 = vector.shape_cast %196 : vector<1x1x32xf32> to vector<1x32xf32>
    %cst_119 = arith.constant dense<0.000000e+00> : vector<16xf32>
    %198 = vector.multi_reduction <add>, %193, %cst_119 [1] : vector<16x32xf32> to vector<16xf32>
    %199 = vector.shape_cast %198 : vector<16xf32> to vector<16x1xf32>
    %cst_120 = arith.constant 3.200000e+01 : f32
    %200 = vector.broadcast %cst_120 : f32 to vector<16x1xf32>
    %201 = arith.divf %199, %200 : vector<16x1xf32>
    %202 = vector.broadcast %201 : vector<16x1xf32> to vector<16x32xf32>
    %203 = arith.subf %193, %202 : vector<16x32xf32>
    %204 = arith.mulf %203, %203 : vector<16x32xf32>
    %cst_121 = arith.constant dense<0.000000e+00> : vector<16xf32>
    %205 = vector.multi_reduction <add>, %204, %cst_121 [1] : vector<16x32xf32> to vector<16xf32>
    %206 = vector.shape_cast %205 : vector<16xf32> to vector<16x1xf32>
    %cst_122 = arith.constant 3.200000e+01 : f32
    %207 = vector.broadcast %cst_122 : f32 to vector<16x1xf32>
    %208 = arith.divf %206, %207 : vector<16x1xf32>
    %cst_123 = arith.constant 9.99999974E-6 : f32
    %209 = vector.broadcast %cst_123 : f32 to vector<16x1xf32>
    %210 = arith.addf %208, %209 : vector<16x1xf32>
    %211 = math.rsqrt %210 : vector<16x1xf32>
    %212 = vector.broadcast %211 : vector<16x1xf32> to vector<16x32xf32>
    %213 = arith.mulf %203, %212 : vector<16x32xf32>
    %214 = vector.broadcast %195 : vector<1x32xf32> to vector<16x32xf32>
    %215 = arith.mulf %213, %214 : vector<16x32xf32>
    %216 = vector.broadcast %197 : vector<1x32xf32> to vector<16x32xf32>
    %217 = arith.addf %215, %216 : vector<16x32xf32>
    %218 = vector.shape_cast %217 : vector<16x32xf32> to vector<2x8x32xf32>
    %c0_124 = arith.constant 0 : index
    %c0_125 = arith.constant 0 : index
    %c0_126 = arith.constant 0 : index
    %219 = vector.load %arg20[%c0_124, %c0_125, %c0_126] : memref<2x8x32xf32, #tpu.memory_space<vmem>>, vector<2x8x32xf32>
    tpu.vector_store %arg20[%c0_124, %c0_125, %c0_126], %218 {strides = array<i32>} : memref<2x8x32xf32, #tpu.memory_space<vmem>>, vector<2x8x32xf32>,
    %c1_i32 = arith.constant 1 : i32
    %220 = arith.cmpi eq, %arg0, %c1_i32 : i32
    %221 = arith.extui %220 : i1 to i32
    %c0_i32_127 = arith.constant 0 : i32
    %222 = arith.cmpi ne, %221, %c0_i32_127 : i32
    scf.if %222 {
      %c0_128 = arith.constant 0 : index
      %c0_129 = arith.constant 0 : index
      %c0_130 = arith.constant 0 : index
      %223 = vector.load %arg19[%c0_128, %c0_129, %c0_130] : memref<2x8x32xf32, #tpu.memory_space<vmem>>, vector<2x8x32xf32>
      tpu.vector_store %arg19[%c0_128, %c0_129, %c0_130], %218 {strides = array<i32>} : memref<2x8x32xf32, #tpu.memory_space<vmem>>, vector<2x8x32xf32>,
    } else {
    }
    return
  }
  func.func @transform_0(%arg0: i32) -> (i32, i32, i32) {
    %c0_i32 = arith.constant 0 : i32
    %c0_i32_0 = arith.constant 0 : i32
    %c0_i32_1 = arith.constant 0 : i32
    %c0_i32_2 = arith.constant 0 : i32
    return %c0_i32, %c0_i32_0, %c0_i32_1 : i32, i32, i32
  }
  func.func @transform_1(%arg0: i32) -> (i32, i32, i32) {
    %c0_i32 = arith.constant 0 : i32
    %c0_i32_0 = arith.constant 0 : i32
    %c0_i32_1 = arith.constant 0 : i32
    %c0_i32_2 = arith.constant 0 : i32
    return %c0_i32, %c0_i32_0, %c0_i32_1 : i32, i32, i32
  }
  func.func @transform_2(%arg0: i32) -> (i32, i32, i32) {
    %c0_i32 = arith.constant 0 : i32
    %c0_i32_0 = arith.constant 0 : i32
    %c0_i32_1 = arith.constant 0 : i32
    return %arg0, %c0_i32, %c0_i32_0 : i32, i32, i32
  }
  func.func @transform_3(%arg0: i32) -> (i32, i32, i32) {
    %c0_i32 = arith.constant 0 : i32
    %c0_i32_0 = arith.constant 0 : i32
    %c0_i32_1 = arith.constant 0 : i32
    return %arg0, %c0_i32, %c0_i32_0 : i32, i32, i32
  }
  func.func @transform_4(%arg0: i32) -> (i32, i32, i32) {
    %c0_i32 = arith.constant 0 : i32
    %c0_i32_0 = arith.constant 0 : i32
    %c0_i32_1 = arith.constant 0 : i32
    return %arg0, %c0_i32, %c0_i32_0 : i32, i32, i32
  }
  func.func @transform_5(%arg0: i32) -> (i32, i32, i32) {
    %c0_i32 = arith.constant 0 : i32
    %c0_i32_0 = arith.constant 0 : i32
    %c0_i32_1 = arith.constant 0 : i32
    return %arg0, %c0_i32, %c0_i32_0 : i32, i32, i32
  }
  func.func @transform_6(%arg0: i32) -> (i32, i32, i32) {
    %c0_i32 = arith.constant 0 : i32
    %c0_i32_0 = arith.constant 0 : i32
    %c0_i32_1 = arith.constant 0 : i32
    return %arg0, %c0_i32, %c0_i32_0 : i32, i32, i32
  }
  func.func @transform_7(%arg0: i32) -> (i32, i32, i32) {
    %c0_i32 = arith.constant 0 : i32
    %c0_i32_0 = arith.constant 0 : i32
    %c0_i32_1 = arith.constant 0 : i32
    return %arg0, %c0_i32, %c0_i32_0 : i32, i32, i32
  }
  func.func @transform_8(%arg0: i32) -> (i32, i32, i32) {
    %c0_i32 = arith.constant 0 : i32
    %c0_i32_0 = arith.constant 0 : i32
    %c0_i32_1 = arith.constant 0 : i32
    return %arg0, %c0_i32, %c0_i32_0 : i32, i32, i32
  }
  func.func @transform_9(%arg0: i32) -> (i32, i32, i32) {
    %c0_i32 = arith.constant 0 : i32
    %c0_i32_0 = arith.constant 0 : i32
    %c0_i32_1 = arith.constant 0 : i32
    return %arg0, %c0_i32, %c0_i32_0 : i32, i32, i32
  }
  func.func @transform_10(%arg0: i32) -> (i32, i32, i32) {
    %c0_i32 = arith.constant 0 : i32
    %c0_i32_0 = arith.constant 0 : i32
    %c0_i32_1 = arith.constant 0 : i32
    return %arg0, %c0_i32, %c0_i32_0 : i32, i32, i32
  }
  func.func @transform_11(%arg0: i32) -> (i32, i32, i32) {
    %c0_i32 = arith.constant 0 : i32
    %c0_i32_0 = arith.constant 0 : i32
    %c0_i32_1 = arith.constant 0 : i32
    return %arg0, %c0_i32, %c0_i32_0 : i32, i32, i32
  }
  func.func @transform_12(%arg0: i32) -> (i32, i32, i32) {
    %c0_i32 = arith.constant 0 : i32
    %c0_i32_0 = arith.constant 0 : i32
    %c0_i32_1 = arith.constant 0 : i32
    return %arg0, %c0_i32, %c0_i32_0 : i32, i32, i32
  }
  func.func @transform_13(%arg0: i32) -> (i32, i32, i32) {
    %c0_i32 = arith.constant 0 : i32
    %c0_i32_0 = arith.constant 0 : i32
    %c0_i32_1 = arith.constant 0 : i32
    return %arg0, %c0_i32, %c0_i32_0 : i32, i32, i32
  }
  func.func @transform_14(%arg0: i32) -> (i32, i32, i32) {
    %c0_i32 = arith.constant 0 : i32
    %c0_i32_0 = arith.constant 0 : i32
    %c0_i32_1 = arith.constant 0 : i32
    return %arg0, %c0_i32, %c0_i32_0 : i32, i32, i32
  }
  func.func @transform_15(%arg0: i32) -> (i32, i32, i32) {
    %c0_i32 = arith.constant 0 : i32
    %c0_i32_0 = arith.constant 0 : i32
    %c0_i32_1 = arith.constant 0 : i32
    return %arg0, %c0_i32, %c0_i32_0 : i32, i32, i32
  }
  func.func @transform_16(%arg0: i32) -> (i32, i32, i32) {
    %c0_i32 = arith.constant 0 : i32
    %c0_i32_0 = arith.constant 0 : i32
    %c0_i32_1 = arith.constant 0 : i32
    return %arg0, %c0_i32, %c0_i32_0 : i32, i32, i32
  }
  func.func @transform_17(%arg0: i32) -> (i32, i32, i32) {
    %c0_i32 = arith.constant 0 : i32
    %c0_i32_0 = arith.constant 0 : i32
    %c0_i32_1 = arith.constant 0 : i32
    return %arg0, %c0_i32, %c0_i32_0 : i32, i32, i32
  }
  func.func @transform_18(%arg0: i32) -> (i32, i32, i32) {
    %c0_i32 = arith.constant 0 : i32
    %c0_i32_0 = arith.constant 0 : i32
    %c0_i32_1 = arith.constant 0 : i32
    %c0_i32_2 = arith.constant 0 : i32
    return %c0_i32, %c0_i32_0, %c0_i32_1 : i32, i32, i32
  }
}

module attributes {stable_mosaic.version = 11 : i64} {
  func.func @_decoder_stack_kernel(%arg0: i32, %arg1: memref<2x8x32xf32, #tpu.memory_space<vmem>>, %arg2: memref<2x8x32xf32, #tpu.memory_space<vmem>>, %arg3: memref<2x8x8xf32, #tpu.memory_space<vmem>>, %arg4: memref<2x1x8xf32, #tpu.memory_space<vmem>>, %arg5: memref<1x32x32xf32, #tpu.memory_space<vmem>>, %arg6: memref<1x1x32xf32, #tpu.memory_space<vmem>>, %arg7: memref<1x32x32xf32, #tpu.memory_space<vmem>>, %arg8: memref<1x1x32xf32, #tpu.memory_space<vmem>>, %arg9: memref<1x32x32xf32, #tpu.memory_space<vmem>>, %arg10: memref<1x1x32xf32, #tpu.memory_space<vmem>>, %arg11: memref<1x32x32xf32, #tpu.memory_space<vmem>>, %arg12: memref<1x1x32xf32, #tpu.memory_space<vmem>>, %arg13: memref<1x32x32xf32, #tpu.memory_space<vmem>>, %arg14: memref<1x1x32xf32, #tpu.memory_space<vmem>>, %arg15: memref<1x32x32xf32, #tpu.memory_space<vmem>>, %arg16: memref<1x1x32xf32, #tpu.memory_space<vmem>>, %arg17: memref<1x32x32xf32, #tpu.memory_space<vmem>>, %arg18: memref<1x1x32xf32, #tpu.memory_space<vmem>>, %arg19: memref<1x32x32xf32, #tpu.memory_space<vmem>>, %arg20: memref<1x1x32xf32, #tpu.memory_space<vmem>>, %arg21: memref<1x32x2048xf32, #tpu.memory_space<vmem>>, %arg22: memref<1x1x2048xf32, #tpu.memory_space<vmem>>, %arg23: memref<1x2048x32xf32, #tpu.memory_space<vmem>>, %arg24: memref<1x1x32xf32, #tpu.memory_space<vmem>>, %arg25: memref<1x1x32xf32, #tpu.memory_space<vmem>>, %arg26: memref<1x1x32xf32, #tpu.memory_space<vmem>>, %arg27: memref<1x1x32xf32, #tpu.memory_space<vmem>>, %arg28: memref<1x1x32xf32, #tpu.memory_space<vmem>>, %arg29: memref<1x1x32xf32, #tpu.memory_space<vmem>>, %arg30: memref<1x1x32xf32, #tpu.memory_space<vmem>>, %arg31: memref<32x128xf32, #tpu.memory_space<vmem>>, %arg32: memref<1x128xf32, #tpu.memory_space<vmem>>, %arg33: memref<2x8x128xf32, #tpu.memory_space<vmem>>, %arg34: memref<2x8x32xf32, #tpu.memory_space<vmem>>) attributes {dimension_semantics = [#tpu.dimension_semantics<arbitrary>], iteration_bounds = array<i64: 2>, scalar_prefetch = 0 : i64, scratch_operands = 1 : i64, tpu.core_type = #tpu.core_type<tc>, window_params = [{pipeline_mode = #tpu.pipeline_mode<synchronous>, transform_indices = @transform_0, window_bounds = array<i64: 2, 8, 32>}, {pipeline_mode = #tpu.pipeline_mode<synchronous>, transform_indices = @transform_1, window_bounds = array<i64: 2, 8, 32>}, {pipeline_mode = #tpu.pipeline_mode<synchronous>, transform_indices = @transform_2, window_bounds = array<i64: 2, 8, 8>}, {pipeline_mode = #tpu.pipeline_mode<synchronous>, transform_indices = @transform_3, window_bounds = array<i64: 2, 1, 8>}, {transform_indices = @transform_4, window_bounds = array<i64: 1, 32, 32>}, {transform_indices = @transform_5, window_bounds = array<i64: 1, 1, 32>}, {transform_indices = @transform_6, window_bounds = array<i64: 1, 32, 32>}, {transform_indices = @transform_7, window_bounds = array<i64: 1, 1, 32>}, {transform_indices = @transform_8, window_bounds = array<i64: 1, 32, 32>}, {transform_indices = @transform_9, window_bounds = array<i64: 1, 1, 32>}, {transform_indices = @transform_10, window_bounds = array<i64: 1, 32, 32>}, {transform_indices = @transform_11, window_bounds = array<i64: 1, 1, 32>}, {transform_indices = @transform_12, window_bounds = array<i64: 1, 32, 32>}, {transform_indices = @transform_13, window_bounds = array<i64: 1, 1, 32>}, {transform_indices = @transform_14, window_bounds = array<i64: 1, 32, 32>}, {transform_indices = @transform_15, window_bounds = array<i64: 1, 1, 32>}, {transform_indices = @transform_16, window_bounds = array<i64: 1, 32, 32>}, {transform_indices = @transform_17, window_bounds = array<i64: 1, 1, 32>}, {transform_indices = @transform_18, window_bounds = array<i64: 1, 32, 32>}, {transform_indices = @transform_19, window_bounds = array<i64: 1, 1, 32>}, {transform_indices = @transform_20, window_bounds = array<i64: 1, 32, 2048>}, {transform_indices = @transform_21, window_bounds = array<i64: 1, 1, 2048>}, {transform_indices = @transform_22, window_bounds = array<i64: 1, 2048, 32>}, {transform_indices = @transform_23, window_bounds = array<i64: 1, 1, 32>}, {transform_indices = @transform_24, window_bounds = array<i64: 1, 1, 32>}, {transform_indices = @transform_25, window_bounds = array<i64: 1, 1, 32>}, {transform_indices = @transform_26, window_bounds = array<i64: 1, 1, 32>}, {transform_indices = @transform_27, window_bounds = array<i64: 1, 1, 32>}, {transform_indices = @transform_28, window_bounds = array<i64: 1, 1, 32>}, {transform_indices = @transform_29, window_bounds = array<i64: 1, 1, 32>}, {pipeline_mode = #tpu.pipeline_mode<synchronous>, transform_indices = @transform_30, window_bounds = array<i64: 32, 128>}, {pipeline_mode = #tpu.pipeline_mode<synchronous>, transform_indices = @transform_31, window_bounds = array<i64: 1, 128>}, {pipeline_mode = #tpu.pipeline_mode<synchronous>, transform_indices = @transform_32, window_bounds = array<i64: 2, 8, 128>}]} {
    %c0_i32 = arith.constant 0 : i32
    %0 = arith.cmpi eq, %arg0, %c0_i32 : i32
    %1 = arith.extui %0 : i1 to i32
    %c0_i32_0 = arith.constant 0 : i32
    %2 = arith.cmpi ne, %1, %c0_i32_0 : i32
    scf.if %2 {
      %c0_193 = arith.constant 0 : index
      %c0_194 = arith.constant 0 : index
      %c0_195 = arith.constant 0 : index
      %352 = vector.load %arg1[%c0_193, %c0_194, %c0_195] : memref<2x8x32xf32, #tpu.memory_space<vmem>>, vector<2x8x32xf32>
      %c0_196 = arith.constant 0 : index
      %c0_197 = arith.constant 0 : index
      %c0_198 = arith.constant 0 : index
      %353 = vector.load %arg34[%c0_196, %c0_197, %c0_198] : memref<2x8x32xf32, #tpu.memory_space<vmem>>, vector<2x8x32xf32>
      tpu.vector_store %arg34[%c0_196, %c0_197, %c0_198], %352 {strides = array<i32>} : memref<2x8x32xf32, #tpu.memory_space<vmem>>, vector<2x8x32xf32>,
    } else {
    }
    %c0 = arith.constant 0 : index
    %c0_1 = arith.constant 0 : index
    %c0_2 = arith.constant 0 : index
    %3 = vector.load %arg34[%c0, %c0_1, %c0_2] : memref<2x8x32xf32, #tpu.memory_space<vmem>>, vector<2x8x32xf32>
    %4 = vector.shape_cast %3 : vector<2x8x32xf32> to vector<16x32xf32>
    %c0_3 = arith.constant 0 : index
    %c0_4 = arith.constant 0 : index
    %c0_5 = arith.constant 0 : index
    %5 = vector.load %arg2[%c0_3, %c0_4, %c0_5] : memref<2x8x32xf32, #tpu.memory_space<vmem>>, vector<2x8x32xf32>
    %6 = vector.shape_cast %5 : vector<2x8x32xf32> to vector<16x32xf32>
    %c0_6 = arith.constant 0 : index
    %c0_7 = arith.constant 0 : index
    %c0_8 = arith.constant 0 : index
    %7 = vector.load %arg5[%c0_6, %c0_7, %c0_8] : memref<1x32x32xf32, #tpu.memory_space<vmem>>, vector<1x32x32xf32>
    %8 = vector.shape_cast %7 : vector<1x32x32xf32> to vector<32x32xf32>
    %cst = arith.constant dense<0.000000e+00> : vector<16x32xf32>
    %9 = tpu.matmul %4, %8, %cst {dimension_numbers = #tpu.dot_dimension_numbers<[1], [0], [0], [1], [0, 0, 1, 1], [], []>} : vector<16x32xf32>, vector<32x32xf32>, vector<16x32xf32> -> vector<16x32xf32>
    %c0_9 = arith.constant 0 : index
    %c0_10 = arith.constant 0 : index
    %c0_11 = arith.constant 0 : index
    %10 = vector.load %arg6[%c0_9, %c0_10, %c0_11] : memref<1x1x32xf32, #tpu.memory_space<vmem>>, vector<1x1x32xf32>
    %11 = vector.shape_cast %10 : vector<1x1x32xf32> to vector<1x32xf32>
    %12 = vector.broadcast %11 : vector<1x32xf32> to vector<16x32xf32>
    %13 = arith.addf %9, %12 : vector<16x32xf32>
    %c0_12 = arith.constant 0 : index
    %c0_13 = arith.constant 0 : index
    %c0_14 = arith.constant 0 : index
    %14 = vector.load %arg7[%c0_12, %c0_13, %c0_14] : memref<1x32x32xf32, #tpu.memory_space<vmem>>, vector<1x32x32xf32>
    %15 = vector.shape_cast %14 : vector<1x32x32xf32> to vector<32x32xf32>
    %cst_15 = arith.constant dense<0.000000e+00> : vector<16x32xf32>
    %16 = tpu.matmul %4, %15, %cst_15 {dimension_numbers = #tpu.dot_dimension_numbers<[1], [0], [0], [1], [0, 0, 1, 1], [], []>} : vector<16x32xf32>, vector<32x32xf32>, vector<16x32xf32> -> vector<16x32xf32>
    %c0_16 = arith.constant 0 : index
    %c0_17 = arith.constant 0 : index
    %c0_18 = arith.constant 0 : index
    %17 = vector.load %arg8[%c0_16, %c0_17, %c0_18] : memref<1x1x32xf32, #tpu.memory_space<vmem>>, vector<1x1x32xf32>
    %18 = vector.shape_cast %17 : vector<1x1x32xf32> to vector<1x32xf32>
    %19 = vector.broadcast %18 : vector<1x32xf32> to vector<16x32xf32>
    %20 = arith.addf %16, %19 : vector<16x32xf32>
    %c0_19 = arith.constant 0 : index
    %c0_20 = arith.constant 0 : index
    %c0_21 = arith.constant 0 : index
    %21 = vector.load %arg9[%c0_19, %c0_20, %c0_21] : memref<1x32x32xf32, #tpu.memory_space<vmem>>, vector<1x32x32xf32>
    %22 = vector.shape_cast %21 : vector<1x32x32xf32> to vector<32x32xf32>
    %cst_22 = arith.constant dense<0.000000e+00> : vector<16x32xf32>
    %23 = tpu.matmul %4, %22, %cst_22 {dimension_numbers = #tpu.dot_dimension_numbers<[1], [0], [0], [1], [0, 0, 1, 1], [], []>} : vector<16x32xf32>, vector<32x32xf32>, vector<16x32xf32> -> vector<16x32xf32>
    %c0_23 = arith.constant 0 : index
    %c0_24 = arith.constant 0 : index
    %c0_25 = arith.constant 0 : index
    %24 = vector.load %arg10[%c0_23, %c0_24, %c0_25] : memref<1x1x32xf32, #tpu.memory_space<vmem>>, vector<1x1x32xf32>
    %25 = vector.shape_cast %24 : vector<1x1x32xf32> to vector<1x32xf32>
    %26 = vector.broadcast %25 : vector<1x32xf32> to vector<16x32xf32>
    %27 = arith.addf %23, %26 : vector<16x32xf32>
    %c0_26 = arith.constant 0 : index
    %c0_27 = arith.constant 0 : index
    %c0_28 = arith.constant 0 : index
    %28 = vector.load %arg3[%c0_26, %c0_27, %c0_28] : memref<2x8x8xf32, #tpu.memory_space<vmem>>, vector<2x8x8xf32>
    %c0_29 = arith.constant 0 : index
    %c0_30 = arith.constant 0 : index
    %c0_31 = arith.constant 0 : index
    %29 = vector.load %arg11[%c0_29, %c0_30, %c0_31] : memref<1x32x32xf32, #tpu.memory_space<vmem>>, vector<1x32x32xf32>
    %30 = vector.shape_cast %29 : vector<1x32x32xf32> to vector<32x32xf32>
    %c0_32 = arith.constant 0 : index
    %c0_33 = arith.constant 0 : index
    %c0_34 = arith.constant 0 : index
    %31 = vector.load %arg12[%c0_32, %c0_33, %c0_34] : memref<1x1x32xf32, #tpu.memory_space<vmem>>, vector<1x1x32xf32>
    %32 = vector.shape_cast %31 : vector<1x1x32xf32> to vector<1x32xf32>
    %33 = vector.shape_cast %13 : vector<16x32xf32> to vector<2x8x32xf32>
    %34 = vector.shape_cast %20 : vector<16x32xf32> to vector<2x8x32xf32>
    %35 = vector.shape_cast %27 : vector<16x32xf32> to vector<2x8x32xf32>
    %36 = vector.extract_strided_slice %33 {offsets = [0, 0, 0], sizes = [2, 8, 8], strides = [1, 1, 1]} : vector<2x8x32xf32> to vector<2x8x8xf32>
    %37 = vector.extract_strided_slice %34 {offsets = [0, 0, 0], sizes = [2, 8, 8], strides = [1, 1, 1]} : vector<2x8x32xf32> to vector<2x8x8xf32>
    "tpu.trace_start"() <{level = 10 : i32, message = "bqd,bkd->bqk"}> : () -> ()
    %cst_35 = arith.constant dense<0.000000e+00> : vector<2x8x8xf32>
    %38 = tpu.matmul %36, %37, %cst_35 {dimension_numbers = #tpu.dot_dimension_numbers<[2], [2], [1], [1], [0, 0, 0, 1, 1, 1], [0], [0]>} : vector<2x8x8xf32>, vector<2x8x8xf32>, vector<2x8x8xf32> -> vector<2x8x8xf32>
    "tpu.trace_stop"() : () -> ()
    %cst_36 = arith.constant 0.353553385 : f32
    %39 = vector.broadcast %cst_36 : f32 to vector<2x8x8xf32>
    %40 = arith.mulf %38, %39 : vector<2x8x8xf32>
    %41 = arith.addf %40, %28 : vector<2x8x8xf32>
    %cst_37 = arith.constant dense<0xFF800000> : vector<2x8xf32>
    %42 = vector.multi_reduction <maximumf>, %41, %cst_37 [2] : vector<2x8x8xf32> to vector<2x8xf32>
    %43 = vector.shape_cast %42 : vector<2x8xf32> to vector<2x8x1xf32>
    %44 = vector.broadcast %43 : vector<2x8x1xf32> to vector<2x8x8xf32>
    %45 = arith.subf %41, %44 : vector<2x8x8xf32>
    %46 = math.exp %45 : vector<2x8x8xf32>
    %cst_38 = arith.constant dense<0.000000e+00> : vector<2x8xf32>
    %47 = vector.multi_reduction <add>, %46, %cst_38 [2] : vector<2x8x8xf32> to vector<2x8xf32>
    %48 = vector.shape_cast %47 : vector<2x8xf32> to vector<2x8x1xf32>
    %49 = vector.broadcast %48 : vector<2x8x1xf32> to vector<2x8x8xf32>
    %50 = arith.divf %46, %49 : vector<2x8x8xf32>
    %51 = vector.extract_strided_slice %35 {offsets = [0, 0, 0], sizes = [2, 8, 8], strides = [1, 1, 1]} : vector<2x8x32xf32> to vector<2x8x8xf32>
    "tpu.trace_start"() <{level = 10 : i32, message = "bqk,bkd->bqd"}> : () -> ()
    %cst_39 = arith.constant dense<0.000000e+00> : vector<2x8x8xf32>
    %52 = tpu.matmul %50, %51, %cst_39 {dimension_numbers = #tpu.dot_dimension_numbers<[2], [1], [1], [2], [0, 0, 0, 1, 1, 2], [0], [0]>} : vector<2x8x8xf32>, vector<2x8x8xf32>, vector<2x8x8xf32> -> vector<2x8x8xf32>
    "tpu.trace_stop"() : () -> ()
    %53 = vector.extract_strided_slice %33 {offsets = [0, 0, 8], sizes = [2, 8, 8], strides = [1, 1, 1]} : vector<2x8x32xf32> to vector<2x8x8xf32>
    %54 = vector.extract_strided_slice %34 {offsets = [0, 0, 8], sizes = [2, 8, 8], strides = [1, 1, 1]} : vector<2x8x32xf32> to vector<2x8x8xf32>
    "tpu.trace_start"() <{level = 10 : i32, message = "bqd,bkd->bqk"}> : () -> ()
    %cst_40 = arith.constant dense<0.000000e+00> : vector<2x8x8xf32>
    %55 = tpu.matmul %53, %54, %cst_40 {dimension_numbers = #tpu.dot_dimension_numbers<[2], [2], [1], [1], [0, 0, 0, 1, 1, 1], [0], [0]>} : vector<2x8x8xf32>, vector<2x8x8xf32>, vector<2x8x8xf32> -> vector<2x8x8xf32>
    "tpu.trace_stop"() : () -> ()
    %cst_41 = arith.constant 0.353553385 : f32
    %56 = vector.broadcast %cst_41 : f32 to vector<2x8x8xf32>
    %57 = arith.mulf %55, %56 : vector<2x8x8xf32>
    %58 = arith.addf %57, %28 : vector<2x8x8xf32>
    %cst_42 = arith.constant dense<0xFF800000> : vector<2x8xf32>
    %59 = vector.multi_reduction <maximumf>, %58, %cst_42 [2] : vector<2x8x8xf32> to vector<2x8xf32>
    %60 = vector.shape_cast %59 : vector<2x8xf32> to vector<2x8x1xf32>
    %61 = vector.broadcast %60 : vector<2x8x1xf32> to vector<2x8x8xf32>
    %62 = arith.subf %58, %61 : vector<2x8x8xf32>
    %63 = math.exp %62 : vector<2x8x8xf32>
    %cst_43 = arith.constant dense<0.000000e+00> : vector<2x8xf32>
    %64 = vector.multi_reduction <add>, %63, %cst_43 [2] : vector<2x8x8xf32> to vector<2x8xf32>
    %65 = vector.shape_cast %64 : vector<2x8xf32> to vector<2x8x1xf32>
    %66 = vector.broadcast %65 : vector<2x8x1xf32> to vector<2x8x8xf32>
    %67 = arith.divf %63, %66 : vector<2x8x8xf32>
    %68 = vector.extract_strided_slice %35 {offsets = [0, 0, 8], sizes = [2, 8, 8], strides = [1, 1, 1]} : vector<2x8x32xf32> to vector<2x8x8xf32>
    "tpu.trace_start"() <{level = 10 : i32, message = "bqk,bkd->bqd"}> : () -> ()
    %cst_44 = arith.constant dense<0.000000e+00> : vector<2x8x8xf32>
    %69 = tpu.matmul %67, %68, %cst_44 {dimension_numbers = #tpu.dot_dimension_numbers<[2], [1], [1], [2], [0, 0, 0, 1, 1, 2], [0], [0]>} : vector<2x8x8xf32>, vector<2x8x8xf32>, vector<2x8x8xf32> -> vector<2x8x8xf32>
    "tpu.trace_stop"() : () -> ()
    %70 = vector.extract_strided_slice %33 {offsets = [0, 0, 16], sizes = [2, 8, 8], strides = [1, 1, 1]} : vector<2x8x32xf32> to vector<2x8x8xf32>
    %71 = vector.extract_strided_slice %34 {offsets = [0, 0, 16], sizes = [2, 8, 8], strides = [1, 1, 1]} : vector<2x8x32xf32> to vector<2x8x8xf32>
    "tpu.trace_start"() <{level = 10 : i32, message = "bqd,bkd->bqk"}> : () -> ()
    %cst_45 = arith.constant dense<0.000000e+00> : vector<2x8x8xf32>
    %72 = tpu.matmul %70, %71, %cst_45 {dimension_numbers = #tpu.dot_dimension_numbers<[2], [2], [1], [1], [0, 0, 0, 1, 1, 1], [0], [0]>} : vector<2x8x8xf32>, vector<2x8x8xf32>, vector<2x8x8xf32> -> vector<2x8x8xf32>
    "tpu.trace_stop"() : () -> ()
    %cst_46 = arith.constant 0.353553385 : f32
    %73 = vector.broadcast %cst_46 : f32 to vector<2x8x8xf32>
    %74 = arith.mulf %72, %73 : vector<2x8x8xf32>
    %75 = arith.addf %74, %28 : vector<2x8x8xf32>
    %cst_47 = arith.constant dense<0xFF800000> : vector<2x8xf32>
    %76 = vector.multi_reduction <maximumf>, %75, %cst_47 [2] : vector<2x8x8xf32> to vector<2x8xf32>
    %77 = vector.shape_cast %76 : vector<2x8xf32> to vector<2x8x1xf32>
    %78 = vector.broadcast %77 : vector<2x8x1xf32> to vector<2x8x8xf32>
    %79 = arith.subf %75, %78 : vector<2x8x8xf32>
    %80 = math.exp %79 : vector<2x8x8xf32>
    %cst_48 = arith.constant dense<0.000000e+00> : vector<2x8xf32>
    %81 = vector.multi_reduction <add>, %80, %cst_48 [2] : vector<2x8x8xf32> to vector<2x8xf32>
    %82 = vector.shape_cast %81 : vector<2x8xf32> to vector<2x8x1xf32>
    %83 = vector.broadcast %82 : vector<2x8x1xf32> to vector<2x8x8xf32>
    %84 = arith.divf %80, %83 : vector<2x8x8xf32>
    %85 = vector.extract_strided_slice %35 {offsets = [0, 0, 16], sizes = [2, 8, 8], strides = [1, 1, 1]} : vector<2x8x32xf32> to vector<2x8x8xf32>
    "tpu.trace_start"() <{level = 10 : i32, message = "bqk,bkd->bqd"}> : () -> ()
    %cst_49 = arith.constant dense<0.000000e+00> : vector<2x8x8xf32>
    %86 = tpu.matmul %84, %85, %cst_49 {dimension_numbers = #tpu.dot_dimension_numbers<[2], [1], [1], [2], [0, 0, 0, 1, 1, 2], [0], [0]>} : vector<2x8x8xf32>, vector<2x8x8xf32>, vector<2x8x8xf32> -> vector<2x8x8xf32>
    "tpu.trace_stop"() : () -> ()
    %87 = vector.extract_strided_slice %33 {offsets = [0, 0, 24], sizes = [2, 8, 8], strides = [1, 1, 1]} : vector<2x8x32xf32> to vector<2x8x8xf32>
    %88 = vector.extract_strided_slice %34 {offsets = [0, 0, 24], sizes = [2, 8, 8], strides = [1, 1, 1]} : vector<2x8x32xf32> to vector<2x8x8xf32>
    "tpu.trace_start"() <{level = 10 : i32, message = "bqd,bkd->bqk"}> : () -> ()
    %cst_50 = arith.constant dense<0.000000e+00> : vector<2x8x8xf32>
    %89 = tpu.matmul %87, %88, %cst_50 {dimension_numbers = #tpu.dot_dimension_numbers<[2], [2], [1], [1], [0, 0, 0, 1, 1, 1], [0], [0]>} : vector<2x8x8xf32>, vector<2x8x8xf32>, vector<2x8x8xf32> -> vector<2x8x8xf32>
    "tpu.trace_stop"() : () -> ()
    %cst_51 = arith.constant 0.353553385 : f32
    %90 = vector.broadcast %cst_51 : f32 to vector<2x8x8xf32>
    %91 = arith.mulf %89, %90 : vector<2x8x8xf32>
    %92 = arith.addf %91, %28 : vector<2x8x8xf32>
    %cst_52 = arith.constant dense<0xFF800000> : vector<2x8xf32>
    %93 = vector.multi_reduction <maximumf>, %92, %cst_52 [2] : vector<2x8x8xf32> to vector<2x8xf32>
    %94 = vector.shape_cast %93 : vector<2x8xf32> to vector<2x8x1xf32>
    %95 = vector.broadcast %94 : vector<2x8x1xf32> to vector<2x8x8xf32>
    %96 = arith.subf %92, %95 : vector<2x8x8xf32>
    %97 = math.exp %96 : vector<2x8x8xf32>
    %cst_53 = arith.constant dense<0.000000e+00> : vector<2x8xf32>
    %98 = vector.multi_reduction <add>, %97, %cst_53 [2] : vector<2x8x8xf32> to vector<2x8xf32>
    %99 = vector.shape_cast %98 : vector<2x8xf32> to vector<2x8x1xf32>
    %100 = vector.broadcast %99 : vector<2x8x1xf32> to vector<2x8x8xf32>
    %101 = arith.divf %97, %100 : vector<2x8x8xf32>
    %102 = vector.extract_strided_slice %35 {offsets = [0, 0, 24], sizes = [2, 8, 8], strides = [1, 1, 1]} : vector<2x8x32xf32> to vector<2x8x8xf32>
    "tpu.trace_start"() <{level = 10 : i32, message = "bqk,bkd->bqd"}> : () -> ()
    %cst_54 = arith.constant dense<0.000000e+00> : vector<2x8x8xf32>
    %103 = tpu.matmul %101, %102, %cst_54 {dimension_numbers = #tpu.dot_dimension_numbers<[2], [1], [1], [2], [0, 0, 0, 1, 1, 2], [0], [0]>} : vector<2x8x8xf32>, vector<2x8x8xf32>, vector<2x8x8xf32> -> vector<2x8x8xf32>
    "tpu.trace_stop"() : () -> ()
    %104 = tpu.concatenate %52, %69, %86, %103 in 2 : vector<2x8x8xf32>, vector<2x8x8xf32>, vector<2x8x8xf32>, vector<2x8x8xf32> -> vector<2x8x32xf32>
    %105 = vector.shape_cast %104 : vector<2x8x32xf32> to vector<16x32xf32>
    %cst_55 = arith.constant dense<0.000000e+00> : vector<16x32xf32>
    %106 = tpu.matmul %105, %30, %cst_55 {dimension_numbers = #tpu.dot_dimension_numbers<[1], [0], [0], [1], [0, 0, 1, 1], [], []>} : vector<16x32xf32>, vector<32x32xf32>, vector<16x32xf32> -> vector<16x32xf32>
    %107 = vector.broadcast %32 : vector<1x32xf32> to vector<16x32xf32>
    %108 = arith.addf %106, %107 : vector<16x32xf32>
    %109 = arith.addf %4, %108 : vector<16x32xf32>
    %c0_56 = arith.constant 0 : index
    %c0_57 = arith.constant 0 : index
    %c0_58 = arith.constant 0 : index
    %110 = vector.load %arg25[%c0_56, %c0_57, %c0_58] : memref<1x1x32xf32, #tpu.memory_space<vmem>>, vector<1x1x32xf32>
    %111 = vector.shape_cast %110 : vector<1x1x32xf32> to vector<1x32xf32>
    %c0_59 = arith.constant 0 : index
    %c0_60 = arith.constant 0 : index
    %c0_61 = arith.constant 0 : index
    %112 = vector.load %arg26[%c0_59, %c0_60, %c0_61] : memref<1x1x32xf32, #tpu.memory_space<vmem>>, vector<1x1x32xf32>
    %113 = vector.shape_cast %112 : vector<1x1x32xf32> to vector<1x32xf32>
    %cst_62 = arith.constant dense<0.000000e+00> : vector<16xf32>
    %114 = vector.multi_reduction <add>, %109, %cst_62 [1] : vector<16x32xf32> to vector<16xf32>
    %115 = vector.shape_cast %114 : vector<16xf32> to vector<16x1xf32>
    %cst_63 = arith.constant 3.200000e+01 : f32
    %116 = vector.broadcast %cst_63 : f32 to vector<16x1xf32>
    %117 = arith.divf %115, %116 : vector<16x1xf32>
    %118 = vector.broadcast %117 : vector<16x1xf32> to vector<16x32xf32>
    %119 = arith.subf %109, %118 : vector<16x32xf32>
    %120 = arith.mulf %119, %119 : vector<16x32xf32>
    %cst_64 = arith.constant dense<0.000000e+00> : vector<16xf32>
    %121 = vector.multi_reduction <add>, %120, %cst_64 [1] : vector<16x32xf32> to vector<16xf32>
    %122 = vector.shape_cast %121 : vector<16xf32> to vector<16x1xf32>
    %cst_65 = arith.constant 3.200000e+01 : f32
    %123 = vector.broadcast %cst_65 : f32 to vector<16x1xf32>
    %124 = arith.divf %122, %123 : vector<16x1xf32>
    %cst_66 = arith.constant 9.99999974E-6 : f32
    %125 = vector.broadcast %cst_66 : f32 to vector<16x1xf32>
    %126 = arith.addf %124, %125 : vector<16x1xf32>
    %127 = math.rsqrt %126 : vector<16x1xf32>
    %128 = vector.broadcast %127 : vector<16x1xf32> to vector<16x32xf32>
    %129 = arith.mulf %119, %128 : vector<16x32xf32>
    %130 = vector.broadcast %111 : vector<1x32xf32> to vector<16x32xf32>
    %131 = arith.mulf %129, %130 : vector<16x32xf32>
    %132 = vector.broadcast %113 : vector<1x32xf32> to vector<16x32xf32>
    %133 = arith.addf %131, %132 : vector<16x32xf32>
    %c0_67 = arith.constant 0 : index
    %c0_68 = arith.constant 0 : index
    %c0_69 = arith.constant 0 : index
    %134 = vector.load %arg13[%c0_67, %c0_68, %c0_69] : memref<1x32x32xf32, #tpu.memory_space<vmem>>, vector<1x32x32xf32>
    %135 = vector.shape_cast %134 : vector<1x32x32xf32> to vector<32x32xf32>
    %cst_70 = arith.constant dense<0.000000e+00> : vector<16x32xf32>
    %136 = tpu.matmul %133, %135, %cst_70 {dimension_numbers = #tpu.dot_dimension_numbers<[1], [0], [0], [1], [0, 0, 1, 1], [], []>} : vector<16x32xf32>, vector<32x32xf32>, vector<16x32xf32> -> vector<16x32xf32>
    %c0_71 = arith.constant 0 : index
    %c0_72 = arith.constant 0 : index
    %c0_73 = arith.constant 0 : index
    %137 = vector.load %arg14[%c0_71, %c0_72, %c0_73] : memref<1x1x32xf32, #tpu.memory_space<vmem>>, vector<1x1x32xf32>
    %138 = vector.shape_cast %137 : vector<1x1x32xf32> to vector<1x32xf32>
    %139 = vector.broadcast %138 : vector<1x32xf32> to vector<16x32xf32>
    %140 = arith.addf %136, %139 : vector<16x32xf32>
    %c0_74 = arith.constant 0 : index
    %c0_75 = arith.constant 0 : index
    %c0_76 = arith.constant 0 : index
    %141 = vector.load %arg15[%c0_74, %c0_75, %c0_76] : memref<1x32x32xf32, #tpu.memory_space<vmem>>, vector<1x32x32xf32>
    %142 = vector.shape_cast %141 : vector<1x32x32xf32> to vector<32x32xf32>
    %cst_77 = arith.constant dense<0.000000e+00> : vector<16x32xf32>
    %143 = tpu.matmul %6, %142, %cst_77 {dimension_numbers = #tpu.dot_dimension_numbers<[1], [0], [0], [1], [0, 0, 1, 1], [], []>} : vector<16x32xf32>, vector<32x32xf32>, vector<16x32xf32> -> vector<16x32xf32>
    %c0_78 = arith.constant 0 : index
    %c0_79 = arith.constant 0 : index
    %c0_80 = arith.constant 0 : index
    %144 = vector.load %arg16[%c0_78, %c0_79, %c0_80] : memref<1x1x32xf32, #tpu.memory_space<vmem>>, vector<1x1x32xf32>
    %145 = vector.shape_cast %144 : vector<1x1x32xf32> to vector<1x32xf32>
    %146 = vector.broadcast %145 : vector<1x32xf32> to vector<16x32xf32>
    %147 = arith.addf %143, %146 : vector<16x32xf32>
    %c0_81 = arith.constant 0 : index
    %c0_82 = arith.constant 0 : index
    %c0_83 = arith.constant 0 : index
    %148 = vector.load %arg17[%c0_81, %c0_82, %c0_83] : memref<1x32x32xf32, #tpu.memory_space<vmem>>, vector<1x32x32xf32>
    %149 = vector.shape_cast %148 : vector<1x32x32xf32> to vector<32x32xf32>
    %cst_84 = arith.constant dense<0.000000e+00> : vector<16x32xf32>
    %150 = tpu.matmul %6, %149, %cst_84 {dimension_numbers = #tpu.dot_dimension_numbers<[1], [0], [0], [1], [0, 0, 1, 1], [], []>} : vector<16x32xf32>, vector<32x32xf32>, vector<16x32xf32> -> vector<16x32xf32>
    %c0_85 = arith.constant 0 : index
    %c0_86 = arith.constant 0 : index
    %c0_87 = arith.constant 0 : index
    %151 = vector.load %arg18[%c0_85, %c0_86, %c0_87] : memref<1x1x32xf32, #tpu.memory_space<vmem>>, vector<1x1x32xf32>
    %152 = vector.shape_cast %151 : vector<1x1x32xf32> to vector<1x32xf32>
    %153 = vector.broadcast %152 : vector<1x32xf32> to vector<16x32xf32>
    %154 = arith.addf %150, %153 : vector<16x32xf32>
    %c0_88 = arith.constant 0 : index
    %c0_89 = arith.constant 0 : index
    %c0_90 = arith.constant 0 : index
    %155 = vector.load %arg4[%c0_88, %c0_89, %c0_90] : memref<2x1x8xf32, #tpu.memory_space<vmem>>, vector<2x1x8xf32>
    %c0_91 = arith.constant 0 : index
    %c0_92 = arith.constant 0 : index
    %c0_93 = arith.constant 0 : index
    %156 = vector.load %arg19[%c0_91, %c0_92, %c0_93] : memref<1x32x32xf32, #tpu.memory_space<vmem>>, vector<1x32x32xf32>
    %157 = vector.shape_cast %156 : vector<1x32x32xf32> to vector<32x32xf32>
    %c0_94 = arith.constant 0 : index
    %c0_95 = arith.constant 0 : index
    %c0_96 = arith.constant 0 : index
    %158 = vector.load %arg20[%c0_94, %c0_95, %c0_96] : memref<1x1x32xf32, #tpu.memory_space<vmem>>, vector<1x1x32xf32>
    %159 = vector.shape_cast %158 : vector<1x1x32xf32> to vector<1x32xf32>
    %160 = vector.shape_cast %140 : vector<16x32xf32> to vector<2x8x32xf32>
    %161 = vector.shape_cast %147 : vector<16x32xf32> to vector<2x8x32xf32>
    %162 = vector.shape_cast %154 : vector<16x32xf32> to vector<2x8x32xf32>
    %163 = vector.extract_strided_slice %160 {offsets = [0, 0, 0], sizes = [2, 8, 8], strides = [1, 1, 1]} : vector<2x8x32xf32> to vector<2x8x8xf32>
    %164 = vector.extract_strided_slice %161 {offsets = [0, 0, 0], sizes = [2, 8, 8], strides = [1, 1, 1]} : vector<2x8x32xf32> to vector<2x8x8xf32>
    "tpu.trace_start"() <{level = 10 : i32, message = "bqd,bkd->bqk"}> : () -> ()
    %cst_97 = arith.constant dense<0.000000e+00> : vector<2x8x8xf32>
    %165 = tpu.matmul %163, %164, %cst_97 {dimension_numbers = #tpu.dot_dimension_numbers<[2], [2], [1], [1], [0, 0, 0, 1, 1, 1], [0], [0]>} : vector<2x8x8xf32>, vector<2x8x8xf32>, vector<2x8x8xf32> -> vector<2x8x8xf32>
    "tpu.trace_stop"() : () -> ()
    %cst_98 = arith.constant 0.353553385 : f32
    %166 = vector.broadcast %cst_98 : f32 to vector<2x8x8xf32>
    %167 = arith.mulf %165, %166 : vector<2x8x8xf32>
    %168 = vector.broadcast %155 : vector<2x1x8xf32> to vector<2x8x8xf32>
    %169 = arith.addf %167, %168 : vector<2x8x8xf32>
    %cst_99 = arith.constant dense<0xFF800000> : vector<2x8xf32>
    %170 = vector.multi_reduction <maximumf>, %169, %cst_99 [2] : vector<2x8x8xf32> to vector<2x8xf32>
    %171 = vector.shape_cast %170 : vector<2x8xf32> to vector<2x8x1xf32>
    %172 = vector.broadcast %171 : vector<2x8x1xf32> to vector<2x8x8xf32>
    %173 = arith.subf %169, %172 : vector<2x8x8xf32>
    %174 = math.exp %173 : vector<2x8x8xf32>
    %cst_100 = arith.constant dense<0.000000e+00> : vector<2x8xf32>
    %175 = vector.multi_reduction <add>, %174, %cst_100 [2] : vector<2x8x8xf32> to vector<2x8xf32>
    %176 = vector.shape_cast %175 : vector<2x8xf32> to vector<2x8x1xf32>
    %177 = vector.broadcast %176 : vector<2x8x1xf32> to vector<2x8x8xf32>
    %178 = arith.divf %174, %177 : vector<2x8x8xf32>
    %179 = vector.extract_strided_slice %162 {offsets = [0, 0, 0], sizes = [2, 8, 8], strides = [1, 1, 1]} : vector<2x8x32xf32> to vector<2x8x8xf32>
    "tpu.trace_start"() <{level = 10 : i32, message = "bqk,bkd->bqd"}> : () -> ()
    %cst_101 = arith.constant dense<0.000000e+00> : vector<2x8x8xf32>
    %180 = tpu.matmul %178, %179, %cst_101 {dimension_numbers = #tpu.dot_dimension_numbers<[2], [1], [1], [2], [0, 0, 0, 1, 1, 2], [0], [0]>} : vector<2x8x8xf32>, vector<2x8x8xf32>, vector<2x8x8xf32> -> vector<2x8x8xf32>
    "tpu.trace_stop"() : () -> ()
    %181 = vector.extract_strided_slice %160 {offsets = [0, 0, 8], sizes = [2, 8, 8], strides = [1, 1, 1]} : vector<2x8x32xf32> to vector<2x8x8xf32>
    %182 = vector.extract_strided_slice %161 {offsets = [0, 0, 8], sizes = [2, 8, 8], strides = [1, 1, 1]} : vector<2x8x32xf32> to vector<2x8x8xf32>
    "tpu.trace_start"() <{level = 10 : i32, message = "bqd,bkd->bqk"}> : () -> ()
    %cst_102 = arith.constant dense<0.000000e+00> : vector<2x8x8xf32>
    %183 = tpu.matmul %181, %182, %cst_102 {dimension_numbers = #tpu.dot_dimension_numbers<[2], [2], [1], [1], [0, 0, 0, 1, 1, 1], [0], [0]>} : vector<2x8x8xf32>, vector<2x8x8xf32>, vector<2x8x8xf32> -> vector<2x8x8xf32>
    "tpu.trace_stop"() : () -> ()
    %cst_103 = arith.constant 0.353553385 : f32
    %184 = vector.broadcast %cst_103 : f32 to vector<2x8x8xf32>
    %185 = arith.mulf %183, %184 : vector<2x8x8xf32>
    %186 = vector.broadcast %155 : vector<2x1x8xf32> to vector<2x8x8xf32>
    %187 = arith.addf %185, %186 : vector<2x8x8xf32>
    %cst_104 = arith.constant dense<0xFF800000> : vector<2x8xf32>
    %188 = vector.multi_reduction <maximumf>, %187, %cst_104 [2] : vector<2x8x8xf32> to vector<2x8xf32>
    %189 = vector.shape_cast %188 : vector<2x8xf32> to vector<2x8x1xf32>
    %190 = vector.broadcast %189 : vector<2x8x1xf32> to vector<2x8x8xf32>
    %191 = arith.subf %187, %190 : vector<2x8x8xf32>
    %192 = math.exp %191 : vector<2x8x8xf32>
    %cst_105 = arith.constant dense<0.000000e+00> : vector<2x8xf32>
    %193 = vector.multi_reduction <add>, %192, %cst_105 [2] : vector<2x8x8xf32> to vector<2x8xf32>
    %194 = vector.shape_cast %193 : vector<2x8xf32> to vector<2x8x1xf32>
    %195 = vector.broadcast %194 : vector<2x8x1xf32> to vector<2x8x8xf32>
    %196 = arith.divf %192, %195 : vector<2x8x8xf32>
    %197 = vector.extract_strided_slice %162 {offsets = [0, 0, 8], sizes = [2, 8, 8], strides = [1, 1, 1]} : vector<2x8x32xf32> to vector<2x8x8xf32>
    "tpu.trace_start"() <{level = 10 : i32, message = "bqk,bkd->bqd"}> : () -> ()
    %cst_106 = arith.constant dense<0.000000e+00> : vector<2x8x8xf32>
    %198 = tpu.matmul %196, %197, %cst_106 {dimension_numbers = #tpu.dot_dimension_numbers<[2], [1], [1], [2], [0, 0, 0, 1, 1, 2], [0], [0]>} : vector<2x8x8xf32>, vector<2x8x8xf32>, vector<2x8x8xf32> -> vector<2x8x8xf32>
    "tpu.trace_stop"() : () -> ()
    %199 = vector.extract_strided_slice %160 {offsets = [0, 0, 16], sizes = [2, 8, 8], strides = [1, 1, 1]} : vector<2x8x32xf32> to vector<2x8x8xf32>
    %200 = vector.extract_strided_slice %161 {offsets = [0, 0, 16], sizes = [2, 8, 8], strides = [1, 1, 1]} : vector<2x8x32xf32> to vector<2x8x8xf32>
    "tpu.trace_start"() <{level = 10 : i32, message = "bqd,bkd->bqk"}> : () -> ()
    %cst_107 = arith.constant dense<0.000000e+00> : vector<2x8x8xf32>
    %201 = tpu.matmul %199, %200, %cst_107 {dimension_numbers = #tpu.dot_dimension_numbers<[2], [2], [1], [1], [0, 0, 0, 1, 1, 1], [0], [0]>} : vector<2x8x8xf32>, vector<2x8x8xf32>, vector<2x8x8xf32> -> vector<2x8x8xf32>
    "tpu.trace_stop"() : () -> ()
    %cst_108 = arith.constant 0.353553385 : f32
    %202 = vector.broadcast %cst_108 : f32 to vector<2x8x8xf32>
    %203 = arith.mulf %201, %202 : vector<2x8x8xf32>
    %204 = vector.broadcast %155 : vector<2x1x8xf32> to vector<2x8x8xf32>
    %205 = arith.addf %203, %204 : vector<2x8x8xf32>
    %cst_109 = arith.constant dense<0xFF800000> : vector<2x8xf32>
    %206 = vector.multi_reduction <maximumf>, %205, %cst_109 [2] : vector<2x8x8xf32> to vector<2x8xf32>
    %207 = vector.shape_cast %206 : vector<2x8xf32> to vector<2x8x1xf32>
    %208 = vector.broadcast %207 : vector<2x8x1xf32> to vector<2x8x8xf32>
    %209 = arith.subf %205, %208 : vector<2x8x8xf32>
    %210 = math.exp %209 : vector<2x8x8xf32>
    %cst_110 = arith.constant dense<0.000000e+00> : vector<2x8xf32>
    %211 = vector.multi_reduction <add>, %210, %cst_110 [2] : vector<2x8x8xf32> to vector<2x8xf32>
    %212 = vector.shape_cast %211 : vector<2x8xf32> to vector<2x8x1xf32>
    %213 = vector.broadcast %212 : vector<2x8x1xf32> to vector<2x8x8xf32>
    %214 = arith.divf %210, %213 : vector<2x8x8xf32>
    %215 = vector.extract_strided_slice %162 {offsets = [0, 0, 16], sizes = [2, 8, 8], strides = [1, 1, 1]} : vector<2x8x32xf32> to vector<2x8x8xf32>
    "tpu.trace_start"() <{level = 10 : i32, message = "bqk,bkd->bqd"}> : () -> ()
    %cst_111 = arith.constant dense<0.000000e+00> : vector<2x8x8xf32>
    %216 = tpu.matmul %214, %215, %cst_111 {dimension_numbers = #tpu.dot_dimension_numbers<[2], [1], [1], [2], [0, 0, 0, 1, 1, 2], [0], [0]>} : vector<2x8x8xf32>, vector<2x8x8xf32>, vector<2x8x8xf32> -> vector<2x8x8xf32>
    "tpu.trace_stop"() : () -> ()
    %217 = vector.extract_strided_slice %160 {offsets = [0, 0, 24], sizes = [2, 8, 8], strides = [1, 1, 1]} : vector<2x8x32xf32> to vector<2x8x8xf32>
    %218 = vector.extract_strided_slice %161 {offsets = [0, 0, 24], sizes = [2, 8, 8], strides = [1, 1, 1]} : vector<2x8x32xf32> to vector<2x8x8xf32>
    "tpu.trace_start"() <{level = 10 : i32, message = "bqd,bkd->bqk"}> : () -> ()
    %cst_112 = arith.constant dense<0.000000e+00> : vector<2x8x8xf32>
    %219 = tpu.matmul %217, %218, %cst_112 {dimension_numbers = #tpu.dot_dimension_numbers<[2], [2], [1], [1], [0, 0, 0, 1, 1, 1], [0], [0]>} : vector<2x8x8xf32>, vector<2x8x8xf32>, vector<2x8x8xf32> -> vector<2x8x8xf32>
    "tpu.trace_stop"() : () -> ()
    %cst_113 = arith.constant 0.353553385 : f32
    %220 = vector.broadcast %cst_113 : f32 to vector<2x8x8xf32>
    %221 = arith.mulf %219, %220 : vector<2x8x8xf32>
    %222 = vector.broadcast %155 : vector<2x1x8xf32> to vector<2x8x8xf32>
    %223 = arith.addf %221, %222 : vector<2x8x8xf32>
    %cst_114 = arith.constant dense<0xFF800000> : vector<2x8xf32>
    %224 = vector.multi_reduction <maximumf>, %223, %cst_114 [2] : vector<2x8x8xf32> to vector<2x8xf32>
    %225 = vector.shape_cast %224 : vector<2x8xf32> to vector<2x8x1xf32>
    %226 = vector.broadcast %225 : vector<2x8x1xf32> to vector<2x8x8xf32>
    %227 = arith.subf %223, %226 : vector<2x8x8xf32>
    %228 = math.exp %227 : vector<2x8x8xf32>
    %cst_115 = arith.constant dense<0.000000e+00> : vector<2x8xf32>
    %229 = vector.multi_reduction <add>, %228, %cst_115 [2] : vector<2x8x8xf32> to vector<2x8xf32>
    %230 = vector.shape_cast %229 : vector<2x8xf32> to vector<2x8x1xf32>
    %231 = vector.broadcast %230 : vector<2x8x1xf32> to vector<2x8x8xf32>
    %232 = arith.divf %228, %231 : vector<2x8x8xf32>
    %233 = vector.extract_strided_slice %162 {offsets = [0, 0, 24], sizes = [2, 8, 8], strides = [1, 1, 1]} : vector<2x8x32xf32> to vector<2x8x8xf32>
    "tpu.trace_start"() <{level = 10 : i32, message = "bqk,bkd->bqd"}> : () -> ()
    %cst_116 = arith.constant dense<0.000000e+00> : vector<2x8x8xf32>
    %234 = tpu.matmul %232, %233, %cst_116 {dimension_numbers = #tpu.dot_dimension_numbers<[2], [1], [1], [2], [0, 0, 0, 1, 1, 2], [0], [0]>} : vector<2x8x8xf32>, vector<2x8x8xf32>, vector<2x8x8xf32> -> vector<2x8x8xf32>
    "tpu.trace_stop"() : () -> ()
    %235 = tpu.concatenate %180, %198, %216, %234 in 2 : vector<2x8x8xf32>, vector<2x8x8xf32>, vector<2x8x8xf32>, vector<2x8x8xf32> -> vector<2x8x32xf32>
    %236 = vector.shape_cast %235 : vector<2x8x32xf32> to vector<16x32xf32>
    %cst_117 = arith.constant dense<0.000000e+00> : vector<16x32xf32>
    %237 = tpu.matmul %236, %157, %cst_117 {dimension_numbers = #tpu.dot_dimension_numbers<[1], [0], [0], [1], [0, 0, 1, 1], [], []>} : vector<16x32xf32>, vector<32x32xf32>, vector<16x32xf32> -> vector<16x32xf32>
    %238 = vector.broadcast %159 : vector<1x32xf32> to vector<16x32xf32>
    %239 = arith.addf %237, %238 : vector<16x32xf32>
    %240 = arith.addf %133, %239 : vector<16x32xf32>
    %c0_118 = arith.constant 0 : index
    %c0_119 = arith.constant 0 : index
    %c0_120 = arith.constant 0 : index
    %241 = vector.load %arg27[%c0_118, %c0_119, %c0_120] : memref<1x1x32xf32, #tpu.memory_space<vmem>>, vector<1x1x32xf32>
    %242 = vector.shape_cast %241 : vector<1x1x32xf32> to vector<1x32xf32>
    %c0_121 = arith.constant 0 : index
    %c0_122 = arith.constant 0 : index
    %c0_123 = arith.constant 0 : index
    %243 = vector.load %arg28[%c0_121, %c0_122, %c0_123] : memref<1x1x32xf32, #tpu.memory_space<vmem>>, vector<1x1x32xf32>
    %244 = vector.shape_cast %243 : vector<1x1x32xf32> to vector<1x32xf32>
    %cst_124 = arith.constant dense<0.000000e+00> : vector<16xf32>
    %245 = vector.multi_reduction <add>, %240, %cst_124 [1] : vector<16x32xf32> to vector<16xf32>
    %246 = vector.shape_cast %245 : vector<16xf32> to vector<16x1xf32>
    %cst_125 = arith.constant 3.200000e+01 : f32
    %247 = vector.broadcast %cst_125 : f32 to vector<16x1xf32>
    %248 = arith.divf %246, %247 : vector<16x1xf32>
    %249 = vector.broadcast %248 : vector<16x1xf32> to vector<16x32xf32>
    %250 = arith.subf %240, %249 : vector<16x32xf32>
    %251 = arith.mulf %250, %250 : vector<16x32xf32>
    %cst_126 = arith.constant dense<0.000000e+00> : vector<16xf32>
    %252 = vector.multi_reduction <add>, %251, %cst_126 [1] : vector<16x32xf32> to vector<16xf32>
    %253 = vector.shape_cast %252 : vector<16xf32> to vector<16x1xf32>
    %cst_127 = arith.constant 3.200000e+01 : f32
    %254 = vector.broadcast %cst_127 : f32 to vector<16x1xf32>
    %255 = arith.divf %253, %254 : vector<16x1xf32>
    %cst_128 = arith.constant 9.99999974E-6 : f32
    %256 = vector.broadcast %cst_128 : f32 to vector<16x1xf32>
    %257 = arith.addf %255, %256 : vector<16x1xf32>
    %258 = math.rsqrt %257 : vector<16x1xf32>
    %259 = vector.broadcast %258 : vector<16x1xf32> to vector<16x32xf32>
    %260 = arith.mulf %250, %259 : vector<16x32xf32>
    %261 = vector.broadcast %242 : vector<1x32xf32> to vector<16x32xf32>
    %262 = arith.mulf %260, %261 : vector<16x32xf32>
    %263 = vector.broadcast %244 : vector<1x32xf32> to vector<16x32xf32>
    %264 = arith.addf %262, %263 : vector<16x32xf32>
    %cst_129 = arith.constant 0.000000e+00 : f32
    %265 = vector.broadcast %cst_129 : f32 to vector<16x32xf32>
    %c0_130 = arith.constant 0 : index
    %c0_131 = arith.constant 0 : index
    %c0_132 = arith.constant 0 : index
    %266 = vector.load %arg24[%c0_130, %c0_131, %c0_132] : memref<1x1x32xf32, #tpu.memory_space<vmem>>, vector<1x1x32xf32>
    %267 = vector.shape_cast %266 : vector<1x1x32xf32> to vector<1x32xf32>
    %268 = vector.broadcast %267 : vector<1x32xf32> to vector<16x32xf32>
    %269 = arith.addf %265, %268 : vector<16x32xf32>
    %c0_133 = arith.constant 0 : index
    %c0_134 = arith.constant 0 : index
    %c0_135 = arith.constant 0 : index
    %270 = vector.load %arg21[%c0_133, %c0_134, %c0_135] : memref<1x32x2048xf32, #tpu.memory_space<vmem>>, vector<1x32x512xf32>
    %271 = vector.shape_cast %270 : vector<1x32x512xf32> to vector<32x512xf32>
    %c0_136 = arith.constant 0 : index
    %c0_137 = arith.constant 0 : index
    %c0_138 = arith.constant 0 : index
    %272 = vector.load %arg22[%c0_136, %c0_137, %c0_138] : memref<1x1x2048xf32, #tpu.memory_space<vmem>>, vector<1x1x512xf32>
    %273 = vector.shape_cast %272 : vector<1x1x512xf32> to vector<1x512xf32>
    %c0_139 = arith.constant 0 : index
    %c0_140 = arith.constant 0 : index
    %c0_141 = arith.constant 0 : index
    %274 = vector.load %arg23[%c0_139, %c0_140, %c0_141] : memref<1x2048x32xf32, #tpu.memory_space<vmem>>, vector<1x512x32xf32>
    %275 = vector.shape_cast %274 : vector<1x512x32xf32> to vector<512x32xf32>
    %cst_142 = arith.constant dense<0.000000e+00> : vector<16x512xf32>
    %276 = tpu.matmul %264, %271, %cst_142 {dimension_numbers = #tpu.dot_dimension_numbers<[1], [0], [0], [1], [0, 0, 1, 1], [], []>} : vector<16x32xf32>, vector<32x512xf32>, vector<16x512xf32> -> vector<16x512xf32>
    %277 = vector.broadcast %273 : vector<1x512xf32> to vector<16x512xf32>
    %278 = arith.addf %276, %277 : vector<16x512xf32>
    %cst_143 = arith.constant 0.000000e+00 : f32
    %279 = vector.broadcast %cst_143 : f32 to vector<16x512xf32>
    %280 = arith.maximumf %278, %279 : vector<16x512xf32>
    %cst_144 = arith.constant dense<0.000000e+00> : vector<16x32xf32>
    %281 = tpu.matmul %280, %275, %cst_144 {dimension_numbers = #tpu.dot_dimension_numbers<[1], [0], [0], [1], [0, 0, 1, 1], [], []>} : vector<16x512xf32>, vector<512x32xf32>, vector<16x32xf32> -> vector<16x32xf32>
    %282 = arith.addf %269, %281 : vector<16x32xf32>
    %c0_145 = arith.constant 0 : index
    %c0_146 = arith.constant 0 : index
    %c512 = arith.constant 512 : index
    %283 = vector.load %arg21[%c0_145, %c0_146, %c512] : memref<1x32x2048xf32, #tpu.memory_space<vmem>>, vector<1x32x512xf32>
    %284 = vector.shape_cast %283 : vector<1x32x512xf32> to vector<32x512xf32>
    %c0_147 = arith.constant 0 : index
    %c0_148 = arith.constant 0 : index
    %c512_149 = arith.constant 512 : index
    %285 = vector.load %arg22[%c0_147, %c0_148, %c512_149] : memref<1x1x2048xf32, #tpu.memory_space<vmem>>, vector<1x1x512xf32>
    %286 = vector.shape_cast %285 : vector<1x1x512xf32> to vector<1x512xf32>
    %c0_150 = arith.constant 0 : index
    %c512_151 = arith.constant 512 : index
    %c0_152 = arith.constant 0 : index
    %287 = vector.load %arg23[%c0_150, %c512_151, %c0_152] : memref<1x2048x32xf32, #tpu.memory_space<vmem>>, vector<1x512x32xf32>
    %288 = vector.shape_cast %287 : vector<1x512x32xf32> to vector<512x32xf32>
    %cst_153 = arith.constant dense<0.000000e+00> : vector<16x512xf32>
    %289 = tpu.matmul %264, %284, %cst_153 {dimension_numbers = #tpu.dot_dimension_numbers<[1], [0], [0], [1], [0, 0, 1, 1], [], []>} : vector<16x32xf32>, vector<32x512xf32>, vector<16x512xf32> -> vector<16x512xf32>
    %290 = vector.broadcast %286 : vector<1x512xf32> to vector<16x512xf32>
    %291 = arith.addf %289, %290 : vector<16x512xf32>
    %cst_154 = arith.constant 0.000000e+00 : f32
    %292 = vector.broadcast %cst_154 : f32 to vector<16x512xf32>
    %293 = arith.maximumf %291, %292 : vector<16x512xf32>
    %cst_155 = arith.constant dense<0.000000e+00> : vector<16x32xf32>
    %294 = tpu.matmul %293, %288, %cst_155 {dimension_numbers = #tpu.dot_dimension_numbers<[1], [0], [0], [1], [0, 0, 1, 1], [], []>} : vector<16x512xf32>, vector<512x32xf32>, vector<16x32xf32> -> vector<16x32xf32>
    %295 = arith.addf %282, %294 : vector<16x32xf32>
    %c0_156 = arith.constant 0 : index
    %c0_157 = arith.constant 0 : index
    %c1024 = arith.constant 1024 : index
    %296 = vector.load %arg21[%c0_156, %c0_157, %c1024] : memref<1x32x2048xf32, #tpu.memory_space<vmem>>, vector<1x32x512xf32>
    %297 = vector.shape_cast %296 : vector<1x32x512xf32> to vector<32x512xf32>
    %c0_158 = arith.constant 0 : index
    %c0_159 = arith.constant 0 : index
    %c1024_160 = arith.constant 1024 : index
    %298 = vector.load %arg22[%c0_158, %c0_159, %c1024_160] : memref<1x1x2048xf32, #tpu.memory_space<vmem>>, vector<1x1x512xf32>
    %299 = vector.shape_cast %298 : vector<1x1x512xf32> to vector<1x512xf32>
    %c0_161 = arith.constant 0 : index
    %c1024_162 = arith.constant 1024 : index
    %c0_163 = arith.constant 0 : index
    %300 = vector.load %arg23[%c0_161, %c1024_162, %c0_163] : memref<1x2048x32xf32, #tpu.memory_space<vmem>>, vector<1x512x32xf32>
    %301 = vector.shape_cast %300 : vector<1x512x32xf32> to vector<512x32xf32>
    %cst_164 = arith.constant dense<0.000000e+00> : vector<16x512xf32>
    %302 = tpu.matmul %264, %297, %cst_164 {dimension_numbers = #tpu.dot_dimension_numbers<[1], [0], [0], [1], [0, 0, 1, 1], [], []>} : vector<16x32xf32>, vector<32x512xf32>, vector<16x512xf32> -> vector<16x512xf32>
    %303 = vector.broadcast %299 : vector<1x512xf32> to vector<16x512xf32>
    %304 = arith.addf %302, %303 : vector<16x512xf32>
    %cst_165 = arith.constant 0.000000e+00 : f32
    %305 = vector.broadcast %cst_165 : f32 to vector<16x512xf32>
    %306 = arith.maximumf %304, %305 : vector<16x512xf32>
    %cst_166 = arith.constant dense<0.000000e+00> : vector<16x32xf32>
    %307 = tpu.matmul %306, %301, %cst_166 {dimension_numbers = #tpu.dot_dimension_numbers<[1], [0], [0], [1], [0, 0, 1, 1], [], []>} : vector<16x512xf32>, vector<512x32xf32>, vector<16x32xf32> -> vector<16x32xf32>
    %308 = arith.addf %295, %307 : vector<16x32xf32>
    %c0_167 = arith.constant 0 : index
    %c0_168 = arith.constant 0 : index
    %c1536 = arith.constant 1536 : index
    %309 = vector.load %arg21[%c0_167, %c0_168, %c1536] : memref<1x32x2048xf32, #tpu.memory_space<vmem>>, vector<1x32x512xf32>
    %310 = vector.shape_cast %309 : vector<1x32x512xf32> to vector<32x512xf32>
    %c0_169 = arith.constant 0 : index
    %c0_170 = arith.constant 0 : index
    %c1536_171 = arith.constant 1536 : index
    %311 = vector.load %arg22[%c0_169, %c0_170, %c1536_171] : memref<1x1x2048xf32, #tpu.memory_space<vmem>>, vector<1x1x512xf32>
    %312 = vector.shape_cast %311 : vector<1x1x512xf32> to vector<1x512xf32>
    %c0_172 = arith.constant 0 : index
    %c1536_173 = arith.constant 1536 : index
    %c0_174 = arith.constant 0 : index
    %313 = vector.load %arg23[%c0_172, %c1536_173, %c0_174] : memref<1x2048x32xf32, #tpu.memory_space<vmem>>, vector<1x512x32xf32>
    %314 = vector.shape_cast %313 : vector<1x512x32xf32> to vector<512x32xf32>
    %cst_175 = arith.constant dense<0.000000e+00> : vector<16x512xf32>
    %315 = tpu.matmul %264, %310, %cst_175 {dimension_numbers = #tpu.dot_dimension_numbers<[1], [0], [0], [1], [0, 0, 1, 1], [], []>} : vector<16x32xf32>, vector<32x512xf32>, vector<16x512xf32> -> vector<16x512xf32>
    %316 = vector.broadcast %312 : vector<1x512xf32> to vector<16x512xf32>
    %317 = arith.addf %315, %316 : vector<16x512xf32>
    %cst_176 = arith.constant 0.000000e+00 : f32
    %318 = vector.broadcast %cst_176 : f32 to vector<16x512xf32>
    %319 = arith.maximumf %317, %318 : vector<16x512xf32>
    %cst_177 = arith.constant dense<0.000000e+00> : vector<16x32xf32>
    %320 = tpu.matmul %319, %314, %cst_177 {dimension_numbers = #tpu.dot_dimension_numbers<[1], [0], [0], [1], [0, 0, 1, 1], [], []>} : vector<16x512xf32>, vector<512x32xf32>, vector<16x32xf32> -> vector<16x32xf32>
    %321 = arith.addf %308, %320 : vector<16x32xf32>
    %322 = arith.addf %264, %321 : vector<16x32xf32>
    %c0_178 = arith.constant 0 : index
    %c0_179 = arith.constant 0 : index
    %c0_180 = arith.constant 0 : index
    %323 = vector.load %arg29[%c0_178, %c0_179, %c0_180] : memref<1x1x32xf32, #tpu.memory_space<vmem>>, vector<1x1x32xf32>
    %324 = vector.shape_cast %323 : vector<1x1x32xf32> to vector<1x32xf32>
    %c0_181 = arith.constant 0 : index
    %c0_182 = arith.constant 0 : index
    %c0_183 = arith.constant 0 : index
    %325 = vector.load %arg30[%c0_181, %c0_182, %c0_183] : memref<1x1x32xf32, #tpu.memory_space<vmem>>, vector<1x1x32xf32>
    %326 = vector.shape_cast %325 : vector<1x1x32xf32> to vector<1x32xf32>
    %cst_184 = arith.constant dense<0.000000e+00> : vector<16xf32>
    %327 = vector.multi_reduction <add>, %322, %cst_184 [1] : vector<16x32xf32> to vector<16xf32>
    %328 = vector.shape_cast %327 : vector<16xf32> to vector<16x1xf32>
    %cst_185 = arith.constant 3.200000e+01 : f32
    %329 = vector.broadcast %cst_185 : f32 to vector<16x1xf32>
    %330 = arith.divf %328, %329 : vector<16x1xf32>
    %331 = vector.broadcast %330 : vector<16x1xf32> to vector<16x32xf32>
    %332 = arith.subf %322, %331 : vector<16x32xf32>
    %333 = arith.mulf %332, %332 : vector<16x32xf32>
    %cst_186 = arith.constant dense<0.000000e+00> : vector<16xf32>
    %334 = vector.multi_reduction <add>, %333, %cst_186 [1] : vector<16x32xf32> to vector<16xf32>
    %335 = vector.shape_cast %334 : vector<16xf32> to vector<16x1xf32>
    %cst_187 = arith.constant 3.200000e+01 : f32
    %336 = vector.broadcast %cst_187 : f32 to vector<16x1xf32>
    %337 = arith.divf %335, %336 : vector<16x1xf32>
    %cst_188 = arith.constant 9.99999974E-6 : f32
    %338 = vector.broadcast %cst_188 : f32 to vector<16x1xf32>
    %339 = arith.addf %337, %338 : vector<16x1xf32>
    %340 = math.rsqrt %339 : vector<16x1xf32>
    %341 = vector.broadcast %340 : vector<16x1xf32> to vector<16x32xf32>
    %342 = arith.mulf %332, %341 : vector<16x32xf32>
    %343 = vector.broadcast %324 : vector<1x32xf32> to vector<16x32xf32>
    %344 = arith.mulf %342, %343 : vector<16x32xf32>
    %345 = vector.broadcast %326 : vector<1x32xf32> to vector<16x32xf32>
    %346 = arith.addf %344, %345 : vector<16x32xf32>
    %347 = vector.shape_cast %346 : vector<16x32xf32> to vector<2x8x32xf32>
    %c0_189 = arith.constant 0 : index
    %c0_190 = arith.constant 0 : index
    %c0_191 = arith.constant 0 : index
    %348 = vector.load %arg34[%c0_189, %c0_190, %c0_191] : memref<2x8x32xf32, #tpu.memory_space<vmem>>, vector<2x8x32xf32>
    tpu.vector_store %arg34[%c0_189, %c0_190, %c0_191], %347 {strides = array<i32>} : memref<2x8x32xf32, #tpu.memory_space<vmem>>, vector<2x8x32xf32>,
    %c1_i32 = arith.constant 1 : i32
    %349 = arith.cmpi eq, %arg0, %c1_i32 : i32
    %350 = arith.extui %349 : i1 to i32
    %c0_i32_192 = arith.constant 0 : i32
    %351 = arith.cmpi ne, %350, %c0_i32_192 : i32
    scf.if %351 {
      %c0_193 = arith.constant 0 : index
      %c0_194 = arith.constant 0 : index
      %352 = vector.load %arg31[%c0_193, %c0_194] : memref<32x128xf32, #tpu.memory_space<vmem>>, vector<32x128xf32>
      %cst_195 = arith.constant dense<0.000000e+00> : vector<16x128xf32>
      %353 = tpu.matmul %346, %352, %cst_195 {dimension_numbers = #tpu.dot_dimension_numbers<[1], [0], [0], [1], [0, 0, 1, 1], [], []>} : vector<16x32xf32>, vector<32x128xf32>, vector<16x128xf32> -> vector<16x128xf32>
      %c0_196 = arith.constant 0 : index
      %c0_197 = arith.constant 0 : index
      %354 = vector.load %arg32[%c0_196, %c0_197] : memref<1x128xf32, #tpu.memory_space<vmem>>, vector<1x128xf32>
      %355 = vector.broadcast %354 : vector<1x128xf32> to vector<16x128xf32>
      %356 = arith.addf %353, %355 : vector<16x128xf32>
      %357 = vector.shape_cast %356 : vector<16x128xf32> to vector<2x8x128xf32>
      %c0_198 = arith.constant 0 : index
      %c0_199 = arith.constant 0 : index
      %c0_200 = arith.constant 0 : index
      %358 = vector.load %arg33[%c0_198, %c0_199, %c0_200] : memref<2x8x128xf32, #tpu.memory_space<vmem>>, vector<2x8x128xf32>
      tpu.vector_store %arg33[%c0_198, %c0_199, %c0_200], %357 {strides = array<i32>} : memref<2x8x128xf32, #tpu.memory_space<vmem>>, vector<2x8x128xf32>,
    } else {
    }
    return
  }
  func.func @transform_0(%arg0: i32) -> (i32, i32, i32) {
    %c0_i32 = arith.constant 0 : i32
    %c0_i32_0 = arith.constant 0 : i32
    %c0_i32_1 = arith.constant 0 : i32
    %c0_i32_2 = arith.constant 0 : i32
    return %c0_i32, %c0_i32_0, %c0_i32_1 : i32, i32, i32
  }
  func.func @transform_1(%arg0: i32) -> (i32, i32, i32) {
    %c0_i32 = arith.constant 0 : i32
    %c0_i32_0 = arith.constant 0 : i32
    %c0_i32_1 = arith.constant 0 : i32
    %c0_i32_2 = arith.constant 0 : i32
    return %c0_i32, %c0_i32_0, %c0_i32_1 : i32, i32, i32
  }
  func.func @transform_2(%arg0: i32) -> (i32, i32, i32) {
    %c0_i32 = arith.constant 0 : i32
    %c0_i32_0 = arith.constant 0 : i32
    %c0_i32_1 = arith.constant 0 : i32
    %c0_i32_2 = arith.constant 0 : i32
    return %c0_i32, %c0_i32_0, %c0_i32_1 : i32, i32, i32
  }
  func.func @transform_3(%arg0: i32) -> (i32, i32, i32) {
    %c0_i32 = arith.constant 0 : i32
    %c0_i32_0 = arith.constant 0 : i32
    %c0_i32_1 = arith.constant 0 : i32
    %c0_i32_2 = arith.constant 0 : i32
    return %c0_i32, %c0_i32_0, %c0_i32_1 : i32, i32, i32
  }
  func.func @transform_4(%arg0: i32) -> (i32, i32, i32) {
    %c0_i32 = arith.constant 0 : i32
    %c0_i32_0 = arith.constant 0 : i32
    %c0_i32_1 = arith.constant 0 : i32
    return %arg0, %c0_i32, %c0_i32_0 : i32, i32, i32
  }
  func.func @transform_5(%arg0: i32) -> (i32, i32, i32) {
    %c0_i32 = arith.constant 0 : i32
    %c0_i32_0 = arith.constant 0 : i32
    %c0_i32_1 = arith.constant 0 : i32
    return %arg0, %c0_i32, %c0_i32_0 : i32, i32, i32
  }
  func.func @transform_6(%arg0: i32) -> (i32, i32, i32) {
    %c0_i32 = arith.constant 0 : i32
    %c0_i32_0 = arith.constant 0 : i32
    %c0_i32_1 = arith.constant 0 : i32
    return %arg0, %c0_i32, %c0_i32_0 : i32, i32, i32
  }
  func.func @transform_7(%arg0: i32) -> (i32, i32, i32) {
    %c0_i32 = arith.constant 0 : i32
    %c0_i32_0 = arith.constant 0 : i32
    %c0_i32_1 = arith.constant 0 : i32
    return %arg0, %c0_i32, %c0_i32_0 : i32, i32, i32
  }
  func.func @transform_8(%arg0: i32) -> (i32, i32, i32) {
    %c0_i32 = arith.constant 0 : i32
    %c0_i32_0 = arith.constant 0 : i32
    %c0_i32_1 = arith.constant 0 : i32
    return %arg0, %c0_i32, %c0_i32_0 : i32, i32, i32
  }
  func.func @transform_9(%arg0: i32) -> (i32, i32, i32) {
    %c0_i32 = arith.constant 0 : i32
    %c0_i32_0 = arith.constant 0 : i32
    %c0_i32_1 = arith.constant 0 : i32
    return %arg0, %c0_i32, %c0_i32_0 : i32, i32, i32
  }
  func.func @transform_10(%arg0: i32) -> (i32, i32, i32) {
    %c0_i32 = arith.constant 0 : i32
    %c0_i32_0 = arith.constant 0 : i32
    %c0_i32_1 = arith.constant 0 : i32
    return %arg0, %c0_i32, %c0_i32_0 : i32, i32, i32
  }
  func.func @transform_11(%arg0: i32) -> (i32, i32, i32) {
    %c0_i32 = arith.constant 0 : i32
    %c0_i32_0 = arith.constant 0 : i32
    %c0_i32_1 = arith.constant 0 : i32
    return %arg0, %c0_i32, %c0_i32_0 : i32, i32, i32
  }
  func.func @transform_12(%arg0: i32) -> (i32, i32, i32) {
    %c0_i32 = arith.constant 0 : i32
    %c0_i32_0 = arith.constant 0 : i32
    %c0_i32_1 = arith.constant 0 : i32
    return %arg0, %c0_i32, %c0_i32_0 : i32, i32, i32
  }
  func.func @transform_13(%arg0: i32) -> (i32, i32, i32) {
    %c0_i32 = arith.constant 0 : i32
    %c0_i32_0 = arith.constant 0 : i32
    %c0_i32_1 = arith.constant 0 : i32
    return %arg0, %c0_i32, %c0_i32_0 : i32, i32, i32
  }
  func.func @transform_14(%arg0: i32) -> (i32, i32, i32) {
    %c0_i32 = arith.constant 0 : i32
    %c0_i32_0 = arith.constant 0 : i32
    %c0_i32_1 = arith.constant 0 : i32
    return %arg0, %c0_i32, %c0_i32_0 : i32, i32, i32
  }
  func.func @transform_15(%arg0: i32) -> (i32, i32, i32) {
    %c0_i32 = arith.constant 0 : i32
    %c0_i32_0 = arith.constant 0 : i32
    %c0_i32_1 = arith.constant 0 : i32
    return %arg0, %c0_i32, %c0_i32_0 : i32, i32, i32
  }
  func.func @transform_16(%arg0: i32) -> (i32, i32, i32) {
    %c0_i32 = arith.constant 0 : i32
    %c0_i32_0 = arith.constant 0 : i32
    %c0_i32_1 = arith.constant 0 : i32
    return %arg0, %c0_i32, %c0_i32_0 : i32, i32, i32
  }
  func.func @transform_17(%arg0: i32) -> (i32, i32, i32) {
    %c0_i32 = arith.constant 0 : i32
    %c0_i32_0 = arith.constant 0 : i32
    %c0_i32_1 = arith.constant 0 : i32
    return %arg0, %c0_i32, %c0_i32_0 : i32, i32, i32
  }
  func.func @transform_18(%arg0: i32) -> (i32, i32, i32) {
    %c0_i32 = arith.constant 0 : i32
    %c0_i32_0 = arith.constant 0 : i32
    %c0_i32_1 = arith.constant 0 : i32
    return %arg0, %c0_i32, %c0_i32_0 : i32, i32, i32
  }
  func.func @transform_19(%arg0: i32) -> (i32, i32, i32) {
    %c0_i32 = arith.constant 0 : i32
    %c0_i32_0 = arith.constant 0 : i32
    %c0_i32_1 = arith.constant 0 : i32
    return %arg0, %c0_i32, %c0_i32_0 : i32, i32, i32
  }
  func.func @transform_20(%arg0: i32) -> (i32, i32, i32) {
    %c0_i32 = arith.constant 0 : i32
    %c0_i32_0 = arith.constant 0 : i32
    %c0_i32_1 = arith.constant 0 : i32
    return %arg0, %c0_i32, %c0_i32_0 : i32, i32, i32
  }
  func.func @transform_21(%arg0: i32) -> (i32, i32, i32) {
    %c0_i32 = arith.constant 0 : i32
    %c0_i32_0 = arith.constant 0 : i32
    %c0_i32_1 = arith.constant 0 : i32
    return %arg0, %c0_i32, %c0_i32_0 : i32, i32, i32
  }
  func.func @transform_22(%arg0: i32) -> (i32, i32, i32) {
    %c0_i32 = arith.constant 0 : i32
    %c0_i32_0 = arith.constant 0 : i32
    %c0_i32_1 = arith.constant 0 : i32
    return %arg0, %c0_i32, %c0_i32_0 : i32, i32, i32
  }
  func.func @transform_23(%arg0: i32) -> (i32, i32, i32) {
    %c0_i32 = arith.constant 0 : i32
    %c0_i32_0 = arith.constant 0 : i32
    %c0_i32_1 = arith.constant 0 : i32
    return %arg0, %c0_i32, %c0_i32_0 : i32, i32, i32
  }
  func.func @transform_24(%arg0: i32) -> (i32, i32, i32) {
    %c0_i32 = arith.constant 0 : i32
    %c0_i32_0 = arith.constant 0 : i32
    %c0_i32_1 = arith.constant 0 : i32
    return %arg0, %c0_i32, %c0_i32_0 : i32, i32, i32
  }
  func.func @transform_25(%arg0: i32) -> (i32, i32, i32) {
    %c0_i32 = arith.constant 0 : i32
    %c0_i32_0 = arith.constant 0 : i32
    %c0_i32_1 = arith.constant 0 : i32
    return %arg0, %c0_i32, %c0_i32_0 : i32, i32, i32
  }
  func.func @transform_26(%arg0: i32) -> (i32, i32, i32) {
    %c0_i32 = arith.constant 0 : i32
    %c0_i32_0 = arith.constant 0 : i32
    %c0_i32_1 = arith.constant 0 : i32
    return %arg0, %c0_i32, %c0_i32_0 : i32, i32, i32
  }
  func.func @transform_27(%arg0: i32) -> (i32, i32, i32) {
    %c0_i32 = arith.constant 0 : i32
    %c0_i32_0 = arith.constant 0 : i32
    %c0_i32_1 = arith.constant 0 : i32
    return %arg0, %c0_i32, %c0_i32_0 : i32, i32, i32
  }
  func.func @transform_28(%arg0: i32) -> (i32, i32, i32) {
    %c0_i32 = arith.constant 0 : i32
    %c0_i32_0 = arith.constant 0 : i32
    %c0_i32_1 = arith.constant 0 : i32
    return %arg0, %c0_i32, %c0_i32_0 : i32, i32, i32
  }
  func.func @transform_29(%arg0: i32) -> (i32, i32, i32) {
    %c0_i32 = arith.constant 0 : i32
    %c0_i32_0 = arith.constant 0 : i32
    %c0_i32_1 = arith.constant 0 : i32
    return %arg0, %c0_i32, %c0_i32_0 : i32, i32, i32
  }
  func.func @transform_30(%arg0: i32) -> (i32, i32) {
    %c0_i32 = arith.constant 0 : i32
    %c0_i32_0 = arith.constant 0 : i32
    %c0_i32_1 = arith.constant 0 : i32
    return %c0_i32, %c0_i32_0 : i32, i32
  }
  func.func @transform_31(%arg0: i32) -> (i32, i32) {
    %c0_i32 = arith.constant 0 : i32
    %c0_i32_0 = arith.constant 0 : i32
    %c0_i32_1 = arith.constant 0 : i32
    return %c0_i32, %c0_i32_0 : i32, i32
  }
  func.func @transform_32(%arg0: i32) -> (i32, i32, i32) {
    %c0_i32 = arith.constant 0 : i32
    %c0_i32_0 = arith.constant 0 : i32
    %c0_i32_1 = arith.constant 0 : i32
    %c0_i32_2 = arith.constant 0 : i32
    return %c0_i32, %c0_i32_0, %c0_i32_1 : i32, i32, i32
  }
}

</mosaic_0001>

<bundles_post_ra>
// kernel: hangman_transformer.2
= control target key start
LH: loop header
LB: loop body
LE: loop exit
PB: predicated region body
PF: predicated region fallthrough
CT: control target
= control target key end

     0   :  { %s3357_s27 = smov 0   ;;  %s4149_s0 = inlined_call_operand.vmem [shape: f32[2,8,32], index: 0, kind: input, shape index: {}]   ;;  %s4150_s1 = inlined_call_operand.vmem [shape: f32[2,1,8], index: 1, kind: input, shape index: {}]   ;;  %s4151_s2 = inlined_call_operand.vmem [shape: f32[2,32,32], index: 2, kind: input, shape index: {}]   ;;  %s4152_s3 = inlined_call_operand.vmem [shape: f32[2,1,32], index: 3, kind: input, shape index: {}]   ;;  %s4153_s4 = inlined_call_operand.vmem [shape: f32[2,32,32], index: 4, kind: input, shape index: {}]   ;;  %s4154_s5 = inlined_call_operand.vmem [shape: f32[2,1,32], index: 5, kind: input, shape index: {}]   ;;  %s4155_s6 = inlined_call_operand.vmem [shape: f32[2,32,32], index: 6, kind: input, shape index: {}]   ;;  %s4156_s7 = inlined_call_operand.vmem [shape: f32[2,1,32], index: 7, kind: input, shape index: {}]   ;;  %s4157_s8 = inlined_call_operand.vmem [shape: f32[2,32,32], index: 8, kind: input, shape index: {}]   ;;  %s4158_s9 = inlined_call_operand.vmem [shape: f32[2,1,32], index: 9, kind: input, shape index: {}]   ;;  %s4159_s10 = inlined_call_operand.vmem [shape: f32[2,32,2048], index: 10, kind: input, shape index: {}]   ;;  %s4160_s11 = inlined_call_operand.vmem [shape: f32[2,1,2048], index: 11, kind: input, shape index: {}]   ;;  %s4161_s12 = inlined_call_operand.vmem [shape: f32[2,2048,32], index: 12, kind: input, shape index: {}]   ;;  %s4162_s13 = inlined_call_operand.vmem [shape: f32[2,1,32], index: 13, kind: input, shape index: {}]   ;;  %s4163_s14 = inlined_call_operand.vmem [shape: f32[2,1,32], index: 14, kind: input, shape index: {}]   ;;  %s4164_s15 = inlined_call_operand.vmem [shape: f32[2,1,32], index: 15, kind: input, shape index: {}]   ;;  %s4165_s16 = inlined_call_operand.vmem [shape: f32[2,1,32], index: 16, kind: input, shape index: {}]   ;;  %s4166_s17 = inlined_call_operand.vmem [shape: f32[2,1,32], index: 17, kind: input, shape index: {}]   ;;  %s4167_s18 = inlined_call_operand.vmem [shape: f32[2,8,32], index: 18, kind: output, shape index: {}]  }
   0x1   :  { %4174 = sst [smem:[#allocation6_spill]] %s4149_s0 }
   0x2   :  { %4175 = sst [smem:[#allocation7_spill]] %s4150_s1 }
   0x3   :  { %4176 = sst [smem:[#allocation8_spill]] %s4151_s2 }
   0x4   :  { %4177 = sst [smem:[#allocation9_spill]] %s4152_s3 }
   0x5   :  { %4178 = sst [smem:[#allocation10_spill]] %s4153_s4 }
   0x6   :  { %4179 = sst [smem:[#allocation11_spill]] %s4154_s5 }
   0x7   :  { %4180 = sst [smem:[#allocation12_spill]] %s4155_s6 }
   0x8   :  { %4181 = sst [smem:[#allocation13_spill]] %s4157_s8 }
   0x9   :  { %4182 = sst [smem:[#allocation14_spill]] %s4159_s10 }
   0xa   :  { %4183 = sst [smem:[#allocation15_spill]] %s4160_s11 }
   0xb   :  { %4184 = sst [smem:[#allocation16_spill]] %s4167_s18 }
   0xc LB: > { %4185 = sst [smem:[#allocation3_spill]] %s3253_s27  ;;  %s3363_s28 = sadd.s32 4294967295, %s3253_s27   ;;  %s3253_s27 = sphi %s3357_s27, %s28_s27  }
   0xd   : > { %p3087_p0 = scmp.ge.s32.totalorder %s3253_s27, 1  ;;  %p638_p1 = scmp.lt.s32.totalorder %s3253_s27, 3 }
   0xf   : > { %p639_p2 = pnand %p3087_p0, %p638_p1 }
  0x11   : > { %642 = sbr.rel (%p639_p2) target bundleno = 2383 (0x94f), region = 92 }
  0x16   : > { %p743_p3 = scmp.lt.s32.totalorder %s3363_s28, 1  ;;  %s4187_s22 = sld [smem:[#allocation8_spill]] }
  0x17   : > { %s4189_s4 = sld [smem:[#allocation10_spill]]  ;;  %p3101_p4 = scmp.ne.s32.totalorder %s3363_s28, 0 }
  0x18   : > { %s3369_s29 = scalar_select %p743_p3, %s3363_s28, 1 }
  0x19   : > { %s4191_s6 = sld [smem:[#allocation12_spill]] }
  0x1a   : > { %s3169_s30 = sshll.u32 %s3369_s29, 5  ;;  %s4193_s8 = sld [smem:[#allocation13_spill]] }
  0x1b   : > { %s3173_s26 = sshll.u32 %s3369_s29, 9  ;;  %s4194_s10 = sld [smem:[#allocation14_spill]] }
  0x1c   : > { %s3379_s2 = scalar_lea.vmem %s4187_s22, %s3169_s30  ;;  %s3098_s19 = sshll.u32 %s3369_s29, 4 }
  0x1d   : > { %4188 = sst [smem:[#allocation4_spill]] %s3379_s2  ;;  %s3384_s25 = scalar_lea.vmem %s4189_s4, %s3169_s30 }
  0x1e   : > { %s4195_s11 = sld [smem:[#allocation15_spill]]  ;;  %s3174_s21 = sshll.u32 %s3369_s29, 11 }
  0x1f   : > { %s3393_s1 = scalar_lea.vmem %s4191_s6, %s3169_s30  ;;  %s3424_s2 = scalar_lea.vmem %s4161_s12, %s3174_s21 }
  0x20   : > { %4192 = sst [smem:[#allocation5_spill]] %s3393_s1  ;;  %s3402_s23 = scalar_lea.vmem %s4193_s8, %s3169_s30 }
  0x21   : > { %s3412_s0 = scalar_lea.vmem %s4194_s10, %s3173_s26  ;;  %s791_s27 = scalar_lea.vmem %s4162_s13, %s3369_s29 }
  0x22   : > { %s794_s18 = scalar_lea.vmem %s4163_s14, %s3369_s29  ;;  %s797_s6 = scalar_lea.vmem %s4164_s15, %s3369_s29 }
  0x23   : > { %s800_s10 = scalar_lea.vmem %s4165_s16, %s3369_s29  ;;  %s803_s21 = scalar_lea.vmem %s4166_s17, %s3369_s29 }
  0x24   : > { %s3418_s20 = scalar_lea.vmem %s4195_s11, %s3098_s19  ;;  %807 = sbr.rel (%p3101_p4) target bundleno = 46 (0x2e), region = 96 }
  0x25   : > { %s4196_s24 = sld [smem:[#allocation6_spill]] (!%p3101_p4) }
  0x29   : > { %vm810_vm0 = vcmask 261120  }
  0x2b   : > { %v808_v0 = vld [vmem:[%s4196_s24] sm:$0xff]  ;;  %v809_v1 = vld [vmem:[%s4196_s24 + $0x8] sm:$0xff] }
  0x2c   : > { %811 = vst.msk [vmem:[#allocation2] sm:$0xff] %vm810_vm0, %v808_v0 }
  0x2d   : > { %812 = vst.msk [vmem:[#allocation2 + $0x8] sm:$0xff] %vm810_vm0, %v809_v1 }
  0x2e PF: > { %s4197_s8 = sld [smem:[#allocation4_spill]]  ;;  %v856_v3 = vld [vmem:[%s3384_s25 + $0x18] sm:$0xff]  ;;  %v855_v5 = vld [vmem:[%s3384_s25 + $0x10] sm:$0xff]  ;;  %v854_v7 = vld [vmem:[%s3384_s25 + $0x8] sm:$0xff]  ;;  %vm823_vm1 = vcmask 261120   ;;  %vm922_vm2 = vcmask 64512  }
  0x2f   : > { %873 = vmatpush.msra.mxu1 %v856_v3  ;;  %3175 = vmatpush.msra.mxu2 %v856_v3  ;;  %v853_v9 = vld [vmem:[%s3384_s25] sm:$0xff]  ;;  %s4198_s26 = sld [smem:[#allocation9_spill]]  ;;  %s3255_s22 = smov 112  }
  0x30   : > { %s4200_s30 = sld [smem:[#allocation11_spill]]  ;;  %s3256_s5 = smov 120  }
  0x31   : > { %874 = vmatpush.msra.mxu1 %v855_v5  ;;  %3176 = vmatpush.msra.mxu2 %v855_v5  ;;  %s3257_s11 = smov 104   ;;  %p3166_p5 = scmp.ne.s32.totalorder %s3363_s28, 1 }
  0x33   : > { %v3461_v10 = vld [vmem:[#allocation2] sm:$0xff]  ;;  %875 = vmatpush.msra.mxu1 %v854_v7  ;;  %3177 = vmatpush.msra.mxu2 %v854_v7 }
  0x34   : > { %v818_v2 = vld [vmem:[%s4197_s8 + $0x18] sm:$0xff]  ;;  %v817_v4 = vld [vmem:[%s4197_s8 + $0x10] sm:$0xff]  ;;  %v816_v6 = vld [vmem:[%s4197_s8 + $0x8] sm:$0xff] }
  0x35   : > { %842 = vmatpush.msra.mxu0 %v818_v2  ;;  %v815_v8 = vld [vmem:[%s4197_s8] sm:$0xff]  ;;  %876 = vmatpush.msra.mxu1 %v853_v9  ;;  %v3463_v11 = vld [vmem:[#allocation2 + $0x8] sm:$0xff]  ;;  %s4199_s1 = scalar_lea.vmem %s4198_s26, %s3369_s29  ;;  %s4202_s8 = sld [smem:[#allocation5_spill]] }
  0x36   : > { %3104 = vmatmul.msk.f32.vlgmr.msra.gmra.mxu1 %vm823_vm1, %v3461_v10  ;;  %3178 = vmatpush.msra.mxu2 %v853_v9  ;;  %v3194_v12 = vld [vmem:[%s4199_s1] ss:$0 sm:$0xff]  ;;  %s4201_s4 = scalar_lea.vmem %s4200_s30, %s3369_s29  ;;  %s4203_s1 = sld [smem:[#allocation7_spill]] }
  0x37   : > { %843 = vmatpush.msra.mxu0 %v817_v4  ;;  %3105 = vmatmul.msk.f32.vlgmr.msra.gmra.mxu2 %vm823_vm1, %v3463_v11  ;;  %v3195_v13 = vld [vmem:[%s4201_s4] ss:$0 sm:$0xff]  ;;  %s4207_s26 = scalar_lea.vmem %s4158_s9, %s3369_s29 }
  0x39   : > { %844 = vmatpush.msra.mxu0 %v816_v6 }
  0x3b   : > { %845 = vmatpush.msra.mxu0 %v815_v8  ;;  %v887_v22 = vld [vmem:[%s4202_s8 + $0x18] sm:$0xff]  ;;  %v886_v23 = vld [vmem:[%s4202_s8 + $0x10] sm:$0xff]  ;;  %v885_v24 = vld [vmem:[%s4202_s8 + $0x8] sm:$0xff] }
  0x3c   : > { %3102 = vmatmul.msk.f32.vlgmr.msra.gmra.mxu0 %vm823_vm1, %v3461_v10  ;;  %904 = vmatpush.msrb.mxu2 %v887_v22  ;;  %v884_v25 = vld [vmem:[%s4202_s8] sm:$0xff]  ;;  %s4204_s8 = scalar_lea.vmem %s4156_s7, %s3369_s29 }
  0x3d   : > { %v3196_v35 = vld [vmem:[%s4203_s1] ss:$0 sm:$0xff]  ;;  %v3197_v43 = vld [vmem:[%s4203_s1 + $0x1] ss:$0 sm:$0xff] }
  0x3e   : > { %905 = vmatpush.msrb.mxu2 %v886_v23  ;;  %v3198_v48 = vld [vmem:[%s4204_s8] ss:$0 sm:$0xff] }
  0x40   : > { %906 = vmatpush.msrb.mxu2 %v885_v24 }
  0x42   : > { %907 = vmatpush.msrb.mxu2 %v884_v25 }
  0x43   : > { %3106 = vmatmul.msk.f32.vlgmr.msrb.gmra.mxu2 %vm823_vm1, %v3461_v10 }
  0x44   : > { %3103 = vmatmul.msk.f32.gmra.mxu0 %vm823_vm1, %v3463_v11 }
  0x4b   : > { %3107 = vmatmul.msk.f32.gmra.mxu2 %vm823_vm1, %v3463_v11 }
  0xb3   : > { %v878_v15 = vpop.f32.mrf.mxu1 }
  0xb4   : > { %v879_v17 = vadd.f32 %v3195_v13, %v878_v15 }
  0xb6   : > { %1243 = vrot.lane.b32.xlu1 %v879_v17, %s3255_s22  ;;  %1081 = vrot.lane.b32.xlu0 %v879_v17, %s3256_s5 }
  0xb7   : > { %3108 = vmatpush.xpose.msk.msra.mxu3 %vm922_vm2, %v879_v17 }
  0xb9   : > { %v847_v14 = vpop.f32.mrf.mxu0 }
  0xba   : > { %v848_v16 = vadd.f32 %v3194_v12, %v847_v14  ;;  %v881_v19 = vpop.f32.mrf.mxu2 }
  0xbb   : > { %v882_v21 = vadd.f32 %v3195_v13, %v881_v19 }
  0xbc   : > { %1241 = vrot.lane.b32.xlu2 %v848_v16, %s3255_s22  ;;  %3109 = vmatmul.msk.f32.vlgmr.msra.gmra.mxu3 %vm922_vm2, %v848_v16 }
  0xbd   : > { %3110 = vmatpush.xpose.msk.msrb.mxu3 %vm922_vm2, %v882_v21 }
  0xbe   : > { %1109 = vrot.lane.b32.xlu1 %v882_v21, %s3256_s5  ;;  %1079 = vrot.lane.b32.xlu0 %v848_v16, %s3256_s5 }
  0xc1   : > { %v850_v18 = vpop.f32.mrf.mxu0 }
  0xc2   : > { %v851_v20 = vadd.f32 %v3194_v12, %v850_v18 }
  0xc4   : > { %1107 = vrot.lane.b32.xlu2 %v851_v20, %s3256_s5  ;;  %3111 = vmatmul.msk.f32.vlgmr.msrb.gmra.mxu3 %vm922_vm2, %v851_v20 }
  0xc6   : > { %1403 = vrot.lane.b32.xlu1 %v879_v17, %s3257_s11  ;;  %1271 = vrot.lane.b32.xlu0 %v882_v21, %s3255_s22  ;;  %v909_v49 = vpop.f32.mrf.mxu2 }
  0xc7   : > { %v3532_v50 = vadd.f32 %v3198_v48, %v909_v49 }
  0xc9   : > { %1051 = vmatpush.msra.mxu3 %v3532_v50 }
  0xcc   : > { %1269 = vrot.lane.b32.xlu2 %v851_v20, %s3255_s22 }
  0xce   : > { %1431 = vrot.lane.b32.xlu1 %v882_v21, %s3257_s11  ;;  %1401 = vrot.lane.b32.xlu0 %v848_v16, %s3257_s11  ;;  %v912_v51 = vpop.f32.mrf.mxu2 }
  0xcf   : > { %v3535_v52 = vadd.f32 %v3198_v48, %v912_v51 }
  0xd1   : > { %1074 = vmatpush.msrb.mxu0 %v3535_v52 }
  0xd4   : > { %1429 = vrot.lane.b32.xlu2 %v851_v20, %s3257_s11 }
 0x116   : > { %v1242_v26 = vpop.permute.xlu2 %1241 }
 0x11e   : > { %v1108_v29 = vpop.permute.xlu2 %1107 }
 0x126   : > { %v1270_v34 = vpop.permute.xlu2 %1269 }
 0x128   : > { %v1244_v27 = vpop.permute.xlu1 %1243  ;;  %v1082_v28 = vpop.permute.xlu0 %1081 }
 0x129   : > { %3114 = vmatpush.xpose.msk.msrb.mxu1 %vm922_vm2, %v1082_v28 }
 0x12d   : > { %3120 = vmatpush.xpose.msk.msra.mxu1 %vm922_vm2, %v1244_v27 }
 0x12e   : > { %v1430_v42 = vpop.permute.xlu2 %1429 }
 0x130   : > { %v1110_v30 = vpop.permute.xlu1 %1109  ;;  %v1080_v31 = vpop.permute.xlu0 %1079 }
 0x131   : > { %3116 = vmatpush.xpose.msk.msra.mxu2 %vm922_vm2, %v1110_v30  ;;  %3115 = vmatmul.msk.f32.vlgmr.msrb.gmra.mxu1 %vm922_vm2, %v1080_v31 }
 0x134   : > { %3117 = vmatmul.msk.f32.vlgmr.msra.gmra.mxu2 %vm922_vm2, %v1108_v29 }
 0x138   : > { %v1404_v32 = vpop.permute.xlu1 %1403  ;;  %v1272_v33 = vpop.permute.xlu0 %1271 }
 0x139   : > { %3126 = vmatpush.xpose.msk.msrb.mxu1 %vm922_vm2, %v1404_v32  ;;  %3122 = vmatpush.xpose.msk.msrb.mxu2 %vm922_vm2, %v1272_v33 }
 0x13a   : > { %3121 = vmatmul.msk.f32.vlgmr.msra.gmra.mxu1 %vm922_vm2, %v1242_v26 }
 0x13c   : > { %3123 = vmatmul.msk.f32.vlgmr.msrb.gmra.mxu2 %vm922_vm2, %v1270_v34 }
 0x13f   : > { %v946_v36 = vpop.f32.mrf.mxu3 }
 0x140   : > { %v975_v37 = vmul.f32 0.35355338, %v946_v36  ;;  %v1432_v38 = vpop.permute.xlu1 %1431  ;;  %v1402_v40 = vpop.permute.xlu0 %1401 }
 0x141   : > { %3128 = vmatpush.xpose.msk.msra.mxu2 %vm922_vm2, %v1432_v38 }
 0x142   : > { %v983_v39 = vadd.f32 %v3196_v35, %v975_v37  ;;  %3127 = vmatmul.msk.f32.vlgmr.msrb.gmra.mxu1 %vm922_vm2, %v1402_v40 }
 0x144   : > { %v985_v41 = vsel %vm922_vm2, %v983_v39, -inf  ;;  %3129 = vmatmul.msk.f32.vlgmr.msra.gmra.mxu2 %vm922_vm2, %v1430_v42 }
 0x145   : > { %986 = vmax.xlane.f32.xlu0 %v985_v41 }
 0x147   : > { %v972_v44 = vpop.f32.mrf.mxu3 }
 0x148   : > { %v976_v45 = vmul.f32 0.35355338, %v972_v44 }
 0x14a   : > { %v984_v46 = vadd.f32 %v3197_v43, %v976_v45 }
 0x14c   : > { %v988_v47 = vsel %vm922_vm2, %v984_v46, -inf }
 0x14d   : > { %989 = vmax.xlane.f32.xlu2 %v988_v47 }
 0x1ae   : > { %v1104_v53 = vpop.f32.mrf.mxu1 }
 0x1af   : > { %v1135_v54 = vmul.f32 0.35355338, %v1104_v53 }
 0x1b1   : > { %v1137_v55 = vadd.f32 %v3196_v35, %v1135_v54 }
 0x1b3   : > { %v1139_v56 = vsel %vm922_vm2, %v1137_v55, -inf }
 0x1b4   : > { %1140 = vmax.xlane.f32.xlu1 %v1139_v56 }
 0x1b7   : > { %v1266_v57 = vpop.f32.mrf.mxu1  ;;  %v1132_v58 = vpop.f32.mrf.mxu2 }
 0x1b8   : > { %v1297_v59 = vmul.f32 0.35355338, %v1266_v57  ;;  %v1136_v60 = vmul.f32 0.35355338, %v1132_v58  ;;  %v987_v20 = vpop.xlane.xlu0 %986 }
 0x1b9   : > { %v991_v21 = vsub.f32 %v983_v39, %v987_v20 }
 0x1ba   : > { %v1299_v61 = vadd.f32 %v3196_v35, %v1297_v59  ;;  %v1138_v62 = vadd.f32 %v3197_v43, %v1136_v60 }
 0x1bb   : > { %v993_v22 = vmul.f32 1.442695, %v991_v21 }
 0x1bc   : > { %v1301_v63 = vsel %vm922_vm2, %v1299_v61, -inf  ;;  %v1142_v0 = vsel %vm922_vm2, %v1138_v62, -inf }
 0x1bd   : > { %1302 = vmax.xlane.f32.xlu2 %v1301_v63  ;;  %1143 = vmax.xlane.f32.xlu0 %v1142_v0 }
 0x1bf   : > { %v1426_v3 = vpop.f32.mrf.mxu1  ;;  %v1294_v5 = vpop.f32.mrf.mxu2 }
 0x1c0   : > { %v990_v1 = vpop.xlane.xlu2 %989  ;;  %v1457_v4 = vmul.f32 0.35355338, %v1426_v3  ;;  %v1298_v7 = vmul.f32 0.35355338, %v1294_v5 }
 0x1c1   : > { %v992_v2 = vsub.f32 %v984_v46, %v990_v1 }
 0x1c2   : > { %v1459_v8 = vadd.f32 %v3196_v35, %v1457_v4  ;;  %v1300_v9 = vadd.f32 %v3197_v43, %v1298_v7 }
 0x1c3   : > { %v995_v6 = vmul.f32 1.442695, %v992_v2 }
 0x1c4   : > { %v1461_v12 = vsel %vm922_vm2, %v1459_v8, -inf  ;;  %v1304_v13 = vsel %vm922_vm2, %v1300_v9, -inf }
 0x1c5   : > { %3205 = vpow2.f32 %v995_v6  ;;  %1462 = vmax.xlane.f32.xlu1 %v1461_v12  ;;  %1305 = vmax.xlane.f32.xlu2 %v1304_v13 }
 0x1c6   : > { %3207 = vpow2.f32 %v993_v22 }
 0x1c7   : > { %v1454_v14 = vpop.f32.mrf.mxu2 }
 0x1c8   : > { %v1458_v16 = vmul.f32 0.35355338, %v1454_v14 }
 0x1ca   : > { %v1460_v18 = vadd.f32 %v3197_v43, %v1458_v16 }
 0x1cb   : > { %v3543_v15 = vpop.eup %3205 }
 0x1cc   : > { %v1000_v17 = vsel %vm922_vm2, %v3543_v15, 0.0  ;;  %v1464_v19 = vsel %vm922_vm2, %v1460_v18, -inf  ;;  %v3552_v23 = vpop.eup %3207 }
 0x1cd   : > { %1001 = vadd.xlane.f32.xlu0 %v1000_v17  ;;  %v997_v24 = vsel %vm922_vm2, %v3552_v23, 0.0 }
 0x1d5   : > { %1465 = vmax.xlane.f32.xlu0 %v1464_v19 }
 0x1de   : > { %1188 = vrot.lane.b32.xlu1 %v3532_v50, %s3256_s5 }
 0x1e9   : > { %1349 = vrot.lane.b32.xlu0 %v3532_v50, %s3255_s22 }
 0x208   : > { %998 = vadd.xlane.f32.xlu1 %v997_v24 }
 0x227   : > { %v1141_v25 = vpop.xlane.xlu1 %1140 }
 0x228   : > { %v1145_v26 = vsub.f32 %v1137_v55, %v1141_v25 }
 0x22a   : > { %v1147_v27 = vmul.f32 1.442695, %v1145_v26 }
 0x22c   : > { %3209 = vpow2.f32 %v1147_v27 }
 0x230   : > { %v1303_v28 = vpop.xlane.xlu2 %1302  ;;  %v1144_v29 = vpop.xlane.xlu0 %1143 }
 0x231   : > { %v1307_v30 = vsub.f32 %v1299_v61, %v1303_v28  ;;  %v1146_v31 = vsub.f32 %v1138_v62, %v1144_v29 }
 0x232   : > { %v3556_v32 = vpop.eup %3209 }
 0x233   : > { %v1309_v33 = vmul.f32 1.442695, %v1307_v30  ;;  %v1149_v34 = vmul.f32 1.442695, %v1146_v31  ;;  %v1151_v35 = vsel %vm922_vm2, %v3556_v32, 0.0 }
 0x234   : > { %1152 = vadd.xlane.f32.xlu2 %v1151_v35 }
 0x235   : > { %3211 = vpow2.f32 %v1309_v33 }
 0x236   : > { %3213 = vpow2.f32 %v1149_v34 }
 0x238   : > { %v1463_v36 = vpop.xlane.xlu1 %1462  ;;  %v1306_v38 = vpop.xlane.xlu2 %1305 }
 0x239   : > { %v1467_v37 = vsub.f32 %v1459_v8, %v1463_v36  ;;  %v1308_v39 = vsub.f32 %v1300_v9, %v1306_v38 }
 0x23b   : > { %v3560_v40 = vpop.eup %3211  ;;  %v1469_v41 = vmul.f32 1.442695, %v1467_v37  ;;  %v1311_v43 = vmul.f32 1.442695, %v1308_v39 }
 0x23c   : > { %v3562_v42 = vpop.eup %3213  ;;  %v1313_v44 = vsel %vm922_vm2, %v3560_v40, 0.0 }
 0x23d   : > { %3215 = vpow2.f32 %v1469_v41  ;;  %1314 = vadd.xlane.f32.xlu1 %v1313_v44  ;;  %v1154_v45 = vsel %vm922_vm2, %v3562_v42, 0.0 }
 0x23e   : > { %3217 = vpow2.f32 %v1311_v43  ;;  %1155 = vadd.xlane.f32.xlu2 %v1154_v45 }
 0x240   : > { %v1002_v46 = vpop.xlane.xlu0 %1001 }
 0x241   : > { %3219 = vrcp.f32 %v1002_v46  ;;  %v1029_v58 = vand.u32 2147483648, %v1002_v46  ;;  %v1027_v61 = vand.u32 2147483647, %v1002_v46  ;;  %vm1023_vm4 = vweird.f32 %v1002_v46 }
 0x243   : > { %v3568_v47 = vpop.eup %3215  ;;  %v1030_v63 = vor.u32 1.1754944e-38, %v1029_v58  ;;  %vm1028_vm6 = vcmp.eq.f32.partialorder %v1027_v61, 8.507059e+37 }
 0x244   : > { %v3570_v48 = vpop.eup %3217  ;;  %v1473_v49 = vsel %vm922_vm2, %v3568_v47, 0.0 }
 0x245   : > { %1474 = vadd.xlane.f32.xlu0 %v1473_v49  ;;  %v1316_v53 = vsel %vm922_vm2, %v3570_v48, 0.0 }
 0x246   : > { %1317 = vadd.xlane.f32.xlu2 %v1316_v53 }
 0x247   : > { %v3220_v51 = vpop.eup %3219 }
 0x248   : > { %v1019_v54 = vmul.f32 %v3220_v51, %v1002_v46  ;;  %v1466_v55 = vpop.xlane.xlu0 %1465  ;;  %vm1024_vm3 = vweird.f32 %v3220_v51 }
 0x249   : > { %v1468_v56 = vsub.f32 %v1460_v18, %v1466_v55  ;;  %vm1025_vm5 = vmor %vm1023_vm4, %vm1024_vm3 }
 0x24a   : > { %v1020_v57 = vsub.f32 1.0, %v1019_v54 }
 0x24b   : > { %v1471_v59 = vmul.f32 1.442695, %v1468_v56 }
 0x24c   : > { %v1021_v60 = vmul.f32 %v3220_v51, %v1020_v57 }
 0x24d   : > { %3221 = vpow2.f32 %v1471_v59 }
 0x24e   : > { %v1022_v62 = vadd.f32 %v3220_v51, %v1021_v60 }
 0x250   : > { %v1026_v0 = vsel %vm1025_vm5, %v3220_v51, %v1022_v62  ;;  %v1189_v2 = vpop.permute.xlu1 %1188 }
 0x251   : > { %v1031_v1 = vsel %vm1028_vm6, %v1030_v63, %v1026_v0  ;;  %1209 = vmatpush.msrb.mxu3 %v1189_v2 }
 0x252   : > { %v1032_v3 = vmul.f32 %v3543_v15, %v1031_v1 }
 0x253   : > { %v3577_v4 = vpop.eup %3221 }
 0x254   : > { %3113 = vmatmul.msk.f32.vlgmr.msrb.gmra.mxu0 %vm922_vm2, %v1032_v3  ;;  %v1476_v5 = vsel %vm922_vm2, %v3577_v4, 0.0 }
 0x255   : > { %1477 = vadd.xlane.f32.xlu2 %v1476_v5 }
 0x256   : > { %1509 = vrot.lane.b32.xlu1 %v3532_v50, %s3257_s11 }
 0x259   : > { %1375 = vrot.lane.b32.xlu0 %v3535_v52, %s3255_s22  ;;  %s3258_s22 = smov 8  }
 0x25b   : > { %v1350_v19 = vpop.permute.xlu0 %1349 }
 0x25e   : > { %1535 = vrot.lane.b32.xlu1 %v3535_v52, %s3257_s11  ;;  %s3260_s11 = smov 24  }
 0x26d   : > { %1215 = vrot.lane.b32.xlu2 %v3535_v52, %s3256_s5  ;;  %s3259_s5 = smov 16  }
 0x27b   : > { %v999_v6 = vpop.xlane.xlu1 %998 }
 0x27c   : > { %3223 = vrcp.f32 %v999_v6  ;;  %v1014_v12 = vand.u32 2147483648, %v999_v6  ;;  %v1012_v14 = vand.u32 2147483647, %v999_v6  ;;  %vm1008_vm8 = vweird.f32 %v999_v6 }
 0x27e   : > { %v1015_v50 = vor.u32 1.1754944e-38, %v1014_v12  ;;  %vm1013_vm10 = vcmp.eq.f32.partialorder %v1012_v14, 8.507059e+37 }
 0x282   : > { %v3224_v7 = vpop.eup %3223 }
 0x283   : > { %v1004_v8 = vmul.f32 %v3224_v7, %v999_v6  ;;  %vm1009_vm7 = vweird.f32 %v3224_v7 }
 0x284   : > { %vm1010_vm9 = vmor %vm1008_vm8, %vm1009_vm7 }
 0x285   : > { %v1005_v9 = vsub.f32 1.0, %v1004_v8 }
 0x287   : > { %v1006_v13 = vmul.f32 %v3224_v7, %v1005_v9 }
 0x289   : > { %v1007_v15 = vadd.f32 %v3224_v7, %v1006_v13 }
 0x28b   : > { %v1011_v16 = vsel %vm1010_vm9, %v3224_v7, %v1007_v15 }
 0x28c   : > { %v1016_v17 = vsel %vm1013_vm10, %v1015_v50, %v1011_v16 }
 0x28d   : > { %v1017_v18 = vmul.f32 %v3552_v23, %v1016_v17 }
 0x28f   : > { %3112 = vmatmul.msk.f32.vlgmr.msra.gmra.mxu3 %vm922_vm2, %v1017_v18 }
 0x290   : > { %1370 = vmatpush.msra.mxu3 %v1350_v19 }
 0x2a7   : > { %v1153_v52 = vpop.xlane.xlu2 %1152 }
 0x2a8   : > { %3225 = vrcp.f32 %v1153_v52  ;;  %v1168_v27 = vand.u32 2147483648, %v1153_v52  ;;  %v1166_v28 = vand.u32 2147483647, %v1153_v52  ;;  %vm1162_vm12 = vweird.f32 %v1153_v52 }
 0x2aa   : > { %v1169_v33 = vor.u32 1.1754944e-38, %v1168_v27  ;;  %vm1167_vm14 = vcmp.eq.f32.partialorder %v1166_v28, 8.507059e+37 }
 0x2ae   : > { %v3226_v20 = vpop.eup %3225 }
 0x2af   : > { %v1158_v21 = vmul.f32 %v3226_v20, %v1153_v52  ;;  %vm1163_vm11 = vweird.f32 %v3226_v20 }
 0x2b0   : > { %v1315_v22 = vpop.xlane.xlu1 %1314  ;;  %vm1164_vm13 = vmor %vm1162_vm12, %vm1163_vm11 }
 0x2b1   : > { %3227 = vrcp.f32 %v1315_v22  ;;  %v3592_v24 = vpop.xlane.xlu2 %1155  ;;  %v1159_v25 = vsub.f32 1.0, %v1158_v21  ;;  %v1330_v41 = vand.u32 2147483648, %v1315_v22  ;;  %v1328_v44 = vand.u32 2147483647, %v1315_v22 }
 0x2b2   : > { %3229 = vrcp.f32 %v3592_v24  ;;  %vm1324_vm0 = vweird.f32 %v1315_v22  ;;  %vm1177_vm7 = vweird.f32 %v3592_v24  ;;  %v1183_v2 = vand.u32 2147483648, %v3592_v24 }
 0x2b3   : > { %v1160_v26 = vmul.f32 %v3226_v20, %v1159_v25  ;;  %v1331_v53 = vor.u32 1.1754944e-38, %v1330_v41  ;;  %vm1329_vm4 = vcmp.eq.f32.partialorder %v1328_v44, 8.507059e+37  ;;  %v1181_v5 = vand.u32 2147483647, %v3592_v24 }
 0x2b4   : > { %v1184_v14 = vor.u32 1.1754944e-38, %v1183_v2 }
 0x2b5   : > { %v1161_v23 = vadd.f32 %v3226_v20, %v1160_v26  ;;  %vm1182_vm12 = vcmp.eq.f32.partialorder %v1181_v5, 8.507059e+37 }
 0x2b7   : > { %v3228_v29 = vpop.eup %3227  ;;  %v1165_v31 = vsel %vm1164_vm13, %v3226_v20, %v1161_v23 }
 0x2b8   : > { %v3230_v30 = vpop.eup %3229  ;;  %v1320_v34 = vmul.f32 %v3228_v29, %v1315_v22  ;;  %v1475_v35 = vpop.xlane.xlu0 %1474  ;;  %v1170_v38 = vsel %vm1167_vm14, %v1169_v33, %v1165_v31  ;;  %vm1325_vm15 = vweird.f32 %v3228_v29 }
 0x2b9   : > { %v1173_v36 = vmul.f32 %v3230_v30, %v3592_v24  ;;  %3231 = vrcp.f32 %v1475_v35  ;;  %v3596_v37 = vpop.xlane.xlu2 %1317  ;;  %v1171_v46 = vmul.f32 %v3556_v32, %v1170_v38  ;;  %vm1326_vm3 = vmor %vm1324_vm0, %vm1325_vm15  ;;  %vm1178_vm5 = vweird.f32 %v3230_v30 }
 0x2ba   : > { %v1321_v39 = vsub.f32 1.0, %v1320_v34  ;;  %3233 = vrcp.f32 %v3596_v37  ;;  %v1488_v61 = vand.u32 2147483647, %v1475_v35  ;;  %v1490_v62 = vand.u32 2147483648, %v1475_v35  ;;  %vm3605_vm8 = vmor %vm1177_vm7, %vm1178_vm5 }
 0x2bb   : > { %v1174_v45 = vsub.f32 1.0, %v1173_v36  ;;  %3118 = vmatmul.msk.f32.vlgmr.msrb.gmra.mxu3 %vm922_vm2, %v1171_v46  ;;  %vm1484_vm9 = vweird.f32 %v1475_v35  ;;  %v1345_v19 = vand.u32 2147483648, %v3596_v37  ;;  %vm1339_vm14 = vweird.f32 %v3596_v37  ;;  %v919_v46 = vld [vmem:[%s3402_s23 + $0x10] sm:$0xff] }
 0x2bc   : > { %v1322_v43 = vmul.f32 %v3228_v29, %v1321_v39  ;;  %v1491_v8 = vor.u32 1.1754944e-38, %v1490_v62  ;;  %vm1489_vm11 = vcmp.eq.f32.partialorder %v1488_v61, 8.507059e+37  ;;  %v1343_v52 = vand.u32 2147483647, %v3596_v37 }
 0x2bd   : > { %v1175_v55 = vmul.f32 %v3230_v30, %v1174_v45  ;;  %v1346_v27 = vor.u32 1.1754944e-38, %v1345_v19  ;;  %v920_v45 = vld [vmem:[%s3402_s23 + $0x18] sm:$0xff]  ;;  %vm1587_vm7 = vcmask 130048  }
 0x2be   : > { %v1323_v49 = vadd.f32 %v3228_v29, %v1322_v43  ;;  %vm1344_vm0 = vcmp.eq.f32.partialorder %v1343_v52, 8.507059e+37  ;;  %1614 = vmatpush.msra.mxu1 %v920_v45  ;;  %v1774_v45 = vld [vmem:[%s3424_s2 + $0x1f0] sm:$0xff] }
 0x2bf   : > { %v3232_v51 = vpop.eup %3231  ;;  %v1176_v63 = vadd.f32 %v3230_v30, %v1175_v55 }
 0x2c0   : > { %v1327_v54 = vsel %vm1326_vm3, %v3228_v29, %v1323_v49  ;;  %v1480_v56 = vmul.f32 %v3232_v51, %v1475_v35  ;;  %v3234_v57 = vpop.eup %3233  ;;  %vm1485_vm6 = vweird.f32 %v3232_v51  ;;  %v918_v49 = vld [vmem:[%s3402_s23 + $0x8] sm:$0xff]  ;;  %1615 = vmatpush.msra.mxu1 %v919_v46 }
 0x2c1   : > { %v1332_v58 = vsel %vm1329_vm4, %v1331_v53, %v1327_v54  ;;  %v1335_v60 = vmul.f32 %v3234_v57, %v3596_v37  ;;  %vm1486_vm10 = vmor %vm1484_vm9, %vm1485_vm6  ;;  %vm1340_vm13 = vweird.f32 %v3234_v57  ;;  %v1757_v46 = vld [vmem:[%s3424_s2 + $0x168] sm:$0xff] }
 0x2c2   : > { %v1481_v59 = vsub.f32 1.0, %v1480_v56  ;;  %v1333_v32 = vmul.f32 %v3560_v40, %v1332_v58  ;;  %v1180_v40 = vsel %vm3605_vm8, %v3230_v30, %v1176_v63  ;;  %vm1341_vm15 = vmor %vm1339_vm14, %vm1340_vm13  ;;  %1616 = vmatpush.msra.mxu1 %v918_v49  ;;  %vm1590_vm8 = vcmask 195584  }
 0x2c3   : > { %v1336_v1 = vsub.f32 1.0, %v1335_v60  ;;  %v1185_v50 = vsel %vm1182_vm12, %v1184_v14, %v1180_v40 }
 0x2c4   : > { %v1482_v0 = vmul.f32 %v3232_v51, %v1481_v59  ;;  %3124 = vmatmul.msk.f32.vlgmr.msra.gmra.mxu3 %vm922_vm2, %v1333_v32  ;;  %v1186_v22 = vmul.f32 %v3562_v42, %v1185_v50 }
 0x2c5   : > { %v1337_v12 = vmul.f32 %v3234_v57, %v1336_v1 }
 0x2c6   : > { %v1483_v6 = vadd.f32 %v3232_v51, %v1482_v0  ;;  %v3199_v0 = vld [vmem:[%s4207_s26] ss:$0 sm:$0xff] }
 0x2c7   : > { %v1338_v17 = vadd.f32 %v3234_v57, %v1337_v12 }
 0x2c8   : > { %v1478_v7 = vpop.xlane.xlu2 %1477  ;;  %v1487_v9 = vsel %vm1486_vm10, %v3232_v51, %v1483_v6  ;;  %v1510_v13 = vpop.permute.xlu1 %1509  ;;  %v917_v51 = vld [vmem:[%s3402_s23] sm:$0xff] }
 0x2c9   : > { %3235 = vrcp.f32 %v1478_v7  ;;  %v1492_v15 = vsel %vm1489_vm11, %v1491_v8, %v1487_v9  ;;  %1530 = vmatpush.msrb.mxu3 %v1510_v13  ;;  %v1342_v24 = vsel %vm1341_vm15, %v3234_v57, %v1338_v17  ;;  %v1505_v30 = vand.u32 2147483648, %v1478_v7  ;;  %1617 = vmatpush.msra.mxu1 %v917_v51 }
 0x2ca   : > { %v1493_v16 = vmul.f32 %v3568_v47, %v1492_v15  ;;  %v1347_v23 = vsel %vm1344_vm0, %v1346_v27, %v1342_v24  ;;  %vm1499_vm4 = vweird.f32 %v1478_v7  ;;  %v1503_v42 = vand.u32 2147483647, %v1478_v7  ;;  %v1710_v27 = vld [vmem:[%s3412_s0 + $0x198] sm:$0xff] }
 0x2cb   : > { %v1376_v47 = vpop.permute.xlu0 %1375  ;;  %v1348_v31 = vmul.f32 %v3570_v48, %v1347_v23  ;;  %v1506_v34 = vor.u32 1.1754944e-38, %v1505_v30  ;;  %v3261_v9 = vmov 32.0   ;;  %1872 = vmatpush.msrb.mxu1 %v1710_v27  ;;  %v1704_v23 = vld [vmem:[%s3412_s0 + $0x108] sm:$0xff]  ;;  %v1706_v30 = vld [vmem:[%s3412_s0 + $0x118] sm:$0xff] }
 0x2cc   : > { %3130 = vmatmul.msk.f32.vlgmr.msrb.gmra.mxu3 %vm922_vm2, %v1493_v16  ;;  %vm1504_vm6 = vcmp.eq.f32.partialorder %v1503_v42, 8.507059e+37  ;;  %3237 = vrcp.f32 %v3261_v9  ;;  %v1699_v42 = vld [vmem:[%s3412_s0 + $0x80] sm:$0xff]  ;;  %v1723_v9 = vld [vmem:[%s3424_s2 + $0x58] sm:$0xff] }
 0x2cd   : > { %1873 = vmatpush.msrb.mxu1 %v1706_v30  ;;  %v1751_v27 = vld [vmem:[%s3424_s2 + $0x138] sm:$0xff] }
 0x2cf   : > { %v3236_v18 = vpop.eup %3235 }
 0x2d0   : > { %v1495_v20 = vmul.f32 %v3236_v18, %v1478_v7  ;;  %v1216_v21 = vpop.permute.xlu2 %1215  ;;  %v1536_v26 = vpop.permute.xlu1 %1535  ;;  %vm1500_vm3 = vweird.f32 %v3236_v18 }
 0x2d1   : > { %1236 = vmatpush.msra.mxu0 %v1216_v21  ;;  %vm1501_vm5 = vmor %vm1499_vm4, %vm1500_vm3  ;;  %v1076_v39 = vpop.f32.mrf.mxu0 }
 0x2d2   : > { %v1496_v25 = vsub.f32 1.0, %v1495_v20  ;;  %3119 = vmatmul.msk.f32.vlgmr.msra.gmra.mxu0 %vm922_vm2, %v1186_v22  ;;  %v3238_v12 = vpop.eup %3237 }
 0x2d3   : > { %1396 = vmatpush.msrb.mxu0 %v1376_v47  ;;  %v1636_v13 = vmul.f32 32.0, %v3238_v12  ;;  %v1708_v47 = vld [vmem:[%s3412_s0 + $0x188] sm:$0xff] }
 0x2d4   : > { %v1497_v28 = vmul.f32 %v3236_v18, %v1496_v25  ;;  %v1707_v25 = vld [vmem:[%s3412_s0 + $0x180] sm:$0xff]  ;;  %1826 = vmatpush.msra.mxu3 %v1708_v47 }
 0x2d5   : > { %1556 = vmatpush.msra.mxu0 %v1536_v26  ;;  %v1637_v14 = vsub.f32 1.0, %v1636_v13  ;;  %v1709_v26 = vld [vmem:[%s3412_s0 + $0x190] sm:$0xff]  ;;  %1803 = vmatpush.msrb.mxu2 %v1707_v25  ;;  %v1753_v13 = vld [vmem:[%s3424_s2 + $0x148] sm:$0xff]  ;;  %v3201_v25 = vld [vmem:[%s797_s6] ss:$0 sm:$0xff] }
 0x2d6   : > { %v1498_v29 = vadd.f32 %v3236_v18, %v1497_v28  ;;  %v1703_v28 = vld [vmem:[%s3412_s0 + $0x100] sm:$0xff]  ;;  %1827 = vmatpush.msra.mxu3 %v1704_v23 }
 0x2d7   : > { %v1638_v15 = vmul.f32 %v3238_v12, %v1637_v14  ;;  %1804 = vmatpush.msrb.mxu2 %v1703_v28  ;;  %v1769_v14 = vld [vmem:[%s3424_s2 + $0x1c8] sm:$0xff]  ;;  %v1767_v28 = vld [vmem:[%s3424_s2 + $0x1b8] sm:$0xff]  ;;  %v1720_v23 = vld [vmem:[%s3424_s2 + $0x40] sm:$0xff] }
 0x2d8   : > { %v1502_v33 = vsel %vm1501_vm5, %v3236_v18, %v1498_v29  ;;  %v1705_v29 = vld [vmem:[%s3412_s0 + $0x110] sm:$0xff] }
 0x2d9   : > { %v1507_v35 = vsel %vm1504_vm6, %v1506_v34, %v1502_v33  ;;  %v1639_v50 = vadd.f32 %v3238_v12, %v1638_v15  ;;  %v1701_v33 = vld [vmem:[%s3412_s0 + $0x90] sm:$0xff]  ;;  %1805 = vmatpush.msrb.mxu2 %v1699_v42  ;;  %v1702_v34 = vld [vmem:[%s3412_s0 + $0x98] sm:$0xff]  ;;  %v3710_v15 = vld [vmem:[%s794_s18] ss:$0 sm:$0xff] }
 0x2da   : > { %3125 = vmatmul.msk.f32.vlgmr.msrb.gmra.mxu0 %vm922_vm2, %v1348_v31  ;;  %v1508_v36 = vmul.f32 %v3577_v4, %v1507_v35  ;;  %v1700_v31 = vld [vmem:[%s3412_s0 + $0x88] sm:$0xff]  ;;  %1874 = vmatpush.msrb.mxu1 %v1702_v34  ;;  %v1695_v35 = vld [vmem:[%s3412_s0] sm:$0xff] }
 0x2db   : > { %1849 = vmatpush.msrb.mxu0 %v1709_v26  ;;  %1828 = vmatpush.msra.mxu3 %v1700_v31  ;;  %v1750_v31 = vld [vmem:[%s3424_s2 + $0x130] sm:$0xff] }
 0x2dc   : > { %1806 = vmatpush.msrb.mxu2 %v1695_v35  ;;  %v1749_v35 = vld [vmem:[%s3424_s2 + $0x128] sm:$0xff] }
 0x2dd   : > { %1850 = vmatpush.msrb.mxu0 %v1705_v29  ;;  %v1736_v29 = vld [vmem:[%s3424_s2 + $0xc0] sm:$0xff] }
 0x2df   : > { %1851 = vmatpush.msrb.mxu0 %v1701_v33 }
 0x2e2   : > { %3131 = vmatmul.msk.f32.vlgmr.msra.gmra.mxu0 %vm922_vm2, %v1508_v36  ;;  %v1696_v36 = vld [vmem:[%s3412_s0 + $0x8] sm:$0xff] }
 0x2e3   : > { %1829 = vmatpush.msra.mxu3 %v1696_v36  ;;  %v1765_v36 = vld [vmem:[%s3424_s2 + $0x1a8] sm:$0xff] }
 0x312   : > { %v1053_v37 = vpop.f32.mrf.mxu3 }
 0x33e   : > { %v1211_v38 = vpop.f32.mrf.mxu3 }
 0x33f   : > { %1563 = vrot.lane.b32.xlu0 %v1211_v38, %s3258_s22  ;;  %v1698_v38 = vld [vmem:[%s3412_s0 + $0x18] sm:$0xff] }
 0x340   : > { %1875 = vmatpush.msrb.mxu1 %v1698_v38  ;;  %v1719_v38 = vld [vmem:[%s3424_s2 + $0x38] sm:$0xff] }
 0x347   : > { %v1372_v48 = vpop.f32.mrf.mxu3 }
 0x348   : > { %1571 = vrot.lane.b32.xlu1 %v1372_v48, %s3259_s5 }
 0x34f   : > { %v1238_v41 = vpop.f32.mrf.mxu0  ;;  %v1532_v43 = vpop.f32.mrf.mxu3 }
 0x350   : > { %1565 = vrot.lane.b32.xlu2 %v1238_v41, %s3258_s22  ;;  %1579 = vrot.lane.b32.xlu0 %v1532_v43, %s3260_s11  ;;  %v1759_v43 = vld [vmem:[%s3424_s2 + $0x178] sm:$0xff] }
 0x357   : > { %v1398_v4 = vpop.f32.mrf.mxu0 }
 0x358   : > { %1573 = vrot.lane.b32.xlu1 %v1398_v4, %s3259_s5  ;;  %v1775_v4 = vld [vmem:[%s3424_s2 + $0x1f8] sm:$0xff] }
 0x35f   : > { %v1558_v44 = vpop.f32.mrf.mxu0 }
 0x360   : > { %1581 = vrot.lane.b32.xlu0 %v1558_v44, %s3260_s11  ;;  %v1758_v44 = vld [vmem:[%s3424_s2 + $0x170] sm:$0xff] }
 0x3aa   : > { %v1566_v59 = vpop.permute.xlu2 %1565 }
 0x3ab   : > { %v1586_v61 = vsel %vm922_vm2, %v1076_v39, %v1566_v59  ;;  %v1742_v59 = vld [vmem:[%s3424_s2 + $0xf0] sm:$0xff] }
 0x3b1   : > { %v1564_v53 = vpop.permute.xlu0 %1563 }
 0x3b2   : > { %v1585_v55 = vsel %vm922_vm2, %v1053_v37, %v1564_v53  ;;  %vm1640_vm2 = vweird.f32 %v3238_v12  ;;  %v1697_v37 = vld [vmem:[%s3412_s0 + $0x10] sm:$0xff]  ;;  %v1773_v53 = vld [vmem:[%s3424_s2 + $0x1e8] sm:$0xff] }
 0x3b3   : > { %1852 = vmatpush.msrb.mxu0 %v1697_v37 }
 0x3b5   : > { %1937 = vmatpush.msra.mxu0 %v1759_v43 }
 0x3b7   : > { %1938 = vmatpush.msra.mxu0 %v1758_v44  ;;  %v1734_v44 = vld [vmem:[%s3424_s2 + $0xb0] sm:$0xff] }
 0x3b9   : > { %1939 = vmatpush.msra.mxu0 %v1757_v46  ;;  %v1763_v46 = vld [vmem:[%s3424_s2 + $0x198] sm:$0xff] }
 0x3ba   : > { %v1572_v54 = vpop.permute.xlu1 %1571 }
 0x3bb   : > { %v1588_v56 = vsel %vm1587_vm7, %v1585_v55, %v1572_v54  ;;  %v1727_v54 = vld [vmem:[%s3424_s2 + $0x78] sm:$0xff] }
 0x3bc   : > { %v1743_v55 = vld [vmem:[%s3424_s2 + $0xf8] sm:$0xff]  ;;  %1891 = vmatpush.msra.mxu2 %v1727_v54 }
 0x3bd   : > { %1914 = vmatpush.msrb.mxu3 %v1743_v55  ;;  %v1733_v55 = vld [vmem:[%s3424_s2 + $0xa8] sm:$0xff] }
 0x3bf   : > { %1915 = vmatpush.msrb.mxu3 %v1742_v59  ;;  %v1732_v59 = vld [vmem:[%s3424_s2 + $0xa0] sm:$0xff] }
 0x3c2   : > { %v1580_v57 = vpop.permute.xlu0 %1579 }
 0x3c3   : > { %v1591_v58 = vsel %vm1590_vm8, %v1588_v56, %v1580_v57 }
 0x3c4   : > { %3132 = vmatmul.msk.f32.vlgmr.msra.gmra.mxu1 %vm823_vm1, %v1591_v58  ;;  %v1726_v58 = vld [vmem:[%s3424_s2 + $0x70] sm:$0xff] }
 0x3c5   : > { %1960 = vmatpush.msra.mxu1 %v1775_v4  ;;  %1892 = vmatpush.msra.mxu2 %v1726_v58  ;;  %v1718_v4 = vld [vmem:[%s3424_s2 + $0x30] sm:$0xff]  ;;  %v1716_v58 = vld [vmem:[%s3424_s2 + $0x20] sm:$0xff] }
 0x3c7   : > { %1961 = vmatpush.msra.mxu1 %v1774_v45  ;;  %v1747_v45 = vld [vmem:[%s3424_s2 + $0x118] sm:$0xff] }
 0x3c9   : > { %1962 = vmatpush.msra.mxu1 %v1773_v53 }
 0x3ca   : > { %v1574_v60 = vpop.permute.xlu1 %1573 }
 0x3cb   : > { %v1589_v62 = vsel %vm1587_vm7, %v1586_v61, %v1574_v60  ;;  %v1756_v60 = vld [vmem:[%s3424_s2 + $0x160] sm:$0xff] }
 0x3cc   : > { %v1772_v61 = vld [vmem:[%s3424_s2 + $0x1e0] sm:$0xff]  ;;  %1940 = vmatpush.msra.mxu0 %v1756_v60  ;;  %v1745_v60 = vld [vmem:[%s3424_s2 + $0x108] sm:$0xff] }
 0x3cd   : > { %1963 = vmatpush.msra.mxu1 %v1772_v61  ;;  %v1761_v61 = vld [vmem:[%s3424_s2 + $0x188] sm:$0xff] }
 0x3d2   : > { %v1582_v32 = vpop.permute.xlu0 %1581 }
 0x3d3   : > { %v1592_v63 = vsel %vm1590_vm8, %v1589_v62, %v1582_v32 }
 0x3d4   : > { %3133 = vmatmul.msk.f32.gmra.mxu1 %vm823_vm1, %v1592_v63  ;;  %v1725_v63 = vld [vmem:[%s3424_s2 + $0x68] sm:$0xff] }
 0x3d5   : > { %1893 = vmatpush.msra.mxu2 %v1725_v63  ;;  %v1744_v63 = vld [vmem:[%s3424_s2 + $0x100] sm:$0xff] }
 0x441   : > { %v1619_v1 = vpop.f32.mrf.mxu1 }
 0x442   : > { %v1620_v2 = vadd.f32 %v3199_v0, %v1619_v1  ;;  %v1755_v1 = vld [vmem:[%s3424_s2 + $0x158] sm:$0xff] }
 0x443   : > { %1941 = vmatpush.msra.mxu0 %v1755_v1  ;;  %v1714_v1 = vld [vmem:[%s3424_s2 + $0x10] sm:$0xff] }
 0x444   : > { %v1625_v3 = vadd.f32 %v1620_v2, %v3461_v10  ;;  %v3641_v10 = vsel %vm1640_vm2, %v3238_v12, %v1639_v50  ;;  %v1771_v2 = vld [vmem:[%s3424_s2 + $0x1d8] sm:$0xff] }
 0x445   : > { %1964 = vmatpush.msra.mxu1 %v1771_v2  ;;  %v1739_v12 = vld [vmem:[%s3424_s2 + $0xd8] sm:$0xff]  ;;  %v1730_v2 = vld [vmem:[%s3424_s2 + $0x90] sm:$0xff] }
 0x446   : > { %v1629_v5 = vsel %vm823_vm1, %v1625_v3, 0.0 }
 0x447   : > { %1630 = vadd.xlane.f32.xlu2 %v1629_v5  ;;  %v1724_v5 = vld [vmem:[%s3424_s2 + $0x60] sm:$0xff] }
 0x448   : > { %1894 = vmatpush.msra.mxu2 %v1724_v5  ;;  %v1729_v5 = vld [vmem:[%s3424_s2 + $0x88] sm:$0xff] }
 0x44a   : > { %1895 = vmatpush.msra.mxu2 %v1723_v9  ;;  %v1995_v9 = vld [vmem:[%s3412_s0 + $0x130] sm:$0xff] }
 0x451   : > { %v1622_v6 = vpop.f32.mrf.mxu1 }
 0x452   : > { %v1623_v7 = vadd.f32 %v3199_v0, %v1622_v6  ;;  %v1741_v0 = vld [vmem:[%s3424_s2 + $0xe8] sm:$0xff]  ;;  %v1740_v6 = vld [vmem:[%s3424_s2 + $0xe0] sm:$0xff] }
 0x453   : > { %1916 = vmatpush.msrb.mxu3 %v1741_v0  ;;  %v1760_v0 = vld [vmem:[%s3424_s2 + $0x180] sm:$0xff] }
 0x454   : > { %v1626_v8 = vadd.f32 %v1623_v7, %v3463_v11  ;;  %v1754_v7 = vld [vmem:[%s3424_s2 + $0x150] sm:$0xff] }
 0x455   : > { %1917 = vmatpush.msrb.mxu3 %v1740_v6  ;;  %1942 = vmatpush.msra.mxu0 %v1754_v7  ;;  %v1712_v6 = vld [vmem:[%s3424_s2] sm:$0xff] }
 0x456   : > { %v1632_v40 = vsel %vm823_vm1, %v1626_v8, 0.0  ;;  %v1728_v7 = vld [vmem:[%s3424_s2 + $0x80] sm:$0xff] }
 0x457   : > { %1633 = vadd.xlane.f32.xlu1 %v1632_v40  ;;  %1918 = vmatpush.msrb.mxu3 %v1739_v12  ;;  %v1996_v12 = vld [vmem:[%s3412_s0 + $0x138] sm:$0xff] }
 0x458   : > { %1943 = vmatpush.msra.mxu0 %v1753_v13  ;;  %v1991_v13 = vld [vmem:[%s3412_s0 + $0xb0] sm:$0xff] }
 0x4ba   : > { %v1631_v16 = vpop.xlane.xlu2 %1630 }
 0x4bb   : > { %v1642_v17 = vmul.f32 %v3641_v10, %v1631_v16  ;;  %v1722_v16 = vld [vmem:[%s3424_s2 + $0x50] sm:$0xff] }
 0x4bc   : > { %1896 = vmatpush.msra.mxu2 %v1722_v16  ;;  %v1987_v16 = vld [vmem:[%s3412_s0 + $0x30] sm:$0xff] }
 0x4bd   : > { %v3644_v11 = vsub.f32 %v1625_v3, %v1642_v17  ;;  %v1738_v17 = vld [vmem:[%s3424_s2 + $0xd0] sm:$0xff] }
 0x4be   : > { %1919 = vmatpush.msrb.mxu3 %v1738_v17  ;;  %v1988_v17 = vld [vmem:[%s3412_s0 + $0x38] sm:$0xff] }
 0x4bf   : > { %v1646_v18 = vmul.f32 %v3644_v11, %v3644_v11 }
 0x4c1   : > { %v1648_v19 = vsel %vm823_vm1, %v1646_v18, 0.0  ;;  %v1752_v18 = vld [vmem:[%s3424_s2 + $0x140] sm:$0xff] }
 0x4c2   : > { %1649 = vadd.xlane.f32.xlu0 %v1648_v19  ;;  %v1768_v19 = vld [vmem:[%s3424_s2 + $0x1c0] sm:$0xff]  ;;  %1944 = vmatpush.msra.mxu0 %v1752_v18 }
 0x4c3   : > { %v1993_v18 = vld [vmem:[%s3412_s0 + $0x120] sm:$0xff] }
 0x4c4   : > { %1945 = vmatpush.msra.mxu0 %v1751_v27 }
 0x4c6   : > { %1946 = vmatpush.msra.mxu0 %v1750_v31 }
 0x4c8   : > { %1947 = vmatpush.msra.mxu0 %v1749_v35 }
 0x4ca   : > { %v1634_v52 = vpop.xlane.xlu1 %1633 }
 0x4cb   : > { %v1643_v20 = vmul.f32 %v3641_v10, %v1634_v52 }
 0x4cd   : > { %v3650_v21 = vsub.f32 %v1626_v8, %v1643_v20  ;;  %v1770_v8 = vld [vmem:[%s3424_s2 + $0x1d0] sm:$0xff] }
 0x4ce   : > { %1965 = vmatpush.msra.mxu1 %v1770_v8  ;;  %v1999_v8 = vld [vmem:[%s3412_s0 + $0x1b0] sm:$0xff] }
 0x4cf   : > { %v1647_v22 = vmul.f32 %v3650_v21, %v3650_v21 }
 0x4d0   : > { %1966 = vmatpush.msra.mxu1 %v1769_v14  ;;  %v1992_v14 = vld [vmem:[%s3412_s0 + $0xb8] sm:$0xff] }
 0x4d1   : > { %v1651_v24 = vsel %vm823_vm1, %v1647_v22, 0.0  ;;  %v1721_v22 = vld [vmem:[%s3424_s2 + $0x48] sm:$0xff] }
 0x4d2   : > { %1652 = vadd.xlane.f32.xlu2 %v1651_v24  ;;  %v1737_v24 = vld [vmem:[%s3424_s2 + $0xc8] sm:$0xff]  ;;  %1967 = vmatpush.msra.mxu1 %v1768_v19 }
 0x4d3   : > { %1897 = vmatpush.msra.mxu2 %v1721_v22  ;;  %1920 = vmatpush.msrb.mxu3 %v1737_v24  ;;  %v1994_v19 = vld [vmem:[%s3412_s0 + $0x128] sm:$0xff]  ;;  %v1711_v22 = vld [vmem:[%s3418_s20] sm:$0xf] }
 0x4d4   : > { %1968 = vmatpush.msra.mxu1 %v1767_v28  ;;  %v1985_v24 = vld [vmem:[%s3412_s0 + $0x20] sm:$0xff] }
 0x4d5   : > { %1898 = vmatpush.msra.mxu2 %v1720_v23  ;;  %1921 = vmatpush.msrb.mxu3 %v1736_v29 }
 0x4d7   : > { %1899 = vmatpush.msra.mxu2 %v1719_v38  ;;  %v2048_v38 = vld [vmem:[%s3424_s2 + $0x370] sm:$0xff] }
 0x4d9   : > { %1900 = vmatpush.msra.mxu2 %v1718_v4 }
 0x535   : > { %v1650_v39 = vpop.xlane.xlu0 %1649 }
 0x536   : > { %v1654_v48 = vmul.f32 %v1650_v39, %v3641_v10  ;;  %v1735_v39 = vld [vmem:[%s3424_s2 + $0xb8] sm:$0xff] }
 0x537   : > { %1922 = vmatpush.msrb.mxu3 %v1735_v39 }
 0x538   : > { %v1656_v41 = vadd.f32 1e-05, %v1654_v48  ;;  %v1748_v48 = vld [vmem:[%s3424_s2 + $0x120] sm:$0xff] }
 0x539   : > { %1948 = vmatpush.msra.mxu0 %v1748_v48  ;;  %1923 = vmatpush.msrb.mxu3 %v1734_v44 }
 0x53a   : > { %3239 = vrsqrt.f32 %v1656_v41  ;;  %vm1664_vm10 = vweird.f32 %v1656_v41 }
 0x53b   : > { %1949 = vmatpush.msra.mxu0 %v1747_v45  ;;  %1924 = vmatpush.msrb.mxu3 %v1733_v55 }
 0x53d   : > { %1925 = vmatpush.msrb.mxu3 %v1732_v59 }
 0x540   : > { %v3677_v49 = vpop.eup %3239 }
 0x541   : > { %v1659_v56 = vmul.f32 %v3677_v49, %v1656_v41  ;;  %vm1665_vm9 = vweird.f32 %v3677_v49  ;;  %v1764_v41 = vld [vmem:[%s3424_s2 + $0x1a0] sm:$0xff] }
 0x542   : > { %vm1666_vm11 = vmor %vm1664_vm10, %vm1665_vm9 }
 0x543   : > { %v1660_v62 = vmul.f32 %v3677_v49, %v1659_v56  ;;  %v1746_v56 = vld [vmem:[%s3424_s2 + $0x110] sm:$0xff] }
 0x544   : > { %1950 = vmatpush.msra.mxu0 %v1746_v56 }
 0x545   : > { %v1653_v51 = vpop.xlane.xlu2 %1652  ;;  %v1661_v3 = vmul.f32 0.5, %v1660_v62  ;;  %v1715_v62 = vld [vmem:[%s3424_s2 + $0x18] sm:$0xff] }
 0x546   : > { %v1655_v57 = vmul.f32 %v1653_v51, %v3641_v10  ;;  %1951 = vmatpush.msra.mxu0 %v1745_v60  ;;  %v2047_v60 = vld [vmem:[%s3424_s2 + $0x368] sm:$0xff] }
 0x547   : > { %v1662_v40 = vsub.f32 1.5, %v1661_v3  ;;  %v1713_v3 = vld [vmem:[%s3424_s2 + $0x8] sm:$0xff] }
 0x548   : > { %v3689_v32 = vadd.f32 1e-05, %v1655_v57  ;;  %v1762_v57 = vld [vmem:[%s3424_s2 + $0x190] sm:$0xff]  ;;  %1952 = vmatpush.msra.mxu0 %v1744_v63  ;;  %v2045_v63 = vld [vmem:[%s3424_s2 + $0x358] sm:$0xff] }
 0x549   : > { %v1663_v50 = vmul.f32 %v3677_v49, %v1662_v40  ;;  %v2000_v40 = vld [vmem:[%s3412_s0 + $0x1b8] sm:$0xff] }
 0x54a   : > { %3241 = vrsqrt.f32 %v3689_v32  ;;  %vm1674_vm13 = vweird.f32 %v3689_v32 }
 0x54b   : > { %v1667_v20 = vsel %vm1666_vm11, %v3677_v49, %v1663_v50  ;;  %v1998_v50 = vld [vmem:[%s3412_s0 + $0x1a8] sm:$0xff] }
 0x54c   : > { %v1678_v47 = vmul.f32 %v1667_v20, %v3644_v11  ;;  %v1766_v11 = vld [vmem:[%s3424_s2 + $0x1b0] sm:$0xff]  ;;  %v1990_v20 = vld [vmem:[%s3412_s0 + $0xa8] sm:$0xff] }
 0x54d   : > { %1969 = vmatpush.msra.mxu1 %v1766_v11 }
 0x54e   : > { %v1683_v30 = vmul.f32 %v3710_v15, %v1678_v47  ;;  %v1779_v47 = vperm.slane %v1711_v22, 2 }
 0x54f   : > { %1970 = vmatpush.msra.mxu1 %v1765_v36  ;;  %v2049_v36 = vld [vmem:[%s3424_s2 + $0x378] sm:$0xff] }
 0x550   : > { %v3242_v52 = vpop.eup %3241  ;;  %v3736_v33 = vadd.f32 %v3201_v25, %v1683_v30  ;;  %v1777_v30 = vperm.slane %v1711_v22, 0 }
 0x551   : > { %v1669_v26 = vmul.f32 %v3242_v52, %v3689_v32  ;;  %vm1675_vm12 = vweird.f32 %v3242_v52  ;;  %1971 = vmatpush.msra.mxu1 %v1764_v41  ;;  %v1731_v32 = vld [vmem:[%s3424_s2 + $0x98] sm:$0xff]  ;;  %v2064_v41 = vld [vmem:[%s3424_s2 + $0x3f0] sm:$0xff] }
 0x552   : > { %3134 = vmatmul.msk.f32.vlgmr.msrb.gmra.mxu2 %vm823_vm1, %v3736_v33  ;;  %3136 = vmatmul.msk.f32.vlgmr.msra.gmra.mxu3 %vm823_vm1, %v3736_v33  ;;  %vm1676_vm14 = vmor %vm1674_vm13, %vm1675_vm12 }
 0x553   : > { %v1670_v42 = vmul.f32 %v3242_v52, %v1669_v26  ;;  %3138 = vmatmul.msk.f32.vlgmr.msrb.gmra.mxu0 %vm823_vm1, %v3736_v33  ;;  %3140 = vmatmul.msk.f32.vlgmr.msrb.gmra.mxu1 %vm823_vm1, %v3736_v33  ;;  %v1780_v26 = vperm.slane %v1711_v22, 3 }
 0x554   : > { %1972 = vmatpush.msra.mxu1 %v1763_v46  ;;  %1926 = vmatpush.msrb.mxu3 %v1731_v32  ;;  %v2062_v32 = vld [vmem:[%s3424_s2 + $0x3e0] sm:$0xff] }
 0x555   : > { %v1671_v34 = vmul.f32 0.5, %v1670_v42  ;;  %2133 = vmatpush.msrb.mxu0 %v1999_v8  ;;  %v1778_v42 = vperm.slane %v1711_v22, 1  ;;  %v2043_v8 = vld [vmem:[%s3424_s2 + $0x348] sm:$0xff] }
 0x556   : > { %1973 = vmatpush.msra.mxu1 %v1762_v57  ;;  %1927 = vmatpush.msrb.mxu3 %v1730_v2  ;;  %v2017_v2 = vld [vmem:[%s3424_s2 + $0x278] sm:$0xff]  ;;  %v2039_v22 = vld [vmem:[%s3424_s2 + $0x328] sm:$0xff] }
 0x557   : > { %v1672_v37 = vsub.f32 1.5, %v1671_v34  ;;  %2134 = vmatpush.msrb.mxu0 %v1995_v9  ;;  %v2042_v9 = vld [vmem:[%s3424_s2 + $0x340] sm:$0xff] }
 0x558   : > { %1974 = vmatpush.msra.mxu1 %v1761_v61  ;;  %1928 = vmatpush.msrb.mxu3 %v1729_v5  ;;  %v2063_v61 = vld [vmem:[%s3424_s2 + $0x3e8] sm:$0xff]  ;;  %v2060_v5 = vld [vmem:[%s3424_s2 + $0x3d0] sm:$0xff] }
 0x559   : > { %v1673_v43 = vmul.f32 %v3242_v52, %v1672_v37  ;;  %2135 = vmatpush.msrb.mxu0 %v1991_v13  ;;  %v2065_v37 = vld [vmem:[%s3424_s2 + $0x3f8] sm:$0xff]  ;;  %v2015_v13 = vld [vmem:[%s3424_s2 + $0x268] sm:$0xff] }
 0x55a   : > { %1975 = vmatpush.msra.mxu1 %v1760_v0  ;;  %1929 = vmatpush.msrb.mxu3 %v1728_v7  ;;  %v2061_v0 = vld [vmem:[%s3424_s2 + $0x3d8] sm:$0xff]  ;;  %v2032_v7 = vld [vmem:[%s3424_s2 + $0x2f0] sm:$0xff] }
 0x55b   : > { %v1677_v49 = vsel %vm1676_vm14, %v3242_v52, %v1673_v43  ;;  %v1989_v52 = vld [vmem:[%s3412_s0 + $0xa0] sm:$0xff]  ;;  %2136 = vmatpush.msrb.mxu0 %v1987_v16 }
 0x55c   : > { %v1679_v51 = vmul.f32 %v1677_v49, %v3650_v21  ;;  %v1717_v21 = vld [vmem:[%s3424_s2 + $0x28] sm:$0xff]  ;;  %2156 = vmatpush.msrb.mxu1 %v2000_v40  ;;  %2110 = vmatpush.msra.mxu3 %v1998_v50  ;;  %v2057_v50 = vld [vmem:[%s3424_s2 + $0x3b8] sm:$0xff]  ;;  %v2014_v16 = vld [vmem:[%s3424_s2 + $0x260] sm:$0xff] }
 0x55d   : > { %1901 = vmatpush.msra.mxu2 %v1717_v21  ;;  %v2059_v40 = vld [vmem:[%s3424_s2 + $0x3c8] sm:$0xff] }
 0x55e   : > { %v1684_v53 = vmul.f32 %v3710_v15, %v1679_v51  ;;  %v1997_v15 = vld [vmem:[%s3412_s0 + $0x1a0] sm:$0xff]  ;;  %2157 = vmatpush.msrb.mxu1 %v1996_v12  ;;  %2111 = vmatpush.msra.mxu3 %v1994_v19  ;;  %v2056_v19 = vld [vmem:[%s3424_s2 + $0x3b0] sm:$0xff] }
 0x55f   : > { %1902 = vmatpush.msra.mxu2 %v1716_v58  ;;  %v2058_v12 = vld [vmem:[%s3424_s2 + $0x3c0] sm:$0xff] }
 0x560   : > { %v3760_v54 = vadd.f32 %v3201_v25, %v1684_v53  ;;  %2158 = vmatpush.msrb.mxu1 %v1992_v14  ;;  %v1986_v25 = vld [vmem:[%s3412_s0 + $0x28] sm:$0xff]  ;;  %2112 = vmatpush.msra.mxu3 %v1990_v20  ;;  %v2029_v20 = vld [vmem:[%s3424_s2 + $0x2d8] sm:$0xff] }
 0x561   : > { %1903 = vmatpush.msra.mxu2 %v1715_v62  ;;  %v2046_v62 = vld [vmem:[%s3424_s2 + $0x360] sm:$0xff]  ;;  %v2031_v14 = vld [vmem:[%s3424_s2 + $0x2e8] sm:$0xff] }
 0x562   : > { %3135 = vmatmul.msk.f32.gmra.mxu2 %vm823_vm1, %v3760_v54  ;;  %3137 = vmatmul.msk.f32.gmra.mxu3 %vm823_vm1, %v3760_v54 }
 0x563   : > { %3139 = vmatmul.msk.f32.gmra.mxu0 %vm823_vm1, %v3760_v54  ;;  %3141 = vmatmul.msk.f32.gmra.mxu1 %vm823_vm1, %v3760_v54 }
 0x564   : > { %1904 = vmatpush.msra.mxu2 %v1714_v1  ;;  %2159 = vmatpush.msrb.mxu1 %v1988_v17  ;;  %v2044_v1 = vld [vmem:[%s3424_s2 + $0x350] sm:$0xff]  ;;  %v2030_v17 = vld [vmem:[%s3424_s2 + $0x2e0] sm:$0xff] }
 0x565   : > { %2113 = vmatpush.msra.mxu3 %v1986_v25  ;;  %v2012_v25 = vld [vmem:[%s3424_s2 + $0x250] sm:$0xff] }
 0x566   : > { %1905 = vmatpush.msra.mxu2 %v1713_v3  ;;  %v2033_v3 = vld [vmem:[%s3424_s2 + $0x2f8] sm:$0xff] }
 0x568   : > { %1906 = vmatpush.msra.mxu2 %v1712_v6  ;;  %v2016_v6 = vld [vmem:[%s3424_s2 + $0x270] sm:$0xff] }
 0x56a   : > { %2087 = vmatpush.msrb.mxu2 %v1997_v15  ;;  %v2041_v15 = vld [vmem:[%s3424_s2 + $0x338] sm:$0xff] }
 0x56c   : > { %2088 = vmatpush.msrb.mxu2 %v1993_v18  ;;  %v2040_v18 = vld [vmem:[%s3424_s2 + $0x330] sm:$0xff] }
 0x56e   : > { %2089 = vmatpush.msrb.mxu2 %v1989_v52  ;;  %v2013_v52 = vld [vmem:[%s3424_s2 + $0x258] sm:$0xff] }
 0x570   : > { %2090 = vmatpush.msrb.mxu2 %v1985_v24  ;;  %v2055_v24 = vld [vmem:[%s3424_s2 + $0x3a8] sm:$0xff] }
 0x5d0   : > { %v1854_v27 = vpop.f32.mrf.mxu0  ;;  %v1877_v28 = vpop.f32.mrf.mxu1 }
 0x5d1   : > { %v1855_v23 = vadd.f32 %v1854_v27, %v1779_v47  ;;  %v1878_v29 = vadd.f32 %v1877_v28, %v1780_v26  ;;  %v2054_v27 = vld [vmem:[%s3424_s2 + $0x3a0] sm:$0xff]  ;;  %v2011_v28 = vld [vmem:[%s3424_s2 + $0x248] sm:$0xff] }
 0x5d3   : > { %v1885_v31 = vmax.f32 %v1855_v23, 0.0  ;;  %v1886_v11 = vmax.f32 %v1878_v29, 0.0  ;;  %v2027_v23 = vld [vmem:[%s3424_s2 + $0x2c8] sm:$0xff]  ;;  %v2037_v29 = vld [vmem:[%s3424_s2 + $0x318] sm:$0xff] }
 0x5d5   : > { %1953 = vmatmul.f32.vlgmr.msra.gmra.mxu0 %v1885_v31  ;;  %1976 = vmatmul.f32.vlgmr.msra.gmra.mxu1 %v1886_v11  ;;  %v1808_v34 = vpop.f32.mrf.mxu2  ;;  %v1831_v35 = vpop.f32.mrf.mxu3  ;;  %v2026_v31 = vld [vmem:[%s3424_s2 + $0x2c0] sm:$0xff]  ;;  %v2036_v11 = vld [vmem:[%s3424_s2 + $0x310] sm:$0xff] }
 0x5d6   : > { %v1809_v39 = vadd.f32 %v1808_v34, %v1777_v30  ;;  %v1832_v48 = vadd.f32 %v1831_v35, %v1778_v42  ;;  %2221 = vmatpush.msra.mxu0 %v2049_v36  ;;  %2244 = vmatpush.msra.mxu1 %v2065_v37  ;;  %v2052_v34 = vld [vmem:[%s3424_s2 + $0x390] sm:$0xff]  ;;  %v2009_v35 = vld [vmem:[%s3424_s2 + $0x238] sm:$0xff]  ;;  %v2035_v37 = vld [vmem:[%s3424_s2 + $0x308] sm:$0xff] }
 0x5d7   : > { %v2025_v36 = vld [vmem:[%s3424_s2 + $0x2b8] sm:$0xff] }
 0x5d8   : > { %v1883_v43 = vmax.f32 %v1809_v39, 0.0  ;;  %v1884_v4 = vmax.f32 %v1832_v48, 0.0  ;;  %2222 = vmatpush.msra.mxu0 %v2048_v38  ;;  %2245 = vmatpush.msra.mxu1 %v2064_v41  ;;  %v2051_v38 = vld [vmem:[%s3424_s2 + $0x388] sm:$0xff]  ;;  %v2008_v39 = vld [vmem:[%s3424_s2 + $0x230] sm:$0xff]  ;;  %v2034_v41 = vld [vmem:[%s3424_s2 + $0x300] sm:$0xff] }
 0x5d9   : > { %v2024_v48 = vld [vmem:[%s3424_s2 + $0x2b0] sm:$0xff] }
 0x5da   : > { %1907 = vmatmul.f32.vlgmr.msra.gmra.mxu2 %v1883_v43  ;;  %1930 = vmatmul.f32.vlgmr.msrb.gmra.mxu3 %v1884_v4  ;;  %v2050_v43 = vld [vmem:[%s3424_s2 + $0x380] sm:$0xff]  ;;  %v2007_v4 = vld [vmem:[%s3424_s2 + $0x228] sm:$0xff] }
 0x5db   : > { %2223 = vmatpush.msra.mxu0 %v2047_v60  ;;  %2246 = vmatpush.msra.mxu1 %v2063_v61  ;;  %v2018_v60 = vld [vmem:[%s3424_s2 + $0x280] sm:$0xff]  ;;  %v2279_v61 = vld [vmem:[%s3412_s0 + $0x150] sm:$0xff] }
 0x5dc   : > { %2175 = vmatpush.msra.mxu2 %v2017_v2  ;;  %2198 = vmatpush.msrb.mxu3 %v2033_v3  ;;  %v2271_v2 = vld [vmem:[%s3412_s0 + $0x50] sm:$0xff]  ;;  %v2272_v3 = vld [vmem:[%s3412_s0 + $0x58] sm:$0xff] }
 0x5dd   : > { %2224 = vmatpush.msra.mxu0 %v2046_v62  ;;  %2247 = vmatpush.msra.mxu1 %v2062_v32 }
 0x5de   : > { %2176 = vmatpush.msra.mxu2 %v2016_v6  ;;  %2199 = vmatpush.msrb.mxu3 %v2032_v7  ;;  %v2281_v7 = vld [vmem:[%s3412_s0 + $0x1c0] sm:$0xff] }
 0x5df   : > { %2225 = vmatpush.msra.mxu0 %v2045_v63  ;;  %2248 = vmatpush.msra.mxu1 %v2061_v0  ;;  %v2280_v63 = vld [vmem:[%s3412_s0 + $0x158] sm:$0xff]  ;;  %v2275_v0 = vld [vmem:[%s3412_s0 + $0xd0] sm:$0xff] }
 0x5e0   : > { %v1857_v44 = vpop.f32.mrf.mxu0  ;;  %v1880_v45 = vpop.f32.mrf.mxu1  ;;  %2177 = vmatpush.msra.mxu2 %v2015_v13  ;;  %2200 = vmatpush.msrb.mxu3 %v2031_v14  ;;  %v2278_v14 = vld [vmem:[%s3412_s0 + $0x148] sm:$0xff] }
 0x5e1   : > { %v1858_v46 = vadd.f32 %v1857_v44, %v1779_v47  ;;  %v1881_v49 = vadd.f32 %v1880_v45, %v1780_v26  ;;  %2226 = vmatpush.msra.mxu0 %v2044_v1  ;;  %2249 = vmatpush.msra.mxu1 %v2060_v5  ;;  %v2028_v47 = vld [vmem:[%s3424_s2 + $0x2d0] sm:$0xff]  ;;  %v2038_v26 = vld [vmem:[%s3424_s2 + $0x320] sm:$0xff]  ;;  %v2023_v44 = vld [vmem:[%s3424_s2 + $0x2a8] sm:$0xff] }
 0x5e2   : > { %2178 = vmatpush.msra.mxu2 %v2014_v16  ;;  %2201 = vmatpush.msrb.mxu3 %v2030_v17  ;;  %v2006_v45 = vld [vmem:[%s3424_s2 + $0x220] sm:$0xff]  ;;  %v2276_v1 = vld [vmem:[%s3412_s0 + $0xd8] sm:$0xff] }
 0x5e3   : > { %v1889_v51 = vmax.f32 %v1858_v46, 0.0  ;;  %v1890_v53 = vmax.f32 %v1881_v49, 0.0  ;;  %2227 = vmatpush.msra.mxu0 %v2043_v8  ;;  %2250 = vmatpush.msra.mxu1 %v2059_v40  ;;  %v2022_v46 = vld [vmem:[%s3424_s2 + $0x2a0] sm:$0xff]  ;;  %v2005_v49 = vld [vmem:[%s3424_s2 + $0x218] sm:$0xff]  ;;  %v2282_v8 = vld [vmem:[%s3412_s0 + $0x1c8] sm:$0xff] }
 0x5e4   : > { %2179 = vmatpush.msra.mxu2 %v2013_v52  ;;  %2202 = vmatpush.msrb.mxu3 %v2029_v20  ;;  %v2277_v40 = vld [vmem:[%s3412_s0 + $0x140] sm:$0xff]  ;;  %v2274_v52 = vld [vmem:[%s3412_s0 + $0xc8] sm:$0xff] }
 0x5e5   : > { %1956 = vmatmul.f32.gmra.mxu0 %v1889_v51  ;;  %1979 = vmatmul.f32.gmra.mxu1 %v1890_v53  ;;  %v1811_v21 = vpop.f32.mrf.mxu2  ;;  %v1834_v55 = vpop.f32.mrf.mxu3  ;;  %v2021_v51 = vld [vmem:[%s3424_s2 + $0x298] sm:$0xff]  ;;  %v2004_v53 = vld [vmem:[%s3424_s2 + $0x210] sm:$0xff]  ;;  %v2269_v20 = vld [vmem:[%s3412_s0 + $0x40] sm:$0xff] }
 0x5e6   : > { %v1812_v56 = vadd.f32 %v1811_v21, %v1777_v30  ;;  %v1835_v57 = vadd.f32 %v1834_v55, %v1778_v42  ;;  %2228 = vmatpush.msra.mxu0 %v2042_v9  ;;  %2251 = vmatpush.msra.mxu1 %v2058_v12  ;;  %v2053_v30 = vld [vmem:[%s3424_s2 + $0x398] sm:$0xff]  ;;  %v2010_v42 = vld [vmem:[%s3424_s2 + $0x240] sm:$0xff]  ;;  %v2020_v21 = vld [vmem:[%s3424_s2 + $0x290] sm:$0xff] }
 0x5e7   : > { %2180 = vmatpush.msra.mxu2 %v2012_v25  ;;  %2203 = vmatpush.msrb.mxu3 %v2028_v47  ;;  %v2003_v55 = vld [vmem:[%s3424_s2 + $0x208] sm:$0xff] }
 0x5e8   : > { %v1887_v58 = vmax.f32 %v1812_v56, 0.0  ;;  %v1888_v59 = vmax.f32 %v1835_v57, 0.0  ;;  %2229 = vmatpush.msra.mxu0 %v2041_v15  ;;  %2252 = vmatpush.msra.mxu1 %v2057_v50  ;;  %v2019_v56 = vld [vmem:[%s3424_s2 + $0x288] sm:$0xff]  ;;  %v2283_v57 = vld [vmem:[%s3412_s0 + $0x1d0] sm:$0xff]  ;;  %v3898_v50 = vld [vmem:[%s3418_s20 + $0x4] sm:$0xf] }
 0x5e9   : > { %2181 = vmatpush.msra.mxu2 %v2011_v28  ;;  %2204 = vmatpush.msrb.mxu3 %v2027_v23  ;;  %v2069_v17 = vperm.slane %v3898_v50, 2 }
 0x5ea   : > { %1910 = vmatmul.f32.gmra.mxu2 %v1887_v58  ;;  %1933 = vmatmul.f32.gmra.mxu3 %v1888_v59  ;;  %v2284_v58 = vld [vmem:[%s3412_s0 + $0x1d8] sm:$0xff]  ;;  %v2002_v59 = vld [vmem:[%s3424_s2 + $0x200] sm:$0xff] }
 0x5eb   : > { %2230 = vmatpush.msra.mxu0 %v2040_v18  ;;  %2253 = vmatpush.msra.mxu1 %v2056_v19  ;;  %v2070_v18 = vperm.slane %v3898_v50, 3  ;;  %v2273_v19 = vld [vmem:[%s3412_s0 + $0xc0] sm:$0xff] }
 0x5ec   : > { %2182 = vmatpush.msra.mxu2 %v2010_v42  ;;  %2205 = vmatpush.msrb.mxu3 %v2026_v31 }
 0x5ed   : > { %3146 = vmatmul.msk.f32.vlgmr.msrb.gmra.mxu0 %vm823_vm1, %v3736_v33  ;;  %3148 = vmatmul.msk.f32.vlgmr.msrb.gmra.mxu1 %vm823_vm1, %v3736_v33 }
 0x5ee   : > { %2231 = vmatpush.msra.mxu0 %v2039_v22  ;;  %2254 = vmatpush.msra.mxu1 %v2055_v24  ;;  %v2270_v22 = vld [vmem:[%s3412_s0 + $0x48] sm:$0xff] }
 0x5ef   : > { %2183 = vmatpush.msra.mxu2 %v2009_v35  ;;  %2206 = vmatpush.msrb.mxu3 %v2025_v36  ;;  %v2333_v35 = vld [vmem:[%s3424_s2 + $0x578] sm:$0xff] }
 0x5f0   : > { %2232 = vmatpush.msra.mxu0 %v2038_v26  ;;  %2255 = vmatpush.msra.mxu1 %v2054_v27  ;;  %v2349_v36 = vld [vmem:[%s3424_s2 + $0x5f8] sm:$0xff] }
 0x5f1   : > { %2184 = vmatpush.msra.mxu2 %v2008_v39  ;;  %2207 = vmatpush.msrb.mxu3 %v2024_v48  ;;  %v2348_v48 = vld [vmem:[%s3424_s2 + $0x5f0] sm:$0xff] }
 0x5f2   : > { %3142 = vmatmul.msk.f32.vlgmr.msrb.gmra.mxu2 %vm823_vm1, %v3736_v33  ;;  %3144 = vmatmul.msk.f32.vlgmr.msra.gmra.mxu3 %vm823_vm1, %v3736_v33 }
 0x5f3   : > { %2233 = vmatpush.msra.mxu0 %v2037_v29  ;;  %2256 = vmatpush.msra.mxu1 %v2053_v30 }
 0x5f4   : > { %2185 = vmatpush.msra.mxu2 %v2007_v4  ;;  %2208 = vmatpush.msrb.mxu3 %v2023_v44  ;;  %v2331_v4 = vld [vmem:[%s3424_s2 + $0x568] sm:$0xff] }
 0x5f5   : > { %3147 = vmatmul.msk.f32.gmra.mxu0 %vm823_vm1, %v3760_v54  ;;  %3149 = vmatmul.msk.f32.gmra.mxu1 %vm823_vm1, %v3760_v54  ;;  %v2347_v44 = vld [vmem:[%s3424_s2 + $0x5e8] sm:$0xff] }
 0x5f6   : > { %2234 = vmatpush.msra.mxu0 %v2036_v11  ;;  %2257 = vmatpush.msra.mxu1 %v2052_v34  ;;  %v2067_v11 = vperm.slane %v3898_v50, 0  ;;  %v2068_v34 = vperm.slane %v3898_v50, 1  ;;  %v2300_v50 = vld [vmem:[%s3424_s2 + $0x470] sm:$0xff] }
 0x5f7   : > { %2186 = vmatpush.msra.mxu2 %v2006_v45  ;;  %2209 = vmatpush.msrb.mxu3 %v2022_v46 }
 0x5f8   : > { %2235 = vmatpush.msra.mxu0 %v2035_v37  ;;  %2258 = vmatpush.msra.mxu1 %v2051_v38  ;;  %v2332_v37 = vld [vmem:[%s3424_s2 + $0x570] sm:$0xff] }
 0x5f9   : > { %2187 = vmatpush.msra.mxu2 %v2005_v49  ;;  %2210 = vmatpush.msrb.mxu3 %v2021_v51 }
 0x5fa   : > { %3143 = vmatmul.msk.f32.gmra.mxu2 %vm823_vm1, %v3760_v54  ;;  %3145 = vmatmul.msk.f32.gmra.mxu3 %vm823_vm1, %v3760_v54 }
 0x5fb   : > { %2236 = vmatpush.msra.mxu0 %v2034_v41  ;;  %2259 = vmatpush.msra.mxu1 %v2050_v43 }
 0x5fc   : > { %2188 = vmatpush.msra.mxu2 %v2004_v53  ;;  %2211 = vmatpush.msrb.mxu3 %v2020_v21 }
 0x5fd   : > { %2417 = vmatpush.msrb.mxu0 %v2283_v57  ;;  %2440 = vmatpush.msrb.mxu1 %v2284_v58 }
 0x5fe   : > { %2189 = vmatpush.msra.mxu2 %v2003_v55  ;;  %2212 = vmatpush.msrb.mxu3 %v2019_v56  ;;  %v2330_v55 = vld [vmem:[%s3424_s2 + $0x560] sm:$0xff] }
 0x5ff   : > { %2418 = vmatpush.msrb.mxu0 %v2279_v61  ;;  %2441 = vmatpush.msrb.mxu1 %v2280_v63  ;;  %v2346_v56 = vld [vmem:[%s3424_s2 + $0x5e0] sm:$0xff] }
 0x600   : > { %2190 = vmatpush.msra.mxu2 %v2002_v59  ;;  %2213 = vmatpush.msrb.mxu3 %v2018_v60  ;;  %v2329_v59 = vld [vmem:[%s3424_s2 + $0x558] sm:$0xff] }
 0x601   : > { %2419 = vmatpush.msrb.mxu0 %v2275_v0  ;;  %2442 = vmatpush.msrb.mxu1 %v2276_v1  ;;  %v2345_v60 = vld [vmem:[%s3424_s2 + $0x5d8] sm:$0xff] }
 0x602   : > { %2371 = vmatpush.msrb.mxu2 %v2281_v7  ;;  %2394 = vmatpush.msra.mxu3 %v2282_v8  ;;  %v2326_v7 = vld [vmem:[%s3424_s2 + $0x540] sm:$0xff] }
 0x603   : > { %2420 = vmatpush.msrb.mxu0 %v2271_v2  ;;  %2443 = vmatpush.msrb.mxu1 %v2272_v3  ;;  %v2328_v2 = vld [vmem:[%s3424_s2 + $0x550] sm:$0xff]  ;;  %v2342_v8 = vld [vmem:[%s3424_s2 + $0x5c0] sm:$0xff] }
 0x604   : > { %2372 = vmatpush.msrb.mxu2 %v2277_v40  ;;  %2395 = vmatpush.msra.mxu3 %v2278_v14  ;;  %v2344_v3 = vld [vmem:[%s3424_s2 + $0x5d0] sm:$0xff]  ;;  %v2325_v40 = vld [vmem:[%s3424_s2 + $0x538] sm:$0xff] }
 0x605   : > { %v2324_v14 = vld [vmem:[%s3424_s2 + $0x530] sm:$0xff] }
 0x606   : > { %2373 = vmatpush.msrb.mxu2 %v2273_v19  ;;  %2396 = vmatpush.msra.mxu3 %v2274_v52  ;;  %v2339_v19 = vld [vmem:[%s3424_s2 + $0x5a8] sm:$0xff] }
 0x607   : > { %v2299_v52 = vld [vmem:[%s3424_s2 + $0x468] sm:$0xff] }
 0x608   : > { %2374 = vmatpush.msrb.mxu2 %v2269_v20  ;;  %2397 = vmatpush.msra.mxu3 %v2270_v22  ;;  %v2315_v20 = vld [vmem:[%s3424_s2 + $0x4e8] sm:$0xff]  ;;  %v2322_v22 = vld [vmem:[%s3424_s2 + $0x520] sm:$0xff] }
 0x652   : > { %v1954_v62 = vpop.f32.mrf.mxu0  ;;  %v1977_v32 = vpop.f32.mrf.mxu1 }
 0x65d   : > { %v1908_v5 = vpop.f32.mrf.mxu2  ;;  %v1931_v6 = vpop.f32.mrf.mxu3 }
 0x65e   : > { %v1932_v9 = vadd.f32 %v1931_v6, %v1908_v5  ;;  %v2327_v5 = vld [vmem:[%s3424_s2 + $0x548] sm:$0xff] }
 0x65f   : > { %v2343_v6 = vld [vmem:[%s3424_s2 + $0x5c8] sm:$0xff] }
 0x660   : > { %v1955_v15 = vadd.f32 %v1954_v62, %v1932_v9  ;;  %v2341_v9 = vld [vmem:[%s3424_s2 + $0x5b8] sm:$0xff] }
 0x662   : > { %v1957_v12 = vpop.f32.mrf.mxu0  ;;  %v1980_v13 = vpop.f32.mrf.mxu1  ;;  %v3900_v16 = vadd.f32 %v1977_v32, %v1955_v15  ;;  %v2340_v15 = vld [vmem:[%s3424_s2 + $0x5b0] sm:$0xff] }
 0x66a   : > { %v2138_v24 = vpop.f32.mrf.mxu0  ;;  %v2161_v25 = vpop.f32.mrf.mxu1 }
 0x66b   : > { %v2139_v47 = vadd.f32 %v2138_v24, %v2069_v17  ;;  %v2162_v26 = vadd.f32 %v2161_v25, %v2070_v18  ;;  %v2338_v24 = vld [vmem:[%s3424_s2 + $0x5a0] sm:$0xff] }
 0x66c   : > { %v2298_v25 = vld [vmem:[%s3424_s2 + $0x460] sm:$0xff] }
 0x66d   : > { %v1911_v27 = vpop.f32.mrf.mxu2  ;;  %v1934_v28 = vpop.f32.mrf.mxu3  ;;  %v2169_v23 = vmax.f32 %v2139_v47, 0.0  ;;  %v2170_v29 = vmax.f32 %v2162_v26, 0.0  ;;  %v2314_v47 = vld [vmem:[%s3424_s2 + $0x4e0] sm:$0xff]  ;;  %v2321_v26 = vld [vmem:[%s3424_s2 + $0x518] sm:$0xff] }
 0x66e   : > { %v1935_v30 = vadd.f32 %v1934_v28, %v1911_v27  ;;  %v2337_v27 = vld [vmem:[%s3424_s2 + $0x598] sm:$0xff] }
 0x66f   : > { %2237 = vmatmul.f32.vlgmr.msra.gmra.mxu0 %v2169_v23  ;;  %2260 = vmatmul.f32.vlgmr.msra.gmra.mxu1 %v2170_v29  ;;  %v2297_v28 = vld [vmem:[%s3424_s2 + $0x458] sm:$0xff]  ;;  %v2320_v29 = vld [vmem:[%s3424_s2 + $0x510] sm:$0xff] }
 0x670   : > { %v1958_v42 = vadd.f32 %v1957_v12, %v1935_v30  ;;  %2505 = vmatpush.msra.mxu0 %v2333_v35  ;;  %2528 = vmatpush.msra.mxu1 %v2349_v36  ;;  %v2301_v12 = vld [vmem:[%s3424_s2 + $0x478] sm:$0xff]  ;;  %v2336_v30 = vld [vmem:[%s3424_s2 + $0x590] sm:$0xff]  ;;  %v2335_v35 = vld [vmem:[%s3424_s2 + $0x588] sm:$0xff] }
 0x671   : > { %v2313_v23 = vld [vmem:[%s3424_s2 + $0x4d8] sm:$0xff]  ;;  %v2295_v36 = vld [vmem:[%s3424_s2 + $0x448] sm:$0xff] }
 0x672   : > { %v3908_v31 = vadd.f32 %v1980_v13, %v1958_v42  ;;  %v2141_v38 = vpop.f32.mrf.mxu0  ;;  %v2164_v39 = vpop.f32.mrf.mxu1  ;;  %2506 = vmatpush.msra.mxu0 %v2332_v37  ;;  %2529 = vmatpush.msra.mxu1 %v2348_v48  ;;  %v2317_v13 = vld [vmem:[%s3424_s2 + $0x4f8] sm:$0xff]  ;;  %v2296_v42 = vld [vmem:[%s3424_s2 + $0x450] sm:$0xff]  ;;  %v2311_v37 = vld [vmem:[%s3424_s2 + $0x4c8] sm:$0xff] }
 0x673   : > { %v2142_v41 = vadd.f32 %v2141_v38, %v2069_v17  ;;  %v2165_v43 = vadd.f32 %v2164_v39, %v2070_v18  ;;  %v2316_v17 = vld [vmem:[%s3424_s2 + $0x4f0] sm:$0xff]  ;;  %v2323_v18 = vld [vmem:[%s3424_s2 + $0x528] sm:$0xff]  ;;  %v2318_v38 = vld [vmem:[%s3424_s2 + $0x500] sm:$0xff] }
 0x674   : > { %2507 = vmatpush.msra.mxu0 %v2331_v4  ;;  %2530 = vmatpush.msra.mxu1 %v2347_v44  ;;  %v2334_v39 = vld [vmem:[%s3424_s2 + $0x580] sm:$0xff]  ;;  %v2309_v4 = vld [vmem:[%s3424_s2 + $0x4b8] sm:$0xff]  ;;  %v2292_v44 = vld [vmem:[%s3424_s2 + $0x430] sm:$0xff] }
 0x675   : > { %v2092_v45 = vpop.f32.mrf.mxu2  ;;  %v2115_v46 = vpop.f32.mrf.mxu3  ;;  %v2173_v49 = vmax.f32 %v2142_v41, 0.0  ;;  %v2174_v51 = vmax.f32 %v2165_v43, 0.0  ;;  %v2294_v48 = vld [vmem:[%s3424_s2 + $0x440] sm:$0xff]  ;;  %v2293_v43 = vld [vmem:[%s3424_s2 + $0x438] sm:$0xff] }
 0x676   : > { %v2093_v53 = vadd.f32 %v2092_v45, %v2067_v11  ;;  %v2116_v21 = vadd.f32 %v2115_v46, %v2068_v34  ;;  %2508 = vmatpush.msra.mxu0 %v2330_v55  ;;  %2531 = vmatpush.msra.mxu1 %v2346_v56  ;;  %v2310_v41 = vld [vmem:[%s3424_s2 + $0x4c0] sm:$0xff]  ;;  %v2308_v45 = vld [vmem:[%s3424_s2 + $0x4b0] sm:$0xff]  ;;  %v2291_v46 = vld [vmem:[%s3424_s2 + $0x428] sm:$0xff] }
 0x677   : > { %2240 = vmatmul.f32.gmra.mxu0 %v2173_v49  ;;  %2263 = vmatmul.f32.gmra.mxu1 %v2174_v51  ;;  %v2307_v49 = vld [vmem:[%s3424_s2 + $0x4a8] sm:$0xff]  ;;  %v2290_v51 = vld [vmem:[%s3424_s2 + $0x420] sm:$0xff] }
 0x678   : > { %v2167_v57 = vmax.f32 %v2093_v53, 0.0  ;;  %v2168_v58 = vmax.f32 %v2116_v21, 0.0  ;;  %2509 = vmatpush.msra.mxu0 %v2329_v59  ;;  %2532 = vmatpush.msra.mxu1 %v2345_v60  ;;  %v2306_v53 = vld [vmem:[%s3424_s2 + $0x4a0] sm:$0xff]  ;;  %v2567_v21 = vld [vmem:[%s3412_s0 + $0x1f0] sm:$0xff]  ;;  %v2305_v59 = vld [vmem:[%s3424_s2 + $0x498] sm:$0xff] }
 0x679   : > { %v2563_v60 = vld [vmem:[%s3412_s0 + $0x170] sm:$0xff] }
 0x67a   : > { %2191 = vmatmul.f32.vlgmr.msra.gmra.mxu2 %v2167_v57  ;;  %2214 = vmatmul.f32.vlgmr.msrb.gmra.mxu3 %v2168_v58  ;;  %v2568_v57 = vld [vmem:[%s3412_s0 + $0x1f8] sm:$0xff] }
 0x67b   : > { %2510 = vmatpush.msra.mxu0 %v2328_v2  ;;  %2533 = vmatpush.msra.mxu1 %v2344_v3  ;;  %v2289_v58 = vld [vmem:[%s3424_s2 + $0x418] sm:$0xff]  ;;  %v2303_v2 = vld [vmem:[%s3424_s2 + $0x488] sm:$0xff]  ;;  %v2555_v3 = vld [vmem:[%s3412_s0 + $0x70] sm:$0xff] }
 0x67c   : > { %2459 = vmatpush.msra.mxu2 %v2301_v12  ;;  %2482 = vmatpush.msrb.mxu3 %v2317_v13 }
 0x67d   : > { %v2095_v61 = vpop.f32.mrf.mxu2  ;;  %v2118_v62 = vpop.f32.mrf.mxu3  ;;  %2511 = vmatpush.msra.mxu0 %v2327_v5  ;;  %2534 = vmatpush.msra.mxu1 %v2343_v6  ;;  %v2556_v5 = vld [vmem:[%s3412_s0 + $0x78] sm:$0xff]  ;;  %v2286_v6 = vld [vmem:[%s3424_s2 + $0x400] sm:$0xff] }
 0x67e   : > { %v2096_v32 = vadd.f32 %v2095_v61, %v2067_v11  ;;  %v2119_v63 = vadd.f32 %v2118_v62, %v2068_v34  ;;  %2460 = vmatpush.msra.mxu2 %v2300_v50  ;;  %2483 = vmatpush.msrb.mxu3 %v2316_v17  ;;  %v2312_v11 = vld [vmem:[%s3424_s2 + $0x4d0] sm:$0xff]  ;;  %v2319_v34 = vld [vmem:[%s3424_s2 + $0x508] sm:$0xff]  ;;  %v2564_v61 = vld [vmem:[%s3412_s0 + $0x178] sm:$0xff] }
 0x67f   : > { %3154 = vmatmul.msk.f32.vlgmr.msrb.gmra.mxu0 %vm823_vm1, %v3736_v33  ;;  %3156 = vmatmul.msk.f32.vlgmr.msrb.gmra.mxu1 %vm823_vm1, %v3736_v33  ;;  %v2288_v62 = vld [vmem:[%s3424_s2 + $0x410] sm:$0xff]  ;;  %v2561_v50 = vld [vmem:[%s3412_s0 + $0x160] sm:$0xff]  ;;  %v2562_v17 = vld [vmem:[%s3412_s0 + $0x168] sm:$0xff] }
 0x680   : > { %v2171_v0 = vmax.f32 %v2096_v32, 0.0  ;;  %v2172_v1 = vmax.f32 %v2119_v63, 0.0  ;;  %2512 = vmatpush.msra.mxu0 %v2326_v7  ;;  %2535 = vmatpush.msra.mxu1 %v2342_v8  ;;  %v2304_v32 = vld [vmem:[%s3424_s2 + $0x490] sm:$0xff]  ;;  %v2302_v7 = vld [vmem:[%s3424_s2 + $0x480] sm:$0xff] }
 0x681   : > { %2461 = vmatpush.msra.mxu2 %v2299_v52  ;;  %2484 = vmatpush.msrb.mxu3 %v2315_v20  ;;  %v2559_v63 = vld [vmem:[%s3412_s0 + $0xf0] sm:$0xff]  ;;  %v2557_v52 = vld [vmem:[%s3412_s0 + $0xe0] sm:$0xff]  ;;  %v2558_v20 = vld [vmem:[%s3412_s0 + $0xe8] sm:$0xff] }
 0x682   : > { %2194 = vmatmul.f32.gmra.mxu2 %v2171_v0  ;;  %2217 = vmatmul.f32.gmra.mxu3 %v2172_v1  ;;  %v2560_v0 = vld [vmem:[%s3412_s0 + $0xf8] sm:$0xff]  ;;  %v2287_v1 = vld [vmem:[%s3424_s2 + $0x408] sm:$0xff] }
 0x683   : > { %2513 = vmatpush.msra.mxu0 %v2325_v40  ;;  %2536 = vmatpush.msra.mxu1 %v2341_v9  ;;  %v4005_v9 = vld [vmem:[%s3418_s20 + $0x8] sm:$0xf] }
 0x684   : > { %2462 = vmatpush.msra.mxu2 %v2298_v25  ;;  %2485 = vmatpush.msrb.mxu3 %v2314_v47  ;;  %v2353_v12 = vperm.slane %v4005_v9, 2  ;;  %v2354_v13 = vperm.slane %v4005_v9, 3 }
 0x685   : > { %2514 = vmatpush.msra.mxu0 %v2324_v14  ;;  %2537 = vmatpush.msra.mxu1 %v2340_v15  ;;  %v2565_v14 = vld [vmem:[%s3412_s0 + $0x1e0] sm:$0xff]  ;;  %v2566_v15 = vld [vmem:[%s3412_s0 + $0x1e8] sm:$0xff] }
 0x686   : > { %2463 = vmatpush.msra.mxu2 %v2297_v28  ;;  %2486 = vmatpush.msrb.mxu3 %v2313_v23 }
 0x687   : > { %3155 = vmatmul.msk.f32.gmra.mxu0 %vm823_vm1, %v3760_v54  ;;  %3157 = vmatmul.msk.f32.gmra.mxu1 %vm823_vm1, %v3760_v54 }
 0x688   : > { %2515 = vmatpush.msra.mxu0 %v2323_v18  ;;  %2538 = vmatpush.msra.mxu1 %v2339_v19 }
 0x689   : > { %2464 = vmatpush.msra.mxu2 %v2296_v42  ;;  %2487 = vmatpush.msrb.mxu3 %v2312_v11 }
 0x68a   : > { %3150 = vmatmul.msk.f32.vlgmr.msrb.gmra.mxu2 %vm823_vm1, %v3736_v33  ;;  %3152 = vmatmul.msk.f32.vlgmr.msra.gmra.mxu3 %vm823_vm1, %v3736_v33 }
 0x68b   : > { %2516 = vmatpush.msra.mxu0 %v2322_v22  ;;  %2539 = vmatpush.msra.mxu1 %v2338_v24 }
 0x68c   : > { %2465 = vmatpush.msra.mxu2 %v2295_v36  ;;  %2488 = vmatpush.msrb.mxu3 %v2311_v37 }
 0x68d   : > { %2517 = vmatpush.msra.mxu0 %v2321_v26  ;;  %2540 = vmatpush.msra.mxu1 %v2337_v27  ;;  %v3202_v26 = vld [vmem:[%s791_s27] ss:$0 sm:$0xff] }
 0x68e   : > { %2466 = vmatpush.msra.mxu2 %v2294_v48  ;;  %2489 = vmatpush.msrb.mxu3 %v2310_v41  ;;  %v1983_v11 = vadd.f32 %v3202_v26, %v3900_v16 }
 0x68f   : > { %2518 = vmatpush.msra.mxu0 %v2320_v29  ;;  %2541 = vmatpush.msra.mxu1 %v2336_v30  ;;  %v2553_v29 = vld [vmem:[%s3412_s0 + $0x60] sm:$0xff]  ;;  %v2554_v30 = vld [vmem:[%s3412_s0 + $0x68] sm:$0xff] }
 0x690   : > { %2467 = vmatpush.msra.mxu2 %v2293_v43  ;;  %2490 = vmatpush.msrb.mxu3 %v2309_v4 }
 0x691   : > { %2519 = vmatpush.msra.mxu0 %v2319_v34  ;;  %2542 = vmatpush.msra.mxu1 %v2335_v35 }
 0x692   : > { %3151 = vmatmul.msk.f32.gmra.mxu2 %vm823_vm1, %v3760_v54  ;;  %3153 = vmatmul.msk.f32.gmra.mxu3 %vm823_vm1, %v3760_v54 }
 0x693   : > { %2520 = vmatpush.msra.mxu0 %v2318_v38  ;;  %2543 = vmatpush.msra.mxu1 %v2334_v39 }
 0x694   : > { %2468 = vmatpush.msra.mxu2 %v2292_v44  ;;  %2491 = vmatpush.msrb.mxu3 %v2308_v45  ;;  %v1984_v45 = vadd.f32 %v3202_v26, %v3908_v31  ;;  %v2585_v26 = vld [vmem:[%s3424_s2 + $0x678] sm:$0xff] }
 0x695   : > { %2701 = vmatpush.msrb.mxu0 %v2567_v21  ;;  %2724 = vmatpush.msrb.mxu1 %v2568_v57  ;;  %v2633_v21 = vld [vmem:[%s3424_s2 + $0x7f8] sm:$0xff] }
 0x696   : > { %2469 = vmatpush.msra.mxu2 %v2291_v46  ;;  %2492 = vmatpush.msrb.mxu3 %v2307_v49  ;;  %v2351_v49 = vperm.slane %v4005_v9, 0 }
 0x697   : > { %2702 = vmatpush.msrb.mxu0 %v2563_v60  ;;  %2725 = vmatpush.msrb.mxu1 %v2564_v61 }
 0x698   : > { %2470 = vmatpush.msra.mxu2 %v2290_v51  ;;  %2493 = vmatpush.msrb.mxu3 %v2306_v53  ;;  %v2352_v51 = vperm.slane %v4005_v9, 1  ;;  %v2617_v53 = vld [vmem:[%s3424_s2 + $0x778] sm:$0xff] }
 0x699   : > { %2703 = vmatpush.msrb.mxu0 %v2559_v63  ;;  %2726 = vmatpush.msrb.mxu1 %v2560_v0  ;;  %v2614_v0 = vld [vmem:[%s3424_s2 + $0x760] sm:$0xff] }
 0x69a   : > { %2471 = vmatpush.msra.mxu2 %v2289_v58  ;;  %2494 = vmatpush.msrb.mxu3 %v2305_v59  ;;  %v2615_v58 = vld [vmem:[%s3424_s2 + $0x768] sm:$0xff] }
 0x69b   : > { %2704 = vmatpush.msrb.mxu0 %v2555_v3  ;;  %2727 = vmatpush.msrb.mxu1 %v2556_v5  ;;  %v2631_v59 = vld [vmem:[%s3424_s2 + $0x7e8] sm:$0xff]  ;;  %v2629_v3 = vld [vmem:[%s3424_s2 + $0x7d8] sm:$0xff] }
 0x69c   : > { %2472 = vmatpush.msra.mxu2 %v2288_v62  ;;  %2495 = vmatpush.msrb.mxu3 %v2304_v32 }
 0x69e   : > { %2473 = vmatpush.msra.mxu2 %v2287_v1  ;;  %2496 = vmatpush.msrb.mxu3 %v2303_v2  ;;  %v2630_v1 = vld [vmem:[%s3424_s2 + $0x7e0] sm:$0xff]  ;;  %v2613_v2 = vld [vmem:[%s3424_s2 + $0x758] sm:$0xff] }
 0x6a0   : > { %2474 = vmatpush.msra.mxu2 %v2286_v6  ;;  %2497 = vmatpush.msrb.mxu3 %v2302_v7 }
 0x6a2   : > { %2655 = vmatpush.msrb.mxu2 %v2565_v14  ;;  %2678 = vmatpush.msra.mxu3 %v2566_v15  ;;  %v2611_v14 = vld [vmem:[%s3424_s2 + $0x748] sm:$0xff] }
 0x6a3   : > { %v2627_v15 = vld [vmem:[%s3424_s2 + $0x7c8] sm:$0xff] }
 0x6a4   : > { %2656 = vmatpush.msrb.mxu2 %v2561_v50  ;;  %2679 = vmatpush.msra.mxu3 %v2562_v17  ;;  %v2610_v50 = vld [vmem:[%s3424_s2 + $0x740] sm:$0xff] }
 0x6a5   : > { %v2626_v17 = vld [vmem:[%s3424_s2 + $0x7c0] sm:$0xff] }
 0x6a6   : > { %2657 = vmatpush.msrb.mxu2 %v2557_v52  ;;  %2680 = vmatpush.msra.mxu3 %v2558_v20  ;;  %v2608_v52 = vld [vmem:[%s3424_s2 + $0x730] sm:$0xff] }
 0x6a7   : > { %v2624_v20 = vld [vmem:[%s3424_s2 + $0x7b0] sm:$0xff] }
 0x6a8   : > { %2658 = vmatpush.msrb.mxu2 %v2553_v29  ;;  %2681 = vmatpush.msra.mxu3 %v2554_v30  ;;  %v2584_v29 = vld [vmem:[%s3424_s2 + $0x670] sm:$0xff] }
 0x6a9   : > { %v2600_v30 = vld [vmem:[%s3424_s2 + $0x6f0] sm:$0xff] }
 0x6ec   : > { %v3985_v55 = vpop.f32.mrf.mxu0  ;;  %v3987_v56 = vpop.f32.mrf.mxu1 }
 0x6f4   : > { %v2241_v8 = vpop.f32.mrf.mxu0  ;;  %v2264_v40 = vpop.f32.mrf.mxu1 }
 0x6fc   : > { %v2422_v18 = vpop.f32.mrf.mxu0  ;;  %v2445_v19 = vpop.f32.mrf.mxu1 }
 0x6fd   : > { %v2423_v22 = vadd.f32 %v2422_v18, %v2353_v12  ;;  %v2446_v24 = vadd.f32 %v2445_v19, %v2354_v13  ;;  %v2192_v25 = vpop.f32.mrf.mxu2  ;;  %v2215_v47 = vpop.f32.mrf.mxu3  ;;  %v2609_v18 = vld [vmem:[%s3424_s2 + $0x738] sm:$0xff] }
 0x6fe   : > { %v2216_v27 = vadd.f32 %v2215_v47, %v2192_v25  ;;  %v2625_v19 = vld [vmem:[%s3424_s2 + $0x7b8] sm:$0xff]  ;;  %v2606_v25 = vld [vmem:[%s3424_s2 + $0x720] sm:$0xff] }
 0x6ff   : > { %v2453_v28 = vmax.f32 %v2423_v22, 0.0  ;;  %v2454_v23 = vmax.f32 %v2446_v24, 0.0  ;;  %v2607_v22 = vld [vmem:[%s3424_s2 + $0x728] sm:$0xff]  ;;  %v2622_v47 = vld [vmem:[%s3424_s2 + $0x7a0] sm:$0xff] }
 0x700   : > { %v2239_v42 = vadd.f32 %v3985_v55, %v2216_v27  ;;  %v2616_v55 = vld [vmem:[%s3424_s2 + $0x770] sm:$0xff]  ;;  %v2623_v24 = vld [vmem:[%s3424_s2 + $0x7a8] sm:$0xff]  ;;  %v2601_v27 = vld [vmem:[%s3424_s2 + $0x6f8] sm:$0xff] }
 0x701   : > { %2521 = vmatmul.f32.vlgmr.msra.gmra.mxu0 %v2453_v28  ;;  %2544 = vmatmul.f32.vlgmr.msra.gmra.mxu1 %v2454_v23  ;;  %v2605_v28 = vld [vmem:[%s3424_s2 + $0x718] sm:$0xff] }
 0x702   : > { %v2262_v34 = vadd.f32 %v3987_v56, %v2239_v42  ;;  %2789 = vmatpush.msra.mxu0 %v2617_v53  ;;  %2812 = vmatpush.msra.mxu1 %v2633_v21  ;;  %v2632_v56 = vld [vmem:[%s3424_s2 + $0x7f0] sm:$0xff]  ;;  %v2621_v23 = vld [vmem:[%s3424_s2 + $0x798] sm:$0xff]  ;;  %v2594_v53 = vld [vmem:[%s3424_s2 + $0x6c0] sm:$0xff] }
 0x703   : > { %v2604_v42 = vld [vmem:[%s3424_s2 + $0x710] sm:$0xff]  ;;  %v2577_v21 = vld [vmem:[%s3424_s2 + $0x638] sm:$0xff] }
 0x704   : > { %v4025_v35 = vadd.f32 %v2262_v34, %v1983_v11  ;;  %v2425_v36 = vpop.f32.mrf.mxu0  ;;  %v2448_v37 = vpop.f32.mrf.mxu1  ;;  %2790 = vmatpush.msra.mxu0 %v2616_v55  ;;  %2813 = vmatpush.msra.mxu1 %v2632_v56  ;;  %v2620_v11 = vld [vmem:[%s3424_s2 + $0x790] sm:$0xff]  ;;  %v2583_v34 = vld [vmem:[%s3424_s2 + $0x668] sm:$0xff]  ;;  %v2593_v55 = vld [vmem:[%s3424_s2 + $0x6b8] sm:$0xff] }
 0x705   : > { %v2426_v38 = vadd.f32 %v2425_v36, %v2353_v12  ;;  %v2449_v39 = vadd.f32 %v2448_v37, %v2354_v13  ;;  %v2195_v48 = vpop.f32.mrf.mxu2  ;;  %v2218_v41 = vpop.f32.mrf.mxu3  ;;  %v2612_v12 = vld [vmem:[%s3424_s2 + $0x750] sm:$0xff]  ;;  %v2599_v36 = vld [vmem:[%s3424_s2 + $0x6e8] sm:$0xff] }
 0x706   : > { %v2219_v43 = vadd.f32 %v2218_v41, %v2195_v48  ;;  %2791 = vmatpush.msra.mxu0 %v2615_v58  ;;  %2814 = vmatpush.msra.mxu1 %v2631_v59  ;;  %v2628_v13 = vld [vmem:[%s3424_s2 + $0x7d0] sm:$0xff]  ;;  %v2603_v37 = vld [vmem:[%s3424_s2 + $0x708] sm:$0xff]  ;;  %v2598_v48 = vld [vmem:[%s3424_s2 + $0x6e0] sm:$0xff] }
 0x707   : > { %v2457_v4 = vmax.f32 %v2426_v38, 0.0  ;;  %v2458_v16 = vmax.f32 %v2449_v39, 0.0  ;;  %v2619_v38 = vld [vmem:[%s3424_s2 + $0x788] sm:$0xff]  ;;  %v2582_v39 = vld [vmem:[%s3424_s2 + $0x660] sm:$0xff]  ;;  %v2576_v59 = vld [vmem:[%s3424_s2 + $0x630] sm:$0xff] }
 0x708   : > { %v2242_v44 = vadd.f32 %v2241_v8, %v2219_v43  ;;  %2792 = vmatpush.msra.mxu0 %v2614_v0  ;;  %2815 = vmatpush.msra.mxu1 %v2630_v1  ;;  %v2602_v41 = vld [vmem:[%s3424_s2 + $0x700] sm:$0xff]  ;;  %v2589_v0 = vld [vmem:[%s3424_s2 + $0x698] sm:$0xff] }
 0x709   : > { %2524 = vmatmul.f32.gmra.mxu0 %v2457_v4  ;;  %2547 = vmatmul.f32.gmra.mxu1 %v2458_v16  ;;  %v2618_v43 = vld [vmem:[%s3424_s2 + $0x780] sm:$0xff]  ;;  %v2581_v4 = vld [vmem:[%s3424_s2 + $0x658] sm:$0xff] }
 0x70a   : > { %v2265_v46 = vadd.f32 %v2264_v40, %v2242_v44  ;;  %2793 = vmatpush.msra.mxu0 %v2613_v2  ;;  %2816 = vmatpush.msra.mxu1 %v2629_v3  ;;  %v2597_v16 = vld [vmem:[%s3424_s2 + $0x6d8] sm:$0xff]  ;;  %v2580_v44 = vld [vmem:[%s3424_s2 + $0x650] sm:$0xff] }
 0x70b   : > { %v2572_v3 = vld [vmem:[%s3424_s2 + $0x610] sm:$0xff] }
 0x70c   : > { %v4034_v57 = vadd.f32 %v2265_v46, %v1984_v45  ;;  %2794 = vmatpush.msra.mxu0 %v2612_v12  ;;  %2817 = vmatpush.msra.mxu1 %v2628_v13  ;;  %v2596_v45 = vld [vmem:[%s3424_s2 + $0x6d0] sm:$0xff]  ;;  %v2579_v46 = vld [vmem:[%s3424_s2 + $0x648] sm:$0xff] }
 0x70d   : > { %v2376_v60 = vpop.f32.mrf.mxu2  ;;  %v2399_v31 = vpop.f32.mrf.mxu3 }
 0x70e   : > { %v2377_v61 = vadd.f32 %v2376_v60, %v2351_v49  ;;  %v2400_v62 = vadd.f32 %v2399_v31, %v2352_v51  ;;  %2795 = vmatpush.msra.mxu0 %v2611_v14  ;;  %2818 = vmatpush.msra.mxu1 %v2627_v15  ;;  %v2592_v60 = vld [vmem:[%s3424_s2 + $0x6b0] sm:$0xff]  ;;  %v2575_v31 = vld [vmem:[%s3424_s2 + $0x628] sm:$0xff] }
 0x710   : > { %v2451_v32 = vmax.f32 %v2377_v61, 0.0  ;;  %v2452_v63 = vmax.f32 %v2400_v62, 0.0  ;;  %2796 = vmatpush.msra.mxu0 %v2610_v50  ;;  %2819 = vmatpush.msra.mxu1 %v2626_v17  ;;  %v2591_v61 = vld [vmem:[%s3424_s2 + $0x6a8] sm:$0xff]  ;;  %v2574_v62 = vld [vmem:[%s3424_s2 + $0x620] sm:$0xff] }
 0x711   : > { %3162 = vmatmul.msk.f32.vlgmr.msrb.gmra.mxu0 %vm823_vm1, %v3736_v33  ;;  %3164 = vmatmul.msk.f32.vlgmr.msrb.gmra.mxu1 %vm823_vm1, %v3736_v33 }
 0x712   : > { %2475 = vmatmul.f32.vlgmr.msra.gmra.mxu2 %v2451_v32  ;;  %2498 = vmatmul.f32.vlgmr.msrb.gmra.mxu3 %v2452_v63  ;;  %v2590_v32 = vld [vmem:[%s3424_s2 + $0x6a0] sm:$0xff]  ;;  %v2573_v63 = vld [vmem:[%s3424_s2 + $0x618] sm:$0xff] }
 0x713   : > { %2797 = vmatpush.msra.mxu0 %v2609_v18  ;;  %2820 = vmatpush.msra.mxu1 %v2625_v19 }
 0x714   : > { %2743 = vmatpush.msra.mxu2 %v2585_v26  ;;  %2766 = vmatpush.msrb.mxu3 %v2601_v27 }
 0x715   : > { %v2379_v5 = vpop.f32.mrf.mxu2  ;;  %v2402_v6 = vpop.f32.mrf.mxu3  ;;  %2798 = vmatpush.msra.mxu0 %v2608_v52  ;;  %2821 = vmatpush.msra.mxu1 %v2624_v20 }
 0x716   : > { %v2380_v7 = vadd.f32 %v2379_v5, %v2351_v49  ;;  %v2403_v8 = vadd.f32 %v2402_v6, %v2352_v51  ;;  %2744 = vmatpush.msra.mxu2 %v2584_v29  ;;  %2767 = vmatpush.msrb.mxu3 %v2600_v30  ;;  %v2595_v49 = vld [vmem:[%s3424_s2 + $0x6c8] sm:$0xff]  ;;  %v2578_v51 = vld [vmem:[%s3424_s2 + $0x640] sm:$0xff]  ;;  %v2588_v5 = vld [vmem:[%s3424_s2 + $0x690] sm:$0xff] }
 0x717   : > { %2799 = vmatpush.msra.mxu0 %v2607_v22  ;;  %2822 = vmatpush.msra.mxu1 %v2623_v24  ;;  %v2569_v6 = vld [vmem:[%s3418_s20 + $0xc] sm:$0xf] }
 0x718   : > { %v2455_v40 = vmax.f32 %v2380_v7, 0.0  ;;  %v2456_v9 = vmax.f32 %v2403_v8, 0.0  ;;  %2745 = vmatpush.msra.mxu2 %v2583_v34  ;;  %2768 = vmatpush.msrb.mxu3 %v2599_v36  ;;  %v2571_v7 = vld [vmem:[%s3424_s2 + $0x608] sm:$0xff]  ;;  %v2637_v12 = vperm.slane %v2569_v6, 2  ;;  %v2638_v13 = vperm.slane %v2569_v6, 3 }
 0x719   : > { %3163 = vmatmul.msk.f32.gmra.mxu0 %vm823_vm1, %v3760_v54  ;;  %3165 = vmatmul.msk.f32.gmra.mxu1 %vm823_vm1, %v3760_v54  ;;  %v2587_v8 = vld [vmem:[%s3424_s2 + $0x688] sm:$0xff] }
 0x71a   : > { %2478 = vmatmul.f32.gmra.mxu2 %v2455_v40  ;;  %2501 = vmatmul.f32.gmra.mxu3 %v2456_v9  ;;  %v2570_v40 = vld [vmem:[%s3424_s2 + $0x600] sm:$0xff] }
 0x71b   : > { %2800 = vmatpush.msra.mxu0 %v2606_v25  ;;  %2823 = vmatpush.msra.mxu1 %v2622_v47  ;;  %v2586_v9 = vld [vmem:[%s3424_s2 + $0x680] sm:$0xff] }
 0x71c   : > { %2746 = vmatpush.msra.mxu2 %v2582_v39  ;;  %2769 = vmatpush.msrb.mxu3 %v2598_v48  ;;  %v2636_v39 = vperm.slane %v2569_v6, 1 }
 0x71d   : > { %2801 = vmatpush.msra.mxu0 %v2605_v28  ;;  %2824 = vmatpush.msra.mxu1 %v2621_v23 }
 0x71e   : > { %2747 = vmatpush.msra.mxu2 %v2581_v4  ;;  %2770 = vmatpush.msrb.mxu3 %v2597_v16 }
 0x71f   : > { %2802 = vmatpush.msra.mxu0 %v2604_v42  ;;  %2825 = vmatpush.msra.mxu1 %v2620_v11 }
 0x720   : > { %2748 = vmatpush.msra.mxu2 %v2580_v44  ;;  %2771 = vmatpush.msrb.mxu3 %v2596_v45 }
 0x721   : > { %2803 = vmatpush.msra.mxu0 %v2603_v37  ;;  %2826 = vmatpush.msra.mxu1 %v2619_v38  ;;  %v2635_v38 = vperm.slane %v2569_v6, 0 }
 0x722   : > { %3158 = vmatmul.msk.f32.vlgmr.msrb.gmra.mxu2 %vm823_vm1, %v3736_v33  ;;  %3160 = vmatmul.msk.f32.vlgmr.msra.gmra.mxu3 %vm823_vm1, %v3736_v33 }
 0x723   : > { %2804 = vmatpush.msra.mxu0 %v2602_v41  ;;  %2827 = vmatpush.msra.mxu1 %v2618_v43 }
 0x724   : > { %2749 = vmatpush.msra.mxu2 %v2579_v46  ;;  %2772 = vmatpush.msrb.mxu3 %v2595_v49 }
 0x726   : > { %2750 = vmatpush.msra.mxu2 %v2578_v51  ;;  %2773 = vmatpush.msrb.mxu3 %v2594_v53 }
 0x728   : > { %2751 = vmatpush.msra.mxu2 %v2577_v21  ;;  %2774 = vmatpush.msrb.mxu3 %v2593_v55 }
 0x72a   : > { %3159 = vmatmul.msk.f32.gmra.mxu2 %vm823_vm1, %v3760_v54  ;;  %3161 = vmatmul.msk.f32.gmra.mxu3 %vm823_vm1, %v3760_v54 }
 0x72b   : > { %2752 = vmatpush.msra.mxu2 %v2576_v59  ;;  %2775 = vmatpush.msrb.mxu3 %v2592_v60 }
 0x72d   : > { %2753 = vmatpush.msra.mxu2 %v2575_v31  ;;  %2776 = vmatpush.msrb.mxu3 %v2591_v61 }
 0x72f   : > { %2754 = vmatpush.msra.mxu2 %v2574_v62  ;;  %2777 = vmatpush.msrb.mxu3 %v2590_v32 }
 0x731   : > { %2755 = vmatpush.msra.mxu2 %v2573_v63  ;;  %2778 = vmatpush.msrb.mxu3 %v2589_v0 }
 0x733   : > { %2756 = vmatpush.msra.mxu2 %v2572_v3  ;;  %2779 = vmatpush.msrb.mxu3 %v2588_v5 }
 0x735   : > { %2757 = vmatpush.msra.mxu2 %v2571_v7  ;;  %2780 = vmatpush.msrb.mxu3 %v2587_v8 }
 0x737   : > { %2758 = vmatpush.msra.mxu2 %v2570_v40  ;;  %2781 = vmatpush.msrb.mxu3 %v2586_v9 }
 0x77e   : > { %v2522_v56 = vpop.f32.mrf.mxu0  ;;  %v2545_v58 = vpop.f32.mrf.mxu1 }
 0x786   : > { %v2525_v1 = vpop.f32.mrf.mxu0  ;;  %v2548_v2 = vpop.f32.mrf.mxu1 }
 0x78e   : > { %v2706_v14 = vpop.f32.mrf.mxu0  ;;  %v2729_v15 = vpop.f32.mrf.mxu1 }
 0x78f   : > { %v2707_v50 = vadd.f32 %v2706_v14, %v2637_v12  ;;  %v2730_v17 = vadd.f32 %v2729_v15, %v2638_v13 }
 0x791   : > { %v2737_v18 = vmax.f32 %v2707_v50, 0.0  ;;  %v2738_v19 = vmax.f32 %v2730_v17, 0.0 }
 0x793   : > { %2805 = vmatmul.f32.vlgmr.msra.gmra.mxu0 %v2737_v18  ;;  %2828 = vmatmul.f32.vlgmr.msra.gmra.mxu1 %v2738_v19 }
 0x795   : > { %v2476_v52 = vpop.f32.mrf.mxu2  ;;  %v2499_v20 = vpop.f32.mrf.mxu3 }
 0x796   : > { %v2500_v22 = vadd.f32 %v2499_v20, %v2476_v52  ;;  %v2709_v24 = vpop.f32.mrf.mxu0  ;;  %v2732_v25 = vpop.f32.mrf.mxu1 }
 0x797   : > { %v2710_v47 = vadd.f32 %v2709_v24, %v2637_v12  ;;  %v2733_v26 = vadd.f32 %v2732_v25, %v2638_v13 }
 0x798   : > { %v2523_v27 = vadd.f32 %v2522_v56, %v2500_v22 }
 0x799   : > { %v2741_v28 = vmax.f32 %v2710_v47, 0.0  ;;  %v2742_v23 = vmax.f32 %v2733_v26, 0.0 }
 0x79a   : > { %v2546_v29 = vadd.f32 %v2545_v58, %v2523_v27 }
 0x79b   : > { %2808 = vmatmul.f32.gmra.mxu0 %v2741_v28  ;;  %2831 = vmatmul.f32.gmra.mxu1 %v2742_v23 }
 0x79c   : > { %v2551_v30 = vadd.f32 %v2546_v29, %v4025_v35 }
 0x79d   : > { %v2479_v42 = vpop.f32.mrf.mxu2  ;;  %v2502_v11 = vpop.f32.mrf.mxu3 }
 0x79e   : > { %v2503_v34 = vadd.f32 %v2502_v11, %v2479_v42  ;;  %v3203_v11 = vld [vmem:[%s800_s10] ss:$0 sm:$0xff] }
 0x7a0   : > { %v2526_v36 = vadd.f32 %v2525_v1, %v2503_v34 }
 0x7a2   : > { %v2549_v37 = vadd.f32 %v2548_v2, %v2526_v36  ;;  %v3204_v36 = vld [vmem:[%s803_s21] ss:$0 sm:$0xff]  ;;  %s4208_s21 = sld [smem:[#allocation16_spill]] (!%p3166_p5) }
 0x7a4   : > { %v2552_v48 = vadd.f32 %v2549_v37, %v4034_v57 }
 0x7a5   : > { %v2660_v41 = vpop.f32.mrf.mxu2  ;;  %v2683_v43 = vpop.f32.mrf.mxu3 }
 0x7a6   : > { %v2661_v4 = vadd.f32 %v2660_v41, %v2635_v38  ;;  %v2684_v16 = vadd.f32 %v2683_v43, %v2636_v39 }
 0x7a8   : > { %v2735_v44 = vmax.f32 %v2661_v4, 0.0  ;;  %v2736_v45 = vmax.f32 %v2684_v16, 0.0 }
 0x7aa   : > { %2759 = vmatmul.f32.vlgmr.msra.gmra.mxu2 %v2735_v44  ;;  %2782 = vmatmul.f32.vlgmr.msrb.gmra.mxu3 %v2736_v45 }
 0x7ad   : > { %v2663_v46 = vpop.f32.mrf.mxu2  ;;  %v2686_v49 = vpop.f32.mrf.mxu3 }
 0x7ae   : > { %v2664_v35 = vadd.f32 %v2663_v46, %v2635_v38  ;;  %v2687_v51 = vadd.f32 %v2686_v49, %v2636_v39 }
 0x7b0   : > { %v2739_v53 = vmax.f32 %v2664_v35, 0.0  ;;  %v2740_v21 = vmax.f32 %v2687_v51, 0.0 }
 0x7b2   : > { %2762 = vmatmul.f32.gmra.mxu2 %v2739_v53  ;;  %2785 = vmatmul.f32.gmra.mxu3 %v2740_v21 }
 0x810   : > { %v2806_v55 = vpop.f32.mrf.mxu0  ;;  %v2829_v59 = vpop.f32.mrf.mxu1 }
 0x818   : > { %v2809_v1 = vpop.f32.mrf.mxu0  ;;  %v2832_v5 = vpop.f32.mrf.mxu1 }
 0x82d   : > { %v2760_v56 = vpop.f32.mrf.mxu2  ;;  %v2783_v58 = vpop.f32.mrf.mxu3 }
 0x82e   : > { %v2784_v57 = vadd.f32 %v2783_v58, %v2760_v56 }
 0x830   : > { %v2807_v60 = vadd.f32 %v2806_v55, %v2784_v57 }
 0x832   : > { %v2830_v31 = vadd.f32 %v2829_v59, %v2807_v60 }
 0x834   : > { %v2835_v61 = vadd.f32 %v2830_v31, %v2551_v30 }
 0x835   : > { %v2763_v62 = vpop.f32.mrf.mxu2  ;;  %v2786_v32 = vpop.f32.mrf.mxu3 }
 0x836   : > { %v2787_v63 = vadd.f32 %v2786_v32, %v2763_v62  ;;  %v2837_v0 = vadd.f32 %v2835_v61, %v3736_v33 }
 0x838   : > { %v2810_v2 = vadd.f32 %v2809_v1, %v2787_v63  ;;  %v2841_v3 = vsel %vm823_vm1, %v2837_v0, 0.0 }
 0x839   : > { %2842 = vadd.xlane.f32.xlu1 %v2841_v3 }
 0x83a   : > { %v2833_v6 = vadd.f32 %v2832_v5, %v2810_v2 }
 0x83c   : > { %v2836_v7 = vadd.f32 %v2833_v6, %v2552_v48 }
 0x83e   : > { %v2838_v8 = vadd.f32 %v2836_v7, %v3760_v54 }
 0x840   : > { %v2844_v40 = vsel %vm823_vm1, %v2838_v8, 0.0 }
 0x841   : > { %2845 = vadd.xlane.f32.xlu0 %v2844_v40 }
 0x8ac   : > { %v2843_v9 = vpop.xlane.xlu1 %2842 }
 0x8ad   : > { %v2847_v12 = vmul.f32 %v2843_v9, %v3641_v10 }
 0x8af   : > { %v2849_v13 = vsub.f32 %v2837_v0, %v2847_v12 }
 0x8b1   : > { %v2851_v14 = vmul.f32 %v2849_v13, %v2849_v13 }
 0x8b3   : > { %v2853_v33 = vsel %vm823_vm1, %v2851_v14, 0.0 }
 0x8b4   : > { %2854 = vadd.xlane.f32.xlu2 %v2853_v33  ;;  %v2846_v15 = vpop.xlane.xlu0 %2845 }
 0x8b5   : > { %v2848_v50 = vmul.f32 %v2846_v15, %v3641_v10 }
 0x8b7   : > { %v2850_v17 = vsub.f32 %v2838_v8, %v2848_v50 }
 0x8b9   : > { %v2852_v18 = vmul.f32 %v2850_v17, %v2850_v17 }
 0x8bb   : > { %v2856_v19 = vsel %vm823_vm1, %v2852_v18, 0.0 }
 0x8bc   : > { %2857 = vadd.xlane.f32.xlu1 %v2856_v19 }
 0x927   : > { %v2855_v54 = vpop.xlane.xlu2 %2854 }
 0x928   : > { %v2859_v52 = vmul.f32 %v2855_v54, %v3641_v10 }
 0x92a   : > { %v2861_v20 = vadd.f32 1e-05, %v2859_v52 }
 0x92c   : > { %3243 = vrsqrt.f32 %v2861_v20  ;;  %vm2869_vm0 = vweird.f32 %v2861_v20 }
 0x92f   : > { %v2858_v22 = vpop.xlane.xlu1 %2857 }
 0x930   : > { %v2860_v24 = vmul.f32 %v2858_v22, %v3641_v10 }
 0x932   : > { %v3244_v25 = vpop.eup %3243  ;;  %v2862_v47 = vadd.f32 1e-05, %v2860_v24 }
 0x933   : > { %v2864_v26 = vmul.f32 %v3244_v25, %v2861_v20  ;;  %vm2870_vm15 = vweird.f32 %v3244_v25 }
 0x934   : > { %3245 = vrsqrt.f32 %v2862_v47  ;;  %vm2871_vm3 = vmor %vm2869_vm0, %vm2870_vm15  ;;  %vm2879_vm5 = vweird.f32 %v2862_v47 }
 0x935   : > { %v2865_v27 = vmul.f32 %v3244_v25, %v2864_v26 }
 0x937   : > { %v2866_v28 = vmul.f32 0.5, %v2865_v27 }
 0x939   : > { %v2867_v23 = vsub.f32 1.5, %v2866_v28 }
 0x93a   : > { %v3246_v29 = vpop.eup %3245 }
 0x93b   : > { %v2868_v30 = vmul.f32 %v3244_v25, %v2867_v23  ;;  %v2874_v42 = vmul.f32 %v3246_v29, %v2862_v47  ;;  %vm2880_vm4 = vweird.f32 %v3246_v29 }
 0x93c   : > { %vm2881_vm6 = vmor %vm2879_vm5, %vm2880_vm4 }
 0x93d   : > { %v2872_v10 = vsel %vm2871_vm3, %v3244_v25, %v2868_v30  ;;  %v2875_v34 = vmul.f32 %v3246_v29, %v2874_v42 }
 0x93e   : > { %v2883_v37 = vmul.f32 %v2872_v10, %v2849_v13 }
 0x93f   : > { %v2876_v38 = vmul.f32 0.5, %v2875_v34 }
 0x940   : > { %v2888_v39 = vmul.f32 %v3203_v11, %v2883_v37 }
 0x941   : > { %v2877_v48 = vsub.f32 1.5, %v2876_v38 }
 0x942   : > { %v2893_v41 = vadd.f32 %v3204_v36, %v2888_v39 }
 0x943   : > { %v2878_v43 = vmul.f32 %v3246_v29, %v2877_v48 }
 0x944   : > { %2895 = vst.msk [vmem:[#allocation2] sm:$0xff] %vm823_vm1, %v2893_v41 }
 0x945   : > { %v2882_v4 = vsel %vm2881_vm6, %v3246_v29, %v2878_v43 }
 0x946   : > { %v2884_v16 = vmul.f32 %v2882_v4, %v2850_v17 }
 0x948   : > { %v2889_v44 = vmul.f32 %v3203_v11, %v2884_v16  ;;  %2900 = sbr.rel (%p3166_p5) target bundleno = 2383 (0x94f), region = 100 }
 0x94a   : > { %v2894_v45 = vadd.f32 %v3204_v36, %v2889_v44 }
 0x94c   : > { %2896 = vst.msk [vmem:[#allocation2 + $0x8] sm:$0xff] %vm823_vm1, %v2894_v45 }
 0x94d   : > { %2901 = vst.msk [vmem:[%s4208_s21] sm:$0xff] %vm823_vm1, %v2893_v41 }
 0x94e   : > { %2902 = vst.msk [vmem:[%s4208_s21 + $0x8] sm:$0xff] %vm823_vm1, %v2894_v45 }
 0x94f PF: > { %s4209_s5 = sld [smem:[#allocation3_spill]] }
 0x955   : > { %s28_s27 = sadd.s32 1, %s4209_s5  }
 0x956   : > { %p25_p6 = scmp.ge.s32.totalorder %s28_s27, 4  }
 0x958   :  { %27 = sbr.rel (!%p25_p6) target bundleno = 12 (0xc), region = 171 }

// kernel: hangman_transformer.3
= control target key start
LH: loop header
LB: loop body
LE: loop exit
PB: predicated region body
PF: predicated region fallthrough
CT: control target
= control target key end

     0   :  { %s5057_s6 = smov 1   ;;  %s5058_s10 = smov 2   ;;  %s6231_s0 = inlined_call_operand.smem [shape: u32[33], index: -1, kind: input, shape index: {}] }
   0x1   :  { %s5106_s5 = sld [smem:[%s6231_s0]]   ;;  %s5059_s14 = smov 3  }
   0x2   :  { %s5111_s9 = sld [smem:[%s6231_s0 + %s5057_s6]]   ;;  %s5060_s18 = smov 4  }
   0x3   :  { %s5116_s13 = sld [smem:[%s6231_s0 + %s5058_s10]]   ;;  %s5061_s22 = smov 5  }
   0x4   :  { %s5121_s17 = sld [smem:[%s6231_s0 + %s5059_s14]]   ;;  %s5062_s26 = smov 6  }
   0x5   :  { %s5126_s21 = sld [smem:[%s6231_s0 + %s5060_s18]]   ;;  %s5063_s30 = smov 7  }
   0x6   :  { %s5131_s25 = sld [smem:[%s6231_s0 + %s5061_s22]]   ;;  %s5064_s4 = smov 8  }
   0x7   :  { %6248 = sst [smem:[#allocation6_spill]] %s5106_s5  ;;  %s5065_s10 = smov 9  }
   0x8   :  { %6249 = sst [smem:[#allocation7_spill]] %s5111_s9  ;;  %s5066_s15 = smov 10  }
   0x9   :  { %6250 = sst [smem:[#allocation8_spill]] %s5116_s13  ;;  %s5067_s20 = smov 11  }
   0xa   :  { %6251 = sst [smem:[#allocation9_spill]] %s5121_s17  ;;  %s5069_s1 = smov 13  }
   0xb   :  { %6252 = sst [smem:[#allocation10_spill]] %s5126_s21  ;;  %s5070_s7 = smov 14  }
   0xc   :  { %6253 = sst [smem:[#allocation11_spill]] %s5131_s25  ;;  %s5072_s22 = smov 16  }
   0xd   :  { %s5136_s29 = sld [smem:[%s6231_s0 + %s5062_s26]]   ;;  %s5068_s26 = smov 12  }
   0xe   :  { %s5141_s3 = sld [smem:[%s6231_s0 + %s5063_s30]]   ;;  %s5073_s28 = smov 17  }
   0xf   :  { %s5146_s8 = sld [smem:[%s6231_s0 + %s5064_s4]]  }
  0x10   :  { %s5151_s14 = sld [smem:[%s6231_s0 + %s5065_s10]]  }
  0x11   :  { %s5156_s19 = sld [smem:[%s6231_s0 + %s5066_s15]]   ;;  %s5071_s15 = smov 15  }
  0x12   :  { %s5161_s24 = sld [smem:[%s6231_s0 + %s5067_s20]]  }
  0x13   :  { %6254 = sst [smem:[#allocation12_spill]] %s5136_s29 }
  0x14   :  { %6255 = sst [smem:[#allocation13_spill]] %s5141_s3 }
  0x15   :  { %6256 = sst [smem:[#allocation14_spill]] %s5146_s8 }
  0x16   :  { %6257 = sst [smem:[#allocation15_spill]] %s5151_s14 }
  0x17   :  { %6258 = sst [smem:[#allocation16_spill]] %s5156_s19 }
  0x18   :  { %6259 = sst [smem:[#allocation17_spill]] %s5161_s24 }
  0x19   :  { %s5166_s30 = sld [smem:[%s6231_s0 + %s5068_s26]]  }
  0x1a   :  { %s5171_s6 = sld [smem:[%s6231_s0 + %s5069_s1]]  }
  0x1b   :  { %s5176_s12 = sld [smem:[%s6231_s0 + %s5070_s7]]   ;;  %s5074_s7 = smov 18  }
  0x1c   :  { %s5181_s20 = sld [smem:[%s6231_s0 + %s5071_s15]]   ;;  %s5075_s15 = smov 19  }
  0x1d   :  { %s5186_s27 = sld [smem:[%s6231_s0 + %s5072_s22]]   ;;  %s5076_s22 = smov 20  }
  0x1e   :  { %s5191_s4 = sld [smem:[%s6231_s0 + %s5073_s28]]   ;;  %s5077_s28 = smov 21  }
  0x1f   :  { %6260 = sst [smem:[#allocation18_spill]] %s5166_s30 }
  0x20   :  { %6261 = sst [smem:[#allocation19_spill]] %s5171_s6 }
  0x21   :  { %6262 = sst [smem:[#allocation20_spill]] %s5176_s12 }
  0x22   :  { %6263 = sst [smem:[#allocation21_spill]] %s5181_s20 }
  0x23   :  { %6264 = sst [smem:[#allocation22_spill]] %s5186_s27 }
  0x24   :  { %s5196_s17 = sld [smem:[%s6231_s0 + %s5074_s7]]   ;;  %s5078_s7 = smov 22  }
  0x25   :  { %s5201_s9 = sld [smem:[%s6231_s0 + %s5075_s15]]   ;;  %s5079_s15 = smov 23  }
  0x26   :  { %s5206_s13 = sld [smem:[%s6231_s0 + %s5076_s22]]   ;;  %s5080_s22 = smov 24  }
  0x27   :  { %s5211_s5 = sld [smem:[%s6231_s0 + %s5077_s28]]   ;;  %s5081_s28 = smov 25  }
  0x2a   :  { %6265 = sst [smem:[#allocation23_spill]] %s5196_s17 }
  0x2b   :  { %6266 = sst [smem:[#allocation24_spill]] %s5201_s9 }
  0x2c   :  { %6267 = sst [smem:[#allocation25_spill]] %s5206_s13 }
  0x2d   :  { %6268 = sst [smem:[#allocation26_spill]] %s5211_s5 }
  0x2e   :  { %s5216_s17 = sld [smem:[%s6231_s0 + %s5078_s7]]   ;;  %s5082_s7 = smov 26  }
  0x2f   :  { %s5221_s9 = sld [smem:[%s6231_s0 + %s5079_s15]]   ;;  %s5083_s15 = smov 27  }
  0x30   :  { %s5226_s13 = sld [smem:[%s6231_s0 + %s5080_s22]]   ;;  %s5084_s22 = smov 28  }
  0x31   :  { %s5231_s5 = sld [smem:[%s6231_s0 + %s5081_s28]]   ;;  %s5085_s28 = smov 29  }
  0x34   :  { %6269 = sst [smem:[#allocation27_spill]] %s5216_s17 }
  0x35   :  { %6270 = sst [smem:[#allocation28_spill]] %s5221_s9 }
  0x36   :  { %6271 = sst [smem:[#allocation29_spill]] %s5226_s13 }
  0x37   :  { %6272 = sst [smem:[#allocation30_spill]] %s5231_s5 }
  0x38   :  { %s5236_s17 = sld [smem:[%s6231_s0 + %s5082_s7]]   ;;  %s5086_s7 = smov 30  }
  0x39   :  { %s5241_s9 = sld [smem:[%s6231_s0 + %s5083_s15]]   ;;  %s5087_s15 = smov 31  }
  0x3a   :  { %s5246_s13 = sld [smem:[%s6231_s0 + %s5084_s22]]   ;;  %s5088_s22 = smov 32  }
  0x3b   :  { %s5251_s5 = sld [smem:[%s6231_s0 + %s5085_s28]]  }
  0x3e   :  { %6273 = sst [smem:[#allocation31_spill]] %s5236_s17 }
  0x3f   :  { %6274 = sst [smem:[#allocation32_spill]] %s5241_s9 }
  0x40   :  { %6275 = sst [smem:[#allocation33_spill]] %s5246_s13 }
  0x41   :  { %s5256_s17 = sld [smem:[%s6231_s0 + %s5086_s7]]  }
  0x42   :  { %s5261_s9 = sld [smem:[%s6231_s0 + %s5087_s15]]  }
  0x43   :  { %s5266_s13 = sld [smem:[%s6231_s0 + %s5088_s22]]  }
  0x47   :  { %6276 = sst [smem:[#allocation34_spill]] %s5256_s17 }
  0x48   :  { %6277 = sst [smem:[#allocation35_spill]] %s5261_s9 }
  0x49   :  { %6278 = sst [smem:[#allocation36_spill]] %s5266_s13 }
  0x4a   :  { %70 = vsyncpa [#allocation4], 0  ;;  %s5268_s28 = smov 0  }
  0x4b LB: > { %6279 = sst [smem:[#allocation37_spill]] %s5055_s28  ;;  %s5274_s1 = sadd.s32 4294967295, %s5055_s28   ;;  %s5055_s28 = sphi %s5268_s28, %s76_s28  }
  0x4c   : > { %6280 = sst [smem:[#allocation38_spill]] %s5274_s1  ;;  %p4722_p0 = scmp.ge.s32.totalorder %s5055_s28, 1 }
  0x4d   : > { %p1110_p1 = scmp.lt.s32.totalorder %s5055_s28, 3 }
  0x4f   : > { %p1111_p2 = pnand %p4722_p0, %p1110_p1 }
  0x51   : > { %1114 = sbr.rel (%p1111_p2) target bundleno = 3951 (0xf6f), region = 148 }
  0x56   : > { %s6282_s21 = sld [smem:[#allocation10_spill]]  ;;  %p1281_p3 = scmp.lt.s32.totalorder %s5274_s1, 1 }
  0x57   : > { %s6283_s29 = sld [smem:[#allocation12_spill]] }
  0x58   : > { %s6285_s8 = sld [smem:[#allocation14_spill]] }
  0x59   : > { %s6287_s19 = sld [smem:[#allocation16_spill]] }
  0x5a   : > { %s6289_s30 = sld [smem:[#allocation18_spill]] }
  0x5b   : > { %s6291_s12 = sld [smem:[#allocation20_spill]] }
  0x5c   : > { %s6293_s27 = sld [smem:[#allocation22_spill]] }
  0x5d   : > { %s5280_s0 = scalar_select %p1281_p3, %s5274_s1, 1 }
  0x5e   : > { %s6294_s2 = sld [smem:[#allocation23_spill]] }
  0x5f   : > { %s4848_s7 = sshll.u32 %s5280_s0, 5  ;;  %s6295_s10 = sld [smem:[#allocation24_spill]] }
  0x60   : > { %s5286_s15 = scalar_lea.vmem %s6282_s21, %s4848_s7  ;;  %s6297_s16 = sld [smem:[#allocation25_spill]] }
  0x61   : > { %6296 = sst [smem:[#allocation39_spill]] %s5286_s15  ;;  %s5289_s18 = scalar_lea.vmem %s6283_s29, %s4848_s7 }
  0x62   : > { %6298 = sst [smem:[#allocation40_spill]] %s5289_s18  ;;  %s5294_s26 = scalar_lea.vmem %s6285_s8, %s4848_s7 }
  0x63   : > { %s6299_s23 = sld [smem:[#allocation26_spill]]  ;;  %s5299_s9 = scalar_lea.vmem %s6287_s19, %s4848_s7 }
  0x64   : > { %6300 = sst [smem:[#allocation41_spill]] %s5294_s26  ;;  %s5304_s21 = scalar_lea.vmem %s6289_s30, %s4848_s7 }
  0x65   : > { %s6301_s13 = sld [smem:[#allocation27_spill]]  ;;  %s5309_s3 = scalar_lea.vmem %s6291_s12, %s4848_s7 }
  0x66   : > { %6302 = sst [smem:[#allocation42_spill]] %s5299_s9  ;;  %s5314_s9 = scalar_lea.vmem %s6293_s27, %s4848_s7 }
  0x67   : > { %s6303_s17 = sld [smem:[#allocation28_spill]]  ;;  %s5319_s24 = scalar_lea.vmem %s6294_s2, %s4848_s7 }
  0x68   : > { %s6304_s11 = sld [smem:[#allocation29_spill]]  ;;  %s1344_s30 = scalar_lea.vmem %s6295_s10, %s5280_s0 }
  0x69   : > { %6305 = sst [smem:[#allocation43_spill]] %s5304_s21  ;;  %s4856_s21 = sshll.u32 %s5280_s0, 9 }
  0x6a   : > { %s6306_s29 = sld [smem:[#allocation30_spill]]  ;;  %s5325_s14 = scalar_lea.vmem %s6297_s16, %s4856_s21 }
  0x6b   : > { %s6307_s22 = sld [smem:[#allocation31_spill]]  ;;  %s4741_s25 = sshll.u32 %s5280_s0, 4 }
  0x6c   : > { %6308 = sst [smem:[#allocation44_spill]] %s5309_s3  ;;  %s5329_s6 = scalar_lea.vmem %s6299_s23, %s4741_s25 }
  0x6d   : > { %s6309_s8 = sld [smem:[#allocation32_spill]]  ;;  %s4857_s12 = sshll.u32 %s5280_s0, 11 }
  0x6e   : > { %s6310_s19 = sld [smem:[#allocation33_spill]]  ;;  %s5333_s3 = scalar_lea.vmem %s6301_s13, %s4857_s12 }
  0x6f   : > { %6311 = sst [smem:[#allocation45_spill]] %s5314_s9  ;;  %s1361_s28 = scalar_lea.vmem %s6303_s17, %s5280_s0 }
  0x70   : > { %s1364_s20 = scalar_lea.vmem %s6304_s11, %s5280_s0  ;;  %s1367_s26 = scalar_lea.vmem %s6306_s29, %s5280_s0 }
  0x71   : > { %s1370_s27 = scalar_lea.vmem %s6307_s22, %s5280_s0  ;;  %s1379_s15 = scalar_lea.vmem %s5251_s5, %s5280_s0 }
  0x72   : > { %s6312_s1 = sld [smem:[#allocation38_spill]] }
  0x73   : > { %s1373_s9 = scalar_lea.vmem %s6309_s8, %s5280_s0 }
  0x74   : > { %s1376_s18 = scalar_lea.vmem %s6310_s19, %s5280_s0 }
  0x78   : > { %p4744_p4 = scmp.ne.s32.totalorder %s6312_s1, 0 }
  0x79   : > { %s6313_s2 = sld [smem:[#allocation6_spill]] (!%p4744_p4) }
  0x7a   : > { %1383 = sbr.rel (%p4744_p4) target bundleno = 130 (0x82), region = 152 }
  0x7f   : > { %v1384_v0 = vld [vmem:[%s6313_s2] sm:$0xff]  ;;  %vm1386_vm0 = vcmask 261120   ;;  %v1385_v1 = vld [vmem:[%s6313_s2 + $0x8] sm:$0xff] }
  0x80   : > { %1387 = vst.msk [vmem:[#allocation2] sm:$0xff] %vm1386_vm0, %v1384_v0 }
  0x81   : > { %1388 = vst.msk [vmem:[#allocation2 + $0x8] sm:$0xff] %vm1386_vm0, %v1385_v1 }
  0x82 PF: > { %s6314_s13 = sld [smem:[#allocation39_spill]]  ;;  %vm1401_vm1 = vcmask 261120   ;;  %vm1500_vm2 = vcmask 64512   ;;  %s5089_s19 = smov 112  }
  0x83   : > { %s6315_s21 = sld [smem:[#allocation40_spill]]  ;;  %s5090_s12 = smov 120  }
  0x84   : > { %s6316_s17 = sld [smem:[#allocation11_spill]]  ;;  %s5091_s7 = smov 104  }
  0x85   : > { %s6317_s25 = sld [smem:[#allocation13_spill]]  ;;  %s5092_s23 = smov 8  }
  0x86   : > { %s6320_s1 = sld [smem:[#allocation41_spill]] }
  0x87   : > { %v5360_v10 = vld [vmem:[#allocation2] sm:$0xff]  ;;  %s6321_s10 = sld [smem:[#allocation8_spill]] }
  0x88   : > { %v1396_v2 = vld [vmem:[%s6314_s13 + $0x18] sm:$0xff]  ;;  %v1395_v4 = vld [vmem:[%s6314_s13 + $0x10] sm:$0xff]  ;;  %v1394_v6 = vld [vmem:[%s6314_s13 + $0x8] sm:$0xff]  ;;  %s6322_s11 = sld [smem:[#allocation15_spill]] }
  0x89   : > { %v1434_v3 = vld [vmem:[%s6315_s21 + $0x18] sm:$0xff]  ;;  %1420 = vmatpush.msra.mxu0 %v1396_v2  ;;  %v1433_v5 = vld [vmem:[%s6315_s21 + $0x10] sm:$0xff]  ;;  %v1432_v7 = vld [vmem:[%s6315_s21 + $0x8] sm:$0xff]  ;;  %s6326_s22 = sld [smem:[#allocation42_spill]] }
  0x8a   : > { %1451 = vmatpush.msra.mxu1 %v1434_v3  ;;  %4858 = vmatpush.msra.mxu2 %v1434_v3  ;;  %v1393_v8 = vld [vmem:[%s6314_s13] sm:$0xff]  ;;  %v5362_v11 = vld [vmem:[#allocation2 + $0x8] sm:$0xff]  ;;  %s6318_s29 = scalar_lea.vmem %s6316_s17, %s5280_s0  ;;  %s5093_s13 = smov 16  }
  0x8b   : > { %1421 = vmatpush.msra.mxu0 %v1395_v4  ;;  %v1431_v9 = vld [vmem:[%s6315_s21] sm:$0xff]  ;;  %s6319_s8 = scalar_lea.vmem %s6317_s25, %s5280_s0  ;;  %s5094_s21 = smov 24  }
  0x8c   : > { %1452 = vmatpush.msra.mxu1 %v1433_v5  ;;  %4859 = vmatpush.msra.mxu2 %v1433_v5  ;;  %v4921_v12 = vld [vmem:[%s6318_s29] ss:$0 sm:$0xff]  ;;  %v1465_v22 = vld [vmem:[%s6320_s1 + $0x18] sm:$0xff]  ;;  %v1464_v23 = vld [vmem:[%s6320_s1 + $0x10] sm:$0xff]  ;;  %s6327_s17 = sld [smem:[#allocation17_spill]] }
  0x8d   : > { %1422 = vmatpush.msra.mxu0 %v1394_v6  ;;  %v4922_v13 = vld [vmem:[%s6319_s8] ss:$0 sm:$0xff]  ;;  %v1463_v24 = vld [vmem:[%s6320_s1 + $0x8] sm:$0xff]  ;;  %s6329_s29 = sld [smem:[#allocation44_spill]] }
  0x8e   : > { %1453 = vmatpush.msra.mxu1 %v1432_v7  ;;  %4860 = vmatpush.msra.mxu2 %v1432_v7  ;;  %v1462_v25 = vld [vmem:[%s6320_s1] sm:$0xff]  ;;  %v1494_v44 = vld [vmem:[%s6321_s10 + $0x8] sm:$0xff]  ;;  %s6323_s16 = scalar_lea.vmem %s6322_s11, %s5280_s0  ;;  %s6330_s8 = sld [smem:[#allocation7_spill]] }
  0x8f   : > { %1423 = vmatpush.msra.mxu0 %v1393_v8  ;;  %v1493_v36 = vld [vmem:[%s6321_s10] sm:$0xff]  ;;  %s6331_s1 = sld [smem:[#allocation43_spill]] }
  0x90   : > { %1454 = vmatpush.msra.mxu1 %v1431_v9  ;;  %4745 = vmatmul.msk.f32.vlgmr.msra.gmra.mxu0 %vm1401_vm1, %v5360_v10  ;;  %v4923_v48 = vld [vmem:[%s6323_s16] ss:$0 sm:$0xff] }
  0x91   : > { %4747 = vmatmul.msk.f32.vlgmr.msra.gmra.mxu1 %vm1401_vm1, %v5360_v10  ;;  %4861 = vmatpush.msra.mxu2 %v1431_v9 }
  0x92   : > { %4748 = vmatmul.msk.f32.vlgmr.msra.gmra.mxu2 %vm1401_vm1, %v5362_v11  ;;  %s6328_s25 = scalar_lea.vmem %s6327_s17, %s5280_s0 }
  0x93   : > { %1482 = vmatpush.msrb.mxu2 %v1465_v22 }
  0x95   : > { %1483 = vmatpush.msrb.mxu2 %v1464_v23 }
  0x97   : > { %1484 = vmatpush.msrb.mxu2 %v1463_v24 }
  0x98   : > { %4746 = vmatmul.msk.f32.gmra.mxu0 %vm1401_vm1, %v5362_v11 }
  0x99   : > { %1485 = vmatpush.msrb.mxu2 %v1462_v25 }
  0x9a   : > { %4749 = vmatmul.msk.f32.vlgmr.msrb.gmra.mxu2 %vm1401_vm1, %v5360_v10 }
  0xa2   : > { %4750 = vmatmul.msk.f32.gmra.mxu2 %vm1401_vm1, %v5362_v11 }
 0x10d   : > { %v1425_v14 = vpop.f32.mrf.mxu0 }
 0x10e   : > { %v1456_v15 = vpop.f32.mrf.mxu1  ;;  %v1426_v16 = vadd.f32 %v4921_v12, %v1425_v14 }
 0x10f   : > { %v1457_v17 = vadd.f32 %v4922_v13, %v1456_v15 }
 0x110   : > { %1813 = vrot.lane.b32.xlu2 %v1426_v16, %s5089_s19 }
 0x111   : > { %1815 = vrot.lane.b32.xlu1 %v1457_v17, %s5089_s19  ;;  %1653 = vrot.lane.b32.xlu0 %v1457_v17, %s5090_s12 }
 0x112   : > { %4751 = vmatpush.xpose.msk.msra.mxu3 %vm1500_vm2, %v1457_v17 }
 0x115   : > { %4752 = vmatmul.msk.f32.vlgmr.msra.gmra.mxu3 %vm1500_vm2, %v1426_v16  ;;  %v1428_v18 = vpop.f32.mrf.mxu0  ;;  %v1459_v19 = vpop.f32.mrf.mxu2 }
 0x116   : > { %v1429_v20 = vadd.f32 %v4921_v12, %v1428_v18  ;;  %v1460_v21 = vadd.f32 %v4922_v13, %v1459_v19 }
 0x118   : > { %4753 = vmatpush.xpose.msk.msrb.mxu3 %vm1500_vm2, %v1460_v21  ;;  %1679 = vrot.lane.b32.xlu2 %v1429_v20, %s5090_s12 }
 0x119   : > { %1681 = vrot.lane.b32.xlu1 %v1460_v21, %s5090_s12  ;;  %1651 = vrot.lane.b32.xlu0 %v1426_v16, %s5090_s12 }
 0x11d   : > { %4754 = vmatmul.msk.f32.vlgmr.msrb.gmra.mxu3 %vm1500_vm2, %v1429_v20  ;;  %v1487_v49 = vpop.f32.mrf.mxu2 }
 0x11e   : > { %v5421_v50 = vadd.f32 %v4923_v48, %v1487_v49 }
 0x120   : > { %1841 = vrot.lane.b32.xlu2 %v1429_v20, %s5089_s19  ;;  %1623 = vmatpush.msra.mxu3 %v5421_v50 }
 0x121   : > { %1975 = vrot.lane.b32.xlu1 %v1457_v17, %s5091_s7  ;;  %1843 = vrot.lane.b32.xlu0 %v1460_v21, %s5089_s19 }
 0x125   : > { %v1490_v51 = vpop.f32.mrf.mxu2 }
 0x126   : > { %v5424_v52 = vadd.f32 %v4923_v48, %v1490_v51 }
 0x128   : > { %2001 = vrot.lane.b32.xlu2 %v1429_v20, %s5091_s7  ;;  %1646 = vmatpush.msrb.mxu0 %v5424_v52 }
 0x129   : > { %2003 = vrot.lane.b32.xlu1 %v1460_v21, %s5091_s7  ;;  %1973 = vrot.lane.b32.xlu0 %v1426_v16, %s5091_s7 }
 0x16a   : > { %v1814_v26 = vpop.permute.xlu2 %1813 }
 0x172   : > { %v1680_v29 = vpop.permute.xlu2 %1679 }
 0x17a   : > { %v1842_v34 = vpop.permute.xlu2 %1841 }
 0x182   : > { %v2002_v42 = vpop.permute.xlu2 %2001 }
 0x183   : > { %v1816_v27 = vpop.permute.xlu1 %1815  ;;  %v1654_v28 = vpop.permute.xlu0 %1653 }
 0x184   : > { %4757 = vmatpush.xpose.msk.msrb.mxu1 %vm1500_vm2, %v1654_v28 }
 0x188   : > { %4763 = vmatpush.xpose.msk.msra.mxu1 %vm1500_vm2, %v1816_v27 }
 0x18b   : > { %v1682_v30 = vpop.permute.xlu1 %1681  ;;  %v1652_v31 = vpop.permute.xlu0 %1651 }
 0x18c   : > { %4759 = vmatpush.xpose.msk.msra.mxu2 %vm1500_vm2, %v1682_v30  ;;  %4758 = vmatmul.msk.f32.vlgmr.msrb.gmra.mxu1 %vm1500_vm2, %v1652_v31 }
 0x18f   : > { %4760 = vmatmul.msk.f32.vlgmr.msra.gmra.mxu2 %vm1500_vm2, %v1680_v29 }
 0x193   : > { %v1976_v32 = vpop.permute.xlu1 %1975  ;;  %v1844_v33 = vpop.permute.xlu0 %1843 }
 0x194   : > { %4769 = vmatpush.xpose.msk.msrb.mxu1 %vm1500_vm2, %v1976_v32  ;;  %4765 = vmatpush.xpose.msk.msrb.mxu2 %vm1500_vm2, %v1844_v33 }
 0x195   : > { %4764 = vmatmul.msk.f32.vlgmr.msra.gmra.mxu1 %vm1500_vm2, %v1814_v26 }
 0x197   : > { %4766 = vmatmul.msk.f32.vlgmr.msrb.gmra.mxu2 %vm1500_vm2, %v1842_v34 }
 0x198   : > { %v1524_v35 = vpop.f32.mrf.mxu3 }
 0x199   : > { %v1553_v37 = vmul.f32 0.35355338, %v1524_v35 }
 0x19b   : > { %v2004_v38 = vpop.permute.xlu1 %2003  ;;  %v1555_v39 = vadd.f32 %v1553_v37, %v1493_v36  ;;  %v1974_v40 = vpop.permute.xlu0 %1973 }
 0x19c   : > { %4771 = vmatpush.xpose.msk.msra.mxu2 %vm1500_vm2, %v2004_v38 }
 0x19d   : > { %4770 = vmatmul.msk.f32.vlgmr.msrb.gmra.mxu1 %vm1500_vm2, %v1974_v40  ;;  %v1557_v41 = vsel %vm1500_vm2, %v1555_v39, -inf }
 0x19e   : > { %1558 = vmax.xlane.f32.xlu0 %v1557_v41 }
 0x19f   : > { %4772 = vmatmul.msk.f32.vlgmr.msra.gmra.mxu2 %vm1500_vm2, %v2002_v42 }
 0x1a0   : > { %v1550_v43 = vpop.f32.mrf.mxu3 }
 0x1a1   : > { %v1554_v45 = vmul.f32 0.35355338, %v1550_v43 }
 0x1a3   : > { %v1556_v46 = vadd.f32 %v1554_v45, %v1494_v44 }
 0x1a5   : > { %v1560_v47 = vsel %vm1500_vm2, %v1556_v46, -inf }
 0x1a6   : > { %1561 = vmax.xlane.f32.xlu2 %v1560_v47 }
 0x209   : > { %v1676_v53 = vpop.f32.mrf.mxu1 }
 0x20a   : > { %v1707_v54 = vmul.f32 0.35355338, %v1676_v53 }
 0x20c   : > { %v1709_v55 = vadd.f32 %v1707_v54, %v1493_v36 }
 0x20e   : > { %v1711_v56 = vsel %vm1500_vm2, %v1709_v55, -inf }
 0x20f   : > { %1712 = vmax.xlane.f32.xlu1 %v1711_v56 }
 0x211   : > { %v1559_v20 = vpop.xlane.xlu0 %1558 }
 0x212   : > { %v1838_v57 = vpop.f32.mrf.mxu1  ;;  %v1704_v58 = vpop.f32.mrf.mxu2  ;;  %v1563_v21 = vsub.f32 %v1555_v39, %v1559_v20 }
 0x213   : > { %v1869_v59 = vmul.f32 0.35355338, %v1838_v57  ;;  %v1708_v60 = vmul.f32 0.35355338, %v1704_v58 }
 0x214   : > { %v1565_v22 = vmul.f32 1.442695, %v1563_v21 }
 0x215   : > { %v1871_v61 = vadd.f32 %v1869_v59, %v1493_v36  ;;  %v1710_v62 = vadd.f32 %v1708_v60, %v1494_v44 }
 0x217   : > { %v1873_v63 = vsel %vm1500_vm2, %v1871_v61, -inf  ;;  %v1714_v0 = vsel %vm1500_vm2, %v1710_v62, -inf }
 0x218   : > { %1874 = vmax.xlane.f32.xlu2 %v1873_v63  ;;  %1715 = vmax.xlane.f32.xlu0 %v1714_v0 }
 0x219   : > { %v1562_v1 = vpop.xlane.xlu2 %1561 }
 0x21a   : > { %v1564_v2 = vsub.f32 %v1556_v46, %v1562_v1  ;;  %v1998_v3 = vpop.f32.mrf.mxu1  ;;  %v1866_v5 = vpop.f32.mrf.mxu2 }
 0x21b   : > { %v2029_v4 = vmul.f32 0.35355338, %v1998_v3  ;;  %v1870_v7 = vmul.f32 0.35355338, %v1866_v5 }
 0x21c   : > { %v1567_v6 = vmul.f32 1.442695, %v1564_v2 }
 0x21d   : > { %v2031_v8 = vadd.f32 %v2029_v4, %v1493_v36  ;;  %v1872_v9 = vadd.f32 %v1870_v7, %v1494_v44 }
 0x21e   : > { %4938 = vpow2.f32 %v1567_v6 }
 0x21f   : > { %v2033_v12 = vsel %vm1500_vm2, %v2031_v8, -inf  ;;  %v1876_v13 = vsel %vm1500_vm2, %v1872_v9, -inf  ;;  %4940 = vpow2.f32 %v1565_v22 }
 0x220   : > { %2034 = vmax.xlane.f32.xlu1 %v2033_v12  ;;  %1877 = vmax.xlane.f32.xlu2 %v1876_v13 }
 0x222   : > { %v2026_v14 = vpop.f32.mrf.mxu2 }
 0x223   : > { %v2030_v16 = vmul.f32 0.35355338, %v2026_v14 }
 0x224   : > { %v5432_v15 = vpop.eup %4938 }
 0x225   : > { %v1572_v17 = vsel %vm1500_vm2, %v5432_v15, 0.0  ;;  %v2032_v18 = vadd.f32 %v2030_v16, %v1494_v44  ;;  %v5441_v23 = vpop.eup %4940 }
 0x226   : > { %1573 = vadd.xlane.f32.xlu0 %v1572_v17  ;;  %v1569_v24 = vsel %vm1500_vm2, %v5441_v23, 0.0 }
 0x227   : > { %v2036_v19 = vsel %vm1500_vm2, %v2032_v18, -inf }
 0x22e   : > { %2037 = vmax.xlane.f32.xlu0 %v2036_v19 }
 0x239   : > { %1760 = vrot.lane.b32.xlu1 %v5421_v50, %s5090_s12 }
 0x242   : > { %1921 = vrot.lane.b32.xlu0 %v5421_v50, %s5089_s19 }
 0x263   : > { %1570 = vadd.xlane.f32.xlu1 %v1569_v24 }
 0x282   : > { %v1713_v25 = vpop.xlane.xlu1 %1712 }
 0x283   : > { %v1717_v26 = vsub.f32 %v1709_v55, %v1713_v25 }
 0x285   : > { %v1719_v27 = vmul.f32 1.442695, %v1717_v26 }
 0x287   : > { %4942 = vpow2.f32 %v1719_v27 }
 0x28b   : > { %v1875_v28 = vpop.xlane.xlu2 %1874  ;;  %v1716_v29 = vpop.xlane.xlu0 %1715 }
 0x28c   : > { %v1879_v30 = vsub.f32 %v1871_v61, %v1875_v28  ;;  %v1718_v31 = vsub.f32 %v1710_v62, %v1716_v29 }
 0x28d   : > { %v5445_v32 = vpop.eup %4942 }
 0x28e   : > { %v1881_v33 = vmul.f32 1.442695, %v1879_v30  ;;  %v1721_v34 = vmul.f32 1.442695, %v1718_v31  ;;  %v1723_v35 = vsel %vm1500_vm2, %v5445_v32, 0.0 }
 0x28f   : > { %1724 = vadd.xlane.f32.xlu2 %v1723_v35 }
 0x290   : > { %4944 = vpow2.f32 %v1881_v33 }
 0x291   : > { %4946 = vpow2.f32 %v1721_v34 }
 0x293   : > { %v2035_v36 = vpop.xlane.xlu1 %2034  ;;  %v1878_v38 = vpop.xlane.xlu2 %1877 }
 0x294   : > { %v2039_v37 = vsub.f32 %v2031_v8, %v2035_v36  ;;  %v1880_v39 = vsub.f32 %v1872_v9, %v1878_v38 }
 0x296   : > { %v5449_v40 = vpop.eup %4944  ;;  %v2041_v41 = vmul.f32 1.442695, %v2039_v37  ;;  %v1883_v43 = vmul.f32 1.442695, %v1880_v39 }
 0x297   : > { %v5451_v42 = vpop.eup %4946  ;;  %v1885_v44 = vsel %vm1500_vm2, %v5449_v40, 0.0 }
 0x298   : > { %4948 = vpow2.f32 %v2041_v41  ;;  %1886 = vadd.xlane.f32.xlu1 %v1885_v44  ;;  %v1726_v45 = vsel %vm1500_vm2, %v5451_v42, 0.0 }
 0x299   : > { %4950 = vpow2.f32 %v1883_v43  ;;  %1727 = vadd.xlane.f32.xlu2 %v1726_v45  ;;  %v1574_v46 = vpop.xlane.xlu0 %1573 }
 0x29a   : > { %4952 = vrcp.f32 %v1574_v46  ;;  %v1601_v58 = vand.u32 2147483648, %v1574_v46  ;;  %v1599_v61 = vand.u32 2147483647, %v1574_v46  ;;  %vm1595_vm4 = vweird.f32 %v1574_v46 }
 0x29c   : > { %v1602_v63 = vor.u32 1.1754944e-38, %v1601_v58  ;;  %vm1600_vm6 = vcmp.eq.f32.partialorder %v1599_v61, 8.507059e+37 }
 0x29e   : > { %v5457_v47 = vpop.eup %4948 }
 0x29f   : > { %v5459_v48 = vpop.eup %4950  ;;  %v2045_v49 = vsel %vm1500_vm2, %v5457_v47, 0.0 }
 0x2a0   : > { %v4953_v51 = vpop.eup %4952  ;;  %2046 = vadd.xlane.f32.xlu0 %v2045_v49  ;;  %v1888_v53 = vsel %vm1500_vm2, %v5459_v48, 0.0 }
 0x2a1   : > { %v1591_v54 = vmul.f32 %v4953_v51, %v1574_v46  ;;  %v2038_v55 = vpop.xlane.xlu0 %2037  ;;  %1889 = vadd.xlane.f32.xlu2 %v1888_v53  ;;  %vm1596_vm3 = vweird.f32 %v4953_v51 }
 0x2a2   : > { %v2040_v56 = vsub.f32 %v2032_v18, %v2038_v55  ;;  %vm1597_vm5 = vmor %vm1595_vm4, %vm1596_vm3 }
 0x2a3   : > { %v1592_v57 = vsub.f32 1.0, %v1591_v54 }
 0x2a4   : > { %v2043_v59 = vmul.f32 1.442695, %v2040_v56 }
 0x2a5   : > { %v1593_v60 = vmul.f32 %v4953_v51, %v1592_v57 }
 0x2a6   : > { %4954 = vpow2.f32 %v2043_v59 }
 0x2a7   : > { %v1594_v62 = vadd.f32 %v4953_v51, %v1593_v60 }
 0x2a9   : > { %v1598_v0 = vsel %vm1597_vm5, %v4953_v51, %v1594_v62 }
 0x2aa   : > { %v1603_v1 = vsel %vm1600_vm6, %v1602_v63, %v1598_v0 }
 0x2ab   : > { %v1761_v2 = vpop.permute.xlu1 %1760  ;;  %v1604_v3 = vmul.f32 %v5432_v15, %v1603_v1 }
 0x2ac   : > { %v5466_v4 = vpop.eup %4954  ;;  %1781 = vmatpush.msrb.mxu3 %v1761_v2 }
 0x2ad   : > { %4756 = vmatmul.msk.f32.vlgmr.msrb.gmra.mxu0 %vm1500_vm2, %v1604_v3  ;;  %v2048_v5 = vsel %vm1500_vm2, %v5466_v4, 0.0 }
 0x2ae   : > { %2049 = vadd.xlane.f32.xlu2 %v2048_v5 }
 0x2b1   : > { %2081 = vrot.lane.b32.xlu1 %v5421_v50, %s5091_s7 }
 0x2b4   : > { %1947 = vrot.lane.b32.xlu0 %v5424_v52, %s5089_s19  ;;  %v1922_v19 = vpop.permute.xlu0 %1921 }
 0x2b9   : > { %2107 = vrot.lane.b32.xlu1 %v5424_v52, %s5091_s7 }
 0x2c6   : > { %1787 = vrot.lane.b32.xlu2 %v5424_v52, %s5090_s12 }
 0x2d6   : > { %v1571_v6 = vpop.xlane.xlu1 %1570 }
 0x2d7   : > { %4956 = vrcp.f32 %v1571_v6  ;;  %v1586_v12 = vand.u32 2147483648, %v1571_v6  ;;  %v1584_v14 = vand.u32 2147483647, %v1571_v6  ;;  %vm1580_vm8 = vweird.f32 %v1571_v6 }
 0x2d9   : > { %v1587_v50 = vor.u32 1.1754944e-38, %v1586_v12  ;;  %vm1585_vm10 = vcmp.eq.f32.partialorder %v1584_v14, 8.507059e+37 }
 0x2dd   : > { %v4957_v7 = vpop.eup %4956 }
 0x2de   : > { %v1576_v8 = vmul.f32 %v4957_v7, %v1571_v6  ;;  %vm1581_vm7 = vweird.f32 %v4957_v7 }
 0x2df   : > { %vm1582_vm9 = vmor %vm1580_vm8, %vm1581_vm7 }
 0x2e0   : > { %v1577_v9 = vsub.f32 1.0, %v1576_v8 }
 0x2e2   : > { %v1578_v13 = vmul.f32 %v4957_v7, %v1577_v9 }
 0x2e4   : > { %v1579_v15 = vadd.f32 %v4957_v7, %v1578_v13 }
 0x2e6   : > { %v1583_v16 = vsel %vm1582_vm9, %v4957_v7, %v1579_v15 }
 0x2e7   : > { %v1588_v17 = vsel %vm1585_vm10, %v1587_v50, %v1583_v16 }
 0x2e8   : > { %v1589_v18 = vmul.f32 %v5441_v23, %v1588_v17 }
 0x2ea   : > { %4755 = vmatmul.msk.f32.vlgmr.msra.gmra.mxu3 %vm1500_vm2, %v1589_v18 }
 0x2eb   : > { %1942 = vmatpush.msra.mxu3 %v1922_v19 }
 0x302   : > { %v1725_v52 = vpop.xlane.xlu2 %1724 }
 0x303   : > { %4958 = vrcp.f32 %v1725_v52  ;;  %v1740_v27 = vand.u32 2147483648, %v1725_v52  ;;  %v1738_v28 = vand.u32 2147483647, %v1725_v52  ;;  %vm1734_vm12 = vweird.f32 %v1725_v52 }
 0x305   : > { %v1741_v33 = vor.u32 1.1754944e-38, %v1740_v27  ;;  %vm1739_vm14 = vcmp.eq.f32.partialorder %v1738_v28, 8.507059e+37 }
 0x309   : > { %v4959_v20 = vpop.eup %4958 }
 0x30a   : > { %v1730_v21 = vmul.f32 %v4959_v20, %v1725_v52  ;;  %vm1735_vm11 = vweird.f32 %v4959_v20 }
 0x30b   : > { %v1887_v22 = vpop.xlane.xlu1 %1886  ;;  %vm1736_vm13 = vmor %vm1734_vm12, %vm1735_vm11 }
 0x30c   : > { %4960 = vrcp.f32 %v1887_v22  ;;  %v5481_v24 = vpop.xlane.xlu2 %1727  ;;  %v1731_v25 = vsub.f32 1.0, %v1730_v21  ;;  %v1902_v41 = vand.u32 2147483648, %v1887_v22  ;;  %v1900_v44 = vand.u32 2147483647, %v1887_v22 }
 0x30d   : > { %4962 = vrcp.f32 %v5481_v24  ;;  %vm1896_vm0 = vweird.f32 %v1887_v22  ;;  %vm1749_vm7 = vweird.f32 %v5481_v24  ;;  %v1755_v2 = vand.u32 2147483648, %v5481_v24 }
 0x30e   : > { %v1732_v26 = vmul.f32 %v4959_v20, %v1731_v25  ;;  %v1903_v53 = vor.u32 1.1754944e-38, %v1902_v41  ;;  %vm1901_vm4 = vcmp.eq.f32.partialorder %v1900_v44, 8.507059e+37  ;;  %v1753_v5 = vand.u32 2147483647, %v5481_v24 }
 0x30f   : > { %v1756_v14 = vor.u32 1.1754944e-38, %v1755_v2 }
 0x310   : > { %v1733_v23 = vadd.f32 %v4959_v20, %v1732_v26  ;;  %vm1754_vm12 = vcmp.eq.f32.partialorder %v1753_v5, 8.507059e+37 }
 0x312   : > { %v4961_v29 = vpop.eup %4960  ;;  %v1737_v31 = vsel %vm1736_vm13, %v4959_v20, %v1733_v23 }
 0x313   : > { %v4963_v30 = vpop.eup %4962  ;;  %v1892_v34 = vmul.f32 %v4961_v29, %v1887_v22  ;;  %v2047_v35 = vpop.xlane.xlu0 %2046  ;;  %v1742_v38 = vsel %vm1739_vm14, %v1741_v33, %v1737_v31  ;;  %vm1897_vm15 = vweird.f32 %v4961_v29 }
 0x314   : > { %v1745_v36 = vmul.f32 %v4963_v30, %v5481_v24  ;;  %4964 = vrcp.f32 %v2047_v35  ;;  %v5485_v37 = vpop.xlane.xlu2 %1889  ;;  %v1743_v46 = vmul.f32 %v5445_v32, %v1742_v38  ;;  %vm1898_vm3 = vmor %vm1896_vm0, %vm1897_vm15  ;;  %vm1750_vm5 = vweird.f32 %v4963_v30 }
 0x315   : > { %v1893_v39 = vsub.f32 1.0, %v1892_v34  ;;  %4966 = vrcp.f32 %v5485_v37  ;;  %v2060_v61 = vand.u32 2147483647, %v2047_v35  ;;  %v2062_v62 = vand.u32 2147483648, %v2047_v35  ;;  %vm5494_vm8 = vmor %vm1749_vm7, %vm1750_vm5 }
 0x316   : > { %v1746_v45 = vsub.f32 1.0, %v1745_v36  ;;  %4761 = vmatmul.msk.f32.vlgmr.msrb.gmra.mxu3 %vm1500_vm2, %v1743_v46  ;;  %vm2056_vm9 = vweird.f32 %v2047_v35  ;;  %v1917_v19 = vand.u32 2147483648, %v5485_v37  ;;  %vm1911_vm14 = vweird.f32 %v5485_v37  ;;  %v1497_v46 = vld [vmem:[%s6326_s22 + $0x10] sm:$0xff] }
 0x317   : > { %v1894_v43 = vmul.f32 %v4961_v29, %v1893_v39  ;;  %v2063_v8 = vor.u32 1.1754944e-38, %v2062_v62  ;;  %vm2061_vm11 = vcmp.eq.f32.partialorder %v2060_v61, 8.507059e+37  ;;  %v1915_v52 = vand.u32 2147483647, %v5485_v37 }
 0x318   : > { %v1747_v55 = vmul.f32 %v4963_v30, %v1746_v45  ;;  %v1918_v27 = vor.u32 1.1754944e-38, %v1917_v19  ;;  %v1498_v45 = vld [vmem:[%s6326_s22 + $0x18] sm:$0xff]  ;;  %vm2159_vm7 = vcmask 130048  }
 0x319   : > { %v1895_v49 = vadd.f32 %v4961_v29, %v1894_v43  ;;  %vm1916_vm0 = vcmp.eq.f32.partialorder %v1915_v52, 8.507059e+37  ;;  %2186 = vmatpush.msra.mxu1 %v1498_v45  ;;  %v4925_v45 = vld [vmem:[%s1364_s20] ss:$0 sm:$0xff]  ;;  %s6335_s20 = sld [smem:[#allocation19_spill]] }
 0x31a   : > { %v4965_v51 = vpop.eup %4964  ;;  %v1748_v63 = vadd.f32 %v4963_v30, %v1747_v55 }
 0x31b   : > { %v1899_v54 = vsel %vm1898_vm3, %v4961_v29, %v1895_v49  ;;  %v2052_v56 = vmul.f32 %v4965_v51, %v2047_v35  ;;  %v4967_v57 = vpop.eup %4966  ;;  %vm2057_vm6 = vweird.f32 %v4965_v51  ;;  %v1496_v49 = vld [vmem:[%s6326_s22 + $0x8] sm:$0xff]  ;;  %2187 = vmatpush.msra.mxu1 %v1497_v46 }
 0x31c   : > { %v1904_v58 = vsel %vm1901_vm4, %v1903_v53, %v1899_v54  ;;  %v1907_v60 = vmul.f32 %v4967_v57, %v5485_v37  ;;  %vm2058_vm10 = vmor %vm2056_vm9, %vm2057_vm6  ;;  %vm1912_vm13 = vweird.f32 %v4967_v57 }
 0x31d   : > { %v2053_v59 = vsub.f32 1.0, %v2052_v56  ;;  %v1905_v32 = vmul.f32 %v5449_v40, %v1904_v58  ;;  %v1752_v40 = vsel %vm5494_vm8, %v4963_v30, %v1748_v63  ;;  %vm1913_vm15 = vmor %vm1911_vm14, %vm1912_vm13  ;;  %2188 = vmatpush.msra.mxu1 %v1496_v49  ;;  %vm2162_vm8 = vcmask 195584  }
 0x31e   : > { %v1908_v1 = vsub.f32 1.0, %v1907_v60  ;;  %v1757_v50 = vsel %vm1754_vm12, %v1756_v14, %v1752_v40 }
 0x31f   : > { %v2054_v0 = vmul.f32 %v4965_v51, %v2053_v59  ;;  %4767 = vmatmul.msk.f32.vlgmr.msra.gmra.mxu3 %vm1500_vm2, %v1905_v32  ;;  %v1758_v22 = vmul.f32 %v5451_v42, %v1757_v50  ;;  %s6337_s17 = scalar_lea.vmem %s6335_s20, %s5280_s0 }
 0x320   : > { %v1909_v12 = vmul.f32 %v4967_v57, %v1908_v1 }
 0x321   : > { %v2055_v6 = vadd.f32 %v4965_v51, %v2054_v0  ;;  %v2050_v7 = vpop.xlane.xlu2 %2049  ;;  %v4924_v0 = vld [vmem:[%s6328_s25] ss:$0 sm:$0xff]  ;;  %s6338_s25 = sld [smem:[#allocation45_spill]] }
 0x322   : > { %4968 = vrcp.f32 %v2050_v7  ;;  %v1910_v17 = vadd.f32 %v4967_v57, %v1909_v12  ;;  %v2077_v30 = vand.u32 2147483648, %v2050_v7  ;;  %vm2071_vm4 = vweird.f32 %v2050_v7 }
 0x323   : > { %v2059_v9 = vsel %vm2058_vm10, %v4965_v51, %v2055_v6  ;;  %v2082_v13 = vpop.permute.xlu1 %2081  ;;  %v2075_v42 = vand.u32 2147483647, %v2050_v7  ;;  %v1495_v51 = vld [vmem:[%s6326_s22] sm:$0xff]  ;;  %s6334_s22 = sld [smem:[#allocation21_spill]] }
 0x324   : > { %v2064_v15 = vsel %vm2061_vm11, %v2063_v8, %v2059_v9  ;;  %2102 = vmatpush.msrb.mxu3 %v2082_v13  ;;  %v1914_v24 = vsel %vm1913_vm15, %v4967_v57, %v1910_v17  ;;  %v2078_v34 = vor.u32 1.1754944e-38, %v2077_v30  ;;  %2189 = vmatpush.msra.mxu1 %v1495_v51  ;;  %v5095_v9 = vmov 32.0   ;;  %v2264_v30 = vld [vmem:[%s6331_s1 + $0x10] sm:$0xff] }
 0x325   : > { %v2065_v16 = vmul.f32 %v5457_v47, %v2064_v15  ;;  %v1919_v23 = vsel %vm1916_vm0, %v1918_v27, %v1914_v24  ;;  %vm2076_vm6 = vcmp.eq.f32.partialorder %v2075_v42, 8.507059e+37  ;;  %4970 = vrcp.f32 %v5095_v9  ;;  %v2299_v27 = vld [vmem:[%s6329_s29] sm:$0xff]  ;;  %v2263_v42 = vld [vmem:[%s6331_s1 + $0x8] sm:$0xff] }
 0x326   : > { %v1948_v47 = vpop.permute.xlu0 %1947  ;;  %v1920_v31 = vmul.f32 %v5459_v48, %v1919_v23  ;;  %v5554_v23 = vld [vmem:[%s6330_s8 + $0x8] sm:$0xff] }
 0x327   : > { %4773 = vmatmul.msk.f32.vlgmr.msrb.gmra.mxu3 %vm1500_vm2, %v2065_v16 }
 0x328   : > { %v4969_v18 = vpop.eup %4968 }
 0x329   : > { %v2067_v20 = vmul.f32 %v4969_v18, %v2050_v7  ;;  %v1788_v21 = vpop.permute.xlu2 %1787  ;;  %vm2072_vm3 = vweird.f32 %v4969_v18 }
 0x32a   : > { %1808 = vmatpush.msra.mxu0 %v1788_v21  ;;  %vm2073_vm5 = vmor %vm2071_vm4, %vm2072_vm3  ;;  %v1648_v39 = vpop.f32.mrf.mxu0 }
 0x32b   : > { %v2068_v25 = vsub.f32 1.0, %v2067_v20  ;;  %v2108_v26 = vpop.permute.xlu1 %2107  ;;  %4762 = vmatmul.msk.f32.vlgmr.msra.gmra.mxu0 %vm1500_vm2, %v1758_v22  ;;  %v4971_v12 = vpop.eup %4970 }
 0x32c   : > { %1968 = vmatpush.msrb.mxu0 %v1948_v47  ;;  %v2208_v13 = vmul.f32 32.0, %v4971_v12  ;;  %vm2212_vm9 = vweird.f32 %v4971_v12  ;;  %v2301_v47 = vld [vmem:[%s6329_s29 + $0x10] sm:$0xff] }
 0x32d   : > { %v2069_v28 = vmul.f32 %v4969_v18, %v2068_v25  ;;  %v2302_v25 = vld [vmem:[%s6329_s29 + $0x18] sm:$0xff] }
 0x32e   : > { %2128 = vmatpush.msra.mxu0 %v2108_v26  ;;  %v2209_v14 = vsub.f32 1.0, %v2208_v13  ;;  %2325 = vmatpush.msra.mxu3 %v2302_v25  ;;  %v2300_v26 = vld [vmem:[%s6329_s29 + $0x8] sm:$0xff]  ;;  %s6339_s29 = sld [smem:[#allocation9_spill]] }
 0x32f   : > { %v2070_v29 = vadd.f32 %v4969_v18, %v2069_v28  ;;  %v5549_v28 = vld [vmem:[%s6330_s8] sm:$0xff] }
 0x330   : > { %v2210_v15 = vmul.f32 %v4971_v12, %v2209_v14  ;;  %2326 = vmatpush.msra.mxu3 %v2301_v47 }
 0x331   : > { %v2074_v33 = vsel %vm2073_vm5, %v4969_v18, %v2070_v29  ;;  %v2265_v29 = vld [vmem:[%s6331_s1 + $0x18] sm:$0xff] }
 0x332   : > { %v2079_v35 = vsel %vm2076_vm6, %v2078_v34, %v2074_v33  ;;  %v2211_v50 = vadd.f32 %v4971_v12, %v2210_v15  ;;  %2327 = vmatpush.msra.mxu3 %v2300_v26  ;;  %2288 = vmatpush.msrb.mxu2 %v2265_v29 }
 0x333   : > { %4768 = vmatmul.msk.f32.vlgmr.msrb.gmra.mxu0 %vm1500_vm2, %v1920_v31  ;;  %v2080_v36 = vmul.f32 %v5466_v4, %v2079_v35  ;;  %v2262_v31 = vld [vmem:[%s6331_s1] sm:$0xff]  ;;  %s6340_s1 = scalar_lea.vmem %s5191_s4, %s5280_s0 }
 0x334   : > { %2328 = vmatpush.msra.mxu3 %v2299_v27  ;;  %2289 = vmatpush.msrb.mxu2 %v2264_v30  ;;  %v4930_v29 = vld [vmem:[%s6339_s29 + $0x1] ss:$0 sm:$0xff] }
 0x335   : > { %4779 = vmatmul.msk.f32.vlgmr.msra.gmra.mxu3 %vm1401_vm1, %v5549_v28 }
 0x336   : > { %2290 = vmatpush.msrb.mxu2 %v2263_v42 }
 0x338   : > { %2291 = vmatpush.msrb.mxu2 %v2262_v31 }
 0x33b   : > { %4774 = vmatmul.msk.f32.vlgmr.msra.gmra.mxu0 %vm1500_vm2, %v2080_v36 }
 0x33d   : > { %4780 = vmatmul.msk.f32.gmra.mxu3 %vm1401_vm1, %v5554_v23 }
 0x36d   : > { %v1625_v37 = vpop.f32.mrf.mxu3 }
 0x399   : > { %v1783_v38 = vpop.f32.mrf.mxu3 }
 0x39a   : > { %2135 = vrot.lane.b32.xlu0 %v1783_v38, %s5092_s23 }
 0x3a2   : > { %v1944_v48 = vpop.f32.mrf.mxu3 }
 0x3a3   : > { %2143 = vrot.lane.b32.xlu1 %v1944_v48, %s5093_s13 }
 0x3a8   : > { %v1810_v41 = vpop.f32.mrf.mxu0 }
 0x3a9   : > { %2137 = vrot.lane.b32.xlu2 %v1810_v41, %s5092_s23 }
 0x3aa   : > { %v2104_v4 = vpop.f32.mrf.mxu3 }
 0x3ab   : > { %2151 = vrot.lane.b32.xlu0 %v2104_v4, %s5094_s21 }
 0x3b0   : > { %v1970_v43 = vpop.f32.mrf.mxu0 }
 0x3b1   : > { %2145 = vrot.lane.b32.xlu1 %v1970_v43, %s5093_s13 }
 0x3b8   : > { %v2130_v44 = vpop.f32.mrf.mxu0 }
 0x3b9   : > { %2153 = vrot.lane.b32.xlu0 %v2130_v44, %s5094_s21 }
 0x403   : > { %v2138_v59 = vpop.permute.xlu2 %2137 }
 0x404   : > { %v2158_v61 = vsel %vm1500_vm2, %v1648_v39, %v2138_v59 }
 0x40c   : > { %v2136_v53 = vpop.permute.xlu0 %2135 }
 0x40d   : > { %v2157_v55 = vsel %vm1500_vm2, %v1625_v37, %v2136_v53 }
 0x415   : > { %v2144_v54 = vpop.permute.xlu1 %2143 }
 0x416   : > { %v2160_v56 = vsel %vm2159_vm7, %v2157_v55, %v2144_v54  ;;  %v4926_v54 = vld [vmem:[%s1367_s26] ss:$0 sm:$0xff]  ;;  %s6336_s26 = scalar_lea.vmem %s6334_s22, %s5280_s0 }
 0x41d   : > { %v2152_v57 = vpop.permute.xlu0 %2151 }
 0x41e   : > { %v2163_v58 = vsel %vm2162_vm8, %v2160_v56, %v2152_v57 }
 0x41f   : > { %4775 = vmatmul.msk.f32.vlgmr.msra.gmra.mxu1 %vm1401_vm1, %v2163_v58 }
 0x423   : > { %v2146_v60 = vpop.permute.xlu1 %2145 }
 0x424   : > { %v2161_v62 = vsel %vm2159_vm7, %v2158_v61, %v2146_v60 }
 0x42b   : > { %v2154_v32 = vpop.permute.xlu0 %2153 }
 0x42c   : > { %v2164_v63 = vsel %vm2162_vm8, %v2161_v62, %v2154_v32 }
 0x42d   : > { %4776 = vmatmul.msk.f32.gmra.mxu1 %vm1401_vm1, %v2164_v63 }
 0x49c   : > { %v2191_v1 = vpop.f32.mrf.mxu1 }
 0x49d   : > { %v2192_v2 = vadd.f32 %v4924_v0, %v2191_v1  ;;  %v2330_v1 = vpop.f32.mrf.mxu3 }
 0x49f   : > { %v2197_v3 = vadd.f32 %v2192_v2, %v5360_v10  ;;  %v5538_v10 = vsel %vm2212_vm9, %v4971_v12, %v2211_v50  ;;  %v2339_v50 = vld [vmem:[%s6338_s25 + $0x18] sm:$0xff] }
 0x4a0   : > { %2356 = vmatpush.msrb.mxu0 %v2339_v50 }
 0x4a1   : > { %v2201_v5 = vsel %vm1401_vm1, %v2197_v3, 0.0 }
 0x4a2   : > { %2202 = vadd.xlane.f32.xlu2 %v2201_v5 }
 0x4aa   : > { %v2194_v6 = vpop.f32.mrf.mxu1 }
 0x4ab   : > { %v2195_v7 = vadd.f32 %v4924_v0, %v2194_v6  ;;  %v4927_v0 = vld [vmem:[%s6336_s26] ss:$0 sm:$0xff] }
 0x4ac   : > { %v2331_v2 = vadd.f32 %v4927_v0, %v2330_v1  ;;  %v4928_v6 = vld [vmem:[%s6337_s17] ss:$0 sm:$0xff] }
 0x4ad   : > { %v2198_v8 = vadd.f32 %v2195_v7, %v5362_v11 }
 0x4ae   : > { %4783 = vmatpush.xpose.msk.msrb.mxu1 %vm1500_vm2, %v2331_v2 }
 0x4af   : > { %v2204_v40 = vsel %vm1401_vm1, %v2198_v8, 0.0 }
 0x4b0   : > { %2205 = vadd.xlane.f32.xlu1 %v2204_v40 }
 0x4c9   : > { %2532 = vrot.lane.b32.xlu1 %v2331_v2, %s5090_s12 }
 0x515   : > { %v2203_v16 = vpop.xlane.xlu2 %2202 }
 0x516   : > { %v2214_v17 = vmul.f32 %v5538_v10, %v2203_v16  ;;  %v2338_v16 = vld [vmem:[%s6338_s25 + $0x10] sm:$0xff] }
 0x517   : > { %2357 = vmatpush.msrb.mxu0 %v2338_v16 }
 0x518   : > { %v2216_v11 = vsub.f32 %v2197_v3, %v2214_v17  ;;  %v2333_v3 = vpop.f32.mrf.mxu3  ;;  %v2337_v17 = vld [vmem:[%s6338_s25 + $0x8] sm:$0xff] }
 0x519   : > { %v2334_v5 = vadd.f32 %v4927_v0, %v2333_v3  ;;  %2358 = vmatpush.msrb.mxu0 %v2337_v17 }
 0x51a   : > { %v2218_v18 = vmul.f32 %v2216_v11, %v2216_v11 }
 0x51b   : > { %4785 = vmatpush.xpose.msk.msra.mxu2 %vm1500_vm2, %v2334_v5 }
 0x51c   : > { %v2220_v19 = vsel %vm1401_vm1, %v2218_v18, 0.0 }
 0x51d   : > { %2221 = vadd.xlane.f32.xlu0 %v2220_v19 }
 0x523   : > { %v2206_v52 = vpop.xlane.xlu1 %2205 }
 0x524   : > { %v2215_v20 = vmul.f32 %v5538_v10, %v2206_v52 }
 0x526   : > { %v2217_v21 = vsub.f32 %v2198_v8, %v2215_v20  ;;  %v4929_v20 = vld [vmem:[%s6339_s29] ss:$0 sm:$0xff] }
 0x528   : > { %v2219_v22 = vmul.f32 %v2217_v21, %v2217_v21 }
 0x52a   : > { %v2223_v24 = vsel %vm1401_vm1, %v2219_v22, 0.0 }
 0x52b   : > { %2224 = vadd.xlane.f32.xlu2 %v2223_v24 }
 0x531   : > { %2694 = vrot.lane.b32.xlu0 %v2331_v2, %s5089_s19 }
 0x53b   : > { %v2533_v13 = vpop.permute.xlu1 %2532 }
 0x53c   : > { %4789 = vmatpush.xpose.msk.msra.mxu1 %vm1500_vm2, %v2533_v13 }
 0x543   : > { %2560 = vrot.lane.b32.xlu2 %v2334_v5, %s5090_s12 }
 0x590   : > { %v2222_v33 = vpop.xlane.xlu0 %2221 }
 0x591   : > { %v2226_v34 = vmul.f32 %v2222_v33, %v5538_v10 }
 0x593   : > { %v2228_v35 = vadd.f32 1e-05, %v2226_v34 }
 0x595   : > { %4972 = vrsqrt.f32 %v2228_v35  ;;  %vm2236_vm11 = vweird.f32 %v2228_v35 }
 0x59b   : > { %v4973_v36 = vpop.eup %4972 }
 0x59c   : > { %v2231_v38 = vmul.f32 %v4973_v36, %v2228_v35  ;;  %vm2237_vm10 = vweird.f32 %v4973_v36 }
 0x59d   : > { %vm2238_vm12 = vmor %vm2236_vm11, %vm2237_vm10 }
 0x59e   : > { %v2225_v37 = vpop.xlane.xlu2 %2224  ;;  %v2232_v48 = vmul.f32 %v4973_v36, %v2231_v38 }
 0x59f   : > { %v2227_v39 = vmul.f32 %v2225_v37, %v5538_v10 }
 0x5a0   : > { %v2233_v4 = vmul.f32 0.5, %v2232_v48 }
 0x5a1   : > { %v2229_v41 = vadd.f32 1e-05, %v2227_v39 }
 0x5a2   : > { %v2234_v43 = vsub.f32 1.5, %v2233_v4 }
 0x5a3   : > { %4974 = vrsqrt.f32 %v2229_v41  ;;  %vm2246_vm14 = vweird.f32 %v2229_v41  ;;  %v2695_v14 = vpop.permute.xlu0 %2694 }
 0x5a4   : > { %v2235_v44 = vmul.f32 %v4973_v36, %v2234_v43 }
 0x5a6   : > { %v2239_v49 = vsel %vm2238_vm12, %v4973_v36, %v2235_v44  ;;  %v2561_v12 = vpop.permute.xlu2 %2560  ;;  %v4931_v44 = vld [vmem:[%s6340_s1] ss:$0 sm:$0xff] }
 0x5a7   : > { %v2250_v51 = vmul.f32 %v2239_v49, %v2216_v11  ;;  %v2336_v11 = vld [vmem:[%s6338_s25] sm:$0xff] }
 0x5a8   : > { %2359 = vmatpush.msrb.mxu0 %v2336_v11 }
 0x5a9   : > { %v4975_v46 = vpop.eup %4974  ;;  %v2255_v55 = vmul.f32 %v4925_v45, %v2250_v51  ;;  %4781 = vmatmul.msk.f32.vlgmr.msrb.gmra.mxu0 %vm1401_vm1, %v5549_v28 }
 0x5aa   : > { %v2241_v53 = vmul.f32 %v4975_v46, %v2229_v41  ;;  %vm2247_vm13 = vweird.f32 %v4975_v46 }
 0x5ab   : > { %v5570_v58 = vadd.f32 %v4926_v54, %v2255_v55  ;;  %vm2248_vm15 = vmor %vm2246_vm14, %vm2247_vm13 }
 0x5ac   : > { %v2242_v56 = vmul.f32 %v4975_v46, %v2241_v53 }
 0x5ad   : > { %4777 = vmatmul.msk.f32.vlgmr.msrb.gmra.mxu2 %vm1401_vm1, %v5570_v58 }
 0x5ae   : > { %v2243_v57 = vmul.f32 0.5, %v2242_v56  ;;  %4791 = vmatpush.xpose.msk.msrb.mxu2 %vm1500_vm2, %v2561_v12 }
 0x5b0   : > { %v2244_v59 = vsub.f32 1.5, %v2243_v57 }
 0x5b1   : > { %4782 = vmatmul.msk.f32.gmra.mxu0 %vm1401_vm1, %v5554_v23 }
 0x5b2   : > { %v2245_v60 = vmul.f32 %v4975_v46, %v2244_v59 }
 0x5b4   : > { %v2249_v61 = vsel %vm2248_vm15, %v4975_v46, %v2245_v60 }
 0x5b5   : > { %v2251_v62 = vmul.f32 %v2249_v61, %v2217_v21 }
 0x5b7   : > { %v2256_v32 = vmul.f32 %v4925_v45, %v2251_v62 }
 0x5b9   : > { %v5574_v63 = vadd.f32 %v4926_v54, %v2256_v32 }
 0x5bb   : > { %4778 = vmatmul.msk.f32.gmra.mxu2 %vm1401_vm1, %v5574_v63 }
 0x626   : > { %v2361_v45 = vpop.f32.mrf.mxu0 }
 0x627   : > { %v5629_v49 = vadd.f32 %v4931_v44, %v2361_v45 }
 0x629   : > { %2502 = vmatpush.msrb.mxu3 %v5629_v49 }
 0x630   : > { %v2293_v7 = vpop.f32.mrf.mxu2 }
 0x631   : > { %v2294_v8 = vadd.f32 %v4928_v6, %v2293_v7 }
 0x633   : > { %2692 = vrot.lane.b32.xlu2 %v2294_v8, %s5089_s19  ;;  %2530 = vrot.lane.b32.xlu0 %v2294_v8, %s5090_s12 }
 0x634   : > { %4784 = vmatmul.msk.f32.vlgmr.msrb.gmra.mxu1 %vm1500_vm2, %v2294_v8 }
 0x635   : > { %4795 = vmatpush.xpose.msk.msrb.mxu1 %vm1500_vm2, %v2695_v14 }
 0x63b   : > { %2722 = vrot.lane.b32.xlu0 %v2334_v5, %s5089_s19 }
 0x63e   : > { %v2296_v40 = vpop.f32.mrf.mxu2 }
 0x63f   : > { %v2297_v9 = vadd.f32 %v4928_v6, %v2296_v40 }
 0x641   : > { %2558 = vrot.lane.b32.xlu1 %v2297_v9, %s5090_s12  ;;  %4786 = vmatmul.msk.f32.vlgmr.msra.gmra.mxu2 %vm1500_vm2, %v2297_v9 }
 0x642   : > { %2720 = vrot.lane.b32.xlu2 %v2297_v9, %s5089_s19 }
 0x643   : > { %2852 = vrot.lane.b32.xlu0 %v2294_v8, %s5091_s7 }
 0x649   : > { %2854 = vrot.lane.b32.xlu1 %v2331_v2, %s5091_s7 }
 0x64a   : > { %2880 = vrot.lane.b32.xlu2 %v2297_v9, %s5091_s7 }
 0x651   : > { %2882 = vrot.lane.b32.xlu1 %v2334_v5, %s5091_s7 }
 0x68d   : > { %v2693_v18 = vpop.permute.xlu2 %2692 }
 0x69c   : > { %v2721_v47 = vpop.permute.xlu2 %2720 }
 0x6a4   : > { %v2881_v31 = vpop.permute.xlu2 %2880 }
 0x6a5   : > { %v2531_v15 = vpop.permute.xlu0 %2530 }
 0x6a6   : > { %4790 = vmatmul.msk.f32.vlgmr.msra.gmra.mxu1 %vm1500_vm2, %v2531_v15 }
 0x6ad   : > { %v2723_v19 = vpop.permute.xlu0 %2722 }
 0x6ae   : > { %4796 = vmatmul.msk.f32.vlgmr.msrb.gmra.mxu1 %vm1500_vm2, %v2693_v18  ;;  %4797 = vmatpush.xpose.msk.msra.mxu2 %vm1500_vm2, %v2723_v19 }
 0x6b1   : > { %v2397_v21 = vpop.f32.mrf.mxu1 }
 0x6b2   : > { %v2426_v22 = vmul.f32 0.35355338, %v2397_v21 }
 0x6b3   : > { %v2559_v52 = vpop.permute.xlu1 %2558 }
 0x6b4   : > { %4792 = vmatmul.msk.f32.vlgmr.msrb.gmra.mxu2 %vm1500_vm2, %v2559_v52  ;;  %v2434_v24 = vadd.f32 %v4929_v20, %v2426_v22 }
 0x6b5   : > { %v2853_v27 = vpop.permute.xlu0 %2852 }
 0x6b6   : > { %v2436_v25 = vsel %vm1500_vm2, %v2434_v24, -inf }
 0x6b7   : > { %2437 = vmax.xlane.f32.xlu0 %v2436_v25 }
 0x6bb   : > { %v2855_v26 = vpop.permute.xlu1 %2854 }
 0x6bc   : > { %4798 = vmatmul.msk.f32.vlgmr.msra.gmra.mxu2 %vm1500_vm2, %v2721_v47  ;;  %4801 = vmatpush.xpose.msk.msra.mxu1 %vm1500_vm2, %v2855_v26 }
 0x6bf   : > { %4802 = vmatmul.msk.f32.vlgmr.msra.gmra.mxu1 %vm1500_vm2, %v2853_v27 }
 0x6c3   : > { %v2883_v28 = vpop.permute.xlu1 %2882 }
 0x6c4   : > { %v2423_v30 = vpop.f32.mrf.mxu2  ;;  %4803 = vmatpush.xpose.msk.msrb.mxu2 %vm1500_vm2, %v2883_v28 }
 0x6c5   : > { %v2427_v42 = vmul.f32 0.35355338, %v2423_v30 }
 0x6c7   : > { %4804 = vmatmul.msk.f32.vlgmr.msrb.gmra.mxu2 %vm1500_vm2, %v2881_v31  ;;  %v2435_v33 = vadd.f32 %v4930_v29, %v2427_v42 }
 0x6c9   : > { %v2439_v23 = vsel %vm1500_vm2, %v2435_v33, -inf }
 0x6ca   : > { %2440 = vmax.xlane.f32.xlu2 %v2439_v23 }
 0x723   : > { %v2555_v34 = vpop.f32.mrf.mxu1 }
 0x724   : > { %v2586_v35 = vmul.f32 0.35355338, %v2555_v34 }
 0x726   : > { %v2588_v36 = vadd.f32 %v4929_v20, %v2586_v35 }
 0x728   : > { %v2590_v37 = vsel %vm1500_vm2, %v2588_v36, -inf }
 0x729   : > { %2591 = vmax.xlane.f32.xlu1 %v2590_v37 }
 0x72a   : > { %v2438_v38 = vpop.xlane.xlu0 %2437 }
 0x72b   : > { %v2442_v39 = vsub.f32 %v2434_v24, %v2438_v38  ;;  %v2717_v48 = vpop.f32.mrf.mxu1 }
 0x72c   : > { %v2748_v41 = vmul.f32 0.35355338, %v2717_v48 }
 0x72d   : > { %v2444_v4 = vmul.f32 1.442695, %v2442_v39 }
 0x72e   : > { %v2750_v43 = vadd.f32 %v4929_v20, %v2748_v41 }
 0x72f   : > { %4976 = vpow2.f32 %v2444_v4 }
 0x730   : > { %v2752_v46 = vsel %vm1500_vm2, %v2750_v43, -inf }
 0x731   : > { %2753 = vmax.xlane.f32.xlu0 %v2752_v46 }
 0x735   : > { %v5632_v53 = vpop.eup %4976 }
 0x736   : > { %v2448_v55 = vsel %vm1500_vm2, %v5632_v53, 0.0 }
 0x737   : > { %v2583_v51 = vpop.f32.mrf.mxu2  ;;  %2449 = vadd.xlane.f32.xlu2 %v2448_v55 }
 0x738   : > { %v2587_v54 = vmul.f32 0.35355338, %v2583_v51 }
 0x73a   : > { %v2589_v56 = vadd.f32 %v4930_v29, %v2587_v54 }
 0x73c   : > { %v2877_v57 = vpop.f32.mrf.mxu1  ;;  %v2593_v59 = vsel %vm1500_vm2, %v2589_v56, -inf }
 0x73d   : > { %v2908_v60 = vmul.f32 0.35355338, %v2877_v57  ;;  %v2441_v61 = vpop.xlane.xlu2 %2440  ;;  %2594 = vmax.xlane.f32.xlu1 %v2593_v59 }
 0x73e   : > { %v2443_v62 = vsub.f32 %v2435_v33, %v2441_v61 }
 0x73f   : > { %v2745_v32 = vpop.f32.mrf.mxu2  ;;  %v2910_v0 = vadd.f32 %v4929_v20, %v2908_v60  ;;  %v2364_v20 = vpop.f32.mrf.mxu0 }
 0x740   : > { %v2446_v1 = vmul.f32 1.442695, %v2443_v62  ;;  %v2749_v2 = vmul.f32 0.35355338, %v2745_v32  ;;  %v5655_v21 = vadd.f32 %v4931_v44, %v2364_v20 }
 0x741   : > { %v2912_v3 = vsel %vm1500_vm2, %v2910_v0, -inf }
 0x742   : > { %4978 = vpow2.f32 %v2446_v1  ;;  %2913 = vmax.xlane.f32.xlu2 %v2912_v3  ;;  %v2751_v5 = vadd.f32 %v4930_v29, %v2749_v2  ;;  %2525 = vmatpush.msra.mxu0 %v5655_v21 }
 0x744   : > { %v2755_v6 = vsel %vm1500_vm2, %v2751_v5, -inf }
 0x745   : > { %2756 = vmax.xlane.f32.xlu0 %v2755_v6 }
 0x748   : > { %v5639_v7 = vpop.eup %4978 }
 0x749   : > { %v2451_v8 = vsel %vm1500_vm2, %v5639_v7, 0.0 }
 0x74a   : > { %2452 = vadd.xlane.f32.xlu1 %v2451_v8  ;;  %v2905_v40 = vpop.f32.mrf.mxu2 }
 0x74b   : > { %v2909_v9 = vmul.f32 0.35355338, %v2905_v40 }
 0x74d   : > { %v5643_v12 = vadd.f32 %v4930_v29, %v2909_v9 }
 0x74f   : > { %v2915_v13 = vsel %vm1500_vm2, %v5643_v12, -inf }
 0x752   : > { %2916 = vmax.xlane.f32.xlu1 %v2915_v13 }
 0x75a   : > { %2639 = vrot.lane.b32.xlu2 %v5629_v49, %s5090_s12 }
 0x76b   : > { %2800 = vrot.lane.b32.xlu1 %v5629_v49, %s5089_s19 }
 0x79c   : > { %v2592_v14 = vpop.xlane.xlu1 %2591 }
 0x79d   : > { %v2596_v15 = vsub.f32 %v2588_v36, %v2592_v14 }
 0x79f   : > { %v2598_v50 = vmul.f32 1.442695, %v2596_v15 }
 0x7a1   : > { %4980 = vpow2.f32 %v2598_v50 }
 0x7a4   : > { %v2754_v16 = vpop.xlane.xlu0 %2753 }
 0x7a5   : > { %v2758_v17 = vsub.f32 %v2750_v43, %v2754_v16 }
 0x7a7   : > { %v5651_v11 = vpop.eup %4980  ;;  %v2760_v18 = vmul.f32 1.442695, %v2758_v17 }
 0x7a8   : > { %v2602_v19 = vsel %vm1500_vm2, %v5651_v11, 0.0 }
 0x7a9   : > { %4982 = vpow2.f32 %v2760_v18  ;;  %2603 = vadd.xlane.f32.xlu0 %v2602_v19 }
 0x7aa   : > { %v2450_v52 = vpop.xlane.xlu2 %2449 }
 0x7ab   : > { %4984 = vrcp.f32 %v2450_v52  ;;  %v2465_v31 = vand.u32 2147483648, %v2450_v52  ;;  %v2463_v35 = vand.u32 2147483647, %v2450_v52  ;;  %vm2459_vm3 = vweird.f32 %v2450_v52 }
 0x7ad   : > { %v2466_v48 = vor.u32 1.1754944e-38, %v2465_v31  ;;  %vm2464_vm5 = vcmp.eq.f32.partialorder %v2463_v35, 8.507059e+37 }
 0x7af   : > { %v5658_v25 = vpop.eup %4982 }
 0x7b0   : > { %v2595_v22 = vpop.xlane.xlu1 %2594  ;;  %v2764_v26 = vsel %vm1500_vm2, %v5658_v25, 0.0 }
 0x7b1   : > { %v2597_v24 = vsub.f32 %v2589_v56, %v2595_v22  ;;  %v4985_v27 = vpop.eup %4984  ;;  %2765 = vadd.xlane.f32.xlu2 %v2764_v26 }
 0x7b2   : > { %v2455_v28 = vmul.f32 %v4985_v27, %v2450_v52  ;;  %vm2460_vm0 = vweird.f32 %v4985_v27 }
 0x7b3   : > { %v2600_v47 = vmul.f32 1.442695, %v2597_v24  ;;  %vm2461_vm4 = vmor %vm2459_vm3, %vm2460_vm0 }
 0x7b4   : > { %v2456_v42 = vsub.f32 1.0, %v2455_v28 }
 0x7b5   : > { %4986 = vpow2.f32 %v2600_v47  ;;  %v2914_v29 = vpop.xlane.xlu2 %2913 }
 0x7b6   : > { %v2918_v30 = vsub.f32 %v2910_v0, %v2914_v29  ;;  %v2457_v34 = vmul.f32 %v4985_v27, %v2456_v42 }
 0x7b8   : > { %v2920_v33 = vmul.f32 1.442695, %v2918_v30  ;;  %v2757_v23 = vpop.xlane.xlu0 %2756  ;;  %v2458_v38 = vadd.f32 %v4985_v27, %v2457_v34 }
 0x7b9   : > { %v2759_v36 = vsub.f32 %v2751_v5, %v2757_v23 }
 0x7ba   : > { %4988 = vpow2.f32 %v2920_v33  ;;  %v2462_v4 = vsel %vm2461_vm4, %v4985_v27, %v2458_v38 }
 0x7bb   : > { %v5662_v37 = vpop.eup %4986  ;;  %v2762_v39 = vmul.f32 1.442695, %v2759_v36  ;;  %v2467_v44 = vsel %vm2464_vm5, %v2466_v48, %v2462_v4 }
 0x7bc   : > { %v2605_v41 = vsel %vm1500_vm2, %v5662_v37, 0.0  ;;  %v2468_v45 = vmul.f32 %v5632_v53, %v2467_v44 }
 0x7bd   : > { %4990 = vpow2.f32 %v2762_v39  ;;  %v2453_v43 = vpop.xlane.xlu1 %2452  ;;  %2606 = vadd.xlane.f32.xlu0 %v2605_v41  ;;  %v2640_v53 = vpop.permute.xlu2 %2639 }
 0x7be   : > { %4992 = vrcp.f32 %v2453_v43  ;;  %4787 = vmatmul.msk.f32.vlgmr.msrb.gmra.mxu3 %vm1500_vm2, %v2468_v45  ;;  %v2480_v62 = vand.u32 2147483648, %v2453_v43  ;;  %v2478_v1 = vand.u32 2147483647, %v2453_v43  ;;  %vm2474_vm9 = vweird.f32 %v2453_v43 }
 0x7bf   : > { %2660 = vmatpush.msra.mxu3 %v2640_v53 }
 0x7c0   : > { %v5667_v46 = vpop.eup %4988  ;;  %v2481_v3 = vor.u32 1.1754944e-38, %v2480_v62  ;;  %vm2479_vm11 = vcmp.eq.f32.partialorder %v2478_v1, 8.507059e+37 }
 0x7c1   : > { %v2924_v51 = vsel %vm1500_vm2, %v5667_v46, 0.0 }
 0x7c2   : > { %2925 = vadd.xlane.f32.xlu1 %v2924_v51 }
 0x7c3   : > { %v5672_v54 = vpop.eup %4990 }
 0x7c4   : > { %v4993_v55 = vpop.eup %4992  ;;  %v2767_v56 = vsel %vm1500_vm2, %v5672_v54, 0.0 }
 0x7c5   : > { %v2470_v57 = vmul.f32 %v4993_v55, %v2453_v43  ;;  %v2917_v59 = vpop.xlane.xlu1 %2916  ;;  %2768 = vadd.xlane.f32.xlu0 %v2767_v56  ;;  %vm2475_vm6 = vweird.f32 %v4993_v55 }
 0x7c6   : > { %v2919_v60 = vsub.f32 %v5643_v12, %v2917_v59  ;;  %vm2476_vm10 = vmor %vm2474_vm9, %vm2475_vm6 }
 0x7c7   : > { %v2471_v61 = vsub.f32 1.0, %v2470_v57 }
 0x7c8   : > { %v2922_v32 = vmul.f32 1.442695, %v2919_v60 }
 0x7c9   : > { %v2472_v0 = vmul.f32 %v4993_v55, %v2471_v61  ;;  %2960 = vrot.lane.b32.xlu2 %v5629_v49, %s5091_s7 }
 0x7ca   : > { %4994 = vpow2.f32 %v2922_v32 }
 0x7cb   : > { %v2473_v2 = vadd.f32 %v4993_v55, %v2472_v0 }
 0x7cd   : > { %v2477_v5 = vsel %vm2476_vm10, %v4993_v55, %v2473_v2 }
 0x7ce   : > { %v2482_v6 = vsel %vm2479_vm11, %v2481_v3, %v2477_v5 }
 0x7cf   : > { %v2483_v8 = vmul.f32 %v5639_v7, %v2482_v6 }
 0x7d0   : > { %v5680_v40 = vpop.eup %4994 }
 0x7d1   : > { %4788 = vmatmul.msk.f32.vlgmr.msra.gmra.mxu0 %vm1500_vm2, %v2483_v8  ;;  %v2927_v9 = vsel %vm1500_vm2, %v5680_v40, 0.0  ;;  %2986 = vrot.lane.b32.xlu2 %v5655_v21, %s5091_s7 }
 0x7d2   : > { %2928 = vadd.xlane.f32.xlu0 %v2927_v9 }
 0x7db   : > { %2826 = vrot.lane.b32.xlu1 %v5655_v21, %s5089_s19 }
 0x7dd   : > { %v2801_v49 = vpop.permute.xlu1 %2800 }
 0x7de   : > { %2821 = vmatpush.msrb.mxu3 %v2801_v49 }
 0x7e6   : > { %2666 = vrot.lane.b32.xlu0 %v5655_v21, %s5090_s12 }
 0x81c   : > { %v2604_v7 = vpop.xlane.xlu0 %2603 }
 0x81d   : > { %4996 = vrcp.f32 %v2604_v7  ;;  %v2619_v50 = vand.u32 2147483648, %v2604_v7  ;;  %v2617_v17 = vand.u32 2147483647, %v2604_v7  ;;  %vm2613_vm13 = vweird.f32 %v2604_v7 }
 0x81f   : > { %v2620_v52 = vor.u32 1.1754944e-38, %v2619_v50  ;;  %vm2618_vm15 = vcmp.eq.f32.partialorder %v2617_v17, 8.507059e+37 }
 0x823   : > { %v4997_v12 = vpop.eup %4996 }
 0x824   : > { %v2609_v13 = vmul.f32 %v4997_v12, %v2604_v7  ;;  %v2766_v14 = vpop.xlane.xlu2 %2765  ;;  %vm2614_vm12 = vweird.f32 %v4997_v12 }
 0x825   : > { %4998 = vrcp.f32 %v2766_v14  ;;  %vm2615_vm14 = vmor %vm2613_vm13, %vm2614_vm12  ;;  %v2781_v47 = vand.u32 2147483648, %v2766_v14  ;;  %v2779_v28 = vand.u32 2147483647, %v2766_v14  ;;  %vm2775_vm3 = vweird.f32 %v2766_v14 }
 0x826   : > { %v2610_v15 = vsub.f32 1.0, %v2609_v13 }
 0x827   : > { %v2782_v33 = vor.u32 1.1754944e-38, %v2781_v47  ;;  %vm2780_vm5 = vcmp.eq.f32.partialorder %v2779_v28, 8.507059e+37 }
 0x828   : > { %v2611_v16 = vmul.f32 %v4997_v12, %v2610_v15 }
 0x82a   : > { %v2612_v18 = vadd.f32 %v4997_v12, %v2611_v16 }
 0x82b   : > { %v4999_v19 = vpop.eup %4998 }
 0x82c   : > { %v2616_v20 = vsel %vm2615_vm14, %v4997_v12, %v2612_v18  ;;  %v2771_v21 = vmul.f32 %v4999_v19, %v2766_v14  ;;  %vm2776_vm0 = vweird.f32 %v4999_v19  ;;  %v2961_v29 = vpop.permute.xlu2 %2960 }
 0x82d   : > { %v2621_v22 = vsel %vm2618_vm15, %v2620_v52, %v2616_v20  ;;  %vm2777_vm4 = vmor %vm2775_vm3, %vm2776_vm0 }
 0x82e   : > { %v2772_v24 = vsub.f32 1.0, %v2771_v21  ;;  %v2622_v26 = vmul.f32 %v5651_v11, %v2621_v22 }
 0x830   : > { %v2773_v27 = vmul.f32 %v4999_v19, %v2772_v24  ;;  %v2607_v30 = vpop.xlane.xlu0 %2606  ;;  %4793 = vmatmul.msk.f32.vlgmr.msra.gmra.mxu3 %vm1500_vm2, %v2622_v26 }
 0x831   : > { %2981 = vmatpush.msra.mxu3 %v2961_v29  ;;  %v2634_v1 = vand.u32 2147483648, %v2607_v30  ;;  %vm2628_vm13 = vweird.f32 %v2607_v30  ;;  %v2632_v2 = vand.u32 2147483647, %v2607_v30 }
 0x832   : > { %v2774_v42 = vadd.f32 %v4999_v19, %v2773_v27 }
 0x833   : > { %v2635_v8 = vor.u32 1.1754944e-38, %v2634_v1  ;;  %vm2633_vm15 = vcmp.eq.f32.partialorder %v2632_v2, 8.507059e+37 }
 0x834   : > { %v2778_v23 = vsel %vm2777_vm4, %v4999_v19, %v2774_v42  ;;  %v2987_v18 = vpop.permute.xlu2 %2986 }
 0x835   : > { %v2926_v31 = vpop.xlane.xlu1 %2925  ;;  %v2783_v34 = vsel %vm2780_vm5, %v2782_v33, %v2778_v23  ;;  %v2372_v33 = vld [vmem:[%s5319_s24 + $0x18] sm:$0xff]  ;;  %v2371_v23 = vld [vmem:[%s5319_s24 + $0x10] sm:$0xff] }
 0x836   : > { %5000 = vrcp.f32 %v2926_v31  ;;  %v2784_v11 = vmul.f32 %v5658_v25, %v2783_v34  ;;  %v2941_v41 = vand.u32 2147483648, %v2926_v31  ;;  %v2939_v43 = vand.u32 2147483647, %v2926_v31  ;;  %3063 = vmatpush.msrb.mxu1 %v2372_v33  ;;  %v2370_v34 = vld [vmem:[%s5319_s24 + $0x8] sm:$0xff] }
 0x837   : > { %5002 = vrcp.f32 %v2607_v30  ;;  %vm2935_vm9 = vweird.f32 %v2926_v31 }
 0x838   : > { %4799 = vmatmul.msk.f32.vlgmr.msrb.gmra.mxu3 %vm1500_vm2, %v2784_v11  ;;  %v2769_v38 = vpop.xlane.xlu0 %2768  ;;  %v2942_v51 = vor.u32 1.1754944e-38, %v2941_v41  ;;  %vm2940_vm11 = vcmp.eq.f32.partialorder %v2939_v43, 8.507059e+37  ;;  %3064 = vmatpush.msrb.mxu1 %v2371_v23  ;;  %v2369_v11 = vld [vmem:[%s5319_s24] sm:$0xff] }
 0x839   : > { %5004 = vrcp.f32 %v2769_v38  ;;  %v2796_v7 = vand.u32 2147483648, %v2769_v38  ;;  %vm2790_vm3 = vweird.f32 %v2769_v38  ;;  %v2794_v12 = vand.u32 2147483647, %v2769_v38 }
 0x83a   : > { %3065 = vmatpush.msrb.mxu1 %v2370_v34 }
 0x83b   : > { %v2797_v17 = vor.u32 1.1754944e-38, %v2796_v7  ;;  %vm2795_vm5 = vcmp.eq.f32.partialorder %v2794_v12, 8.507059e+37  ;;  %v3151_v7 = vld [vmem:[%s5325_s14 + $0x190] sm:$0xff]  ;;  %v3152_v12 = vld [vmem:[%s5325_s14 + $0x198] sm:$0xff] }
 0x83c   : > { %v5001_v35 = vpop.eup %5000  ;;  %3066 = vmatpush.msrb.mxu1 %v2369_v11  ;;  %v3201_v11 = vld [vmem:[%s5333_s3 + $0x178] sm:$0xff] }
 0x83d   : > { %v2931_v36 = vmul.f32 %v5001_v35, %v2926_v31  ;;  %v5003_v39 = vpop.eup %5002  ;;  %vm2936_vm6 = vweird.f32 %v5001_v35 }
 0x83e   : > { %v2624_v44 = vmul.f32 %v5003_v39, %v2607_v30  ;;  %vm2937_vm10 = vmor %vm2935_vm9, %vm2936_vm6  ;;  %vm2629_vm12 = vweird.f32 %v5003_v39  ;;  %3314 = vmatpush.msra.mxu1 %v3152_v12 }
 0x83f   : > { %v2932_v48 = vsub.f32 1.0, %v2931_v36  ;;  %v5005_v59 = vpop.eup %5004  ;;  %vm2630_vm14 = vmor %vm2628_vm13, %vm2629_vm12 }
 0x840   : > { %v2625_v25 = vsub.f32 1.0, %v2624_v44  ;;  %v2786_v61 = vmul.f32 %v5005_v59, %v2769_v38  ;;  %vm2791_vm0 = vweird.f32 %v5005_v59 }
 0x841   : > { %v2933_v4 = vmul.f32 %v5001_v35, %v2932_v48  ;;  %vm2792_vm4 = vmor %vm2790_vm3, %vm2791_vm0  ;;  %v2504_v27 = vpop.f32.mrf.mxu3 }
 0x842   : > { %v2626_v53 = vmul.f32 %v5003_v39, %v2625_v25  ;;  %v2787_v32 = vsub.f32 1.0, %v2786_v61  ;;  %v4932_v25 = vld [vmem:[%s1344_s30] ss:$0 sm:$0xff] }
 0x843   : > { %v2934_v45 = vadd.f32 %v5001_v35, %v2933_v4 }
 0x844   : > { %v2627_v62 = vadd.f32 %v5003_v39, %v2626_v53  ;;  %v2788_v5 = vmul.f32 %v5005_v59, %v2787_v32 }
 0x845   : > { %v2938_v55 = vsel %vm2937_vm10, %v5001_v35, %v2934_v45  ;;  %v2929_v57 = vpop.xlane.xlu0 %2928 }
 0x846   : > { %v2943_v56 = vsel %vm2940_vm11, %v2942_v51, %v2938_v55  ;;  %5006 = vrcp.f32 %v2929_v57  ;;  %v2631_v3 = vsel %vm2630_vm14, %v5003_v39, %v2627_v62  ;;  %v2956_v20 = vand.u32 2147483648, %v2929_v57 }
 0x847   : > { %v2944_v60 = vmul.f32 %v5667_v46, %v2943_v56  ;;  %v2636_v9 = vsel %vm2633_vm15, %v2635_v8, %v2631_v3  ;;  %v2789_v46 = vadd.f32 %v5005_v59, %v2788_v5  ;;  %vm2950_vm9 = vweird.f32 %v2929_v57 }
 0x848   : > { %v2637_v15 = vmul.f32 %v5662_v37, %v2636_v9  ;;  %v2954_v21 = vand.u32 2147483647, %v2929_v57  ;;  %v2957_v24 = vor.u32 1.1754944e-38, %v2956_v20  ;;  %v3138_v20 = vld [vmem:[%s5325_s14 + $0x8] sm:$0xff] }
 0x849   : > { %4805 = vmatmul.msk.f32.vlgmr.msra.gmra.mxu3 %vm1500_vm2, %v2944_v60  ;;  %v2793_v50 = vsel %vm2792_vm4, %v5005_v59, %v2789_v46  ;;  %v3149_v46 = vld [vmem:[%s5325_s14 + $0x180] sm:$0xff] }
 0x84a   : > { %v2798_v19 = vsel %vm2795_vm5, %v2797_v17, %v2793_v50  ;;  %vm2955_vm11 = vcmp.eq.f32.partialorder %v2954_v21, 8.507059e+37  ;;  %3245 = vmatpush.msra.mxu2 %v3149_v46  ;;  %v3148_v50 = vld [vmem:[%s5325_s14 + $0x118] sm:$0xff]  ;;  %v3142_v17 = vld [vmem:[%s5325_s14 + $0x88] sm:$0xff]  ;;  %v3139_v21 = vld [vmem:[%s5325_s14 + $0x10] sm:$0xff] }
 0x84b   : > { %v2799_v22 = vmul.f32 %v5672_v54, %v2798_v19  ;;  %3315 = vmatpush.msra.mxu1 %v3148_v50  ;;  %v3144_v19 = vld [vmem:[%s5325_s14 + $0x98] sm:$0xff]  ;;  %v3178_v50 = vld [vmem:[%s5333_s3 + $0xc0] sm:$0xff] }
 0x84c   : > { %v5007_v0 = vpop.eup %5006 }
 0x84d   : > { %v2946_v6 = vmul.f32 %v5007_v0, %v2929_v57  ;;  %v2827_v14 = vpop.permute.xlu1 %2826  ;;  %vm2951_vm6 = vweird.f32 %v5007_v0  ;;  %3316 = vmatpush.msra.mxu1 %v3144_v19  ;;  %v3161_v19 = vld [vmem:[%s5333_s3 + $0x38] sm:$0xff] }
 0x84e   : > { %vm2952_vm10 = vmor %vm2950_vm9, %vm2951_vm6  ;;  %v2527_v30 = vpop.f32.mrf.mxu0 }
 0x84f   : > { %v2947_v49 = vsub.f32 1.0, %v2946_v6 }
 0x851   : > { %v2948_v16 = vmul.f32 %v5007_v0, %v2947_v49  ;;  %v3150_v49 = vld [vmem:[%s5325_s14 + $0x188] sm:$0xff] }
 0x852   : > { %3268 = vmatpush.msrb.mxu3 %v3150_v49  ;;  %v3163_v49 = vld [vmem:[%s5333_s3 + $0x48] sm:$0xff] }
 0x853   : > { %v2949_v52 = vadd.f32 %v5007_v0, %v2948_v16  ;;  %v3141_v16 = vld [vmem:[%s5325_s14 + $0x80] sm:$0xff] }
 0x855   : > { %v2953_v37 = vsel %vm2952_vm10, %v5007_v0, %v2949_v52  ;;  %v3137_v52 = vld [vmem:[%s5325_s14] sm:$0xff] }
 0x856   : > { %v2958_v47 = vsel %vm2955_vm11, %v2957_v24, %v2953_v37 }
 0x857   : > { %v2959_v26 = vmul.f32 %v5680_v40, %v2958_v47 }
 0x858   : > { %v2667_v13 = vpop.permute.xlu0 %2666 }
 0x859   : > { %2687 = vmatpush.msrb.mxu0 %v2667_v13  ;;  %v3145_v13 = vld [vmem:[%s5325_s14 + $0x100] sm:$0xff] }
 0x85a   : > { %4794 = vmatmul.msk.f32.vlgmr.msrb.gmra.mxu0 %vm1500_vm2, %v2637_v15  ;;  %v3147_v15 = vld [vmem:[%s5325_s14 + $0x110] sm:$0xff]  ;;  %3246 = vmatpush.msra.mxu2 %v3145_v13  ;;  %v3193_v13 = vld [vmem:[%s5333_s3 + $0x138] sm:$0xff] }
 0x85b   : > { %2847 = vmatpush.msra.mxu0 %v2827_v14  ;;  %v3146_v14 = vld [vmem:[%s5325_s14 + $0x108] sm:$0xff] }
 0x85c   : > { %3269 = vmatpush.msrb.mxu3 %v3146_v14  ;;  %3247 = vmatpush.msra.mxu2 %v3141_v16  ;;  %v3209_v14 = vld [vmem:[%s5333_s3 + $0x1b8] sm:$0xff] }
 0x85d   : > { %3007 = vmatpush.msrb.mxu0 %v2987_v18  ;;  %v3143_v18 = vld [vmem:[%s5325_s14 + $0x90] sm:$0xff] }
 0x85e   : > { %3270 = vmatpush.msrb.mxu3 %v3142_v17  ;;  %3248 = vmatpush.msra.mxu2 %v3137_v52  ;;  %v3192_v17 = vld [vmem:[%s5333_s3 + $0x130] sm:$0xff]  ;;  %v3177_v52 = vld [vmem:[%s5333_s3 + $0xb8] sm:$0xff] }
 0x860   : > { %3271 = vmatpush.msrb.mxu3 %v3138_v20 }
 0x862   : > { %4800 = vmatmul.msk.f32.vlgmr.msra.gmra.mxu0 %vm1500_vm2, %v2799_v22  ;;  %v3140_v22 = vld [vmem:[%s5325_s14 + $0x18] sm:$0xff] }
 0x863   : > { %3291 = vmatpush.msra.mxu0 %v3151_v7  ;;  %3317 = vmatpush.msra.mxu1 %v3140_v22  ;;  %v3179_v7 = vld [vmem:[%s5333_s3 + $0xc8] sm:$0xff] }
 0x864   : > { %v3207_v22 = vld [vmem:[%s5333_s3 + $0x1a8] sm:$0xff] }
 0x865   : > { %3292 = vmatpush.msra.mxu0 %v3147_v15  ;;  %v3162_v15 = vld [vmem:[%s5333_s3 + $0x40] sm:$0xff] }
 0x867   : > { %3293 = vmatpush.msra.mxu0 %v3143_v18  ;;  %v3208_v18 = vld [vmem:[%s5333_s3 + $0x1b0] sm:$0xff] }
 0x869   : > { %3294 = vmatpush.msra.mxu0 %v3139_v21  ;;  %v3191_v21 = vld [vmem:[%s5333_s3 + $0x128] sm:$0xff] }
 0x86a   : > { %4806 = vmatmul.msk.f32.vlgmr.msrb.gmra.mxu0 %vm1500_vm2, %v2959_v26 }
 0x86b   : > { %3379 = vmatpush.msrb.mxu0 %v3201_v11  ;;  %v3188_v11 = vld [vmem:[%s5333_s3 + $0x110] sm:$0xff] }
 0x8b3   : > { %v2662_v28 = vpop.f32.mrf.mxu3 }
 0x8b4   : > { %3014 = vrot.lane.b32.xlu1 %v2662_v28, %s5092_s23 }
 0x8bb   : > { %v2823_v29 = vpop.f32.mrf.mxu3 }
 0x8bc   : > { %3022 = vrot.lane.b32.xlu0 %v2823_v29, %s5093_s13 }
 0x8cc   : > { %v2983_v54 = vpop.f32.mrf.mxu3 }
 0x8cd   : > { %3030 = vrot.lane.b32.xlu2 %v2983_v54, %s5094_s21 }
 0x8d7   : > { %v2689_v42 = vpop.f32.mrf.mxu0 }
 0x8d8   : > { %3016 = vrot.lane.b32.xlu1 %v2689_v42, %s5092_s23  ;;  %v5756_v42 = vld [vmem:[%s1370_s27] ss:$0 sm:$0xff] }
 0x8df   : > { %v2849_v40 = vpop.f32.mrf.mxu0 }
 0x8e0   : > { %3024 = vrot.lane.b32.xlu0 %v2849_v40, %s5093_s13 }
 0x8e7   : > { %v3009_v31 = vpop.f32.mrf.mxu0 }
 0x8e8   : > { %3032 = vrot.lane.b32.xlu2 %v3009_v31, %s5094_s21  ;;  %v5761_v31 = vld [vmem:[%s1373_s9] ss:$0 sm:$0xff] }
 0x926   : > { %v3015_v35 = vpop.permute.xlu1 %3014 }
 0x927   : > { %v3036_v36 = vsel %vm1500_vm2, %v2504_v27, %v3015_v35  ;;  %v3031_v39 = vpop.permute.xlu2 %3030  ;;  %v3217_v35 = vld [vmem:[%s5333_s3 + $0x1f8] sm:$0xff] }
 0x92e   : > { %v3023_v38 = vpop.permute.xlu0 %3022 }
 0x92f   : > { %v3038_v48 = vsel %vm2159_vm7, %v3036_v36, %v3023_v38  ;;  %v3200_v36 = vld [vmem:[%s5333_s3 + $0x170] sm:$0xff] }
 0x930   : > { %v3040_v41 = vsel %vm2162_vm8, %v3038_v48, %v3031_v39  ;;  %v3216_v38 = vld [vmem:[%s5333_s3 + $0x1f0] sm:$0xff]  ;;  %v3199_v39 = vld [vmem:[%s5333_s3 + $0x168] sm:$0xff]  ;;  %3380 = vmatpush.msrb.mxu0 %v3200_v36  ;;  %v3174_v36 = vld [vmem:[%s5333_s3 + $0xa0] sm:$0xff] }
 0x931   : > { %4807 = vmatmul.msk.f32.vlgmr.msrb.gmra.mxu1 %vm1401_vm1, %v3040_v41  ;;  %v3215_v41 = vld [vmem:[%s5333_s3 + $0x1e8] sm:$0xff] }
 0x932   : > { %3402 = vmatpush.msrb.mxu1 %v3217_v35  ;;  %3381 = vmatpush.msrb.mxu0 %v3199_v39  ;;  %v3158_v35 = vld [vmem:[%s5333_s3 + $0x20] sm:$0xff]  ;;  %v3203_v39 = vld [vmem:[%s5333_s3 + $0x188] sm:$0xff] }
 0x934   : > { %3403 = vmatpush.msrb.mxu1 %v3216_v38  ;;  %v3187_v38 = vld [vmem:[%s5333_s3 + $0x108] sm:$0xff] }
 0x936   : > { %3404 = vmatpush.msrb.mxu1 %v3215_v41  ;;  %v3173_v41 = vld [vmem:[%s5333_s3 + $0x98] sm:$0xff] }
 0x942   : > { %v3033_v45 = vpop.permute.xlu2 %3032 }
 0x94a   : > { %v3017_v4 = vpop.permute.xlu1 %3016 }
 0x94b   : > { %v3037_v43 = vsel %vm1500_vm2, %v2527_v30, %v3017_v4  ;;  %v3169_v4 = vld [vmem:[%s5333_s3 + $0x78] sm:$0xff] }
 0x94c   : > { %3333 = vmatpush.msrb.mxu2 %v3169_v4  ;;  %v3186_v4 = vld [vmem:[%s5333_s3 + $0x100] sm:$0xff] }
 0x952   : > { %v3025_v44 = vpop.permute.xlu0 %3024 }
 0x953   : > { %v3039_v51 = vsel %vm2159_vm7, %v3037_v43, %v3025_v44  ;;  %v3185_v43 = vld [vmem:[%s5333_s3 + $0xf8] sm:$0xff] }
 0x954   : > { %v3041_v55 = vsel %vm2162_vm8, %v3039_v51, %v3033_v45  ;;  %v3168_v45 = vld [vmem:[%s5333_s3 + $0x70] sm:$0xff]  ;;  %3356 = vmatpush.msra.mxu3 %v3185_v43  ;;  %v3202_v43 = vld [vmem:[%s5333_s3 + $0x180] sm:$0xff] }
 0x955   : > { %4808 = vmatmul.msk.f32.gmra.mxu1 %vm1401_vm1, %v3041_v55  ;;  %v3184_v51 = vld [vmem:[%s5333_s3 + $0xf0] sm:$0xff]  ;;  %v3198_v55 = vld [vmem:[%s5333_s3 + $0x160] sm:$0xff]  ;;  %3334 = vmatpush.msrb.mxu2 %v3168_v45 }
 0x956   : > { %3357 = vmatpush.msra.mxu3 %v3184_v51  ;;  %3382 = vmatpush.msrb.mxu0 %v3198_v55  ;;  %v3172_v45 = vld [vmem:[%s5333_s3 + $0x90] sm:$0xff]  ;;  %v3155_v51 = vld [vmem:[%s5333_s3 + $0x8] sm:$0xff] }
 0x957   : > { %v3171_v55 = vld [vmem:[%s5333_s3 + $0x88] sm:$0xff] }
 0x9ae   : > { %v3068_v56 = vpop.f32.mrf.mxu1 }
 0x9af   : > { %v3069_v57 = vadd.f32 %v4932_v25, %v3068_v56 }
 0x9b1   : > { %v3074_v59 = vadd.f32 %v3069_v57, %v5570_v58  ;;  %v3167_v57 = vld [vmem:[%s5333_s3 + $0x68] sm:$0xff] }
 0x9b2   : > { %3335 = vmatpush.msrb.mxu2 %v3167_v57  ;;  %v5859_v57 = vld [vmem:[%s5329_s6] sm:$0xf] }
 0x9b3   : > { %v3078_v60 = vsel %vm1401_vm1, %v3074_v59, 0.0 }
 0x9b4   : > { %3079 = vadd.xlane.f32.xlu1 %v3078_v60  ;;  %v3197_v60 = vld [vmem:[%s5333_s3 + $0x158] sm:$0xff] }
 0x9b5   : > { %3383 = vmatpush.msrb.mxu0 %v3197_v60  ;;  %v3222_v60 = vperm.slane %v5859_v57, 3 }
 0x9d2   : > { %v3071_v53 = vpop.f32.mrf.mxu1 }
 0x9d3   : > { %v3072_v61 = vadd.f32 %v4932_v25, %v3071_v53  ;;  %v3214_v25 = vld [vmem:[%s5333_s3 + $0x1e0] sm:$0xff]  ;;  %v3213_v53 = vld [vmem:[%s5333_s3 + $0x1d8] sm:$0xff] }
 0x9d4   : > { %3405 = vmatpush.msrb.mxu1 %v3214_v25  ;;  %v3154_v25 = vld [vmem:[%s5333_s3] sm:$0xff] }
 0x9d5   : > { %v3075_v62 = vadd.f32 %v3072_v61, %v5574_v63  ;;  %v3166_v61 = vld [vmem:[%s5333_s3 + $0x60] sm:$0xff] }
 0x9d6   : > { %3406 = vmatpush.msrb.mxu1 %v3213_v53  ;;  %3336 = vmatpush.msrb.mxu2 %v3166_v61 }
 0x9d7   : > { %v3081_v32 = vsel %vm1401_vm1, %v3075_v62, 0.0 }
 0x9d8   : > { %3082 = vadd.xlane.f32.xlu0 %v3081_v32  ;;  %v3196_v32 = vld [vmem:[%s5333_s3 + $0x150] sm:$0xff] }
 0x9d9   : > { %3384 = vmatpush.msrb.mxu0 %v3196_v32 }
 0xa27   : > { %v3080_v0 = vpop.xlane.xlu1 %3079 }
 0xa28   : > { %v3084_v1 = vmul.f32 %v3080_v0, %v5538_v10  ;;  %v3212_v0 = vld [vmem:[%s5333_s3 + $0x1d0] sm:$0xff] }
 0xa29   : > { %3407 = vmatpush.msrb.mxu1 %v3212_v0  ;;  %v3219_v0 = vperm.slane %v5859_v57, 0 }
 0xa2a   : > { %v3086_v2 = vsub.f32 %v3074_v59, %v3084_v1  ;;  %v3183_v59 = vld [vmem:[%s5333_s3 + $0xe8] sm:$0xff]  ;;  %v3165_v1 = vld [vmem:[%s5333_s3 + $0x58] sm:$0xff] }
 0xa2b   : > { %3358 = vmatpush.msra.mxu3 %v3183_v59  ;;  %3337 = vmatpush.msrb.mxu2 %v3165_v1  ;;  %v3221_v59 = vperm.slane %v5859_v57, 2  ;;  %v3220_v1 = vperm.slane %v5859_v57, 1  ;;  %v3486_v57 = vld [vmem:[%s5333_s3 + $0x350] sm:$0xff] }
 0xa2c   : > { %v3088_v3 = vmul.f32 %v3086_v2, %v3086_v2 }
 0xa2e   : > { %v3090_v58 = vsel %vm1401_vm1, %v3088_v3, 0.0  ;;  %v3195_v3 = vld [vmem:[%s5333_s3 + $0x148] sm:$0xff] }
 0xa2f   : > { %3091 = vadd.xlane.f32.xlu2 %v3090_v58  ;;  %v3211_v58 = vld [vmem:[%s5333_s3 + $0x1c8] sm:$0xff]  ;;  %3385 = vmatpush.msrb.mxu0 %v3195_v3 }
 0xa30   : > { %3408 = vmatpush.msrb.mxu1 %v3211_v58 }
 0xa4b   : > { %v3083_v5 = vpop.xlane.xlu0 %3082 }
 0xa4c   : > { %v3085_v63 = vmul.f32 %v3083_v5, %v5538_v10  ;;  %v3164_v5 = vld [vmem:[%s5333_s3 + $0x50] sm:$0xff] }
 0xa4d   : > { %3338 = vmatpush.msrb.mxu2 %v3164_v5 }
 0xa4e   : > { %v5731_v6 = vsub.f32 %v3075_v62, %v3085_v63  ;;  %v3182_v62 = vld [vmem:[%s5333_s3 + $0xe0] sm:$0xff]  ;;  %v3180_v63 = vld [vmem:[%s5333_s3 + $0xd0] sm:$0xff] }
 0xa4f   : > { %3359 = vmatpush.msra.mxu3 %v3182_v62  ;;  %3339 = vmatpush.msrb.mxu2 %v3163_v49  ;;  %v3441_v49 = vld [vmem:[%s5325_s14 + $0x1b0] sm:$0xff] }
 0xa50   : > { %v3089_v8 = vmul.f32 %v5731_v6, %v5731_v6 }
 0xa51   : > { %3340 = vmatpush.msrb.mxu2 %v3162_v15  ;;  %v3434_v15 = vld [vmem:[%s5325_s14 + $0xb8] sm:$0xff] }
 0xa52   : > { %v3093_v9 = vsel %vm1401_vm1, %v3089_v8, 0.0  ;;  %v3194_v8 = vld [vmem:[%s5333_s3 + $0x140] sm:$0xff] }
 0xa53   : > { %3094 = vadd.xlane.f32.xlu1 %v3093_v9  ;;  %v3210_v9 = vld [vmem:[%s5333_s3 + $0x1c0] sm:$0xff]  ;;  %3386 = vmatpush.msrb.mxu0 %v3194_v8 }
 0xa54   : > { %3409 = vmatpush.msrb.mxu1 %v3210_v9  ;;  %3341 = vmatpush.msrb.mxu2 %v3161_v19  ;;  %v3435_v19 = vld [vmem:[%s5325_s14 + $0x120] sm:$0xff] }
 0xa55   : > { %3387 = vmatpush.msrb.mxu0 %v3193_v13  ;;  %v3438_v13 = vld [vmem:[%s5325_s14 + $0x138] sm:$0xff] }
 0xa56   : > { %3410 = vmatpush.msrb.mxu1 %v3209_v14  ;;  %v3433_v14 = vld [vmem:[%s5325_s14 + $0xb0] sm:$0xff] }
 0xa57   : > { %3388 = vmatpush.msrb.mxu0 %v3192_v17  ;;  %v3429_v17 = vld [vmem:[%s5325_s14 + $0x30] sm:$0xff] }
 0xa58   : > { %3411 = vmatpush.msrb.mxu1 %v3208_v18  ;;  %v3430_v18 = vld [vmem:[%s5325_s14 + $0x38] sm:$0xff] }
 0xa59   : > { %3389 = vmatpush.msrb.mxu0 %v3191_v21  ;;  %v3432_v21 = vld [vmem:[%s5325_s14 + $0xa8] sm:$0xff] }
 0xa5a   : > { %3412 = vmatpush.msrb.mxu1 %v3207_v22  ;;  %v3427_v22 = vld [vmem:[%s5325_s14 + $0x20] sm:$0xff] }
 0xaa2   : > { %v3092_v37 = vpop.xlane.xlu2 %3091 }
 0xaa3   : > { %v3096_v24 = vmul.f32 %v3092_v37, %v5538_v10  ;;  %v3160_v37 = vld [vmem:[%s5333_s3 + $0x30] sm:$0xff] }
 0xaa4   : > { %3342 = vmatpush.msrb.mxu2 %v3160_v37  ;;  %v3428_v37 = vld [vmem:[%s5325_s14 + $0x28] sm:$0xff] }
 0xaa5   : > { %v3098_v47 = vadd.f32 1e-05, %v3096_v24  ;;  %v3176_v24 = vld [vmem:[%s5333_s3 + $0xb0] sm:$0xff] }
 0xaa7   : > { %5008 = vrsqrt.f32 %v3098_v47  ;;  %vm3106_vm7 = vweird.f32 %v3098_v47 }
 0xaad   : > { %v5009_v26 = vpop.eup %5008 }
 0xaae   : > { %v3101_v27 = vmul.f32 %v5009_v26, %v3098_v47  ;;  %vm3107_vm2 = vweird.f32 %v5009_v26 }
 0xaaf   : > { %vm3108_vm8 = vmor %vm3106_vm7, %vm3107_vm2 }
 0xab0   : > { %v3102_v28 = vmul.f32 %v5009_v26, %v3101_v27  ;;  %v3206_v27 = vld [vmem:[%s5333_s3 + $0x1a0] sm:$0xff] }
 0xab1   : > { %3413 = vmatpush.msrb.mxu1 %v3206_v27 }
 0xab2   : > { %v3103_v29 = vmul.f32 0.5, %v3102_v28 }
 0xab4   : > { %v3104_v54 = vsub.f32 1.5, %v3103_v29  ;;  %v3189_v29 = vld [vmem:[%s5333_s3 + $0x118] sm:$0xff] }
 0xab6   : > { %v3105_v30 = vmul.f32 %v5009_v26, %v3104_v54  ;;  %v3205_v54 = vld [vmem:[%s5333_s3 + $0x198] sm:$0xff] }
 0xab7   : > { %3414 = vmatpush.msrb.mxu1 %v3205_v54 }
 0xab8   : > { %v3109_v40 = vsel %vm3108_vm8, %v5009_v26, %v3105_v30  ;;  %v3190_v26 = vld [vmem:[%s5333_s3 + $0x120] sm:$0xff] }
 0xab9   : > { %v3120_v33 = vmul.f32 %v3109_v40, %v3086_v2  ;;  %v3181_v2 = vld [vmem:[%s5333_s3 + $0xd8] sm:$0xff]  ;;  %3390 = vmatpush.msrb.mxu0 %v3190_v26 }
 0xaba   : > { %3360 = vmatpush.msra.mxu3 %v3181_v2 }
 0xabb   : > { %v3125_v23 = vmul.f32 %v5756_v42, %v3120_v33  ;;  %3391 = vmatpush.msrb.mxu0 %v3189_v29 }
 0xabc   : > { %3361 = vmatpush.msra.mxu3 %v3180_v63 }
 0xabd   : > { %v5765_v34 = vadd.f32 %v5761_v31, %v3125_v23  ;;  %3392 = vmatpush.msrb.mxu0 %v3188_v11  ;;  %v3491_v11 = vld [vmem:[%s5333_s3 + $0x378] sm:$0xff] }
 0xabe   : > { %3362 = vmatpush.msra.mxu3 %v3179_v7  ;;  %v3442_v7 = vld [vmem:[%s5325_s14 + $0x1b8] sm:$0xff] }
 0xabf   : > { %4809 = vmatmul.msk.f32.vlgmr.msra.gmra.mxu2 %vm1401_vm1, %v5765_v34  ;;  %4811 = vmatmul.msk.f32.vlgmr.msrb.gmra.mxu3 %vm1401_vm1, %v5765_v34 }
 0xac0   : > { %4813 = vmatmul.msk.f32.vlgmr.msra.gmra.mxu0 %vm1401_vm1, %v5765_v34  ;;  %4815 = vmatmul.msk.f32.vlgmr.msra.gmra.mxu1 %vm1401_vm1, %v5765_v34 }
 0xac1   : > { %3363 = vmatpush.msra.mxu3 %v3178_v50  ;;  %3393 = vmatpush.msrb.mxu0 %v3187_v38  ;;  %v3439_v50 = vld [vmem:[%s5325_s14 + $0x1a0] sm:$0xff]  ;;  %v3489_v38 = vld [vmem:[%s5333_s3 + $0x368] sm:$0xff] }
 0xac3   : > { %3364 = vmatpush.msra.mxu3 %v3177_v52  ;;  %3394 = vmatpush.msrb.mxu0 %v3186_v4  ;;  %v3436_v52 = vld [vmem:[%s5325_s14 + $0x128] sm:$0xff]  ;;  %v3459_v4 = vld [vmem:[%s5333_s3 + $0x278] sm:$0xff] }
 0xac5   : > { %3365 = vmatpush.msra.mxu3 %v3176_v24  ;;  %3575 = vmatpush.msra.mxu0 %v3441_v49  ;;  %v3470_v49 = vld [vmem:[%s5333_s3 + $0x2d0] sm:$0xff] }
 0xac6   : > { %v3095_v48 = vpop.xlane.xlu1 %3094 }
 0xac7   : > { %v3097_v44 = vmul.f32 %v3095_v48, %v5538_v10  ;;  %v3157_v48 = vld [vmem:[%s5333_s3 + $0x18] sm:$0xff] }
 0xac9   : > { %v5788_v56 = vadd.f32 1e-05, %v3097_v44  ;;  %v3156_v44 = vld [vmem:[%s5333_s3 + $0x10] sm:$0xff] }
 0xacb   : > { %5010 = vrsqrt.f32 %v5788_v56  ;;  %vm3116_vm13 = vweird.f32 %v5788_v56 }
 0xad1   : > { %v5011_v46 = vpop.eup %5010 }
 0xad2   : > { %v3111_v12 = vmul.f32 %v5011_v46, %v5788_v56  ;;  %vm3117_vm12 = vweird.f32 %v5011_v46  ;;  %v3170_v56 = vld [vmem:[%s5333_s3 + $0x80] sm:$0xff] }
 0xad3   : > { %vm3118_vm14 = vmor %vm3116_vm13, %vm3117_vm12 }
 0xad4   : > { %v3112_v16 = vmul.f32 %v5011_v46, %v3111_v12  ;;  %v3437_v12 = vld [vmem:[%s5325_s14 + $0x130] sm:$0xff] }
 0xad5   : > { %3576 = vmatpush.msra.mxu0 %v3437_v12  ;;  %v3469_v12 = vld [vmem:[%s5333_s3 + $0x2c8] sm:$0xff] }
 0xad6   : > { %v3113_v20 = vmul.f32 0.5, %v3112_v16  ;;  %v3440_v16 = vld [vmem:[%s5325_s14 + $0x1a8] sm:$0xff] }
 0xad7   : > { %3577 = vmatpush.msra.mxu0 %v3433_v14  ;;  %v3496_v14 = vld [vmem:[%s5333_s3 + $0x3a0] sm:$0xff] }
 0xad8   : > { %v3114_v47 = vsub.f32 1.5, %v3113_v20  ;;  %v3431_v20 = vld [vmem:[%s5325_s14 + $0xa0] sm:$0xff] }
 0xad9   : > { %3578 = vmatpush.msra.mxu0 %v3429_v17 }
 0xada   : > { %v3115_v28 = vmul.f32 %v5011_v46, %v3114_v47 }
 0xadc   : > { %v3119_v30 = vsel %vm3118_vm14, %v5011_v46, %v3115_v28 }
 0xadd   : > { %v3121_v40 = vmul.f32 %v3119_v30, %v5731_v6  ;;  %v3159_v6 = vld [vmem:[%s5333_s3 + $0x28] sm:$0xff] }
 0xade   : > { %3343 = vmatpush.msrb.mxu2 %v3159_v6 }
 0xadf   : > { %v3126_v33 = vmul.f32 %v5756_v42, %v3121_v40  ;;  %v3175_v42 = vld [vmem:[%s5333_s3 + $0xa8] sm:$0xff] }
 0xae0   : > { %3366 = vmatpush.msra.mxu3 %v3175_v42  ;;  %3344 = vmatpush.msrb.mxu2 %v3158_v35  ;;  %v3490_v35 = vld [vmem:[%s5333_s3 + $0x370] sm:$0xff] }
 0xae1   : > { %v5830_v23 = vadd.f32 %v5761_v31, %v3126_v33  ;;  %v3204_v31 = vld [vmem:[%s5333_s3 + $0x190] sm:$0xff] }
 0xae2   : > { %3415 = vmatpush.msrb.mxu1 %v3204_v31  ;;  %3367 = vmatpush.msra.mxu3 %v3174_v36  ;;  %v3507_v31 = vld [vmem:[%s5333_s3 + $0x3f8] sm:$0xff]  ;;  %v3506_v36 = vld [vmem:[%s5333_s3 + $0x3f0] sm:$0xff] }
 0xae3   : > { %4810 = vmatmul.msk.f32.gmra.mxu2 %vm1401_vm1, %v5830_v23  ;;  %4812 = vmatmul.msk.f32.gmra.mxu3 %vm1401_vm1, %v5830_v23 }
 0xae4   : > { %4814 = vmatmul.msk.f32.gmra.mxu0 %vm1401_vm1, %v5830_v23  ;;  %4816 = vmatmul.msk.f32.gmra.mxu1 %vm1401_vm1, %v5830_v23 }
 0xae5   : > { %3416 = vmatpush.msrb.mxu1 %v3203_v39  ;;  %3345 = vmatpush.msrb.mxu2 %v3157_v48  ;;  %v3505_v39 = vld [vmem:[%s5333_s3 + $0x3e8] sm:$0xff]  ;;  %v3488_v48 = vld [vmem:[%s5333_s3 + $0x360] sm:$0xff] }
 0xae6   : > { %3368 = vmatpush.msra.mxu3 %v3173_v41  ;;  %v3504_v41 = vld [vmem:[%s5333_s3 + $0x3e0] sm:$0xff] }
 0xae7   : > { %3417 = vmatpush.msrb.mxu1 %v3202_v43  ;;  %3346 = vmatpush.msrb.mxu2 %v3156_v44  ;;  %v3475_v43 = vld [vmem:[%s5333_s3 + $0x2f8] sm:$0xff]  ;;  %v3458_v44 = vld [vmem:[%s5333_s3 + $0x270] sm:$0xff] }
 0xae8   : > { %3369 = vmatpush.msra.mxu3 %v3172_v45  ;;  %v3487_v45 = vld [vmem:[%s5333_s3 + $0x358] sm:$0xff] }
 0xae9   : > { %3347 = vmatpush.msrb.mxu2 %v3155_v51  ;;  %3598 = vmatpush.msra.mxu1 %v3442_v7  ;;  %v3503_v51 = vld [vmem:[%s5333_s3 + $0x3d8] sm:$0xff]  ;;  %v3453_v7 = vld [vmem:[%s5333_s3 + $0x248] sm:$0xff] }
 0xaea   : > { %3370 = vmatpush.msra.mxu3 %v3171_v55  ;;  %v3474_v55 = vld [vmem:[%s5333_s3 + $0x2f0] sm:$0xff] }
 0xaeb   : > { %3348 = vmatpush.msrb.mxu2 %v3154_v25  ;;  %3599 = vmatpush.msra.mxu1 %v3438_v13  ;;  %v3457_v25 = vld [vmem:[%s5333_s3 + $0x268] sm:$0xff]  ;;  %v3480_v13 = vld [vmem:[%s5333_s3 + $0x320] sm:$0xff] }
 0xaec   : > { %3371 = vmatpush.msra.mxu3 %v3170_v56  ;;  %v3473_v56 = vld [vmem:[%s5333_s3 + $0x2e8] sm:$0xff] }
 0xaed   : > { %3529 = vmatpush.msra.mxu2 %v3439_v50  ;;  %3600 = vmatpush.msra.mxu1 %v3434_v15  ;;  %v3479_v15 = vld [vmem:[%s5333_s3 + $0x318] sm:$0xff] }
 0xaee   : > { %3552 = vmatpush.msrb.mxu3 %v3440_v16  ;;  %v3495_v50 = vld [vmem:[%s5333_s3 + $0x398] sm:$0xff] }
 0xaef   : > { %3530 = vmatpush.msra.mxu2 %v3435_v19  ;;  %3601 = vmatpush.msra.mxu1 %v3430_v18  ;;  %v3452_v18 = vld [vmem:[%s5333_s3 + $0x240] sm:$0xff] }
 0xaf0   : > { %3553 = vmatpush.msrb.mxu3 %v3436_v52  ;;  %v3468_v19 = vld [vmem:[%s5333_s3 + $0x2c0] sm:$0xff]  ;;  %v3478_v52 = vld [vmem:[%s5333_s3 + $0x310] sm:$0xff] }
 0xaf1   : > { %3531 = vmatpush.msra.mxu2 %v3431_v20 }
 0xaf2   : > { %3554 = vmatpush.msrb.mxu3 %v3432_v21  ;;  %v3494_v21 = vld [vmem:[%s5333_s3 + $0x390] sm:$0xff] }
 0xaf3   : > { %3532 = vmatpush.msra.mxu2 %v3427_v22  ;;  %v3451_v22 = vld [vmem:[%s5333_s3 + $0x238] sm:$0xff] }
 0xaf4   : > { %3555 = vmatpush.msrb.mxu3 %v3428_v37  ;;  %v3467_v37 = vld [vmem:[%s5333_s3 + $0x2b8] sm:$0xff] }
 0xb3d   : > { %v3296_v53 = vpop.f32.mrf.mxu0  ;;  %v3319_v61 = vpop.f32.mrf.mxu1 }
 0xb3e   : > { %v3297_v62 = vadd.f32 %v3296_v53, %v3221_v59  ;;  %v3320_v32 = vadd.f32 %v3319_v61, %v3222_v60  ;;  %v3501_v53 = vld [vmem:[%s5333_s3 + $0x3c8] sm:$0xff]  ;;  %v3484_v61 = vld [vmem:[%s5333_s3 + $0x340] sm:$0xff] }
 0xb40   : > { %v3327_v2 = vmax.f32 %v3297_v62, 0.0  ;;  %v3328_v3 = vmax.f32 %v3320_v32, 0.0  ;;  %v3500_v62 = vld [vmem:[%s5333_s3 + $0x3c0] sm:$0xff]  ;;  %v3483_v32 = vld [vmem:[%s5333_s3 + $0x338] sm:$0xff] }
 0xb42   : > { %3395 = vmatmul.f32.vlgmr.msrb.gmra.mxu0 %v3327_v2  ;;  %3418 = vmatmul.f32.vlgmr.msrb.gmra.mxu1 %v3328_v3  ;;  %v3250_v58 = vpop.f32.mrf.mxu2  ;;  %v3273_v5 = vpop.f32.mrf.mxu3  ;;  %v3472_v2 = vld [vmem:[%s5333_s3 + $0x2e0] sm:$0xff]  ;;  %v3482_v3 = vld [vmem:[%s5333_s3 + $0x330] sm:$0xff] }
 0xb43   : > { %v3251_v63 = vadd.f32 %v3250_v58, %v3219_v0  ;;  %v3274_v8 = vadd.f32 %v3273_v5, %v3220_v1  ;;  %3663 = vmatpush.msrb.mxu0 %v3491_v11  ;;  %3686 = vmatpush.msrb.mxu1 %v3507_v31  ;;  %v3498_v58 = vld [vmem:[%s5333_s3 + $0x3b0] sm:$0xff]  ;;  %v3455_v5 = vld [vmem:[%s5333_s3 + $0x258] sm:$0xff]  ;;  %v3448_v11 = vld [vmem:[%s5333_s3 + $0x220] sm:$0xff] }
 0xb44   : > { %v3464_v31 = vld [vmem:[%s5333_s3 + $0x2a0] sm:$0xff] }
 0xb45   : > { %v3325_v9 = vmax.f32 %v3251_v63, 0.0  ;;  %v3326_v46 = vmax.f32 %v3274_v8, 0.0  ;;  %3664 = vmatpush.msrb.mxu0 %v3490_v35  ;;  %3687 = vmatpush.msrb.mxu1 %v3506_v36  ;;  %v3471_v63 = vld [vmem:[%s5333_s3 + $0x2d8] sm:$0xff]  ;;  %v3454_v8 = vld [vmem:[%s5333_s3 + $0x250] sm:$0xff] }
 0xb46   : > { %v3447_v35 = vld [vmem:[%s5333_s3 + $0x218] sm:$0xff] }
 0xb47   : > { %3349 = vmatmul.f32.vlgmr.msrb.gmra.mxu2 %v3325_v9  ;;  %3372 = vmatmul.f32.vlgmr.msra.gmra.mxu3 %v3326_v46  ;;  %v3481_v9 = vld [vmem:[%s5333_s3 + $0x328] sm:$0xff]  ;;  %v3463_v36 = vld [vmem:[%s5333_s3 + $0x298] sm:$0xff] }
 0xb48   : > { %3665 = vmatpush.msrb.mxu0 %v3489_v38  ;;  %3688 = vmatpush.msrb.mxu1 %v3505_v39  ;;  %v3497_v46 = vld [vmem:[%s5333_s3 + $0x3a8] sm:$0xff]  ;;  %v3446_v38 = vld [vmem:[%s5333_s3 + $0x210] sm:$0xff] }
 0xb49   : > { %3617 = vmatpush.msrb.mxu2 %v3459_v4  ;;  %3640 = vmatpush.msra.mxu3 %v3475_v43  ;;  %v3462_v39 = vld [vmem:[%s5333_s3 + $0x290] sm:$0xff]  ;;  %v3726_v43 = vld [vmem:[%s5325_s14 + $0x1d8] sm:$0xff] }
 0xb4a   : > { %3666 = vmatpush.msrb.mxu0 %v3488_v48  ;;  %3689 = vmatpush.msrb.mxu1 %v3504_v41  ;;  %v3445_v48 = vld [vmem:[%s5333_s3 + $0x208] sm:$0xff]  ;;  %v3725_v4 = vld [vmem:[%s5325_s14 + $0x1d0] sm:$0xff] }
 0xb4b   : > { %3618 = vmatpush.msrb.mxu2 %v3458_v44  ;;  %3641 = vmatpush.msra.mxu3 %v3474_v55  ;;  %v3461_v41 = vld [vmem:[%s5333_s3 + $0x288] sm:$0xff]  ;;  %v3721_v44 = vld [vmem:[%s5325_s14 + $0x150] sm:$0xff]  ;;  %v3722_v55 = vld [vmem:[%s5325_s14 + $0x158] sm:$0xff] }
 0xb4c   : > { %3667 = vmatpush.msrb.mxu0 %v3487_v45  ;;  %3690 = vmatpush.msrb.mxu1 %v3503_v51  ;;  %v3444_v45 = vld [vmem:[%s5333_s3 + $0x200] sm:$0xff] }
 0xb4d   : > { %3619 = vmatpush.msrb.mxu2 %v3457_v25  ;;  %3642 = vmatpush.msra.mxu3 %v3473_v56  ;;  %v3460_v51 = vld [vmem:[%s5333_s3 + $0x280] sm:$0xff]  ;;  %v3717_v25 = vld [vmem:[%s5325_s14 + $0xd0] sm:$0xff]  ;;  %v3718_v56 = vld [vmem:[%s5325_s14 + $0xd8] sm:$0xff] }
 0xb4e   : > { %3668 = vmatpush.msrb.mxu0 %v3486_v57  ;;  %v3713_v57 = vld [vmem:[%s5325_s14 + $0x50] sm:$0xff] }
 0xb4f   : > { %3643 = vmatpush.msra.mxu3 %v3472_v2 }
 0xb51   : > { %3644 = vmatpush.msra.mxu3 %v3471_v63  ;;  %v3711_v63 = vld [vmem:[%s5325_s14 + $0x40] sm:$0xff] }
 0xb53   : > { %3645 = vmatpush.msra.mxu3 %v3470_v49 }
 0xb55   : > { %3646 = vmatpush.msra.mxu3 %v3469_v12 }
 0xb57   : > { %3647 = vmatpush.msra.mxu3 %v3468_v19 }
 0xb59   : > { %3648 = vmatpush.msra.mxu3 %v3467_v37  ;;  %v3774_v37 = vld [vmem:[%s5333_s3 + $0x570] sm:$0xff] }
 0xb61   : > { %v3299_v24 = vpop.f32.mrf.mxu0  ;;  %v3322_v47 = vpop.f32.mrf.mxu1 }
 0xb62   : > { %v3300_v26 = vadd.f32 %v3299_v24, %v3221_v59  ;;  %v3323_v27 = vadd.f32 %v3322_v47, %v3222_v60  ;;  %v3502_v59 = vld [vmem:[%s5333_s3 + $0x3d0] sm:$0xff]  ;;  %v3485_v60 = vld [vmem:[%s5333_s3 + $0x348] sm:$0xff] }
 0xb63   : > { %3691 = vmatpush.msrb.mxu1 %v3502_v59  ;;  %3669 = vmatpush.msrb.mxu0 %v3485_v60  ;;  %v3477_v47 = vld [vmem:[%s5333_s3 + $0x308] sm:$0xff]  ;;  %v3714_v59 = vld [vmem:[%s5325_s14 + $0x58] sm:$0xff] }
 0xb64   : > { %v3331_v28 = vmax.f32 %v3300_v26, 0.0  ;;  %v3332_v29 = vmax.f32 %v3323_v27, 0.0  ;;  %v3493_v26 = vld [vmem:[%s5333_s3 + $0x388] sm:$0xff] }
 0xb65   : > { %3692 = vmatpush.msrb.mxu1 %v3501_v53  ;;  %3670 = vmatpush.msrb.mxu0 %v3484_v61  ;;  %v3723_v61 = vld [vmem:[%s5325_s14 + $0x1c0] sm:$0xff] }
 0xb66   : > { %3398 = vmatmul.f32.gmra.mxu0 %v3331_v28  ;;  %3421 = vmatmul.f32.gmra.mxu1 %v3332_v29  ;;  %v3253_v54 = vpop.f32.mrf.mxu2  ;;  %v3276_v30 = vpop.f32.mrf.mxu3  ;;  %v3450_v29 = vld [vmem:[%s5333_s3 + $0x230] sm:$0xff] }
 0xb67   : > { %v3254_v40 = vadd.f32 %v3253_v54, %v3219_v0  ;;  %v3277_v33 = vadd.f32 %v3276_v30, %v3220_v1  ;;  %v3499_v0 = vld [vmem:[%s5333_s3 + $0x3b8] sm:$0xff]  ;;  %3693 = vmatpush.msrb.mxu1 %v3500_v62  ;;  %v3456_v1 = vld [vmem:[%s5333_s3 + $0x260] sm:$0xff]  ;;  %3671 = vmatpush.msrb.mxu0 %v3483_v32  ;;  %v3466_v54 = vld [vmem:[%s5333_s3 + $0x2b0] sm:$0xff] }
 0xb68   : > { %3620 = vmatpush.msrb.mxu2 %v3456_v1  ;;  %v3476_v30 = vld [vmem:[%s5333_s3 + $0x300] sm:$0xff]  ;;  %3649 = vmatpush.msra.mxu3 %v3466_v54  ;;  %v3724_v62 = vld [vmem:[%s5325_s14 + $0x1c8] sm:$0xff] }
 0xb69   : > { %v3329_v6 = vmax.f32 %v3254_v40, 0.0  ;;  %v3330_v42 = vmax.f32 %v3277_v33, 0.0  ;;  %3694 = vmatpush.msrb.mxu1 %v3499_v0  ;;  %3672 = vmatpush.msrb.mxu0 %v3482_v3  ;;  %v3492_v33 = vld [vmem:[%s5333_s3 + $0x380] sm:$0xff]  ;;  %v3720_v0 = vld [vmem:[%s5325_s14 + $0x148] sm:$0xff] }
 0xb6a   : > { %3621 = vmatpush.msrb.mxu2 %v3455_v5  ;;  %v3719_v32 = vld [vmem:[%s5325_s14 + $0x140] sm:$0xff]  ;;  %v3716_v5 = vld [vmem:[%s5325_s14 + $0xc8] sm:$0xff] }
 0xb6b   : > { %3352 = vmatmul.f32.gmra.mxu2 %v3329_v6  ;;  %3375 = vmatmul.f32.gmra.mxu3 %v3330_v42  ;;  %v3449_v6 = vld [vmem:[%s5333_s3 + $0x228] sm:$0xff]  ;;  %v5976_v1 = vld [vmem:[%s5329_s6 + $0x4] sm:$0xf] }
 0xb6c   : > { %3695 = vmatpush.msrb.mxu1 %v3498_v58  ;;  %3622 = vmatpush.msrb.mxu2 %v3454_v8  ;;  %v3465_v42 = vld [vmem:[%s5333_s3 + $0x2a8] sm:$0xff]  ;;  %v3511_v2 = vperm.slane %v5976_v1, 2  ;;  %v3512_v3 = vperm.slane %v5976_v1, 3  ;;  %v3715_v58 = vld [vmem:[%s5325_s14 + $0xc0] sm:$0xff] }
 0xb6d   : > { %3673 = vmatpush.msrb.mxu0 %v3481_v9  ;;  %3650 = vmatpush.msra.mxu3 %v3465_v42  ;;  %v3712_v8 = vld [vmem:[%s5325_s14 + $0x48] sm:$0xff] }
 0xb6e   : > { %4821 = vmatmul.msk.f32.vlgmr.msra.gmra.mxu0 %vm1401_vm1, %v5765_v34  ;;  %4823 = vmatmul.msk.f32.vlgmr.msra.gmra.mxu1 %vm1401_vm1, %v5765_v34 }
 0xb6f   : > { %3696 = vmatpush.msrb.mxu1 %v3497_v46  ;;  %3623 = vmatpush.msrb.mxu2 %v3453_v7 }
 0xb70   : > { %3674 = vmatpush.msrb.mxu0 %v3480_v13  ;;  %3651 = vmatpush.msra.mxu3 %v3464_v31 }
 0xb71   : > { %3697 = vmatpush.msrb.mxu1 %v3496_v14  ;;  %3624 = vmatpush.msrb.mxu2 %v3452_v18 }
 0xb72   : > { %3675 = vmatpush.msrb.mxu0 %v3479_v15  ;;  %3652 = vmatpush.msra.mxu3 %v3463_v36  ;;  %v3788_v36 = vld [vmem:[%s5333_s3 + $0x5e0] sm:$0xff] }
 0xb73   : > { %4817 = vmatmul.msk.f32.vlgmr.msra.gmra.mxu2 %vm1401_vm1, %v5765_v34  ;;  %4819 = vmatmul.msk.f32.vlgmr.msrb.gmra.mxu3 %vm1401_vm1, %v5765_v34 }
 0xb74   : > { %3698 = vmatpush.msrb.mxu1 %v3495_v50  ;;  %3676 = vmatpush.msrb.mxu0 %v3478_v52  ;;  %v3509_v52 = vperm.slane %v5976_v1, 0 }
 0xb75   : > { %3625 = vmatpush.msrb.mxu2 %v3451_v22  ;;  %3653 = vmatpush.msra.mxu3 %v3462_v39  ;;  %v3791_v22 = vld [vmem:[%s5333_s3 + $0x5f8] sm:$0xff] }
 0xb76   : > { %4822 = vmatmul.msk.f32.gmra.mxu0 %vm1401_vm1, %v5830_v23  ;;  %4824 = vmatmul.msk.f32.gmra.mxu1 %vm1401_vm1, %v5830_v23  ;;  %v3787_v39 = vld [vmem:[%s5333_s3 + $0x5d8] sm:$0xff] }
 0xb77   : > { %3699 = vmatpush.msrb.mxu1 %v3494_v21  ;;  %3677 = vmatpush.msrb.mxu0 %v3477_v47  ;;  %v3775_v21 = vld [vmem:[%s5333_s3 + $0x578] sm:$0xff] }
 0xb78   : > { %3626 = vmatpush.msrb.mxu2 %v3450_v29  ;;  %3654 = vmatpush.msra.mxu3 %v3461_v41 }
 0xb79   : > { %3700 = vmatpush.msrb.mxu1 %v3493_v26  ;;  %3678 = vmatpush.msrb.mxu0 %v3476_v30  ;;  %v3790_v26 = vld [vmem:[%s5333_s3 + $0x5f0] sm:$0xff]  ;;  %v3773_v30 = vld [vmem:[%s5333_s3 + $0x568] sm:$0xff] }
 0xb7a   : > { %3627 = vmatpush.msrb.mxu2 %v3449_v6  ;;  %3655 = vmatpush.msra.mxu3 %v3460_v51  ;;  %v3770_v51 = vld [vmem:[%s5333_s3 + $0x550] sm:$0xff] }
 0xb7b   : > { %4818 = vmatmul.msk.f32.gmra.mxu2 %vm1401_vm1, %v5830_v23  ;;  %4820 = vmatmul.msk.f32.gmra.mxu3 %vm1401_vm1, %v5830_v23 }
 0xb7c   : > { %3701 = vmatpush.msrb.mxu1 %v3492_v33  ;;  %3628 = vmatpush.msrb.mxu2 %v3448_v11  ;;  %v3789_v33 = vld [vmem:[%s5333_s3 + $0x5e8] sm:$0xff] }
 0xb7d   : > { %3859 = vmatpush.msra.mxu0 %v3725_v4  ;;  %3836 = vmatpush.msrb.mxu3 %v3724_v62  ;;  %v3759_v62 = vld [vmem:[%s5333_s3 + $0x4f8] sm:$0xff] }
 0xb7e   : > { %3629 = vmatpush.msrb.mxu2 %v3447_v35  ;;  %3882 = vmatpush.msra.mxu1 %v3726_v43  ;;  %v3772_v35 = vld [vmem:[%s5333_s3 + $0x560] sm:$0xff] }
 0xb7f   : > { %3860 = vmatpush.msra.mxu0 %v3721_v44  ;;  %3837 = vmatpush.msrb.mxu3 %v3720_v0  ;;  %v3782_v0 = vld [vmem:[%s5333_s3 + $0x5b0] sm:$0xff] }
 0xb80   : > { %3630 = vmatpush.msrb.mxu2 %v3446_v38  ;;  %3883 = vmatpush.msra.mxu1 %v3722_v55  ;;  %v3771_v38 = vld [vmem:[%s5333_s3 + $0x558] sm:$0xff]  ;;  %v3786_v55 = vld [vmem:[%s5333_s3 + $0x5d0] sm:$0xff] }
 0xb81   : > { %3861 = vmatpush.msra.mxu0 %v3717_v25  ;;  %3838 = vmatpush.msrb.mxu3 %v3716_v5  ;;  %v3769_v25 = vld [vmem:[%s5333_s3 + $0x548] sm:$0xff] }
 0xb82   : > { %3631 = vmatpush.msrb.mxu2 %v3445_v48  ;;  %3884 = vmatpush.msra.mxu1 %v3718_v56  ;;  %v3785_v56 = vld [vmem:[%s5333_s3 + $0x5c8] sm:$0xff] }
 0xb83   : > { %3862 = vmatpush.msra.mxu0 %v3713_v57  ;;  %3839 = vmatpush.msrb.mxu3 %v3712_v8  ;;  %v3768_v57 = vld [vmem:[%s5333_s3 + $0x540] sm:$0xff]  ;;  %v3741_v5 = vld [vmem:[%s5333_s3 + $0x468] sm:$0xff] }
 0xb84   : > { %3632 = vmatpush.msrb.mxu2 %v3444_v45  ;;  %3885 = vmatpush.msra.mxu1 %v3714_v59  ;;  %v3784_v59 = vld [vmem:[%s5333_s3 + $0x5c0] sm:$0xff] }
 0xb85   : > { %v3764_v8 = vld [vmem:[%s5333_s3 + $0x520] sm:$0xff] }
 0xb86   : > { %3813 = vmatpush.msra.mxu2 %v3723_v61  ;;  %v3743_v61 = vld [vmem:[%s5333_s3 + $0x478] sm:$0xff] }
 0xb88   : > { %3814 = vmatpush.msra.mxu2 %v3719_v32  ;;  %v3766_v32 = vld [vmem:[%s5333_s3 + $0x530] sm:$0xff] }
 0xb8a   : > { %3815 = vmatpush.msra.mxu2 %v3715_v58  ;;  %v3781_v58 = vld [vmem:[%s5333_s3 + $0x5a8] sm:$0xff] }
 0xb8c   : > { %3816 = vmatpush.msra.mxu2 %v3711_v63  ;;  %v3757_v63 = vld [vmem:[%s5333_s3 + $0x4e8] sm:$0xff] }
 0xbbf   : > { %v3396_v24 = vpop.f32.mrf.mxu0  ;;  %v3419_v28 = vpop.f32.mrf.mxu1 }
 0xbca   : > { %v3350_v16 = vpop.f32.mrf.mxu2  ;;  %v3373_v17 = vpop.f32.mrf.mxu3 }
 0xbcb   : > { %v3374_v20 = vadd.f32 %v3373_v17, %v3350_v16 }
 0xbcd   : > { %v3397_v27 = vadd.f32 %v3396_v24, %v3374_v20  ;;  %v3510_v20 = vperm.slane %v5976_v1, 1  ;;  %v3742_v1 = vld [vmem:[%s5333_s3 + $0x470] sm:$0xff] }
 0xbcf   : > { %v5948_v40 = vadd.f32 %v3419_v28, %v3397_v27 }
 0xbe3   : > { %v3399_v60 = vpop.f32.mrf.mxu0  ;;  %v3422_v53 = vpop.f32.mrf.mxu1 }
 0xbeb   : > { %v3580_v9 = vpop.f32.mrf.mxu0  ;;  %v3603_v46 = vpop.f32.mrf.mxu1 }
 0xbec   : > { %v3581_v49 = vadd.f32 %v3580_v9, %v3511_v2  ;;  %v3604_v7 = vadd.f32 %v3603_v46, %v3512_v3  ;;  %v3780_v9 = vld [vmem:[%s5333_s3 + $0x5a0] sm:$0xff] }
 0xbed   : > { %v3740_v46 = vld [vmem:[%s5333_s3 + $0x460] sm:$0xff] }
 0xbee   : > { %v3611_v12 = vmax.f32 %v3581_v49, 0.0  ;;  %v3612_v13 = vmax.f32 %v3604_v7, 0.0  ;;  %v3353_v14 = vpop.f32.mrf.mxu2  ;;  %v3376_v15 = vpop.f32.mrf.mxu3  ;;  %v3756_v49 = vld [vmem:[%s5333_s3 + $0x4e0] sm:$0xff]  ;;  %v3763_v7 = vld [vmem:[%s5333_s3 + $0x518] sm:$0xff] }
 0xbef   : > { %v3377_v50 = vadd.f32 %v3376_v15, %v3353_v14  ;;  %v3755_v14 = vld [vmem:[%s5333_s3 + $0x4d8] sm:$0xff]  ;;  %v3762_v15 = vld [vmem:[%s5333_s3 + $0x510] sm:$0xff] }
 0xbf0   : > { %3679 = vmatmul.f32.vlgmr.msrb.gmra.mxu0 %v3611_v12  ;;  %3702 = vmatmul.f32.vlgmr.msrb.gmra.mxu1 %v3612_v13  ;;  %v3779_v12 = vld [vmem:[%s5333_s3 + $0x598] sm:$0xff] }
 0xbf1   : > { %v3400_v16 = vadd.f32 %v3399_v60, %v3377_v50  ;;  %3947 = vmatpush.msrb.mxu0 %v3775_v21  ;;  %3970 = vmatpush.msrb.mxu1 %v3791_v22  ;;  %v3767_v60 = vld [vmem:[%s5333_s3 + $0x538] sm:$0xff]  ;;  %v3778_v50 = vld [vmem:[%s5333_s3 + $0x590] sm:$0xff]  ;;  %v3753_v21 = vld [vmem:[%s5333_s3 + $0x4c8] sm:$0xff] }
 0xbf2   : > { %v3739_v13 = vld [vmem:[%s5333_s3 + $0x458] sm:$0xff]  ;;  %v3760_v22 = vld [vmem:[%s5333_s3 + $0x500] sm:$0xff] }
 0xbf3   : > { %v5984_v17 = vadd.f32 %v3422_v53, %v3400_v16  ;;  %v3583_v18 = vpop.f32.mrf.mxu0  ;;  %v3606_v19 = vpop.f32.mrf.mxu1  ;;  %3948 = vmatpush.msrb.mxu0 %v3774_v37  ;;  %3971 = vmatpush.msrb.mxu1 %v3790_v26  ;;  %v3783_v53 = vld [vmem:[%s5333_s3 + $0x5b8] sm:$0xff]  ;;  %v3738_v16 = vld [vmem:[%s5333_s3 + $0x450] sm:$0xff]  ;;  %v3776_v37 = vld [vmem:[%s5333_s3 + $0x580] sm:$0xff] }
 0xbf4   : > { %v3584_v24 = vadd.f32 %v3583_v18, %v3511_v2  ;;  %v3607_v47 = vadd.f32 %v3606_v19, %v3512_v3  ;;  %v3758_v2 = vld [vmem:[%s5333_s3 + $0x4f0] sm:$0xff]  ;;  %v3765_v3 = vld [vmem:[%s5333_s3 + $0x528] sm:$0xff]  ;;  %v3735_v26 = vld [vmem:[%s5333_s3 + $0x438] sm:$0xff] }
 0xbf5   : > { %3949 = vmatpush.msrb.mxu0 %v3773_v30  ;;  %3972 = vmatpush.msrb.mxu1 %v3789_v33  ;;  %v3754_v18 = vld [vmem:[%s5333_s3 + $0x4d0] sm:$0xff]  ;;  %v3761_v19 = vld [vmem:[%s5333_s3 + $0x508] sm:$0xff] }
 0xbf6   : > { %v3615_v27 = vmax.f32 %v3584_v24, 0.0  ;;  %v3616_v28 = vmax.f32 %v3607_v47, 0.0  ;;  %v3534_v29 = vpop.f32.mrf.mxu2  ;;  %v3557_v54 = vpop.f32.mrf.mxu3  ;;  %v3736_v24 = vld [vmem:[%s5333_s3 + $0x440] sm:$0xff]  ;;  %v3749_v30 = vld [vmem:[%s5333_s3 + $0x4a8] sm:$0xff] }
 0xbf7   : > { %v3535_v6 = vadd.f32 %v3534_v29, %v3509_v52  ;;  %v3558_v42 = vadd.f32 %v3557_v54, %v3510_v20  ;;  %3950 = vmatpush.msrb.mxu0 %v3772_v35  ;;  %3973 = vmatpush.msrb.mxu1 %v3788_v36  ;;  %v3752_v47 = vld [vmem:[%s5333_s3 + $0x4c0] sm:$0xff]  ;;  %v3750_v29 = vld [vmem:[%s5333_s3 + $0x4b0] sm:$0xff]  ;;  %v3733_v54 = vld [vmem:[%s5333_s3 + $0x428] sm:$0xff] }
 0xbf8   : > { %3682 = vmatmul.f32.gmra.mxu0 %v3615_v27  ;;  %3705 = vmatmul.f32.gmra.mxu1 %v3616_v28  ;;  %v3751_v27 = vld [vmem:[%s5333_s3 + $0x4b8] sm:$0xff]  ;;  %v3734_v28 = vld [vmem:[%s5333_s3 + $0x430] sm:$0xff] }
 0xbf9   : > { %v3609_v11 = vmax.f32 %v3535_v6, 0.0  ;;  %v3610_v31 = vmax.f32 %v3558_v42, 0.0  ;;  %3951 = vmatpush.msrb.mxu0 %v3771_v38  ;;  %3974 = vmatpush.msrb.mxu1 %v3787_v39  ;;  %v3732_v42 = vld [vmem:[%s5333_s3 + $0x420] sm:$0xff]  ;;  %v4010_v35 = vld [vmem:[%s5325_s14 + $0x1f8] sm:$0xff]  ;;  %v4005_v39 = vld [vmem:[%s5325_s14 + $0x170] sm:$0xff] }
 0xbfa   : > { %v3731_v36 = vld [vmem:[%s5333_s3 + $0x418] sm:$0xff] }
 0xbfb   : > { %3633 = vmatmul.f32.vlgmr.msrb.gmra.mxu2 %v3609_v11  ;;  %3656 = vmatmul.f32.vlgmr.msra.gmra.mxu3 %v3610_v31  ;;  %v3748_v11 = vld [vmem:[%s5333_s3 + $0x4a0] sm:$0xff]  ;;  %v4009_v31 = vld [vmem:[%s5325_s14 + $0x1f0] sm:$0xff]  ;;  %v3747_v38 = vld [vmem:[%s5333_s3 + $0x498] sm:$0xff] }
 0xbfc   : > { %3952 = vmatpush.msrb.mxu0 %v3770_v51  ;;  %3975 = vmatpush.msrb.mxu1 %v3786_v55  ;;  %v3745_v51 = vld [vmem:[%s5333_s3 + $0x488] sm:$0xff]  ;;  %v3997_v55 = vld [vmem:[%s5325_s14 + $0x70] sm:$0xff] }
 0xbfd   : > { %3901 = vmatpush.msrb.mxu2 %v3743_v61  ;;  %3924 = vmatpush.msra.mxu3 %v3759_v62 }
 0xbfe   : > { %v3537_v48 = vpop.f32.mrf.mxu2  ;;  %v3560_v41 = vpop.f32.mrf.mxu3  ;;  %3953 = vmatpush.msrb.mxu0 %v3769_v25  ;;  %3976 = vmatpush.msrb.mxu1 %v3785_v56  ;;  %v3998_v25 = vld [vmem:[%s5325_s14 + $0x78] sm:$0xff]  ;;  %v3728_v56 = vld [vmem:[%s5333_s3 + $0x400] sm:$0xff] }
 0xbff   : > { %v3538_v4 = vadd.f32 %v3537_v48, %v3509_v52  ;;  %v3561_v43 = vadd.f32 %v3560_v41, %v3510_v20  ;;  %3902 = vmatpush.msrb.mxu2 %v3742_v1  ;;  %3925 = vmatpush.msra.mxu3 %v3758_v2  ;;  %v3777_v52 = vld [vmem:[%s5333_s3 + $0x588] sm:$0xff]  ;;  %v4006_v48 = vld [vmem:[%s5325_s14 + $0x178] sm:$0xff]  ;;  %v3730_v41 = vld [vmem:[%s5333_s3 + $0x410] sm:$0xff] }
 0xc00   : > { %4829 = vmatmul.msk.f32.vlgmr.msra.gmra.mxu0 %vm1401_vm1, %v5765_v34  ;;  %4831 = vmatmul.msk.f32.vlgmr.msra.gmra.mxu1 %vm1401_vm1, %v5765_v34  ;;  %v3737_v20 = vld [vmem:[%s5333_s3 + $0x448] sm:$0xff]  ;;  %v4003_v1 = vld [vmem:[%s5325_s14 + $0x160] sm:$0xff] }
 0xc01   : > { %v3613_v44 = vmax.f32 %v3538_v4, 0.0  ;;  %v3614_v45 = vmax.f32 %v3561_v43, 0.0  ;;  %3954 = vmatpush.msrb.mxu0 %v3768_v57  ;;  %3977 = vmatpush.msrb.mxu1 %v3784_v59  ;;  %v3746_v4 = vld [vmem:[%s5333_s3 + $0x490] sm:$0xff]  ;;  %v3744_v57 = vld [vmem:[%s5333_s3 + $0x480] sm:$0xff]  ;;  %v4004_v2 = vld [vmem:[%s5325_s14 + $0x168] sm:$0xff] }
 0xc02   : > { %3903 = vmatpush.msrb.mxu2 %v3741_v5  ;;  %3926 = vmatpush.msra.mxu3 %v3757_v63  ;;  %v4001_v43 = vld [vmem:[%s5325_s14 + $0xf0] sm:$0xff]  ;;  %v3999_v5 = vld [vmem:[%s5325_s14 + $0xe0] sm:$0xff]  ;;  %v4000_v63 = vld [vmem:[%s5325_s14 + $0xe8] sm:$0xff] }
 0xc03   : > { %3636 = vmatmul.f32.gmra.mxu2 %v3613_v44  ;;  %3659 = vmatmul.f32.gmra.mxu3 %v3614_v45  ;;  %v4002_v44 = vld [vmem:[%s5325_s14 + $0xf8] sm:$0xff]  ;;  %v3729_v45 = vld [vmem:[%s5333_s3 + $0x408] sm:$0xff] }
 0xc04   : > { %3955 = vmatpush.msrb.mxu0 %v3767_v60  ;;  %3978 = vmatpush.msrb.mxu1 %v3783_v53  ;;  %v6081_v53 = vld [vmem:[%s5329_s6 + $0x8] sm:$0xf] }
 0xc05   : > { %3904 = vmatpush.msrb.mxu2 %v3740_v46  ;;  %3927 = vmatpush.msra.mxu3 %v3756_v49  ;;  %v3795_v61 = vperm.slane %v6081_v53, 2  ;;  %v3796_v62 = vperm.slane %v6081_v53, 3 }
 0xc06   : > { %3956 = vmatpush.msrb.mxu0 %v3766_v32  ;;  %3979 = vmatpush.msrb.mxu1 %v3782_v0  ;;  %v4007_v32 = vld [vmem:[%s5325_s14 + $0x1e0] sm:$0xff]  ;;  %v4008_v0 = vld [vmem:[%s5325_s14 + $0x1e8] sm:$0xff] }
 0xc07   : > { %3905 = vmatpush.msrb.mxu2 %v3739_v13  ;;  %3928 = vmatpush.msra.mxu3 %v3755_v14 }
 0xc08   : > { %4830 = vmatmul.msk.f32.gmra.mxu0 %vm1401_vm1, %v5830_v23  ;;  %4832 = vmatmul.msk.f32.gmra.mxu1 %vm1401_vm1, %v5830_v23 }
 0xc09   : > { %3957 = vmatpush.msrb.mxu0 %v3765_v3  ;;  %3980 = vmatpush.msrb.mxu1 %v3781_v58 }
 0xc0a   : > { %3906 = vmatpush.msrb.mxu2 %v3738_v16  ;;  %3929 = vmatpush.msra.mxu3 %v3754_v18 }
 0xc0b   : > { %4825 = vmatmul.msk.f32.vlgmr.msra.gmra.mxu2 %vm1401_vm1, %v5765_v34  ;;  %4827 = vmatmul.msk.f32.vlgmr.msrb.gmra.mxu3 %vm1401_vm1, %v5765_v34 }
 0xc0c   : > { %3958 = vmatpush.msrb.mxu0 %v3764_v8  ;;  %3981 = vmatpush.msrb.mxu1 %v3780_v9 }
 0xc0d   : > { %3907 = vmatpush.msrb.mxu2 %v3737_v20  ;;  %3930 = vmatpush.msra.mxu3 %v3753_v21 }
 0xc0e   : > { %3959 = vmatpush.msrb.mxu0 %v3763_v7  ;;  %3982 = vmatpush.msrb.mxu1 %v3779_v12  ;;  %v4935_v7 = vld [vmem:[%s1361_s28] ss:$0 sm:$0xff] }
 0xc0f   : > { %3908 = vmatpush.msrb.mxu2 %v3736_v24  ;;  %3931 = vmatpush.msra.mxu3 %v3752_v47  ;;  %v3425_v18 = vadd.f32 %v4935_v7, %v5948_v40 }
 0xc10   : > { %3960 = vmatpush.msrb.mxu0 %v3762_v15  ;;  %3983 = vmatpush.msrb.mxu1 %v3778_v50  ;;  %v3995_v15 = vld [vmem:[%s5325_s14 + $0x60] sm:$0xff]  ;;  %v3996_v50 = vld [vmem:[%s5325_s14 + $0x68] sm:$0xff]  ;;  %s6346_s14 = sld [smem:[#allocation38_spill]] }
 0xc11   : > { %3909 = vmatpush.msrb.mxu2 %v3735_v26  ;;  %3932 = vmatpush.msra.mxu3 %v3751_v27 }
 0xc12   : > { %3961 = vmatpush.msrb.mxu0 %v3761_v19  ;;  %3984 = vmatpush.msrb.mxu1 %v3777_v52 }
 0xc13   : > { %4826 = vmatmul.msk.f32.gmra.mxu2 %vm1401_vm1, %v5830_v23  ;;  %4828 = vmatmul.msk.f32.gmra.mxu3 %vm1401_vm1, %v5830_v23 }
 0xc14   : > { %3962 = vmatpush.msrb.mxu0 %v3760_v22  ;;  %3985 = vmatpush.msrb.mxu1 %v3776_v37 }
 0xc15   : > { %3910 = vmatpush.msrb.mxu2 %v3734_v28  ;;  %3933 = vmatpush.msra.mxu3 %v3750_v29  ;;  %v3426_v29 = vadd.f32 %v4935_v7, %v5984_v17  ;;  %v4027_v7 = vld [vmem:[%s5333_s3 + $0x678] sm:$0xff] }
 0xc16   : > { %4143 = vmatpush.msra.mxu0 %v4009_v31  ;;  %4166 = vmatpush.msra.mxu1 %v4010_v35  ;;  %v4074_v31 = vld [vmem:[%s5333_s3 + $0x7f0] sm:$0xff]  ;;  %p4841_p5 = scmp.ne.s32.totalorder %s6346_s14, 1 }
 0xc17   : > { %3911 = vmatpush.msrb.mxu2 %v3733_v54  ;;  %3934 = vmatpush.msra.mxu3 %v3749_v30  ;;  %v3793_v30 = vperm.slane %v6081_v53, 0  ;;  %s6348_s27 = sld [smem:[#allocation35_spill]] (!%p4841_p5) }
 0xc18   : > { %4144 = vmatpush.msra.mxu0 %v4005_v39  ;;  %4167 = vmatpush.msra.mxu1 %v4006_v48 }
 0xc19   : > { %3912 = vmatpush.msrb.mxu2 %v3732_v42  ;;  %3935 = vmatpush.msra.mxu3 %v3748_v11  ;;  %v4075_v42 = vld [vmem:[%s5333_s3 + $0x7f8] sm:$0xff]  ;;  %v4058_v11 = vld [vmem:[%s5333_s3 + $0x770] sm:$0xff] }
 0xc1a   : > { %4145 = vmatpush.msra.mxu0 %v4001_v43  ;;  %4168 = vmatpush.msra.mxu1 %v4002_v44  ;;  %v4056_v44 = vld [vmem:[%s5333_s3 + $0x760] sm:$0xff] }
 0xc1b   : > { %3913 = vmatpush.msrb.mxu2 %v3731_v36  ;;  %3936 = vmatpush.msra.mxu3 %v3747_v38  ;;  %v4057_v36 = vld [vmem:[%s5333_s3 + $0x768] sm:$0xff] }
 0xc1c   : > { %4146 = vmatpush.msra.mxu0 %v3997_v55  ;;  %4169 = vmatpush.msra.mxu1 %v3998_v25  ;;  %v4073_v38 = vld [vmem:[%s5333_s3 + $0x7e8] sm:$0xff]  ;;  %v4071_v55 = vld [vmem:[%s5333_s3 + $0x7d8] sm:$0xff] }
 0xc1d   : > { %3914 = vmatpush.msrb.mxu2 %v3730_v41  ;;  %3937 = vmatpush.msra.mxu3 %v3746_v4 }
 0xc1f   : > { %3915 = vmatpush.msrb.mxu2 %v3729_v45  ;;  %3938 = vmatpush.msra.mxu3 %v3745_v51  ;;  %v4072_v45 = vld [vmem:[%s5333_s3 + $0x7e0] sm:$0xff]  ;;  %v4055_v51 = vld [vmem:[%s5333_s3 + $0x758] sm:$0xff] }
 0xc21   : > { %3916 = vmatpush.msrb.mxu2 %v3728_v56  ;;  %3939 = vmatpush.msra.mxu3 %v3744_v57 }
 0xc23   : > { %4097 = vmatpush.msra.mxu2 %v4007_v32  ;;  %4120 = vmatpush.msrb.mxu3 %v4008_v0  ;;  %v4053_v32 = vld [vmem:[%s5333_s3 + $0x748] sm:$0xff] }
 0xc24   : > { %v4069_v0 = vld [vmem:[%s5333_s3 + $0x7c8] sm:$0xff] }
 0xc25   : > { %4098 = vmatpush.msra.mxu2 %v4003_v1  ;;  %4121 = vmatpush.msrb.mxu3 %v4004_v2  ;;  %v4052_v1 = vld [vmem:[%s5333_s3 + $0x740] sm:$0xff] }
 0xc26   : > { %v4068_v2 = vld [vmem:[%s5333_s3 + $0x7c0] sm:$0xff] }
 0xc27   : > { %4099 = vmatpush.msra.mxu2 %v3999_v5  ;;  %4122 = vmatpush.msrb.mxu3 %v4000_v63  ;;  %v4050_v5 = vld [vmem:[%s5333_s3 + $0x730] sm:$0xff] }
 0xc28   : > { %v4066_v63 = vld [vmem:[%s5333_s3 + $0x7b0] sm:$0xff] }
 0xc29   : > { %4100 = vmatpush.msra.mxu2 %v3995_v15  ;;  %4123 = vmatpush.msrb.mxu3 %v3996_v50  ;;  %v4026_v15 = vld [vmem:[%s5333_s3 + $0x670] sm:$0xff] }
 0xc2a   : > { %v4042_v50 = vld [vmem:[%s5333_s3 + $0x6f0] sm:$0xff] }
 0xc6d   : > { %v6058_v33 = vpop.f32.mrf.mxu0  ;;  %v6060_v6 = vpop.f32.mrf.mxu1 }
 0xc75   : > { %v3683_v59 = vpop.f32.mrf.mxu0  ;;  %v3706_v60 = vpop.f32.mrf.mxu1 }
 0xc7d   : > { %v3864_v3 = vpop.f32.mrf.mxu0  ;;  %v3887_v58 = vpop.f32.mrf.mxu1 }
 0xc7e   : > { %v3865_v8 = vadd.f32 %v3864_v3, %v3795_v61  ;;  %v3888_v9 = vadd.f32 %v3887_v58, %v3796_v62  ;;  %v3634_v46 = vpop.f32.mrf.mxu2  ;;  %v3657_v49 = vpop.f32.mrf.mxu3  ;;  %v4051_v3 = vld [vmem:[%s5333_s3 + $0x738] sm:$0xff] }
 0xc7f   : > { %v3658_v12 = vadd.f32 %v3657_v49, %v3634_v46  ;;  %v4067_v58 = vld [vmem:[%s5333_s3 + $0x7b8] sm:$0xff]  ;;  %v4048_v46 = vld [vmem:[%s5333_s3 + $0x720] sm:$0xff] }
 0xc80   : > { %v3895_v13 = vmax.f32 %v3865_v8, 0.0  ;;  %v3896_v14 = vmax.f32 %v3888_v9, 0.0  ;;  %v4049_v8 = vld [vmem:[%s5333_s3 + $0x728] sm:$0xff]  ;;  %v4064_v49 = vld [vmem:[%s5333_s3 + $0x7a0] sm:$0xff] }
 0xc81   : > { %v3681_v16 = vadd.f32 %v6058_v33, %v3658_v12  ;;  %v3794_v33 = vperm.slane %v6081_v53, 1  ;;  %v4065_v9 = vld [vmem:[%s5333_s3 + $0x7a8] sm:$0xff]  ;;  %v4043_v12 = vld [vmem:[%s5333_s3 + $0x6f8] sm:$0xff] }
 0xc82   : > { %3963 = vmatmul.f32.vlgmr.msrb.gmra.mxu0 %v3895_v13  ;;  %3986 = vmatmul.f32.vlgmr.msrb.gmra.mxu1 %v3896_v14  ;;  %v4047_v13 = vld [vmem:[%s5333_s3 + $0x718] sm:$0xff] }
 0xc83   : > { %v3704_v19 = vadd.f32 %v6060_v6, %v3681_v16  ;;  %v4059_v6 = vld [vmem:[%s5333_s3 + $0x778] sm:$0xff]  ;;  %4254 = vmatpush.msrb.mxu1 %v4075_v42  ;;  %v4046_v16 = vld [vmem:[%s5333_s3 + $0x710] sm:$0xff] }
 0xc84   : > { %4231 = vmatpush.msrb.mxu0 %v4059_v6  ;;  %v4063_v14 = vld [vmem:[%s5333_s3 + $0x798] sm:$0xff]  ;;  %v4036_v6 = vld [vmem:[%s5333_s3 + $0x6c0] sm:$0xff] }
 0xc85   : > { %v6099_v52 = vadd.f32 %v3704_v19, %v3425_v18  ;;  %v3867_v20 = vpop.f32.mrf.mxu0  ;;  %v3890_v21 = vpop.f32.mrf.mxu1  ;;  %4255 = vmatpush.msrb.mxu1 %v4074_v31  ;;  %v4062_v18 = vld [vmem:[%s5333_s3 + $0x790] sm:$0xff]  ;;  %v4025_v19 = vld [vmem:[%s5333_s3 + $0x668] sm:$0xff]  ;;  %v4019_v42 = vld [vmem:[%s5333_s3 + $0x638] sm:$0xff] }
 0xc86   : > { %v3868_v22 = vadd.f32 %v3867_v20, %v3795_v61  ;;  %v3891_v37 = vadd.f32 %v3890_v21, %v3796_v62  ;;  %v3637_v24 = vpop.f32.mrf.mxu2  ;;  %v3660_v47 = vpop.f32.mrf.mxu3  ;;  %4232 = vmatpush.msrb.mxu0 %v4058_v11  ;;  %v4054_v61 = vld [vmem:[%s5333_s3 + $0x750] sm:$0xff]  ;;  %v4041_v20 = vld [vmem:[%s5333_s3 + $0x6e8] sm:$0xff]  ;;  %v4035_v11 = vld [vmem:[%s5333_s3 + $0x6b8] sm:$0xff] }
 0xc87   : > { %v3661_v26 = vadd.f32 %v3660_v47, %v3637_v24  ;;  %4256 = vmatpush.msrb.mxu1 %v4073_v38  ;;  %v4070_v62 = vld [vmem:[%s5333_s3 + $0x7d0] sm:$0xff]  ;;  %v4045_v21 = vld [vmem:[%s5333_s3 + $0x708] sm:$0xff]  ;;  %v4040_v24 = vld [vmem:[%s5333_s3 + $0x6e0] sm:$0xff] }
 0xc88   : > { %v3899_v27 = vmax.f32 %v3868_v22, 0.0  ;;  %v3900_v40 = vmax.f32 %v3891_v37, 0.0  ;;  %4233 = vmatpush.msrb.mxu0 %v4057_v36  ;;  %v4061_v22 = vld [vmem:[%s5333_s3 + $0x788] sm:$0xff]  ;;  %v4024_v37 = vld [vmem:[%s5333_s3 + $0x660] sm:$0xff]  ;;  %v4018_v38 = vld [vmem:[%s5333_s3 + $0x630] sm:$0xff] }
 0xc89   : > { %v3684_v28 = vadd.f32 %v3683_v59, %v3661_v26  ;;  %4257 = vmatpush.msrb.mxu1 %v4072_v45  ;;  %v4044_v47 = vld [vmem:[%s5333_s3 + $0x700] sm:$0xff] }
 0xc8a   : > { %3966 = vmatmul.f32.gmra.mxu0 %v3899_v27  ;;  %3989 = vmatmul.f32.gmra.mxu1 %v3900_v40  ;;  %v4060_v26 = vld [vmem:[%s5333_s3 + $0x780] sm:$0xff]  ;;  %v4023_v27 = vld [vmem:[%s5333_s3 + $0x658] sm:$0xff] }
 0xc8b   : > { %v3707_v54 = vadd.f32 %v3706_v60, %v3684_v28  ;;  %4234 = vmatpush.msrb.mxu0 %v4056_v44  ;;  %4258 = vmatpush.msrb.mxu1 %v4071_v55  ;;  %v4039_v40 = vld [vmem:[%s5333_s3 + $0x6d8] sm:$0xff]  ;;  %v4022_v28 = vld [vmem:[%s5333_s3 + $0x650] sm:$0xff]  ;;  %v4011_v55 = vld [vmem:[%s5329_s6 + $0xc] sm:$0xf]  ;;  %s6347_s6 = sld [smem:[#allocation34_spill]] (!%p4841_p5) }
 0xc8c   : > { %v4031_v44 = vld [vmem:[%s5333_s3 + $0x698] sm:$0xff] }
 0xc8d   : > { %v6108_v35 = vadd.f32 %v3707_v54, %v3426_v29  ;;  %4235 = vmatpush.msrb.mxu0 %v4055_v51  ;;  %4259 = vmatpush.msrb.mxu1 %v4070_v62  ;;  %v4038_v29 = vld [vmem:[%s5333_s3 + $0x6d0] sm:$0xff]  ;;  %v4021_v54 = vld [vmem:[%s5333_s3 + $0x648] sm:$0xff]  ;;  %v4028_v62 = vld [vmem:[%s5333_s3 + $0x680] sm:$0xff] }
 0xc8e   : > { %v3818_v39 = vpop.f32.mrf.mxu2  ;;  %v3841_v17 = vpop.f32.mrf.mxu3 }
 0xc8f   : > { %v3819_v48 = vadd.f32 %v3818_v39, %v3793_v30  ;;  %v3842_v41 = vadd.f32 %v3841_v17, %v3794_v33  ;;  %4236 = vmatpush.msrb.mxu0 %v4054_v61  ;;  %4260 = vmatpush.msrb.mxu1 %v4069_v0  ;;  %v4034_v39 = vld [vmem:[%s5333_s3 + $0x6b0] sm:$0xff]  ;;  %v4017_v17 = vld [vmem:[%s5333_s3 + $0x628] sm:$0xff]  ;;  %v4012_v61 = vld [vmem:[%s5333_s3 + $0x600] sm:$0xff] }
 0xc91   : > { %v3893_v4 = vmax.f32 %v3819_v48, 0.0  ;;  %v3894_v43 = vmax.f32 %v3842_v41, 0.0  ;;  %4237 = vmatpush.msrb.mxu0 %v4053_v32  ;;  %4261 = vmatpush.msrb.mxu1 %v4068_v2  ;;  %v4033_v48 = vld [vmem:[%s5333_s3 + $0x6a8] sm:$0xff]  ;;  %v4016_v41 = vld [vmem:[%s5333_s3 + $0x620] sm:$0xff] }
 0xc92   : > { %4837 = vmatmul.msk.f32.vlgmr.msra.gmra.mxu0 %vm1401_vm1, %v5765_v34  ;;  %4839 = vmatmul.msk.f32.vlgmr.msra.gmra.mxu1 %vm1401_vm1, %v5765_v34 }
 0xc93   : > { %3917 = vmatmul.f32.vlgmr.msrb.gmra.mxu2 %v3893_v4  ;;  %3940 = vmatmul.f32.vlgmr.msra.gmra.mxu3 %v3894_v43  ;;  %v4032_v4 = vld [vmem:[%s5333_s3 + $0x6a0] sm:$0xff]  ;;  %v4015_v43 = vld [vmem:[%s5333_s3 + $0x618] sm:$0xff] }
 0xc94   : > { %4238 = vmatpush.msrb.mxu0 %v4052_v1  ;;  %4262 = vmatpush.msrb.mxu1 %v4067_v58 }
 0xc95   : > { %4185 = vmatpush.msrb.mxu2 %v4027_v7  ;;  %4208 = vmatpush.msra.mxu3 %v4043_v12 }
 0xc96   : > { %v3821_v25 = vpop.f32.mrf.mxu2  ;;  %v3844_v56 = vpop.f32.mrf.mxu3  ;;  %4239 = vmatpush.msrb.mxu0 %v4051_v3  ;;  %4263 = vmatpush.msrb.mxu1 %v4066_v63 }
 0xc97   : > { %v3822_v57 = vadd.f32 %v3821_v25, %v3793_v30  ;;  %v3845_v59 = vadd.f32 %v3844_v56, %v3794_v33  ;;  %4186 = vmatpush.msrb.mxu2 %v4026_v15  ;;  %4209 = vmatpush.msra.mxu3 %v4042_v50  ;;  %v4037_v30 = vld [vmem:[%s5333_s3 + $0x6c8] sm:$0xff]  ;;  %v4020_v33 = vld [vmem:[%s5333_s3 + $0x640] sm:$0xff]  ;;  %v4014_v25 = vld [vmem:[%s5333_s3 + $0x610] sm:$0xff] }
 0xc98   : > { %4240 = vmatpush.msrb.mxu0 %v4050_v5  ;;  %4264 = vmatpush.msrb.mxu1 %v4065_v9  ;;  %v4030_v56 = vld [vmem:[%s5333_s3 + $0x690] sm:$0xff] }
 0xc99   : > { %v3897_v60 = vmax.f32 %v3822_v57, 0.0  ;;  %v3898_v53 = vmax.f32 %v3845_v59, 0.0  ;;  %4187 = vmatpush.msrb.mxu2 %v4025_v19  ;;  %4210 = vmatpush.msra.mxu3 %v4041_v20  ;;  %v4013_v57 = vld [vmem:[%s5333_s3 + $0x608] sm:$0xff] }
 0xc9a   : > { %4838 = vmatmul.msk.f32.gmra.mxu0 %vm1401_vm1, %v5830_v23  ;;  %4840 = vmatmul.msk.f32.gmra.mxu1 %vm1401_vm1, %v5830_v23  ;;  %v4029_v59 = vld [vmem:[%s5333_s3 + $0x688] sm:$0xff] }
 0xc9b   : > { %3920 = vmatmul.f32.gmra.mxu2 %v3897_v60  ;;  %3943 = vmatmul.f32.gmra.mxu3 %v3898_v53  ;;  %v4079_v60 = vperm.slane %v4011_v55, 2  ;;  %v4080_v53 = vperm.slane %v4011_v55, 3 }
 0xc9c   : > { %4241 = vmatpush.msrb.mxu0 %v4049_v8  ;;  %4265 = vmatpush.msrb.mxu1 %v4064_v49 }
 0xc9d   : > { %4188 = vmatpush.msrb.mxu2 %v4024_v37  ;;  %4211 = vmatpush.msra.mxu3 %v4040_v24  ;;  %v4078_v37 = vperm.slane %v4011_v55, 1 }
 0xc9e   : > { %4242 = vmatpush.msrb.mxu0 %v4048_v46  ;;  %4266 = vmatpush.msrb.mxu1 %v4063_v14 }
 0xc9f   : > { %4189 = vmatpush.msrb.mxu2 %v4023_v27  ;;  %4212 = vmatpush.msra.mxu3 %v4039_v40 }
 0xca0   : > { %4243 = vmatpush.msrb.mxu0 %v4047_v13  ;;  %4267 = vmatpush.msrb.mxu1 %v4062_v18 }
 0xca1   : > { %4190 = vmatpush.msrb.mxu2 %v4022_v28  ;;  %4213 = vmatpush.msra.mxu3 %v4038_v29 }
 0xca2   : > { %4244 = vmatpush.msrb.mxu0 %v4046_v16  ;;  %4268 = vmatpush.msrb.mxu1 %v4061_v22  ;;  %v4077_v22 = vperm.slane %v4011_v55, 0 }
 0xca3   : > { %4833 = vmatmul.msk.f32.vlgmr.msra.gmra.mxu2 %vm1401_vm1, %v5765_v34  ;;  %4835 = vmatmul.msk.f32.vlgmr.msrb.gmra.mxu3 %vm1401_vm1, %v5765_v34 }
 0xca4   : > { %4245 = vmatpush.msrb.mxu0 %v4045_v21  ;;  %4269 = vmatpush.msrb.mxu1 %v4060_v26 }
 0xca5   : > { %4191 = vmatpush.msrb.mxu2 %v4021_v54  ;;  %4214 = vmatpush.msra.mxu3 %v4037_v30 }
 0xca6   : > { %4246 = vmatpush.msrb.mxu0 %v4044_v47 }
 0xca7   : > { %4192 = vmatpush.msrb.mxu2 %v4020_v33  ;;  %4215 = vmatpush.msra.mxu3 %v4036_v6 }
 0xca9   : > { %4193 = vmatpush.msrb.mxu2 %v4019_v42  ;;  %4216 = vmatpush.msra.mxu3 %v4035_v11 }
 0xcab   : > { %4834 = vmatmul.msk.f32.gmra.mxu2 %vm1401_vm1, %v5830_v23  ;;  %4836 = vmatmul.msk.f32.gmra.mxu3 %vm1401_vm1, %v5830_v23 }
 0xcac   : > { %4194 = vmatpush.msrb.mxu2 %v4018_v38  ;;  %4217 = vmatpush.msra.mxu3 %v4034_v39 }
 0xcae   : > { %4195 = vmatpush.msrb.mxu2 %v4017_v17  ;;  %4218 = vmatpush.msra.mxu3 %v4033_v48 }
 0xcb0   : > { %4196 = vmatpush.msrb.mxu2 %v4016_v41  ;;  %4219 = vmatpush.msra.mxu3 %v4032_v4 }
 0xcb2   : > { %4197 = vmatpush.msrb.mxu2 %v4015_v43  ;;  %4220 = vmatpush.msra.mxu3 %v4031_v44 }
 0xcb4   : > { %4198 = vmatpush.msrb.mxu2 %v4014_v25  ;;  %4221 = vmatpush.msra.mxu3 %v4030_v56 }
 0xcb6   : > { %4199 = vmatpush.msrb.mxu2 %v4013_v57  ;;  %4222 = vmatpush.msra.mxu3 %v4029_v59 }
 0xcb8   : > { %4200 = vmatpush.msrb.mxu2 %v4012_v61  ;;  %4223 = vmatpush.msra.mxu3 %v4028_v62 }
 0xcff   : > { %v3964_v31 = vpop.f32.mrf.mxu0  ;;  %v3987_v36 = vpop.f32.mrf.mxu1 }
 0xd07   : > { %v3967_v45 = vpop.f32.mrf.mxu0  ;;  %v3990_v51 = vpop.f32.mrf.mxu1 }
 0xd0f   : > { %v4148_v32 = vpop.f32.mrf.mxu0  ;;  %v4171_v0 = vpop.f32.mrf.mxu1 }
 0xd10   : > { %v4149_v1 = vadd.f32 %v4148_v32, %v4079_v60  ;;  %v4172_v2 = vadd.f32 %v4171_v0, %v4080_v53 }
 0xd12   : > { %v4179_v3 = vmax.f32 %v4149_v1, 0.0  ;;  %v4180_v58 = vmax.f32 %v4172_v2, 0.0 }
 0xd14   : > { %4247 = vmatmul.f32.vlgmr.msrb.gmra.mxu0 %v4179_v3  ;;  %4270 = vmatmul.f32.vlgmr.msrb.gmra.mxu1 %v4180_v58 }
 0xd16   : > { %v3918_v5 = vpop.f32.mrf.mxu2  ;;  %v3941_v63 = vpop.f32.mrf.mxu3 }
 0xd17   : > { %v3942_v8 = vadd.f32 %v3941_v63, %v3918_v5  ;;  %v4151_v9 = vpop.f32.mrf.mxu0  ;;  %v4174_v46 = vpop.f32.mrf.mxu1 }
 0xd18   : > { %v4152_v49 = vadd.f32 %v4151_v9, %v4079_v60  ;;  %v4175_v7 = vadd.f32 %v4174_v46, %v4080_v53 }
 0xd19   : > { %v3965_v12 = vadd.f32 %v3964_v31, %v3942_v8 }
 0xd1a   : > { %v4183_v13 = vmax.f32 %v4152_v49, 0.0  ;;  %v4184_v14 = vmax.f32 %v4175_v7, 0.0 }
 0xd1b   : > { %v3988_v15 = vadd.f32 %v3987_v36, %v3965_v12 }
 0xd1c   : > { %4250 = vmatmul.f32.gmra.mxu0 %v4183_v13  ;;  %4273 = vmatmul.f32.gmra.mxu1 %v4184_v14 }
 0xd1d   : > { %v3993_v50 = vadd.f32 %v3988_v15, %v6099_v52 }
 0xd1e   : > { %v3921_v16 = vpop.f32.mrf.mxu2  ;;  %v3944_v18 = vpop.f32.mrf.mxu3 }
 0xd1f   : > { %v3945_v19 = vadd.f32 %v3944_v18, %v3921_v16  ;;  %v4936_v18 = vld [vmem:[%s1376_s18] ss:$0 sm:$0xff] }
 0xd21   : > { %v3968_v20 = vadd.f32 %v3967_v45, %v3945_v19 }
 0xd23   : > { %v3991_v21 = vadd.f32 %v3990_v51, %v3968_v20 }
 0xd25   : > { %v3994_v24 = vadd.f32 %v3991_v21, %v6108_v35 }
 0xd26   : > { %v4102_v47 = vpop.f32.mrf.mxu2  ;;  %v4125_v26 = vpop.f32.mrf.mxu3 }
 0xd27   : > { %v4103_v27 = vadd.f32 %v4102_v47, %v4077_v22  ;;  %v4126_v40 = vadd.f32 %v4125_v26, %v4078_v37 }
 0xd29   : > { %v4177_v28 = vmax.f32 %v4103_v27, 0.0  ;;  %v4178_v29 = vmax.f32 %v4126_v40, 0.0 }
 0xd2b   : > { %4201 = vmatmul.f32.vlgmr.msrb.gmra.mxu2 %v4177_v28  ;;  %4224 = vmatmul.f32.vlgmr.msra.gmra.mxu3 %v4178_v29 }
 0xd2e   : > { %v4105_v54 = vpop.f32.mrf.mxu2  ;;  %v4128_v30 = vpop.f32.mrf.mxu3 }
 0xd2f   : > { %v4106_v52 = vadd.f32 %v4105_v54, %v4077_v22  ;;  %v4129_v33 = vadd.f32 %v4128_v30, %v4078_v37 }
 0xd31   : > { %v4181_v6 = vmax.f32 %v4106_v52, 0.0  ;;  %v4182_v42 = vmax.f32 %v4129_v33, 0.0 }
 0xd33   : > { %4204 = vmatmul.f32.gmra.mxu2 %v4181_v6  ;;  %4227 = vmatmul.f32.gmra.mxu3 %v4182_v42 }
 0xd91   : > { %v4248_v11 = vpop.f32.mrf.mxu0  ;;  %v4271_v38 = vpop.f32.mrf.mxu1 }
 0xd99   : > { %v4251_v45 = vpop.f32.mrf.mxu0  ;;  %v4274_v25 = vpop.f32.mrf.mxu1 }
 0xdae   : > { %v4202_v31 = vpop.f32.mrf.mxu2  ;;  %v4225_v36 = vpop.f32.mrf.mxu3 }
 0xdaf   : > { %v4226_v35 = vadd.f32 %v4225_v36, %v4202_v31 }
 0xdb1   : > { %v4249_v39 = vadd.f32 %v4248_v11, %v4226_v35 }
 0xdb3   : > { %v4272_v17 = vadd.f32 %v4271_v38, %v4249_v39 }
 0xdb5   : > { %v4277_v48 = vadd.f32 %v4272_v17, %v3993_v50 }
 0xdb6   : > { %v4205_v41 = vpop.f32.mrf.mxu2  ;;  %v4228_v4 = vpop.f32.mrf.mxu3 }
 0xdb7   : > { %v4229_v43 = vadd.f32 %v4228_v4, %v4205_v41  ;;  %v4279_v44 = vadd.f32 %v4277_v48, %v5765_v34 }
 0xdb9   : > { %v4252_v51 = vadd.f32 %v4251_v45, %v4229_v43  ;;  %v4283_v55 = vsel %vm1401_vm1, %v4279_v44, 0.0 }
 0xdba   : > { %4284 = vadd.xlane.f32.xlu0 %v4283_v55 }
 0xdbb   : > { %v4275_v56 = vadd.f32 %v4274_v25, %v4252_v51 }
 0xdbd   : > { %v4278_v57 = vadd.f32 %v4275_v56, %v3994_v24 }
 0xdbf   : > { %v4280_v59 = vadd.f32 %v4278_v57, %v5830_v23 }
 0xdc1   : > { %v4286_v60 = vsel %vm1401_vm1, %v4280_v59, 0.0 }
 0xdc2   : > { %4287 = vadd.xlane.f32.xlu2 %v4286_v60 }
 0xe2d   : > { %v4285_v53 = vpop.xlane.xlu0 %4284 }
 0xe2e   : > { %v4289_v61 = vmul.f32 %v4285_v53, %v5538_v10 }
 0xe30   : > { %v4291_v62 = vsub.f32 %v4279_v44, %v4289_v61 }
 0xe32   : > { %v4293_v32 = vmul.f32 %v4291_v62, %v4291_v62 }
 0xe34   : > { %v4295_v34 = vsel %vm1401_vm1, %v4293_v32, 0.0 }
 0xe35   : > { %4296 = vadd.xlane.f32.xlu1 %v4295_v34  ;;  %v4288_v0 = vpop.xlane.xlu2 %4287 }
 0xe36   : > { %v4290_v1 = vmul.f32 %v4288_v0, %v5538_v10 }
 0xe38   : > { %v4292_v2 = vsub.f32 %v4280_v59, %v4290_v1 }
 0xe3a   : > { %v4294_v3 = vmul.f32 %v4292_v2, %v4292_v2 }
 0xe3c   : > { %v4298_v58 = vsel %vm1401_vm1, %v4294_v3, 0.0 }
 0xe3d   : > { %4299 = vadd.xlane.f32.xlu0 %v4298_v58 }
 0xea8   : > { %v4297_v23 = vpop.xlane.xlu1 %4296 }
 0xea9   : > { %v4301_v5 = vmul.f32 %v4297_v23, %v5538_v10 }
 0xeab   : > { %v4303_v63 = vadd.f32 1e-05, %v4301_v5 }
 0xead   : > { %5012 = vrsqrt.f32 %v4303_v63  ;;  %vm4311_vm0 = vweird.f32 %v4303_v63 }
 0xeb0   : > { %v4300_v8 = vpop.xlane.xlu0 %4299 }
 0xeb1   : > { %v4302_v9 = vmul.f32 %v4300_v8, %v5538_v10  ;;  %v4937_v10 = vld [vmem:[%s1379_s15] ss:$0 sm:$0xff] }
 0xeb3   : > { %v5013_v46 = vpop.eup %5012  ;;  %v4304_v49 = vadd.f32 1e-05, %v4302_v9 }
 0xeb4   : > { %v4306_v7 = vmul.f32 %v5013_v46, %v4303_v63  ;;  %vm4312_vm15 = vweird.f32 %v5013_v46 }
 0xeb5   : > { %5014 = vrsqrt.f32 %v4304_v49  ;;  %vm4313_vm3 = vmor %vm4311_vm0, %vm4312_vm15  ;;  %vm4321_vm5 = vweird.f32 %v4304_v49 }
 0xeb6   : > { %v4307_v12 = vmul.f32 %v5013_v46, %v4306_v7 }
 0xeb8   : > { %v4308_v13 = vmul.f32 0.5, %v4307_v12 }
 0xeba   : > { %v4309_v14 = vsub.f32 1.5, %v4308_v13 }
 0xebb   : > { %v5015_v15 = vpop.eup %5014 }
 0xebc   : > { %v4310_v50 = vmul.f32 %v5013_v46, %v4309_v14  ;;  %v4316_v16 = vmul.f32 %v5015_v15, %v4304_v49  ;;  %vm4322_vm4 = vweird.f32 %v5015_v15 }
 0xebd   : > { %vm4323_vm6 = vmor %vm4321_vm5, %vm4322_vm4 }
 0xebe   : > { %v4314_v19 = vsel %vm4313_vm3, %v5013_v46, %v4310_v50  ;;  %v4317_v20 = vmul.f32 %v5015_v15, %v4316_v16 }
 0xebf   : > { %v4325_v21 = vmul.f32 %v4314_v19, %v4291_v62 }
 0xec0   : > { %v4318_v22 = vmul.f32 0.5, %v4317_v20 }
 0xec1   : > { %v4330_v37 = vmul.f32 %v4936_v18, %v4325_v21 }
 0xec2   : > { %v4319_v24 = vsub.f32 1.5, %v4318_v22 }
 0xec3   : > { %v4335_v47 = vadd.f32 %v4937_v10, %v4330_v37 }
 0xec4   : > { %v4320_v26 = vmul.f32 %v5015_v15, %v4319_v24 }
 0xec5   : > { %4337 = vst.msk [vmem:[#allocation2] sm:$0xff] %vm1401_vm1, %v4335_v47 }
 0xec6   : > { %v4324_v27 = vsel %vm4323_vm6, %v5015_v15, %v4320_v26 }
 0xec7   : > { %v4326_v40 = vmul.f32 %v4324_v27, %v4292_v2 }
 0xec9   : > { %v4331_v28 = vmul.f32 %v4936_v18, %v4326_v40  ;;  %4342 = sbr.rel (%p4841_p5) target bundleno = 3928 (0xf58), region = 156 }
 0xecb   : > { %v4336_v29 = vadd.f32 %v4937_v10, %v4331_v28 }
 0xecd   : > { %4338 = vst.msk [vmem:[#allocation2 + $0x8] sm:$0xff] %vm1401_vm1, %v4336_v29 }
 0xece   : > { %v4346_v54 = vld [vmem:[%s6347_s6 + $0x18] sm:$0xff]  ;;  %v4345_v30 = vld [vmem:[%s6347_s6 + $0x10] sm:$0xff]  ;;  %v4344_v52 = vld [vmem:[%s6347_s6 + $0x8] sm:$0xff] }
 0xecf   : > { %4369 = vmatpush.msra.mxu0 %v4346_v54  ;;  %4862 = vmatpush.msra.mxu1 %v4346_v54  ;;  %v4343_v33 = vld [vmem:[%s6347_s6] sm:$0xff] }
 0xed0   : > { %v5016_v6 = vld [vmem:[%s6348_s27] ss:$0 sm:$0xff] }
 0xed1   : > { %4370 = vmatpush.msra.mxu0 %v4345_v30  ;;  %4863 = vmatpush.msra.mxu1 %v4345_v30 }
 0xed3   : > { %4371 = vmatpush.msra.mxu0 %v4344_v52  ;;  %4864 = vmatpush.msra.mxu1 %v4344_v52 }
 0xed5   : > { %4372 = vmatpush.msra.mxu0 %v4343_v33  ;;  %4865 = vmatpush.msra.mxu1 %v4343_v33 }
 0xed6   : > { %4842 = vmatmul.msk.f32.vlgmr.msra.gmra.mxu0 %vm1401_vm1, %v4335_v47  ;;  %4843 = vmatmul.msk.f32.vlgmr.msra.gmra.mxu1 %vm1401_vm1, %v4336_v29 }
 0xf53   : > { %v4374_v42 = vpop.f32.mrf.mxu0  ;;  %v4377_v11 = vpop.f32.mrf.mxu1 }
 0xf54   : > { %v4375_v31 = vadd.f32 %v5016_v6, %v4374_v42  ;;  %v4378_v36 = vadd.f32 %v5016_v6, %v4377_v11 }
 0xf56   : > { %4380 = vst [vmem:[#allocation3] sm:$0xff] %v4375_v31 }
 0xf57   : > { %4381 = vst [vmem:[#allocation3 + $0x8] sm:$0xff] %v4378_v36 }
 0xf58 PF: > { %s6349_s28 = sld [smem:[#allocation38_spill]]  ;;  %s5096_s15 = smov [#allocation3]  }
 0xf59   : > { %s6350_s0 = sld [smem:[#allocation36_spill]]  ;;  %s4387_s18 = sshll.u32 %s5096_s15, 4  ;;  %s4388_s18 = int_to_ptr.vmem [resolvable:$true] %s4387_s18 }
 0xf5e   : > { %p4870_p6 = scmp.eq.s32.totalorder %s6349_s28, 1 }
 0xf5f   : > { %s4389_s12 = sshll.u32 %s6350_s0, 4  ;;  %s5037_s21 = scalar_lea.hbm %s6350_s0, 16  ;;  %s4390_s12 = int_to_ptr.hbm [resolvable:$true] %s4389_s12 }
 0xf60   : > { %s5031_s7 = sshra.s32 %s4390_s12, 4  ;;  %s5032_s7 = int_to_ptr.hbm [resolvable:$true] %s5031_s7 }
 0xf61   : > { %s5033_s13 = scalar_lea.hbm %s5032_s7, 16  ;;  %p5038_p10 = scmp.lt.s32.totalorder %s5032_s7, %s6350_s0 }
 0xf62   : > { %p5034_p7 = scmp.ne.s32.totalorder %s5032_s7, %s5033_s13  ;;  %p5039_p11 = scmp.lt.s32.totalorder %s5037_s21, %s5033_s13 }
 0xf64   : > { %p5035_p8 = pnand %p5034_p7, %p4870_p6  ;;  %p5040_p12 = por %p5039_p11, %p5038_p10 }
 0xf66   : > { %p5036_p9 = pneg %p5035_p8 }
 0xf68   : > { %p5041_p13 = pnand %p5040_p12, %p5036_p9 }
 0xf6a   : > { %5044 = shalt.err (!%p5041_p13)
}
 0xf6b   : > { %s5097_s11 = smov 128  }
 0xf6c   : > { %4867 = dma.vmem_to_hbm [thread:$0]  (%p4870_p6), %s4388_s18, 256, %s4390_s12, [#allocation4], %s5097_s11, %s5097_s11, %s5092_s23  }
 0xf6d   : > { %5050 = dma.done.wait (%p4870_p6), [#allocation4], 256  }
 0xf6e   : > { %5052 = vsyncadd (%p4870_p6), [#allocation4], 4294967040 }
 0xf6f PF: > { %s6351_s16 = sld [smem:[#allocation37_spill]] }
 0xf75   : > { %s76_s28 = sadd.s32 1, %s6351_s16  }
 0xf76   : > { %p73_p0 = scmp.ge.s32.totalorder %s76_s28, 4  }
 0xf78   :  { %75 = sbr.rel (!%p73_p0) target bundleno = 75 (0x4b), region = 290 }
 0xf7d   :  { %4406 = vsyncpa [#allocation4], 1 }
 0xf7e   :  { %4408 = vsyncpa [#allocation4 + $0x1], 1 }

</bundles_post_ra>
